<compile_context>
chip_gen: v6e
topology: v6e:2x2x1
jax: 0.10.0
libtpu: 0.0.40
codegen_flags: <defaults>
</compile_context>

<pallas_src>
import functools
import math

import numpy as np

import jax
import jax.numpy as jnp
from jax.experimental import pallas as pl
from jax.experimental.pallas import tpu as pltpu

_MIB = 1024 * 1024


def _round_up(a, b):
    return -(-a // b) * b


def _vmem_limits():
    """(physical VMEM bytes, per-kernel scoped limit we request)."""
    try:
        phys = int(pltpu.get_tpu_info().vmem_capacity_bytes)
    except Exception:
        phys = 128 * _MIB
    # v5e/v6e: 128 MiB physical -> 64 MiB per kernel.
    # v7x:      64 MiB physical -> ~38 MiB (double buffers + scratch headroom).
    limit = min(64 * _MIB, int(phys * 0.6))
    return phys, limit


def _weight_spec(block_shape, index_map):
    """BlockSpec for a grid-invariant (constant) operand: single-buffer it."""
    try:
        return pl.BlockSpec(block_shape, index_map, pipeline_mode=pl.Buffered(1))
    except Exception:  # older jax without pipeline_mode support
        return pl.BlockSpec(block_shape, index_map)


def _fit_tc(nc, per_row_bytes, fixed_bytes, budget, cap=1024):
    """Largest N*C tile (multiple of 8) whose footprint fits the budget."""
    avail = budget - fixed_bytes
    if avail <= 0:
        return 0
    tc = (avail // max(per_row_bytes, 1)) // 8 * 8
    tc = min(tc, cap, _round_up(nc, 8))
    if nc >= 16:
        # keep >=2 grid steps so v7x's two TensorCores both get work
        tc = min(tc, _round_up(-(-nc // 2), 8))
    if tc >= 256:
        tc = (tc // 128) * 128  # full MXU passes in the M dimension
    return tc


# ---------------------------------------------------------------------------
# Kernel bodies
# ---------------------------------------------------------------------------
def _kron_kernel(x_ref, at_ref, o_ref):
    # x: (tc, H*W), at: (H*W, OH*OW), o: (tc, OH*OW) -- one MXU matmul with a
    # lane-dense output block -> unmasked vector stores.
    o_ref[...] = jnp.dot(
        x_ref[...], at_ref[...], preferred_element_type=jnp.float32
    ).astype(o_ref.dtype)


def _sep_kernel(x_ref, aht_ref, awt_ref, o_ref):
    # x: (tc, H, W), ahT: (H, toh), awT: (W, OW), o: (tc, toh, OW).
    # Both einsums already produce their outputs in the requested dim order,
    # so no in-kernel transposes are generated.
    t = jnp.einsum("bhw,hO->bwO", x_ref[...], aht_ref[...],
                   preferred_element_type=jnp.float32)          # (tc, W, toh)
    out = jnp.einsum("bwO,wP->bOP", t, awt_ref[...],
                     preferred_element_type=jnp.float32)        # (tc, toh, OW)
    o_ref[...] = out.astype(o_ref.dtype)


def _nearest_repl_kernel(x_ref, o_ref, *, sh, sw):
    # Pure data replication (nearest, integer scale): no MXU, no weights.
    x = x_ref[...]                                              # (tc, th, W)
    tc, th, w = x.shape
    y = jnp.broadcast_to(x[:, :, None, :, None], (tc, th, sh, w, sw))
    o_ref[...] = y.reshape(tc, th * sh, w * sw)


# ---------------------------------------------------------------------------
# Host-side interpolation matrices (match PyTorch F.interpolate semantics)
# ---------------------------------------------------------------------------
def _interp_matrix(in_size, out_size, mode):
    """(out_size, in_size) float32 matrix reproducing F.interpolate weights."""
    if mode == "nearest":
        src = np.floor(np.arange(out_size) * (in_size / out_size)).astype(np.int64)
        src = np.clip(src, 0, in_size - 1)
        m = np.zeros((out_size, in_size), np.float32)
        m[np.arange(out_size), src] = 1.0
        return m
    if mode in ("bilinear", "linear"):
        # align_corners=False (PyTorch default)
        scale = in_size / out_size
        src = (np.arange(out_size, dtype=np.float64) + 0.5) * scale - 0.5
        src = np.clip(src, 0.0, in_size - 1)
        lo = np.floor(src).astype(np.int64)
        hi = np.minimum(lo + 1, in_size - 1)
        frac = (src - lo).astype(np.float32)
        m = np.zeros((out_size, in_size), np.float32)
        m[np.arange(out_size), lo] += 1.0 - frac
        m[np.arange(out_size), hi] += frac
        return m
    # TODO(synk): 'bicubic' / 'area' / 'trilinear' modes not implemented.
    raise NotImplementedError(f"mode={mode!r} not supported")


# ---------------------------------------------------------------------------
# Module
# ---------------------------------------------------------------------------
class Interpolate:
    """JAX/Pallas equivalent of the PyTorch Interpolate module (NCHW)."""

    # Fused kron matmul only while it stays HBM-roofline bound on every TPU
    # generation (dense-kron arithmetic intensity ~ H*W FLOP/B; v5e critical
    # intensity ~240, v7x ~310), and while the kron matrix itself is small.
    _KRON_HW_MAX = 256
    _KRON_BYTES_MAX = 4 * _MIB

    def __init__(self, scale_factor, mode, _force_path=None):
        self.factor = scale_factor
        self.mode = mode
        self._force_path = _force_path  # None | "kron" | "separable" (tests)

    def __call__(self, x):
        return self.forward(x)

    # -- public forward -----------------------------------------------------
    def forward(self, x):
        N, C, H, W = x.shape
        OH = int(math.floor(H * self.factor))
        OW = int(math.floor(W * self.factor))
        nc = N * C

        phys_vmem, vmem_limit = _vmem_limits()
        budget = vmem_limit - 2 * _MIB  # headroom for compiler-internal scratch

        f = float(self.factor)
        is_int_up = f >= 1.0 and f == float(int(f))

        out = None
        if self.mode == "nearest" and is_int_up and self._force_path is None:
            try:
                out = self._nearest_replicate(x.reshape(nc, H, W), nc, H, W,
                                              OH, OW, budget, vmem_limit,
                                              phys_vmem)
            except Exception:
                # TODO(synk): drop this fallback once in-kernel
                # broadcast+reshape replication is verified on all Mosaic
                # versions; the matmul path below is the safe equivalent.
                out = None
        if out is None:
            out = self._matmul_path(x.reshape(nc, H, W), nc, H, W, OH, OW,
                                    x.dtype, budget, vmem_limit, phys_vmem)
        return out.reshape(N, C, OH, OW)

    # -- nearest + integer scale: replication kernel -------------------------
    def _nearest_replicate(self, x2, nc, H, W, OH, OW, budget, vmem_limit,
                           phys_vmem):
        sh, sw = OH // H, OW // W
        item = np.dtype(x2.dtype).itemsize

        # input-row block th (multiple of 8 or full H), then N*C tile tc
        th_cands = [H]
        t = (H // 2 // 8) * 8
        while t >= 8:
            th_cands.append(t)
            t = (t // 2 // 8) * 8
        best = (H, 0)
        per_row = 0
        for th in th_cands:
            per_row = (2 * th * W + 4 * th * sh * OW) * item  # in/out dbuf + temp
            tc = _fit_tc(nc, per_row, 0, budget)
            if tc > best[1]:
                best = (th, tc)
            if tc >= 64:
                break
        th, tc = best
        per_row = (2 * th * W + 4 * th * sh * OW) * item
        if tc < 8:
            tc = 8
            vmem_limit = min(int(phys_vmem * 0.9),
                             max(vmem_limit, tc * per_row + 4 * _MIB))

        grid = (pl.cdiv(nc, tc), pl.cdiv(H, th))
        kern = functools.partial(_nearest_repl_kernel, sh=sh, sw=sw)
        bytes_accessed = nc * (H * W + OH * OW) * item
        return pl.pallas_call(
            kern,
            out_shape=jax.ShapeDtypeStruct((nc, OH, OW), x2.dtype),
            grid=grid,
            in_specs=[pl.BlockSpec((tc, th, W), lambda i, j: (i, j, 0))],
            out_specs=pl.BlockSpec((tc, th * sh, OW), lambda i, j: (i, j, 0)),
            compiler_params=pltpu.CompilerParams(
                dimension_semantics=("parallel", "parallel"),
                vmem_limit_bytes=int(vmem_limit)),
            cost_estimate=pl.CostEstimate(
                flops=0, transcendentals=0, bytes_accessed=int(bytes_accessed)),
        )(x2)

    # -- general path: fused kron matmul or separable two-matmul -------------
    def _matmul_path(self, x, nc, H, W, OH, OW, out_dtype, budget, vmem_limit,
                     phys_vmem):
        # keep bf16 in bf16 (half the HBM traffic), everything else f32
        if x.dtype in (jnp.bfloat16, jnp.float32):
            xin = x
        else:
            xin = x.astype(jnp.float32)
        ii = np.dtype(xin.dtype).itemsize
        oi = np.dtype(out_dtype).itemsize

        ah = _interp_matrix(H, OH, self.mode)   # (OH, H) f32, numpy constant
        aw = _interp_matrix(W, OW, self.mode)   # (OW, W) f32
        # nearest weights are exact 0/1 -> match the input dtype for the fast
        # single-pass MXU path; bilinear weights stay f32 (mixed-precision dot)
        # so non-dyadic scale factors keep full precision.
        w_dtype = xin.dtype if self.mode == "nearest" else jnp.float32
        wi = np.dtype(w_dtype).itemsize

        use_kron = (H * W <= self._KRON_HW_MAX
                    and (H * W) * (OH * OW) * wi <= self._KRON_BYTES_MAX)
        if self._force_path == "kron":
            use_kron = True
        elif self._force_path == "separable":
            use_kron = False

        if use_kron:
            a_bytes = (H * W) * (OH * OW) * wi
            per_row = 2 * H * W * ii + 2 * OH * OW * oi + OH * OW * 4
            tc = _fit_tc(nc, per_row, 2 * a_bytes, budget)
            if tc >= 8:
                at = jnp.asarray(np.kron(ah, aw).T, dtype=w_dtype)  # (H*W, OH*OW)
                x2 = xin.reshape(nc, H * W)
                flops = 2 * nc * (H * W) * (OH * OW)
                bytes_accessed = nc * (H * W * ii + OH * OW * oi) + a_bytes
                out = pl.pallas_call(
                    _kron_kernel,
                    out_shape=jax.ShapeDtypeStruct((nc, OH * OW), out_dtype),
                    grid=(pl.cdiv(nc, tc),),
                    in_specs=[
                        pl.BlockSpec((tc, H * W), lambda i: (i, 0)),
                        _weight_spec((H * W, OH * OW), lambda i: (0, 0)),
                    ],
                    out_specs=pl.BlockSpec((tc, OH * OW), lambda i: (i, 0)),
                    compiler_params=pltpu.CompilerParams(
                        dimension_semantics=("parallel",),
                        vmem_limit_bytes=int(vmem_limit)),
                    cost_estimate=pl.CostEstimate(
                        flops=int(flops), transcendentals=0,
                        bytes_accessed=int(bytes_accessed)),
                )(x2, at)
                return out.reshape(nc, OH, OW)
            # fused block cannot fit VMEM even at tc=8 -> separable below

        # ---- separable path: out = A_h @ x @ A_w^T, tiled over OH ----------
        ahT = jnp.asarray(ah.T, dtype=w_dtype)   # (H, OH)
        awT = jnp.asarray(aw.T, dtype=w_dtype)   # (W, OW)

        toh_cands = [OH]                          # toh must be OH or 128*k
        t = (OH // 2) // 128 * 128
        while t >= 128:
            toh_cands.append(t)
            t = (t // 2) // 128 * 128
        best = (OH, 0)
        for toh in toh_cands:
            per_row = (2 * H * W * ii + 2 * toh * OW * oi
                       + (W * toh + toh * OW) * 4)            # f32 intermediates
            fixed = (2 * H * toh + W * OW) * wi
            tc = _fit_tc(nc, per_row, fixed, budget)
            if tc > best[1]:
                best = (toh, tc)
            if tc >= 64:
                break
        toh, tc = best
        per_row = (2 * H * W * ii + 2 * toh * OW * oi + (W * toh + toh * OW) * 4)
        fixed = (2 * H * toh + W * OW) * wi
        if tc < 8:
            tc = 8
            vmem_limit = min(int(phys_vmem * 0.9),
                             max(vmem_limit, fixed + tc * per_row + 4 * _MIB))

        grid = (pl.cdiv(nc, tc), pl.cdiv(OH, toh))
        flops = 2 * nc * (OH * H * W + OH * W * OW)
        bytes_accessed = (nc * (H * W * ii + OH * OW * oi)
                          + (H * OH + W * OW) * wi)
        return pl.pallas_call(
            _sep_kernel,
            out_shape=jax.ShapeDtypeStruct((nc, OH, OW), out_dtype),
            grid=grid,
            in_specs=[
                # x stays resident in VMEM across the inner OH axis
                pl.BlockSpec((tc, H, W), lambda i, j: (i, 0, 0)),
                pl.BlockSpec((H, toh), lambda i, j: (0, j)),
                _weight_spec((W, OW), lambda i, j: (0, 0)),
            ],
            out_specs=pl.BlockSpec((tc, toh, OW), lambda i, j: (i, j, 0)),
            compiler_params=pltpu.CompilerParams(
                dimension_semantics=("parallel", "arbitrary"),
                vmem_limit_bytes=int(vmem_limit)),
            cost_estimate=pl.CostEstimate(
                flops=int(flops), transcendentals=0,
                bytes_accessed=int(bytes_accessed)),
        )(xin, ahT, awT)


if __name__ == "__main__":
    key = jax.random.PRNGKey(0)
    x = jax.random.normal(key, (2, 4, 16, 16), dtype=jnp.float32)

    # nearest, scale 2 (typical text2img usage) -> replication path
    up_near = Interpolate(scale_factor=2, mode="nearest")
    y = jax.block_until_ready(up_near(x))
    assert y.shape == (2, 4, 32, 32), y.shape
    ref = jnp.repeat(jnp.repeat(x, 2, axis=2), 2, axis=3)
    assert jnp.allclose(y, ref, atol=1e-6), "nearest(x2) mismatch"

    # nearest, non-integer scale 1.5 -> fused kron matmul path
    up_near15 = Interpolate(scale_factor=1.5, mode="nearest")
    y15 = jax.block_until_ready(up_near15(x))
    idx = np.clip(np.floor(np.arange(24) * (16 / 24)).astype(np.int32), 0, 15)
    ref15 = x[:, :, idx, :][:, :, :, idx]
    assert y15.shape == (2, 4, 24, 24), y15.shape
    assert jnp.allclose(y15, ref15, atol=1e-6), "nearest(x1.5) mismatch"

    # bilinear, scale 2 (align_corners=False, PyTorch default) -> kron path
    up_bil = Interpolate(scale_factor=2, mode="bilinear")
    yb = jax.block_until_ready(up_bil(x))
    ah = jnp.asarray(_interp_matrix(16, 32, "bilinear"))
    aw = jnp.asarray(_interp_matrix(16, 32, "bilinear"))
    refb = jnp.einsum("Oh,nchw,Pw->ncOP", ah, x, aw)
    assert jnp.allclose(yb, refb, atol=1e-5), "bilinear mismatch"

    # bf16 stays bf16 end-to-end (nearest replication is exact in bf16)
    xb = x.astype(jnp.bfloat16)
    ybf = jax.block_until_ready(up_near(xb))
    assert ybf.dtype == jnp.bfloat16, ybf.dtype
    refbf = jnp.repeat(jnp.repeat(xb, 2, axis=2), 2, axis=3)
    assert jnp.allclose(ybf.astype(jnp.float32), refbf.astype(jnp.float32),
                        atol=1e-2), "bf16 mismatch"

    # separable (large-spatial) path, forced for coverage + multi-block grid
    x2 = jax.random.normal(jax.random.PRNGKey(0), (4, 16, 32, 32),
                           dtype=jnp.float32)
    up_sep = Interpolate(scale_factor=2, mode="bilinear",
                         _force_path="separable")
    ys = jax.block_until_ready(up_sep(x2))
    ah2 = jnp.asarray(_interp_matrix(32, 64, "bilinear"))
    ref_s = jnp.einsum("Oh,nchw,Pw->ncOP", ah2, x2, ah2)
    assert ys.shape == (4, 16, 64, 64), ys.shape
    assert jnp.allclose(ys, ref_s, atol=1e-5), "separable mismatch"

    print("KERNEL_OK")
</pallas_src>

<mosaic_0001>
module attributes {stable_mosaic.version = 11 : i64} {
  func.func @_nearest_repl_kernel(%arg0: i32, %arg1: i32, %arg2: memref<8x16x16xf32, #tpu.memory_space<vmem>>, %arg3: memref<8x32x32xf32, #tpu.memory_space<vmem>>) attributes {dimension_semantics = [#tpu.dimension_semantics<parallel>, #tpu.dimension_semantics<parallel>], iteration_bounds = array<i64: 1, 1>, scalar_prefetch = 0 : i64, scratch_operands = 0 : i64, tpu.core_type = #tpu.core_type<tc>, window_params = [{transform_indices = @transform_0, window_bounds = array<i64: 8, 16, 16>}, {transform_indices = @transform_1, window_bounds = array<i64: 8, 32, 32>}]} {
    %c0 = arith.constant 0 : index
    %c0_0 = arith.constant 0 : index
    %c0_1 = arith.constant 0 : index
    %0 = vector.load %arg2[%c0, %c0_0, %c0_1] : memref<8x16x16xf32, #tpu.memory_space<vmem>>, vector<8x16x16xf32>
    %1 = vector.shape_cast %0 : vector<8x16x16xf32> to vector<8x16x1x16x1xf32>
    %2 = vector.shape_cast %1 : vector<8x16x1x16x1xf32> to vector<8x16x1x16x1xf32>
    %3 = vector.broadcast %2 : vector<8x16x1x16x1xf32> to vector<8x16x2x16x2xf32>
    %4 = vector.shape_cast %3 : vector<8x16x2x16x2xf32> to vector<8x32x32xf32>
    %c0_2 = arith.constant 0 : index
    %c0_3 = arith.constant 0 : index
    %c0_4 = arith.constant 0 : index
    %5 = vector.load %arg3[%c0_2, %c0_3, %c0_4] : memref<8x32x32xf32, #tpu.memory_space<vmem>>, vector<8x32x32xf32>
    tpu.vector_store %arg3[%c0_2, %c0_3, %c0_4], %4 {strides = array<i32>} : memref<8x32x32xf32, #tpu.memory_space<vmem>>, vector<8x32x32xf32>,
    return
  }
  func.func @transform_0(%arg0: i32, %arg1: i32) -> (i32, i32, i32) {
    %c0_i32 = arith.constant 0 : i32
    %c0_i32_0 = arith.constant 0 : i32
    return %arg0, %arg1, %c0_i32 : i32, i32, i32
  }
  func.func @transform_1(%arg0: i32, %arg1: i32) -> (i32, i32, i32) {
    %c0_i32 = arith.constant 0 : i32
    %c0_i32_0 = arith.constant 0 : i32
    return %arg0, %arg1, %c0_i32 : i32, i32, i32
  }
}

module attributes {stable_mosaic.version = 11 : i64} {
  func.func @_kron_kernel(%arg0: i32, %arg1: memref<8x256xf32, #tpu.memory_space<vmem>>, %arg2: memref<256x1024xf32, #tpu.memory_space<vmem>>, %arg3: memref<8x1024xf32, #tpu.memory_space<vmem>>) attributes {dimension_semantics = [#tpu.dimension_semantics<parallel>], iteration_bounds = array<i64: 1>, scalar_prefetch = 0 : i64, scratch_operands = 0 : i64, tpu.core_type = #tpu.core_type<tc>, window_params = [{transform_indices = @transform_0, window_bounds = array<i64: 8, 256>}, {pipeline_mode = #tpu.pipeline_mode<synchronous>, transform_indices = @transform_1, window_bounds = array<i64: 256, 1024>}, {transform_indices = @transform_2, window_bounds = array<i64: 8, 1024>}]} {
    %c0 = arith.constant 0 : index
    %c0_0 = arith.constant 0 : index
    %0 = vector.load %arg1[%c0, %c0_0] : memref<8x256xf32, #tpu.memory_space<vmem>>, vector<8x256xf32>
    %c0_1 = arith.constant 0 : index
    %c0_2 = arith.constant 0 : index
    %1 = vector.load %arg2[%c0_1, %c0_2] : memref<256x1024xf32, #tpu.memory_space<vmem>>, vector<256x1024xf32>
    %cst = arith.constant dense<0.000000e+00> : vector<8x1024xf32>
    %2 = tpu.matmul %0, %1, %cst {dimension_numbers = #tpu.dot_dimension_numbers<[1], [0], [0], [1], [0, 0, 1, 1], [], []>} : vector<8x256xf32>, vector<256x1024xf32>, vector<8x1024xf32> -> vector<8x1024xf32>
    %c0_3 = arith.constant 0 : index
    %c0_4 = arith.constant 0 : index
    %3 = vector.load %arg3[%c0_3, %c0_4] : memref<8x1024xf32, #tpu.memory_space<vmem>>, vector<8x1024xf32>
    tpu.vector_store %arg3[%c0_3, %c0_4], %2 {strides = array<i32>} : memref<8x1024xf32, #tpu.memory_space<vmem>>, vector<8x1024xf32>,
    return
  }
  func.func @transform_0(%arg0: i32) -> (i32, i32) {
    %c0_i32 = arith.constant 0 : i32
    %c0_i32_0 = arith.constant 0 : i32
    return %arg0, %c0_i32 : i32, i32
  }
  func.func @transform_1(%arg0: i32) -> (i32, i32) {
    %c0_i32 = arith.constant 0 : i32
    %c0_i32_0 = arith.constant 0 : i32
    %c0_i32_1 = arith.constant 0 : i32
    return %c0_i32, %c0_i32_0 : i32, i32
  }
  func.func @transform_2(%arg0: i32) -> (i32, i32) {
    %c0_i32 = arith.constant 0 : i32
    %c0_i32_0 = arith.constant 0 : i32
    return %arg0, %c0_i32 : i32, i32
  }
}

</mosaic_0001>

<bundles_post_ra>
// kernel: tpu_custom_call.1
= control target key start
LH: loop header
LB: loop body
LE: loop exit
PB: predicated region body
PF: predicated region fallthrough
CT: control target
= control target key end

     0   :  { %6 = vsyncpa [#allocation3], 0  ;;  %s18274_s0 = inlined_call_operand.hbm [shape: f32[8,16,16], index: 0, kind: input, shape index: {}]   ;;  %s18275_s1 = inlined_call_operand.hbm [shape: f32[8,32,32], index: 1, kind: output, shape index: {}]  }
   0x1   :  { %7 = vsyncpa [#allocation4], 0  ;;  %s10632_s6 = smov [#allocation2]  }
   0x2   :  { %s13_s7 = sshll.u32 %s10632_s6, 4  ;;  %s14_s7 = int_to_ptr.vmem [resolvable:$true] %s13_s7 }
   0x3   :  { %s10596_s8 = scalar_lea.vmem %s14_s7, 2048  ;;  %p10601_p1 = scmp.lt.s32.totalorder %s14_s7, %s14_s7 }
   0x4   :  { %p10597_p0 = scmp.ne.s32.totalorder %s14_s7, %s10596_s8  ;;  %p10602_p2 = scmp.lt.s32.totalorder %s10596_s8, %s10596_s8 }
   0x6   :  { %p10603_p3 = por %p10602_p2, %p10601_p1 }
   0x8   :  { %p10604_p4 = pnand %p10603_p3, %p10597_p0 }
   0xa   :  { %10607 = shalt.err (!%p10604_p4)
}
   0xb   :  { %s10633_s9 = smov 128   ;;  %s10634_s10 = smov 8  }
   0xc   :  { %19 = dma.hbm_to_vmem [thread:$0]  %s18274_s0, 2048, %s14_s7, [#allocation3], %s10633_s9, %s10633_s9, %s10634_s10  }
   0xd   :  { %10628 = dma.done.wait [#allocation3], 2048  }
   0xe   :  { %10629 = vsyncadd [#allocation3], 4294965248  ;;  %v39_v0 = vlaneseq  ;;  %v23_v4 = vld [vmem:[#allocation2] sm:$0xff]  ;;  %v24_v19 = vld [vmem:[#allocation2 + $0x8] sm:$0xff]  ;;  %v10635_v43 = vmov 1983009808  }
   0xf   :  { %v25_v28 = vld [vmem:[#allocation2 + $0x10] sm:$0xff]  ;;  %v26_v37 = vld [vmem:[#allocation2 + $0x18] sm:$0xff]  ;;  %v1450_v44 = vunpack.c.l.s4 %v10635_v43  ;;  %v10636_v50 = vmov 1934713408   ;;  %v10729_v57 = vld [vmem:[#allocation2 + $0x20] sm:$0xff]  ;;  %s10637_s0 = smov 2  }
  0x10   :  { %v10668_v1 = vshrl.u32 %v39_v0, 7  ;;  %v1482_v51 = vunpack.c.l.s4 %v10636_v50  ;;  %s10638_s13 = smov 4   ;;  %s10639_s14 = smov 6   ;;  %vm10023_vm0 = vcmask 15360   ;;  %vm10056_vm1 = vcmask 31744  }
  0x11   :  { %v1451_v48 = vunpack.c.0.s8 %v1450_v44  ;;  %s10640_s15 = smov 10   ;;  %s10641_s16 = smov 12   ;;  %vm10089_vm2 = vcmask 48128   ;;  %vm10122_vm3 = vcmask 64512   ;;  %vm10155_vm4 = vcmask 80896  }
  0x12   :  { %v10671_v2 = vsub.s32 1, %v10668_v1  ;;  %v10674_v3 = vsub.s32 0, %v10668_v1  ;;  %v10679_v7 = vsub.s32 2, %v10668_v1  ;;  %v10683_v9 = vsub.s32 3, %v10668_v1  ;;  %s10642_s17 = smov 14   ;;  %s10643_s18 = smov 16  }
  0x13   :  { %v10687_v11 = vsub.s32 4, %v10668_v1  ;;  %v10691_v13 = vsub.s32 5, %v10668_v1  ;;  %v10695_v15 = vsub.s32 6, %v10668_v1  ;;  %v10699_v17 = vsub.s32 7, %v10668_v1  ;;  %s10644_s19 = smov 18   ;;  %s10645_s20 = smov 20  }
  0x14   :  { %v53_v5 = vrot.slane %v23_v4, %v10671_v2  ;;  %v42_v6 = vrot.slane %v23_v4, %v10674_v3  ;;  %v64_v8 = vrot.slane %v23_v4, %v10679_v7  ;;  %v75_v10 = vrot.slane %v23_v4, %v10683_v9  ;;  %s10646_s21 = smov 22   ;;  %s10647_s22 = smov 24  }
  0x15   :  { %v86_v12 = vrot.slane %v23_v4, %v10687_v11  ;;  %v97_v14 = vrot.slane %v23_v4, %v10691_v13  ;;  %v108_v16 = vrot.slane %v23_v4, %v10695_v15  ;;  %v119_v18 = vrot.slane %v23_v4, %v10699_v17  ;;  %s10648_s23 = smov 26   ;;  %s10649_s24 = smov 28  }
  0x16   :  { %55 = vbcast.lane.b32.xlu1 %v53_v5, 256  ;;  %44 = vbcast.lane.b32.xlu0 %v42_v6, 256  ;;  %v130_v20 = vrot.slane %v24_v19, %v10674_v3  ;;  %v141_v21 = vrot.slane %v24_v19, %v10671_v2  ;;  %v152_v22 = vrot.slane %v24_v19, %v10679_v7  ;;  %v1483_v58 = vunpack.c.0.s8 %v1482_v51  ;;  %v10874_v51 = vld [vmem:[#allocation2 + $0x28] sm:$0xff]  ;;  %s10650_s25 = smov 30   ;;  %s10651_s26 = smov [#allocation5]  }
  0x17   :  { %v163_v23 = vrot.slane %v24_v19, %v10683_v9  ;;  %v174_v24 = vrot.slane %v24_v19, %v10687_v11  ;;  %v185_v25 = vrot.slane %v24_v19, %v10691_v13  ;;  %v196_v26 = vrot.slane %v24_v19, %v10695_v15  ;;  %s10556_s27 = sshll.u32 %s10651_s26, 4  ;;  %s10557_s27 = int_to_ptr.vmem [resolvable:$true] %s10556_s27 }
  0x18   :  { %v207_v27 = vrot.slane %v24_v19, %v10699_v17  ;;  %v218_v29 = vrot.slane %v25_v28, %v10674_v3  ;;  %v229_v30 = vrot.slane %v25_v28, %v10671_v2  ;;  %v240_v31 = vrot.slane %v25_v28, %v10679_v7  ;;  %s10608_s28 = scalar_lea.vmem %s10557_s27, 4096  ;;  %p10613_p6 = scmp.lt.s32.totalorder %s10557_s27, %s10557_s27 }
  0x19   :  { %v251_v32 = vrot.slane %v25_v28, %v10683_v9  ;;  %v262_v33 = vrot.slane %v25_v28, %v10687_v11  ;;  %v273_v34 = vrot.slane %v25_v28, %v10691_v13  ;;  %v284_v35 = vrot.slane %v25_v28, %v10695_v15  ;;  %p10609_p5 = scmp.ne.s32.totalorder %s10557_s27, %s10608_s28  ;;  %p10614_p7 = scmp.lt.s32.totalorder %s10608_s28, %s10608_s28 }
  0x1a   :  { %59 = vbcast.lane.b32.xlu1 %v53_v5, 264  ;;  %48 = vbcast.lane.b32.xlu0 %v42_v6, 264  ;;  %v295_v36 = vrot.slane %v25_v28, %v10699_v17  ;;  %v306_v38 = vrot.slane %v26_v37, %v10674_v3  ;;  %v317_v39 = vrot.slane %v26_v37, %v10671_v2  ;;  %vm10188_vm5 = vcmask 97280  }
  0x1b   :  { %v328_v40 = vrot.slane %v26_v37, %v10679_v7  ;;  %v339_v41 = vrot.slane %v26_v37, %v10683_v9  ;;  %v350_v42 = vrot.slane %v26_v37, %v10687_v11  ;;  %v361_v45 = vrot.slane %v26_v37, %v10691_v13  ;;  %p10615_p8 = por %p10614_p7, %p10613_p6 }
  0x1c   :  { %v372_v49 = vrot.slane %v26_v37, %v10695_v15  ;;  %v10726_v54 = vsub.s32 %v1451_v48, %v10668_v1  ;;  %v383_v56 = vrot.slane %v26_v37, %v10699_v17  ;;  %v394_v63 = vrot.slane %v10729_v57, %v10674_v3 }
  0x1d   :  { %v10735_v0 = vsub.s32 %v1483_v58, %v10668_v1  ;;  %v405_v19 = vrot.slane %v10729_v57, %v10671_v2  ;;  %vm10221_vm6 = vcmask 113664   ;;  %vm10254_vm7 = vcmask 130048   ;;  %p10616_p9 = pnand %p10615_p8, %p10609_p5 }
  0x1e   :  { %70 = vbcast.lane.b32.xlu1 %v64_v8, 264  ;;  %66 = vbcast.lane.b32.xlu0 %v64_v8, 256  ;;  %19325 = vst [vmem:[#allocation8_spill] sm:$0xff] %v10726_v54  ;;  %vm10287_vm8 = vcmask 146432   ;;  %vm10320_vm9 = vcmask 162816   ;;  %vm10353_vm10 = vcmask 179200  }
  0x1f   :  { %19326 = vst [vmem:[#allocation9_spill] sm:$0xff] %v10735_v0  ;;  %vm10386_vm11 = vcmask 195584   ;;  %vm10419_vm12 = vcmask 211968   ;;  %vm10452_vm13 = vcmask 228352   ;;  %vm10485_vm14 = vcmask 244736  }
  0x20   :  { %vm10518_vm15 = vcmask 261120  }
  0x22   :  { %81 = vbcast.lane.b32.xlu1 %v75_v10, 264  ;;  %77 = vbcast.lane.b32.xlu0 %v75_v10, 256 }
  0x26   :  { %92 = vbcast.lane.b32.xlu1 %v86_v12, 264  ;;  %88 = vbcast.lane.b32.xlu0 %v86_v12, 256 }
  0x2a   :  { %103 = vbcast.lane.b32.xlu1 %v97_v14, 264  ;;  %99 = vbcast.lane.b32.xlu0 %v97_v14, 256 }
  0x2e   :  { %114 = vbcast.lane.b32.xlu1 %v108_v16, 264  ;;  %110 = vbcast.lane.b32.xlu0 %v108_v16, 256 }
  0x32   :  { %125 = vbcast.lane.b32.xlu1 %v119_v18, 264  ;;  %121 = vbcast.lane.b32.xlu0 %v119_v18, 256 }
  0x36   :  { %136 = vbcast.lane.b32.xlu1 %v130_v20, 264  ;;  %132 = vbcast.lane.b32.xlu0 %v130_v20, 256 }
  0x3a   :  { %147 = vbcast.lane.b32.xlu1 %v141_v21, 264  ;;  %143 = vbcast.lane.b32.xlu0 %v141_v21, 256 }
  0x3e   :  { %158 = vbcast.lane.b32.xlu1 %v152_v22, 264  ;;  %154 = vbcast.lane.b32.xlu0 %v152_v22, 256 }
  0x42   :  { %169 = vbcast.lane.b32.xlu1 %v163_v23, 264  ;;  %165 = vbcast.lane.b32.xlu0 %v163_v23, 256 }
  0x46   :  { %180 = vbcast.lane.b32.xlu1 %v174_v24, 264  ;;  %176 = vbcast.lane.b32.xlu0 %v174_v24, 256 }
  0x4a   :  { %191 = vbcast.lane.b32.xlu1 %v185_v25, 264  ;;  %187 = vbcast.lane.b32.xlu0 %v185_v25, 256  ;;  %v416_v25 = vrot.slane %v10729_v57, %v10679_v7 }
  0x4e   :  { %202 = vbcast.lane.b32.xlu1 %v196_v26, 264  ;;  %198 = vbcast.lane.b32.xlu0 %v196_v26, 256 }
  0x52   :  { %213 = vbcast.lane.b32.xlu1 %v207_v27, 264  ;;  %209 = vbcast.lane.b32.xlu0 %v207_v27, 256 }
  0x56   :  { %224 = vbcast.lane.b32.xlu1 %v218_v29, 264  ;;  %220 = vbcast.lane.b32.xlu0 %v218_v29, 256 }
  0x5a   :  { %235 = vbcast.lane.b32.xlu1 %v229_v30, 264  ;;  %231 = vbcast.lane.b32.xlu0 %v229_v30, 256 }
  0x5e   :  { %246 = vbcast.lane.b32.xlu1 %v240_v31, 264  ;;  %242 = vbcast.lane.b32.xlu0 %v240_v31, 256 }
  0x62   :  { %257 = vbcast.lane.b32.xlu1 %v251_v32, 264  ;;  %253 = vbcast.lane.b32.xlu0 %v251_v32, 256 }
  0x66   :  { %268 = vbcast.lane.b32.xlu1 %v262_v33, 264  ;;  %264 = vbcast.lane.b32.xlu0 %v262_v33, 256 }
  0x6a   :  { %279 = vbcast.lane.b32.xlu1 %v273_v34, 264  ;;  %275 = vbcast.lane.b32.xlu0 %v273_v34, 256 }
  0x6e   :  { %290 = vbcast.lane.b32.xlu1 %v284_v35, 264  ;;  %286 = vbcast.lane.b32.xlu0 %v284_v35, 256 }
  0x72   :  { %301 = vbcast.lane.b32.xlu1 %v295_v36, 264  ;;  %297 = vbcast.lane.b32.xlu0 %v295_v36, 256 }
  0x76   :  { %312 = vbcast.lane.b32.xlu1 %v306_v38, 264  ;;  %308 = vbcast.lane.b32.xlu0 %v306_v38, 256 }
  0x7a   :  { %323 = vbcast.lane.b32.xlu1 %v317_v39, 264  ;;  %319 = vbcast.lane.b32.xlu0 %v317_v39, 256 }
  0x7e   :  { %334 = vbcast.lane.b32.xlu1 %v328_v40, 264  ;;  %330 = vbcast.lane.b32.xlu0 %v328_v40, 256 }
  0x82   :  { %345 = vbcast.lane.b32.xlu1 %v339_v41, 264  ;;  %341 = vbcast.lane.b32.xlu0 %v339_v41, 256 }
  0x86   :  { %356 = vbcast.lane.b32.xlu1 %v350_v42, 264  ;;  %352 = vbcast.lane.b32.xlu0 %v350_v42, 256 }
  0x88   :  { %v56_v46 = vpop.permute.xlu1 %55  ;;  %v45_v47 = vpop.permute.xlu0 %44 }
  0x89   :  { %v1447_v55 = vcombine.low %v45_v47, %v56_v46  ;;  %v1448_v59 = vcombine.high %v45_v47, %v56_v46 }
  0x8a   :  { %367 = vbcast.lane.b32.xlu1 %v361_v45, 264  ;;  %363 = vbcast.lane.b32.xlu0 %v361_v45, 256  ;;  %v427_v45 = vrot.slane %v10729_v57, %v10683_v9 }
  0x8b   :  { %v1455_v62 = vrot.slane %v1447_v55, %v10726_v54  ;;  %v1462_v4 = vrot.slane %v1448_v59, %v10726_v54 }
  0x8c   :  { %v60_v52 = vpop.permute.xlu1 %59  ;;  %v49_v53 = vpop.permute.xlu0 %48 }
  0x8d   :  { %v1479_v8 = vcombine.low %v1455_v62, %v1455_v62  ;;  %v1480_v16 = vcombine.high %v1455_v62, %v1455_v62  ;;  %v1863_v18 = vcombine.low %v49_v53, %v60_v52  ;;  %v1864_v20 = vcombine.high %v49_v53, %v60_v52 }
  0x8e   :  { %378 = vbcast.lane.b32.xlu1 %v372_v49, 264  ;;  %374 = vbcast.lane.b32.xlu0 %v372_v49, 256  ;;  %v1495_v26 = vcombine.low %v1462_v4, %v1462_v4  ;;  %v1496_v27 = vcombine.high %v1462_v4, %v1462_v4  ;;  %v438_v4 = vrot.slane %v10729_v57, %v10687_v11 }
  0x8f   :  { %v10748_v29 = vrot.slane %v1479_v8, %v10735_v0  ;;  %v1871_v34 = vrot.slane %v1863_v18, %v10726_v54  ;;  %v10752_v35 = vrot.slane %v1864_v20, %v10726_v54  ;;  %v10758_v37 = vrot.slane %v1480_v16, %v10735_v0 }
  0x90   :  { %v71_v60 = vpop.permute.xlu1 %70  ;;  %v67_v61 = vpop.permute.xlu0 %66  ;;  %v10777_v46 = vrot.slane %v1495_v26, %v10735_v0  ;;  %v10780_v47 = vrot.slane %v1496_v27, %v10735_v0 }
  0x91   :  { %19327 = vst [vmem:[#allocation10_spill] sm:$0xff] %v10748_v29  ;;  %19328 = vst [vmem:[#allocation11_spill] sm:$0xff] %v10758_v37  ;;  %v1895_v52 = vcombine.low %v1871_v34, %v1871_v34  ;;  %v1896_v53 = vcombine.high %v1871_v34, %v1871_v34  ;;  %v1911_v55 = vcombine.low %v10752_v35, %v10752_v35 }
  0x92   :  { %389 = vbcast.lane.b32.xlu1 %v383_v56, 264  ;;  %385 = vbcast.lane.b32.xlu0 %v383_v56, 256  ;;  %19333 = vst [vmem:[#allocation16_spill] sm:$0xff] %v10777_v46  ;;  %19334 = vst [vmem:[#allocation17_spill] sm:$0xff] %v10780_v47 }
  0x93   :  { %v10812_v16 = vrot.slane %v1895_v52, %v10735_v0 }
  0x94   :  { %v82_v5 = vpop.permute.xlu1 %81  ;;  %v78_v6 = vpop.permute.xlu0 %77 }
  0x95   :  { %v1879_v10 = vcombine.low %v71_v60, %v82_v5  ;;  %v1463_v12 = vcombine.low %v67_v61, %v78_v6  ;;  %v1464_v14 = vcombine.high %v67_v61, %v78_v6  ;;  %v1880_v21 = vcombine.high %v71_v60, %v82_v5  ;;  %19337 = vst [vmem:[#allocation20_spill] sm:$0xff] %v10812_v16 }
  0x96   :  { %400 = vbcast.lane.b32.xlu1 %v394_v63, 264  ;;  %396 = vbcast.lane.b32.xlu0 %v394_v63, 256  ;;  %v493_v61 = vrot.slane %v10874_v51, %v10671_v2 }
  0x97   :  { %v1471_v22 = vrot.slane %v1463_v12, %v10726_v54  ;;  %v1478_v1 = vrot.slane %v1464_v14, %v10726_v54  ;;  %v1887_v28 = vrot.slane %v1879_v10, %v10726_v54  ;;  %v10755_v36 = vrot.slane %v1880_v21, %v10726_v54 }
  0x98   :  { %v10742_v23 = vpop.permute.xlu1 %92  ;;  %v89_v24 = vpop.permute.xlu0 %88  ;;  %v449_v12 = vrot.slane %v10729_v57, %v10691_v13  ;;  %v10817_v21 = vrot.slane %v1896_v53, %v10735_v0 }
  0x99   :  { %v1511_v30 = vcombine.low %v1471_v22, %v1471_v22  ;;  %v1512_v31 = vcombine.high %v1471_v22, %v1471_v22  ;;  %v1527_v32 = vcombine.low %v1478_v1, %v1478_v1  ;;  %v1528_v33 = vcombine.high %v1478_v1, %v1478_v1 }
  0x9a   :  { %411 = vbcast.lane.b32.xlu1 %v405_v19, 264  ;;  %407 = vbcast.lane.b32.xlu0 %v405_v19, 256  ;;  %v1927_v44 = vcombine.low %v1887_v28, %v1887_v28  ;;  %v1928_v48 = vcombine.high %v1887_v28, %v1887_v28  ;;  %v1943_v56 = vcombine.low %v10755_v36, %v10755_v36 }
  0x9b   :  { %v10763_v40 = vrot.slane %v1511_v30, %v10735_v0  ;;  %v10766_v41 = vrot.slane %v1512_v31, %v10735_v0  ;;  %v10769_v42 = vrot.slane %v1527_v32, %v10735_v0  ;;  %v10772_v43 = vrot.slane %v1528_v33, %v10735_v0  ;;  %19338 = vst [vmem:[#allocation21_spill] sm:$0xff] %v10817_v21 }
  0x9c   :  { %v10760_v38 = vpop.permute.xlu1 %103  ;;  %v100_v39 = vpop.permute.xlu0 %99  ;;  %v10802_v8 = vrot.slane %v1927_v44, %v10735_v0  ;;  %v10805_v10 = vrot.slane %v1928_v48, %v10735_v0  ;;  %v10820_v22 = vrot.slane %v1911_v55, %v10735_v0  ;;  %v10823_v1 = vrot.slane %v1943_v56, %v10735_v0 }
  0x9d   :  { %19329 = vst [vmem:[#allocation12_spill] sm:$0xff] %v10763_v40  ;;  %19330 = vst [vmem:[#allocation13_spill] sm:$0xff] %v10766_v41  ;;  %v1551_v49 = vcombine.low %v89_v24, %v100_v39  ;;  %v1552_v63 = vcombine.high %v89_v24, %v100_v39  ;;  %v1967_v5 = vcombine.low %v10742_v23, %v10760_v38 }
  0x9e   :  { %19331 = vst [vmem:[#allocation14_spill] sm:$0xff] %v10769_v42  ;;  %19332 = vst [vmem:[#allocation15_spill] sm:$0xff] %v10772_v43  ;;  %422 = vbcast.lane.b32.xlu1 %v416_v25, 264  ;;  %418 = vbcast.lane.b32.xlu0 %v416_v25, 256  ;;  %v1968_v18 = vcombine.high %v10742_v23, %v10760_v38  ;;  %v471_v48 = vrot.slane %v10729_v57, %v10699_v17 }
  0x9f   :  { %v1559_v6 = vrot.slane %v1551_v49, %v10726_v54  ;;  %19335 = vst [vmem:[#allocation18_spill] sm:$0xff] %v10802_v8  ;;  %19336 = vst [vmem:[#allocation19_spill] sm:$0xff] %v10805_v10  ;;  %v1566_v24 = vrot.slane %v1552_v63, %v10726_v54  ;;  %v1975_v28 = vrot.slane %v1967_v5, %v10726_v54 }
  0xa0   :  { %v115_v58 = vpop.permute.xlu1 %114  ;;  %v111_v59 = vpop.permute.xlu0 %110  ;;  %19339 = vst [vmem:[#allocation22_spill] sm:$0xff] %v10820_v22  ;;  %19340 = vst [vmem:[#allocation23_spill] sm:$0xff] %v10823_v1  ;;  %v10844_v53 = vrot.slane %v1968_v18, %v10726_v54  ;;  %v482_v31 = vrot.slane %v10874_v51, %v10674_v3  ;;  %v537_v8 = vrot.slane %v10874_v51, %v10691_v13 }
  0xa1   :  { %v1583_v30 = vcombine.low %v1559_v6, %v1559_v6  ;;  %v1584_v32 = vcombine.high %v1559_v6, %v1559_v6  ;;  %v1599_v55 = vcombine.low %v1566_v24, %v1566_v24  ;;  %v1600_v56 = vcombine.high %v1566_v24, %v1566_v24 }
  0xa2   :  { %433 = vbcast.lane.b32.xlu1 %v427_v45, 264  ;;  %429 = vbcast.lane.b32.xlu0 %v427_v45, 256  ;;  %v460_v45 = vrot.slane %v10729_v57, %v10695_v15  ;;  %v1999_v6 = vcombine.low %v1975_v28, %v1975_v28 }
  0xa3   :  { %v10854_v18 = vrot.slane %v1584_v32, %v10735_v0  ;;  %v10872_v32 = vrot.slane %v1600_v56, %v10735_v0 }
  0xa4   :  { %v126_v19 = vpop.permute.xlu1 %125  ;;  %v122_v20 = vpop.permute.xlu0 %121 }
  0xa5   :  { %v1983_v25 = vcombine.low %v115_v58, %v126_v19  ;;  %v1567_v26 = vcombine.low %v111_v59, %v122_v20  ;;  %v1568_v27 = vcombine.high %v111_v59, %v122_v20  ;;  %v1984_v33 = vcombine.high %v115_v58, %v126_v19  ;;  %19342 = vst [vmem:[#allocation25_spill] sm:$0xff] %v10854_v18 }
  0xa6   :  { %444 = vbcast.lane.b32.xlu1 %v438_v4, 264  ;;  %440 = vbcast.lane.b32.xlu0 %v438_v4, 256  ;;  %v10851_v19 = vrot.slane %v1583_v30, %v10735_v0  ;;  %19348 = vst [vmem:[#allocation31_spill] sm:$0xff] %v10872_v32 }
  0xa7   :  { %v1575_v34 = vrot.slane %v1567_v26, %v10726_v54  ;;  %v1582_v38 = vrot.slane %v1568_v27, %v10726_v54  ;;  %v1991_v58 = vrot.slane %v1983_v25, %v10726_v54  ;;  %v10848_v57 = vrot.slane %v1984_v33, %v10726_v54 }
  0xa8   :  { %v10833_v39 = vpop.permute.xlu1 %136  ;;  %v133_v44 = vpop.permute.xlu0 %132  ;;  %19341 = vst [vmem:[#allocation24_spill] sm:$0xff] %v10851_v19 }
  0xa9   :  { %v1615_v59 = vcombine.low %v1575_v34, %v1575_v34  ;;  %v1616_v63 = vcombine.high %v1575_v34, %v1575_v34  ;;  %v1631_v4 = vcombine.low %v1582_v38, %v1582_v38  ;;  %v1632_v5 = vcombine.high %v1582_v38, %v1582_v38 }
  0xaa   :  { %455 = vbcast.lane.b32.xlu1 %v449_v12, 264  ;;  %451 = vbcast.lane.b32.xlu0 %v449_v12, 256  ;;  %v2000_v12 = vcombine.high %v1975_v28, %v1975_v28  ;;  %v2031_v30 = vcombine.low %v1991_v58, %v1991_v58  ;;  %v10869_v34 = vrot.slane %v1599_v55, %v10735_v0 }
  0xab   :  { %v10857_v25 = vrot.slane %v1615_v59, %v10735_v0  ;;  %v10860_v26 = vrot.slane %v1616_v63, %v10735_v0  ;;  %v10863_v27 = vrot.slane %v1631_v4, %v10735_v0  ;;  %v10866_v33 = vrot.slane %v1632_v5, %v10735_v0 }
  0xac   :  { %v148_v20 = vpop.permute.xlu1 %147  ;;  %v144_v24 = vpop.permute.xlu0 %143  ;;  %19347 = vst [vmem:[#allocation30_spill] sm:$0xff] %v10869_v34  ;;  %v2032_v38 = vcombine.high %v1991_v58, %v1991_v58  ;;  %v2015_v28 = vcombine.low %v10844_v53, %v10844_v53  ;;  %v2047_v55 = vcombine.low %v10848_v57, %v10848_v57  ;;  %v10896_v23 = vrot.slane %v2000_v12, %v10735_v0 }
  0xad   :  { %19343 = vst [vmem:[#allocation26_spill] sm:$0xff] %v10857_v25  ;;  %19344 = vst [vmem:[#allocation27_spill] sm:$0xff] %v10860_v26  ;;  %v1655_v59 = vcombine.low %v133_v44, %v144_v24  ;;  %v1656_v49 = vcombine.high %v133_v44, %v144_v24  ;;  %v2071_v14 = vcombine.low %v10833_v39, %v148_v20 }
  0xae   :  { %19345 = vst [vmem:[#allocation28_spill] sm:$0xff] %v10863_v27  ;;  %19346 = vst [vmem:[#allocation29_spill] sm:$0xff] %v10866_v33  ;;  %466 = vbcast.lane.b32.xlu1 %v460_v45, 264  ;;  %462 = vbcast.lane.b32.xlu0 %v460_v45, 256  ;;  %v10893_v45 = vrot.slane %v1999_v6, %v10735_v0  ;;  %v10901_v52 = vrot.slane %v2031_v30, %v10735_v0 }
  0xaf   :  { %19350 = vst [vmem:[#allocation33_spill] sm:$0xff] %v10896_v23  ;;  %v1663_v62 = vrot.slane %v1655_v59, %v10726_v54  ;;  %v10904_v63 = vrot.slane %v2032_v38, %v10735_v0  ;;  %v2072_v6 = vcombine.high %v10833_v39, %v148_v20  ;;  %v10912_v59 = vrot.slane %v2015_v28, %v10735_v0 }
  0xb0   :  { %v159_v56 = vpop.permute.xlu1 %158  ;;  %v155_v5 = vpop.permute.xlu0 %154  ;;  %19349 = vst [vmem:[#allocation32_spill] sm:$0xff] %v10893_v45  ;;  %19351 = vst [vmem:[#allocation34_spill] sm:$0xff] %v10901_v52  ;;  %v10915_v30 = vrot.slane %v2047_v55, %v10735_v0  ;;  %v1670_v38 = vrot.slane %v1656_v49, %v10726_v54  ;;  %v2079_v44 = vrot.slane %v2071_v14, %v10726_v54 }
  0xb1   :  { %19352 = vst [vmem:[#allocation35_spill] sm:$0xff] %v10904_v63  ;;  %19353 = vst [vmem:[#allocation36_spill] sm:$0xff] %v10912_v59  ;;  %v1687_v4 = vcombine.low %v1663_v62, %v1663_v62  ;;  %v1688_v28 = vcombine.high %v1663_v62, %v1663_v62  ;;  %v504_v14 = vrot.slane %v10874_v51, %v10679_v7 }
  0xb2   :  { %477 = vbcast.lane.b32.xlu1 %v471_v48, 264  ;;  %473 = vbcast.lane.b32.xlu0 %v471_v48, 256  ;;  %19354 = vst [vmem:[#allocation37_spill] sm:$0xff] %v10915_v30  ;;  %v2103_v21 = vcombine.low %v2079_v44, %v2079_v44 }
  0xb3   :  { %v10943_v39 = vrot.slane %v1687_v4, %v10735_v0 }
  0xb4   :  { %v170_v24 = vpop.permute.xlu1 %169  ;;  %v166_v12 = vpop.permute.xlu0 %165 }
  0xb5   :  { %v2087_v58 = vcombine.low %v159_v56, %v170_v24  ;;  %v1671_v48 = vcombine.low %v155_v5, %v166_v12  ;;  %v1672_v60 = vcombine.high %v155_v5, %v166_v12  ;;  %v2088_v50 = vcombine.high %v159_v56, %v170_v24  ;;  %19355 = vst [vmem:[#allocation38_spill] sm:$0xff] %v10943_v39 }
  0xb6   :  { %488 = vbcast.lane.b32.xlu1 %v482_v31, 264  ;;  %484 = vbcast.lane.b32.xlu0 %v482_v31, 256  ;;  %v515_v12 = vrot.slane %v10874_v51, %v10683_v9  ;;  %v10936_v56 = vrot.slane %v2072_v6, %v10726_v54  ;;  %v1704_v31 = vcombine.high %v1670_v38, %v1670_v38 }
  0xb7   :  { %v1679_v55 = vrot.slane %v1671_v48, %v10726_v54  ;;  %v1686_v22 = vrot.slane %v1672_v60, %v10726_v54  ;;  %v1703_v60 = vcombine.low %v1670_v38, %v1670_v38  ;;  %v2095_v24 = vrot.slane %v2087_v58, %v10726_v54 }
  0xb8   :  { %v10925_v49 = vpop.permute.xlu1 %180  ;;  %v177_v5 = vpop.permute.xlu0 %176  ;;  %v10940_v45 = vrot.slane %v2088_v50, %v10726_v54  ;;  %v10946_v6 = vrot.slane %v1688_v28, %v10735_v0  ;;  %v10964_v28 = vrot.slane %v1704_v31, %v10735_v0 }
  0xb9   :  { %v1719_v48 = vcombine.low %v1679_v55, %v1679_v55  ;;  %v1720_v20 = vcombine.high %v1679_v55, %v1679_v55  ;;  %v1735_v1 = vcombine.low %v1686_v22, %v1686_v22  ;;  %v1736_v10 = vcombine.high %v1686_v22, %v1686_v22 }
  0xba   :  { %499 = vbcast.lane.b32.xlu1 %v493_v61, 264  ;;  %495 = vbcast.lane.b32.xlu0 %v493_v61, 256  ;;  %19356 = vst [vmem:[#allocation39_spill] sm:$0xff] %v10946_v6  ;;  %v2104_v61 = vcombine.high %v2079_v44, %v2079_v44  ;;  %v2135_v4 = vcombine.low %v2095_v24, %v2095_v24  ;;  %19362 = vst [vmem:[#allocation45_spill] sm:$0xff] %v10964_v28 }
  0xbb   :  { %v10949_v58 = vrot.slane %v1719_v48, %v10735_v0  ;;  %v10952_v55 = vrot.slane %v1720_v20, %v10735_v0  ;;  %v10955_v22 = vrot.slane %v1735_v1, %v10735_v0  ;;  %v10958_v50 = vrot.slane %v1736_v10, %v10735_v0 }
  0xbc   :  { %v192_v62 = vpop.permute.xlu1 %191  ;;  %v188_v38 = vpop.permute.xlu0 %187  ;;  %v10961_v59 = vrot.slane %v1703_v60, %v10735_v0  ;;  %v2136_v30 = vcombine.high %v2095_v24, %v2095_v24  ;;  %v2119_v10 = vcombine.low %v10936_v56, %v10936_v56  ;;  %v2151_v44 = vcombine.low %v10940_v45, %v10940_v45 }
  0xbd   :  { %19357 = vst [vmem:[#allocation40_spill] sm:$0xff] %v10949_v58  ;;  %19358 = vst [vmem:[#allocation41_spill] sm:$0xff] %v10952_v55  ;;  %v1759_v48 = vcombine.low %v177_v5, %v188_v38  ;;  %v1760_v23 = vcombine.high %v177_v5, %v188_v38  ;;  %v526_v1 = vrot.slane %v10874_v51, %v10687_v11 }
  0xbe   :  { %19359 = vst [vmem:[#allocation42_spill] sm:$0xff] %v10955_v22  ;;  %19360 = vst [vmem:[#allocation43_spill] sm:$0xff] %v10958_v50  ;;  %510 = vbcast.lane.b32.xlu1 %v504_v14, 264  ;;  %506 = vbcast.lane.b32.xlu0 %v504_v14, 256  ;;  %v10983_v14 = vrot.slane %v2103_v21, %v10735_v0  ;;  %v10986_v52 = vrot.slane %v2104_v61, %v10735_v0 }
  0xbf   :  { %19361 = vst [vmem:[#allocation44_spill] sm:$0xff] %v10961_v59  ;;  %v2175_v16 = vcombine.low %v10925_v49, %v192_v62  ;;  %v1767_v31 = vrot.slane %v1759_v48, %v10726_v54  ;;  %v10991_v24 = vrot.slane %v2135_v4, %v10735_v0  ;;  %v10994_v20 = vrot.slane %v2136_v30, %v10735_v0 }
  0xc0   :  { %v203_v60 = vpop.permute.xlu1 %202  ;;  %v199_v63 = vpop.permute.xlu0 %198  ;;  %19363 = vst [vmem:[#allocation46_spill] sm:$0xff] %v10983_v14  ;;  %19364 = vst [vmem:[#allocation47_spill] sm:$0xff] %v10986_v52  ;;  %v2176_v21 = vcombine.high %v10925_v49, %v192_v62  ;;  %v11002_v48 = vrot.slane %v2119_v10, %v10735_v0  ;;  %v11005_v4 = vrot.slane %v2151_v44, %v10735_v0 }
  0xc1   :  { %19365 = vst [vmem:[#allocation48_spill] sm:$0xff] %v10991_v24  ;;  %19366 = vst [vmem:[#allocation49_spill] sm:$0xff] %v10994_v20  ;;  %v1774_v30 = vrot.slane %v1760_v23, %v10726_v54  ;;  %v2183_v5 = vrot.slane %v2175_v16, %v10726_v54  ;;  %v1791_v50 = vcombine.low %v1767_v31, %v1767_v31  ;;  %v11056_v20 = vld [vmem:[#allocation2 + $0x30] sm:$0xff] }
  0xc2   :  { %521 = vbcast.lane.b32.xlu1 %v515_v12, 264  ;;  %517 = vbcast.lane.b32.xlu0 %v515_v12, 256  ;;  %19367 = vst [vmem:[#allocation50_spill] sm:$0xff] %v11002_v48  ;;  %19368 = vst [vmem:[#allocation51_spill] sm:$0xff] %v11005_v4  ;;  %v1792_v10 = vcombine.high %v1767_v31, %v1767_v31  ;;  %v548_v16 = vrot.slane %v10874_v51, %v10695_v15 }
  0xc3   :  { %v11026_v31 = vrot.slane %v2176_v21, %v10726_v54  ;;  %v2207_v47 = vcombine.low %v2183_v5, %v2183_v5  ;;  %v11033_v49 = vrot.slane %v1791_v50, %v10735_v0 }
  0xc4   :  { %v214_v38 = vpop.permute.xlu1 %213  ;;  %v210_v61 = vpop.permute.xlu0 %209  ;;  %v11036_v21 = vrot.slane %v1792_v10, %v10735_v0 }
  0xc5   :  { %v2191_v33 = vcombine.low %v203_v60, %v214_v38  ;;  %v1775_v12 = vcombine.low %v199_v63, %v210_v61  ;;  %v1776_v32 = vcombine.high %v199_v63, %v210_v61  ;;  %v2192_v28 = vcombine.high %v203_v60, %v214_v38  ;;  %19369 = vst [vmem:[#allocation52_spill] sm:$0xff] %v11033_v49 }
  0xc6   :  { %532 = vbcast.lane.b32.xlu1 %v526_v1, 264  ;;  %528 = vbcast.lane.b32.xlu0 %v526_v1, 256  ;;  %v559_v61 = vrot.slane %v10874_v51, %v10699_v17  ;;  %v1808_v1 = vcombine.high %v1774_v30, %v1774_v30  ;;  %19370 = vst [vmem:[#allocation53_spill] sm:$0xff] %v11036_v21 }
  0xc7   :  { %v1783_v44 = vrot.slane %v1775_v12, %v10726_v54  ;;  %v1790_v43 = vrot.slane %v1776_v32, %v10726_v54  ;;  %v1807_v32 = vcombine.low %v1774_v30, %v1774_v30  ;;  %v2199_v38 = vrot.slane %v2191_v33, %v10726_v54 }
  0xc8   :  { %v11015_v23 = vpop.permute.xlu1 %224  ;;  %v221_v63 = vpop.permute.xlu0 %220  ;;  %v11030_v51 = vrot.slane %v2192_v28, %v10726_v54  ;;  %v11054_v10 = vrot.slane %v1808_v1, %v10735_v0 }
  0xc9   :  { %v1823_v12 = vcombine.low %v1783_v44, %v1783_v44  ;;  %v1824_v62 = vcombine.high %v1783_v44, %v1783_v44  ;;  %v1839_v14 = vcombine.low %v1790_v43, %v1790_v43  ;;  %v1840_v24 = vcombine.high %v1790_v43, %v1790_v43 }
  0xca   :  { %543 = vbcast.lane.b32.xlu1 %v537_v8, 264  ;;  %539 = vbcast.lane.b32.xlu0 %v537_v8, 256  ;;  %v2208_v8 = vcombine.high %v2183_v5, %v2183_v5  ;;  %v2239_v50 = vcombine.low %v2199_v38, %v2199_v38  ;;  %v11051_v48 = vrot.slane %v1807_v32, %v10735_v0 }
  0xcb   :  { %v11039_v33 = vrot.slane %v1823_v12, %v10735_v0  ;;  %v11042_v44 = vrot.slane %v1824_v62, %v10735_v0  ;;  %v11045_v43 = vrot.slane %v1839_v14, %v10735_v0  ;;  %v11048_v28 = vrot.slane %v1840_v24, %v10735_v0  ;;  %19376 = vst [vmem:[#allocation59_spill] sm:$0xff] %v11054_v10 }
  0xcc   :  { %v236_v60 = vpop.permute.xlu1 %235  ;;  %v232_v30 = vpop.permute.xlu0 %231  ;;  %19375 = vst [vmem:[#allocation58_spill] sm:$0xff] %v11051_v48  ;;  %v2240_v4 = vcombine.high %v2199_v38, %v2199_v38  ;;  %v2223_v5 = vcombine.low %v11026_v31, %v11026_v31  ;;  %v2255_v62 = vcombine.low %v11030_v51, %v11030_v51  ;;  %v570_v24 = vrot.slane %v11056_v20, %v10674_v3 }
  0xcd   :  { %19371 = vst [vmem:[#allocation54_spill] sm:$0xff] %v11039_v33  ;;  %19372 = vst [vmem:[#allocation55_spill] sm:$0xff] %v11042_v44  ;;  %v2279_v12 = vcombine.low %v221_v63, %v232_v30  ;;  %v2280_v34 = vcombine.high %v221_v63, %v232_v30  ;;  %v11078_v27 = vrot.slane %v2208_v8, %v10735_v0 }
  0xce   :  { %19373 = vst [vmem:[#allocation56_spill] sm:$0xff] %v11045_v43  ;;  %19374 = vst [vmem:[#allocation57_spill] sm:$0xff] %v11048_v28  ;;  %554 = vbcast.lane.b32.xlu1 %v548_v16, 264  ;;  %550 = vbcast.lane.b32.xlu0 %v548_v16, 256  ;;  %v11075_v16 = vrot.slane %v2207_v47, %v10735_v0  ;;  %v2695_v59 = vcombine.low %v11015_v23, %v236_v60 }
  0xcf   :  { %19378 = vst [vmem:[#allocation61_spill] sm:$0xff] %v11078_v27  ;;  %v2287_v38 = vrot.slane %v2279_v12, %v10726_v54  ;;  %v11083_v52 = vrot.slane %v2239_v50, %v10735_v0  ;;  %v11086_v14 = vrot.slane %v2240_v4, %v10735_v0  ;;  %v2696_v47 = vcombine.high %v11015_v23, %v236_v60 }
  0xd0   :  { %v247_v32 = vpop.permute.xlu1 %246  ;;  %v243_v1 = vpop.permute.xlu0 %242  ;;  %19377 = vst [vmem:[#allocation60_spill] sm:$0xff] %v11075_v16  ;;  %v581_v48 = vrot.slane %v11056_v20, %v10671_v2  ;;  %v11094_v12 = vrot.slane %v2223_v5, %v10735_v0  ;;  %v11097_v50 = vrot.slane %v2255_v62, %v10735_v0  ;;  %v2294_v4 = vrot.slane %v2280_v34, %v10726_v54 }
  0xd1   :  { %19379 = vst [vmem:[#allocation62_spill] sm:$0xff] %v11083_v52  ;;  %19380 = vst [vmem:[#allocation63_spill] sm:$0xff] %v11086_v14  ;;  %v2703_v63 = vrot.slane %v2695_v59, %v10726_v54  ;;  %v2311_v28 = vcombine.low %v2287_v38, %v2287_v38  ;;  %v2312_v5 = vcombine.high %v2287_v38, %v2287_v38 }
  0xd2   :  { %565 = vbcast.lane.b32.xlu1 %v559_v61, 264  ;;  %561 = vbcast.lane.b32.xlu0 %v559_v61, 256  ;;  %19381 = vst [vmem:[#allocation64_spill] sm:$0xff] %v11094_v12  ;;  %19382 = vst [vmem:[#allocation65_spill] sm:$0xff] %v11097_v50  ;;  %v592_v59 = vrot.slane %v11056_v20, %v10679_v7  ;;  %v11118_v38 = vrot.slane %v2696_v47, %v10726_v54 }
  0xd3   :  { %v2727_v42 = vcombine.low %v2703_v63, %v2703_v63  ;;  %v11125_v23 = vrot.slane %v2311_v28, %v10735_v0  ;;  %v11128_v47 = vrot.slane %v2312_v5, %v10735_v0 }
  0xd4   :  { %v258_v30 = vpop.permute.xlu1 %257  ;;  %v254_v8 = vpop.permute.xlu0 %253 }
  0xd5   :  { %v2711_v43 = vcombine.low %v247_v32, %v258_v30  ;;  %v2295_v61 = vcombine.low %v243_v1, %v254_v8  ;;  %v2296_v22 = vcombine.high %v243_v1, %v254_v8  ;;  %v2712_v10 = vcombine.high %v247_v32, %v258_v30  ;;  %19383 = vst [vmem:[#allocation66_spill] sm:$0xff] %v11125_v23 }
  0xd6   :  { %576 = vbcast.lane.b32.xlu1 %v570_v24, 264  ;;  %572 = vbcast.lane.b32.xlu0 %v570_v24, 256  ;;  %v603_v8 = vrot.slane %v11056_v20, %v10683_v9  ;;  %v2328_v24 = vcombine.high %v2294_v4, %v2294_v4  ;;  %19384 = vst [vmem:[#allocation67_spill] sm:$0xff] %v11128_v47 }
  0xd7   :  { %v2303_v62 = vrot.slane %v2295_v61, %v10726_v54  ;;  %v2310_v46 = vrot.slane %v2296_v22, %v10726_v54  ;;  %v2327_v22 = vcombine.low %v2294_v4, %v2294_v4  ;;  %v2719_v30 = vrot.slane %v2711_v43, %v10726_v54 }
  0xd8   :  { %v11107_v34 = vpop.permute.xlu1 %268  ;;  %v265_v1 = vpop.permute.xlu0 %264  ;;  %v11122_v44 = vrot.slane %v2712_v10, %v10726_v54  ;;  %v11146_v5 = vrot.slane %v2328_v24, %v10735_v0 }
  0xd9   :  { %v2343_v61 = vcombine.low %v2303_v62, %v2303_v62  ;;  %v2344_v60 = vcombine.high %v2303_v62, %v2303_v62  ;;  %v2359_v16 = vcombine.low %v2310_v46, %v2310_v46  ;;  %v2360_v52 = vcombine.high %v2310_v46, %v2310_v46 }
  0xda   :  { %587 = vbcast.lane.b32.xlu1 %v581_v48, 264  ;;  %583 = vbcast.lane.b32.xlu0 %v581_v48, 256  ;;  %v2728_v48 = vcombine.high %v2703_v63, %v2703_v63  ;;  %v2759_v28 = vcombine.low %v2719_v30, %v2719_v30  ;;  %v11143_v12 = vrot.slane %v2327_v22, %v10735_v0 }
  0xdb   :  { %v11131_v43 = vrot.slane %v2343_v61, %v10735_v0  ;;  %v11134_v62 = vrot.slane %v2344_v60, %v10735_v0  ;;  %v11137_v46 = vrot.slane %v2359_v16, %v10735_v0  ;;  %v11140_v10 = vrot.slane %v2360_v52, %v10735_v0  ;;  %19390 = vst [vmem:[#allocation73_spill] sm:$0xff] %v11146_v5 }
  0xdc   :  { %v280_v32 = vpop.permute.xlu1 %279  ;;  %v276_v4 = vpop.permute.xlu0 %275  ;;  %19389 = vst [vmem:[#allocation72_spill] sm:$0xff] %v11143_v12  ;;  %v2760_v50 = vcombine.high %v2719_v30, %v2719_v30  ;;  %v2743_v52 = vcombine.low %v11118_v38, %v11118_v38  ;;  %v2775_v63 = vcombine.low %v11122_v44, %v11122_v44  ;;  %v614_v16 = vrot.slane %v11056_v20, %v10687_v11 }
  0xdd   :  { %19385 = vst [vmem:[#allocation68_spill] sm:$0xff] %v11131_v43  ;;  %19386 = vst [vmem:[#allocation69_spill] sm:$0xff] %v11134_v62  ;;  %v2383_v61 = vcombine.low %v265_v1, %v276_v4  ;;  %v2384_v27 = vcombine.high %v265_v1, %v276_v4  ;;  %v11168_v21 = vrot.slane %v2728_v48, %v10735_v0 }
  0xde   :  { %19387 = vst [vmem:[#allocation70_spill] sm:$0xff] %v11137_v46  ;;  %19388 = vst [vmem:[#allocation71_spill] sm:$0xff] %v11140_v10  ;;  %598 = vbcast.lane.b32.xlu1 %v592_v59, 264  ;;  %594 = vbcast.lane.b32.xlu0 %v592_v59, 256  ;;  %v11165_v59 = vrot.slane %v2727_v42, %v10735_v0  ;;  %v2799_v26 = vcombine.low %v11107_v34, %v280_v32 }
  0xdf   :  { %19392 = vst [vmem:[#allocation75_spill] sm:$0xff] %v11168_v21  ;;  %v2391_v24 = vrot.slane %v2383_v61, %v10726_v54  ;;  %v11173_v30 = vrot.slane %v2759_v28, %v10735_v0  ;;  %v11176_v60 = vrot.slane %v2760_v50, %v10735_v0  ;;  %v2800_v42 = vcombine.high %v11107_v34, %v280_v32 }
  0xe0   :  { %v291_v22 = vpop.permute.xlu1 %290  ;;  %v287_v14 = vpop.permute.xlu0 %286  ;;  %19391 = vst [vmem:[#allocation74_spill] sm:$0xff] %v11165_v59  ;;  %v625_v12 = vrot.slane %v11056_v20, %v10691_v13  ;;  %v11184_v61 = vrot.slane %v2743_v52, %v10735_v0  ;;  %v11187_v28 = vrot.slane %v2775_v63, %v10735_v0  ;;  %v2398_v50 = vrot.slane %v2384_v27, %v10726_v54 }
  0xe1   :  { %19393 = vst [vmem:[#allocation76_spill] sm:$0xff] %v11173_v30  ;;  %19394 = vst [vmem:[#allocation77_spill] sm:$0xff] %v11176_v60  ;;  %v2807_v1 = vrot.slane %v2799_v26, %v10726_v54  ;;  %v2415_v10 = vcombine.low %v2391_v24, %v2391_v24  ;;  %v2416_v52 = vcombine.high %v2391_v24, %v2391_v24  ;;  %v11240_v60 = vld [vmem:[#allocation2 + $0x38] sm:$0xff] }
  0xe2   :  { %609 = vbcast.lane.b32.xlu1 %v603_v8, 264  ;;  %605 = vbcast.lane.b32.xlu0 %v603_v8, 256  ;;  %19395 = vst [vmem:[#allocation78_spill] sm:$0xff] %v11184_v61  ;;  %19396 = vst [vmem:[#allocation79_spill] sm:$0xff] %v11187_v28  ;;  %v636_v26 = vrot.slane %v11056_v20, %v10695_v15  ;;  %v11208_v24 = vrot.slane %v2800_v42, %v10726_v54 }
  0xe3   :  { %v2831_v47 = vcombine.low %v2807_v1, %v2807_v1  ;;  %v11215_v34 = vrot.slane %v2415_v10, %v10735_v0  ;;  %v11218_v42 = vrot.slane %v2416_v52, %v10735_v0  ;;  %v2832_v10 = vcombine.high %v2807_v1, %v2807_v1 }
  0xe4   :  { %v302_v4 = vpop.permute.xlu1 %301  ;;  %v298_v48 = vpop.permute.xlu0 %297  ;;  %v2847_v1 = vcombine.low %v11208_v24, %v11208_v24 }
  0xe5   :  { %v2815_v46 = vcombine.low %v291_v22, %v302_v4  ;;  %v2399_v8 = vcombine.low %v287_v14, %v298_v48  ;;  %v2400_v18 = vcombine.high %v287_v14, %v298_v48  ;;  %v2816_v5 = vcombine.high %v291_v22, %v302_v4  ;;  %19397 = vst [vmem:[#allocation80_spill] sm:$0xff] %v11215_v34 }
  0xe6   :  { %620 = vbcast.lane.b32.xlu1 %v614_v16, 264  ;;  %616 = vbcast.lane.b32.xlu0 %v614_v16, 256  ;;  %v647_v48 = vrot.slane %v11056_v20, %v10699_v17  ;;  %v2432_v16 = vcombine.high %v2398_v50, %v2398_v50  ;;  %19398 = vst [vmem:[#allocation81_spill] sm:$0xff] %v11218_v42 }
  0xe7   :  { %v2407_v63 = vrot.slane %v2399_v8, %v10726_v54  ;;  %v2414_v62 = vrot.slane %v2400_v18, %v10726_v54  ;;  %v2431_v18 = vcombine.low %v2398_v50, %v2398_v50  ;;  %v2823_v4 = vrot.slane %v2815_v46, %v10726_v54 }
  0xe8   :  { %v11197_v27 = vpop.permute.xlu1 %312  ;;  %v309_v14 = vpop.permute.xlu0 %308  ;;  %v11212_v20 = vrot.slane %v2816_v5, %v10726_v54  ;;  %v11238_v61 = vrot.slane %v2432_v16, %v10735_v0 }
  0xe9   :  { %v2447_v8 = vcombine.low %v2407_v63, %v2407_v63  ;;  %v2448_v32 = vcombine.high %v2407_v63, %v2407_v63  ;;  %v2463_v59 = vcombine.low %v2414_v62, %v2414_v62  ;;  %v2464_v30 = vcombine.high %v2414_v62, %v2414_v62 }
  0xea   :  { %631 = vbcast.lane.b32.xlu1 %v625_v12, 264  ;;  %627 = vbcast.lane.b32.xlu0 %v625_v12, 256  ;;  %v2863_v5 = vcombine.low %v2823_v4, %v2823_v4  ;;  %v11235_v52 = vrot.slane %v2431_v18, %v10735_v0  ;;  %19404 = vst [vmem:[#allocation87_spill] sm:$0xff] %v11238_v61 }
  0xeb   :  { %v11223_v46 = vrot.slane %v2447_v8, %v10735_v0  ;;  %v11226_v62 = vrot.slane %v2448_v32, %v10735_v0  ;;  %v11229_v63 = vrot.slane %v2463_v59, %v10735_v0  ;;  %v11232_v12 = vrot.slane %v2464_v30, %v10735_v0 }
  0xec   :  { %v11220_v22 = vpop.permute.xlu1 %323  ;;  %v320_v50 = vpop.permute.xlu0 %319  ;;  %19403 = vst [vmem:[#allocation86_spill] sm:$0xff] %v11235_v52  ;;  %v2864_v28 = vcombine.high %v2823_v4, %v2823_v4  ;;  %v2879_v32 = vcombine.low %v11212_v20, %v11212_v20  ;;  %v658_v30 = vrot.slane %v11240_v60, %v10674_v3  ;;  %v11263_v41 = vrot.slane %v2863_v5, %v10735_v0 }
  0xed   :  { %19399 = vst [vmem:[#allocation82_spill] sm:$0xff] %v11223_v46  ;;  %19400 = vst [vmem:[#allocation83_spill] sm:$0xff] %v11226_v62  ;;  %v2487_v8 = vcombine.low %v309_v14, %v320_v50  ;;  %v2488_v55 = vcombine.high %v309_v14, %v320_v50  ;;  %v11266_v4 = vrot.slane %v2832_v10, %v10735_v0 }
  0xee   :  { %19401 = vst [vmem:[#allocation84_spill] sm:$0xff] %v11229_v63  ;;  %19402 = vst [vmem:[#allocation85_spill] sm:$0xff] %v11232_v12  ;;  %642 = vbcast.lane.b32.xlu1 %v636_v26, 264  ;;  %638 = vbcast.lane.b32.xlu0 %v636_v26, 256  ;;  %v11259_v26 = vrot.slane %v2831_v47, %v10735_v0  ;;  %v11269_v21 = vrot.slane %v2864_v28, %v10735_v0 }
  0xef   :  { %v2495_v6 = vrot.slane %v2487_v8, %v10726_v54  ;;  %19406 = vst [vmem:[#allocation89_spill] sm:$0xff] %v11263_v41  ;;  %19407 = vst [vmem:[#allocation90_spill] sm:$0xff] %v11266_v4  ;;  %v2903_v47 = vcombine.low %v11197_v27, %v11220_v22  ;;  %v669_v8 = vrot.slane %v11240_v60, %v10671_v2 }
  0xf0   :  { %v335_v18 = vpop.permute.xlu1 %334  ;;  %v331_v16 = vpop.permute.xlu0 %330  ;;  %19405 = vst [vmem:[#allocation88_spill] sm:$0xff] %v11259_v26  ;;  %19408 = vst [vmem:[#allocation91_spill] sm:$0xff] %v11269_v21  ;;  %v11278_v5 = vrot.slane %v2847_v1, %v10735_v0  ;;  %v11281_v10 = vrot.slane %v2879_v32, %v10735_v0  ;;  %v2502_v28 = vrot.slane %v2488_v55, %v10726_v54 }
  0xf1   :  { %v2904_v14 = vcombine.high %v11197_v27, %v11220_v22  ;;  %v2519_v12 = vcombine.low %v2495_v6, %v2495_v6  ;;  %v2520_v62 = vcombine.high %v2495_v6, %v2495_v6  ;;  %v680_v27 = vrot.slane %v11240_v60, %v10679_v7 }
  0xf2   :  { %653 = vbcast.lane.b32.xlu1 %v647_v48, 264  ;;  %649 = vbcast.lane.b32.xlu0 %v647_v48, 256  ;;  %19409 = vst [vmem:[#allocation92_spill] sm:$0xff] %v11278_v5  ;;  %19410 = vst [vmem:[#allocation93_spill] sm:$0xff] %v11281_v10  ;;  %v691_v22 = vrot.slane %v11240_v60, %v10683_v9 }
  0xf3   :  { %v11305_v41 = vrot.slane %v2904_v14, %v10726_v54  ;;  %v11311_v6 = vrot.slane %v2519_v12, %v10735_v0 }
  0xf4   :  { %v346_v50 = vpop.permute.xlu1 %345  ;;  %v342_v59 = vpop.permute.xlu0 %341 }
  0xf5   :  { %v2919_v48 = vcombine.low %v335_v18, %v346_v50  ;;  %v2503_v52 = vcombine.low %v331_v16, %v342_v59  ;;  %v2504_v63 = vcombine.high %v331_v16, %v342_v59  ;;  %v2920_v42 = vcombine.high %v335_v18, %v346_v50  ;;  %19412 = vst [vmem:[#allocation95_spill] sm:$0xff] %v11311_v6 }
  0xf6   :  { %664 = vbcast.lane.b32.xlu1 %v658_v30, 264  ;;  %660 = vbcast.lane.b32.xlu0 %v658_v30, 256  ;;  %v2535_v18 = vcombine.low %v2502_v28, %v2502_v28  ;;  %v702_v6 = vrot.slane %v11240_v60, %v10687_v11 }
  0xf7   :  { %v2511_v32 = vrot.slane %v2503_v52, %v10726_v54  ;;  %v2518_v55 = vrot.slane %v2504_v63, %v10726_v54  ;;  %v2911_v52 = vrot.slane %v2903_v47, %v10726_v54  ;;  %v2536_v63 = vcombine.high %v2502_v28, %v2502_v28 }
  0xf8   :  { %v11292_v37 = vpop.permute.xlu1 %356  ;;  %v353_v59 = vpop.permute.xlu0 %352  ;;  %v2927_v30 = vrot.slane %v2919_v48, %v10726_v54  ;;  %v11308_v34 = vrot.slane %v2920_v42, %v10726_v54  ;;  %v11314_v47 = vrot.slane %v2520_v62, %v10735_v0  ;;  %v11331_v62 = vrot.slane %v2535_v18, %v10735_v0 }
  0xf9   :  { %v2551_v50 = vcombine.low %v2511_v32, %v2511_v32  ;;  %v2552_v1 = vcombine.high %v2511_v32, %v2511_v32  ;;  %v2567_v61 = vcombine.low %v2518_v55, %v2518_v55  ;;  %v2568_v26 = vcombine.high %v2518_v55, %v2518_v55 }
  0xfa   :  { %675 = vbcast.lane.b32.xlu1 %v669_v8, 264  ;;  %19411 = vst [vmem:[#allocation94_spill] sm:$0xff] %v11308_v34  ;;  %671 = vbcast.lane.b32.xlu0 %v669_v8, 256  ;;  %19413 = vst [vmem:[#allocation96_spill] sm:$0xff] %v11314_v47  ;;  %v2935_v12 = vcombine.low %v2911_v52, %v2911_v52  ;;  %v2936_v8 = vcombine.high %v2911_v52, %v2911_v52 }
  0xfb   :  { %v11319_v32 = vrot.slane %v2551_v50, %v10735_v0  ;;  %v11322_v55 = vrot.slane %v2552_v1, %v10735_v0  ;;  %v11325_v14 = vrot.slane %v2567_v61, %v10735_v0  ;;  %v11328_v42 = vrot.slane %v2568_v26, %v10735_v0  ;;  %19418 = vst [vmem:[#allocation101_spill] sm:$0xff] %v11331_v62 }
  0xfc   :  { %v11316_v28 = vpop.permute.xlu1 %367  ;;  %v364_v48 = vpop.permute.xlu0 %363  ;;  %v2967_v16 = vcombine.low %v2927_v30, %v2927_v30  ;;  %v2968_v5 = vcombine.high %v2927_v30, %v2927_v30  ;;  %v11338_v61 = vrot.slane %v2536_v63, %v10735_v0  ;;  %v2951_v26 = vcombine.low %v11305_v41, %v11305_v41 }
  0xfd   :  { %19414 = vst [vmem:[#allocation97_spill] sm:$0xff] %v11319_v32  ;;  %19415 = vst [vmem:[#allocation98_spill] sm:$0xff] %v11322_v55  ;;  %v2591_v10 = vcombine.low %v353_v59, %v364_v48  ;;  %v2983_v52 = vcombine.low %v11308_v34, %v11308_v34  ;;  %v11351_v1 = vrot.slane %v2935_v12, %v10735_v0 }
  0xfe   :  { %19416 = vst [vmem:[#allocation99_spill] sm:$0xff] %v11325_v14  ;;  %19417 = vst [vmem:[#allocation100_spill] sm:$0xff] %v11328_v42  ;;  %686 = vbcast.lane.b32.xlu1 %v680_v27, 264  ;;  %682 = vbcast.lane.b32.xlu0 %v680_v27, 256  ;;  %v11354_v4 = vrot.slane %v2967_v16, %v10735_v0  ;;  %v2592_v27 = vcombine.high %v353_v59, %v364_v48 }
  0xff   :  { %19419 = vst [vmem:[#allocation102_spill] sm:$0xff] %v11338_v61  ;;  %19420 = vst [vmem:[#allocation103_spill] sm:$0xff] %v11351_v1  ;;  %v11359_v32 = vrot.slane %v2936_v8, %v10735_v0  ;;  %v11362_v21 = vrot.slane %v2968_v5, %v10735_v0  ;;  %v2599_v50 = vrot.slane %v2591_v10, %v10726_v54 }
 0x100   :  { %v379_v18 = vpop.permute.xlu1 %378  ;;  %v375_v30 = vpop.permute.xlu0 %374  ;;  %19421 = vst [vmem:[#allocation104_spill] sm:$0xff] %v11354_v4  ;;  %v11368_v16 = vrot.slane %v2951_v26, %v10735_v0  ;;  %v11371_v59 = vrot.slane %v2983_v52, %v10735_v0  ;;  %v3007_v48 = vcombine.low %v11292_v37, %v11316_v28  ;;  %v713_v5 = vrot.slane %v11240_v60, %v10691_v13 }
 0x101   :  { %19422 = vst [vmem:[#allocation105_spill] sm:$0xff] %v11359_v32  ;;  %19423 = vst [vmem:[#allocation106_spill] sm:$0xff] %v11362_v21  ;;  %v3008_v52 = vcombine.high %v11292_v37, %v11316_v28  ;;  %v2623_v61 = vcombine.low %v2599_v50, %v2599_v50  ;;  %v2624_v26 = vcombine.high %v2599_v50, %v2599_v50 }
 0x102   :  { %697 = vbcast.lane.b32.xlu1 %v691_v22, 264  ;;  %693 = vbcast.lane.b32.xlu0 %v691_v22, 256  ;;  %19424 = vst [vmem:[#allocation107_spill] sm:$0xff] %v11368_v16  ;;  %19425 = vst [vmem:[#allocation108_spill] sm:$0xff] %v11371_v59  ;;  %v2606_v22 = vrot.slane %v2592_v27, %v10726_v54 }
 0x103   :  { %v11402_v50 = vrot.slane %v2623_v61, %v10735_v0  ;;  %v11419_v61 = vrot.slane %v2624_v26, %v10735_v0 }
 0x104   :  { %v390_v63 = vpop.permute.xlu1 %389  ;;  %v386_v62 = vpop.permute.xlu0 %385  ;;  %v2639_v14 = vcombine.low %v2606_v22, %v2606_v22 }
 0x105   :  { %v3023_v8 = vcombine.low %v379_v18, %v390_v63  ;;  %v2607_v12 = vcombine.low %v375_v30, %v386_v62  ;;  %v2608_v42 = vcombine.high %v375_v30, %v386_v62  ;;  %v3024_v55 = vcombine.high %v379_v18, %v390_v63  ;;  %19427 = vst [vmem:[#allocation110_spill] sm:$0xff] %v11402_v50 }
 0x106   :  { %708 = vbcast.lane.b32.xlu1 %v702_v6, 264  ;;  %704 = vbcast.lane.b32.xlu0 %v702_v6, 256  ;;  %v3015_v30 = vrot.slane %v3007_v48, %v10726_v54  ;;  %v724_v6 = vrot.slane %v11240_v60, %v10695_v15  ;;  %v735_v48 = vrot.slane %v11240_v60, %v10699_v17 }
 0x107   :  { %v2615_v47 = vrot.slane %v2607_v12, %v10726_v54  ;;  %v2622_v10 = vrot.slane %v2608_v42, %v10726_v54  ;;  %v3031_v37 = vrot.slane %v3023_v8, %v10726_v54  ;;  %v11397_v42 = vrot.slane %v3008_v52, %v10726_v54  ;;  %19432 = vst [vmem:[#allocation115_spill] sm:$0xff] %v11419_v61 }
 0x108   :  { %v11388_v27 = vpop.permute.xlu1 %400  ;;  %v397_v28 = vpop.permute.xlu0 %396  ;;  %v11405_v8 = vrot.slane %v3024_v55, %v10726_v54  ;;  %v2640_v52 = vcombine.high %v2606_v22, %v2606_v22  ;;  %v3040_v55 = vcombine.high %v3015_v30, %v3015_v30  ;;  %v11424_v1 = vrot.slane %v2639_v14, %v10735_v0 }
 0x109   :  { %v2655_v18 = vcombine.low %v2615_v47, %v2615_v47  ;;  %v2656_v63 = vcombine.high %v2615_v47, %v2615_v47  ;;  %v2671_v12 = vcombine.low %v2622_v10, %v2622_v10  ;;  %19426 = vst [vmem:[#allocation109_spill] sm:$0xff] %v11397_v42  ;;  %v2672_v21 = vcombine.high %v2622_v10, %v2622_v10 }
 0x10a   :  { %719 = vbcast.lane.b32.xlu1 %v713_v5, 264  ;;  %715 = vbcast.lane.b32.xlu0 %v713_v5, 256  ;;  %19428 = vst [vmem:[#allocation111_spill] sm:$0xff] %v11405_v8  ;;  %v3039_v5 = vcombine.low %v3015_v30, %v3015_v30  ;;  %v3071_v60 = vcombine.low %v3031_v37, %v3031_v37  ;;  %19433 = vst [vmem:[#allocation116_spill] sm:$0xff] %v11424_v1 }
 0x10b   :  { %v11410_v47 = vrot.slane %v2655_v18, %v10735_v0  ;;  %v11413_v16 = vrot.slane %v2656_v63, %v10735_v0  ;;  %v11416_v10 = vrot.slane %v2671_v12, %v10735_v0  ;;  %v3072_v32 = vcombine.high %v3031_v37, %v3031_v37  ;;  %v11426_v12 = vld [vmem:[#allocation2 + $0x40] sm:$0xff] }
 0x10c   :  { %v11407_v62 = vpop.permute.xlu1 %411  ;;  %v408_v59 = vpop.permute.xlu0 %407  ;;  %v11433_v30 = vrot.slane %v2672_v21, %v10735_v0  ;;  %v3055_v37 = vcombine.low %v11397_v42, %v11397_v42  ;;  %v3087_v14 = vcombine.low %v11405_v8, %v11405_v8  ;;  %v11442_v50 = vrot.slane %v2640_v52, %v10735_v0 }
 0x10d   :  { %19429 = vst [vmem:[#allocation112_spill] sm:$0xff] %v11410_v47  ;;  %19430 = vst [vmem:[#allocation113_spill] sm:$0xff] %v11413_v16  ;;  %v3111_v63 = vcombine.low %v397_v28, %v408_v59  ;;  %v11445_v22 = vrot.slane %v3039_v5, %v10735_v0  ;;  %v11448_v21 = vrot.slane %v3071_v60, %v10735_v0 }
 0x10e   :  { %19431 = vst [vmem:[#allocation114_spill] sm:$0xff] %v11416_v10  ;;  %730 = vbcast.lane.b32.xlu1 %v724_v6, 264  ;;  %726 = vbcast.lane.b32.xlu0 %v724_v6, 256  ;;  %19434 = vst [vmem:[#allocation117_spill] sm:$0xff] %v11433_v30  ;;  %v3112_v26 = vcombine.high %v397_v28, %v408_v59  ;;  %v746_v16 = vrot.slane %v11426_v12, %v10674_v3 }
 0x10f   :  { %19435 = vst [vmem:[#allocation118_spill] sm:$0xff] %v11442_v50  ;;  %19436 = vst [vmem:[#allocation119_spill] sm:$0xff] %v11445_v22  ;;  %v11453_v61 = vrot.slane %v3040_v55, %v10735_v0  ;;  %v11456_v6 = vrot.slane %v3072_v32, %v10735_v0  ;;  %v3119_v52 = vrot.slane %v3111_v63, %v10726_v54 }
 0x110   :  { %v423_v18 = vpop.permute.xlu1 %422  ;;  %v419_v4 = vpop.permute.xlu0 %418  ;;  %19437 = vst [vmem:[#allocation120_spill] sm:$0xff] %v11448_v21  ;;  %v11464_v28 = vrot.slane %v3055_v37, %v10735_v0  ;;  %v11467_v1 = vrot.slane %v3087_v14, %v10735_v0  ;;  %v3527_v32 = vcombine.low %v11388_v27, %v11407_v62  ;;  %v3126_v60 = vrot.slane %v3112_v26, %v10726_v54 }
 0x111   :  { %19438 = vst [vmem:[#allocation121_spill] sm:$0xff] %v11453_v61  ;;  %19439 = vst [vmem:[#allocation122_spill] sm:$0xff] %v11456_v6  ;;  %v3528_v14 = vcombine.high %v11388_v27, %v11407_v62  ;;  %v3144_v50 = vcombine.high %v3119_v52, %v3119_v52  ;;  %v3143_v37 = vcombine.low %v3119_v52, %v3119_v52 }
 0x112   :  { %741 = vbcast.lane.b32.xlu1 %v735_v48, 264  ;;  %737 = vbcast.lane.b32.xlu0 %v735_v48, 256  ;;  %19440 = vst [vmem:[#allocation123_spill] sm:$0xff] %v11464_v28  ;;  %19441 = vst [vmem:[#allocation124_spill] sm:$0xff] %v11467_v1  ;;  %v757_v48 = vrot.slane %v11426_v12, %v10671_v2  ;;  %v3159_v47 = vcombine.low %v3126_v60, %v3126_v60 }
 0x113   :  { %v11498_v52 = vrot.slane %v3144_v50, %v10735_v0  ;;  %v11515_v50 = vrot.slane %v3143_v37, %v10735_v0 }
 0x114   :  { %v434_v59 = vpop.permute.xlu1 %433  ;;  %v430_v10 = vpop.permute.xlu0 %429  ;;  %v11520_v21 = vrot.slane %v3159_v47, %v10735_v0 }
 0x115   :  { %v3543_v55 = vcombine.low %v423_v18, %v434_v59  ;;  %v3127_v5 = vcombine.low %v419_v4, %v430_v10  ;;  %v3128_v30 = vcombine.high %v419_v4, %v430_v10  ;;  %v3544_v8 = vcombine.high %v423_v18, %v434_v59  ;;  %19443 = vst [vmem:[#allocation126_spill] sm:$0xff] %v11498_v52 }
 0x116   :  { %752 = vbcast.lane.b32.xlu1 %v746_v16, 264  ;;  %748 = vbcast.lane.b32.xlu0 %v746_v16, 256  ;;  %v3535_v10 = vrot.slane %v3527_v32, %v10726_v54  ;;  %v768_v16 = vrot.slane %v11426_v12, %v10679_v7  ;;  %v779_v32 = vrot.slane %v11426_v12, %v10683_v9 }
 0x117   :  { %v3135_v42 = vrot.slane %v3127_v5, %v10726_v54  ;;  %v3142_v63 = vrot.slane %v3128_v30, %v10726_v54  ;;  %v3551_v27 = vrot.slane %v3543_v55, %v10726_v54  ;;  %v11493_v30 = vrot.slane %v3528_v14, %v10726_v54  ;;  %19448 = vst [vmem:[#allocation131_spill] sm:$0xff] %v11515_v50 }
 0x118   :  { %v11484_v26 = vpop.permute.xlu1 %444  ;;  %v441_v62 = vpop.permute.xlu0 %440  ;;  %v11501_v55 = vrot.slane %v3544_v8, %v10726_v54  ;;  %v3160_v14 = vcombine.high %v3126_v60, %v3126_v60  ;;  %v3560_v8 = vcombine.high %v3535_v10, %v3535_v10  ;;  %19449 = vst [vmem:[#allocation132_spill] sm:$0xff] %v11520_v21 }
 0x119   :  { %v3175_v18 = vcombine.low %v3135_v42, %v3135_v42  ;;  %v3176_v59 = vcombine.high %v3135_v42, %v3135_v42  ;;  %v3191_v5 = vcombine.low %v3142_v63, %v3142_v63  ;;  %19442 = vst [vmem:[#allocation125_spill] sm:$0xff] %v11493_v30  ;;  %v3192_v6 = vcombine.high %v3142_v63, %v3142_v63 }
 0x11a   :  { %763 = vbcast.lane.b32.xlu1 %v757_v48, 264  ;;  %759 = vbcast.lane.b32.xlu0 %v757_v48, 256  ;;  %19444 = vst [vmem:[#allocation127_spill] sm:$0xff] %v11501_v55  ;;  %v3559_v48 = vcombine.low %v3535_v10, %v3535_v10  ;;  %v3591_v1 = vcombine.low %v3551_v27, %v3551_v27 }
 0x11b   :  { %v11506_v42 = vrot.slane %v3175_v18, %v10735_v0  ;;  %v11509_v28 = vrot.slane %v3176_v59, %v10735_v0  ;;  %v11512_v63 = vrot.slane %v3191_v5, %v10735_v0  ;;  %v3592_v22 = vcombine.high %v3551_v27, %v3551_v27 }
 0x11c   :  { %v11503_v4 = vpop.permute.xlu1 %455  ;;  %v452_v61 = vpop.permute.xlu0 %451  ;;  %v11527_v37 = vrot.slane %v3192_v6, %v10735_v0  ;;  %v3575_v10 = vcombine.low %v11493_v30, %v11493_v30  ;;  %v3607_v27 = vcombine.low %v11501_v55, %v11501_v55  ;;  %v11536_v34 = vrot.slane %v3160_v14, %v10735_v0 }
 0x11d   :  { %19445 = vst [vmem:[#allocation128_spill] sm:$0xff] %v11506_v42  ;;  %19446 = vst [vmem:[#allocation129_spill] sm:$0xff] %v11509_v28  ;;  %v3215_v59 = vcombine.low %v441_v62, %v452_v61  ;;  %v11539_v5 = vrot.slane %v3559_v48, %v10735_v0  ;;  %v11542_v6 = vrot.slane %v3591_v1, %v10735_v0 }
 0x11e   :  { %19447 = vst [vmem:[#allocation130_spill] sm:$0xff] %v11512_v63  ;;  %774 = vbcast.lane.b32.xlu1 %v768_v16, 264  ;;  %770 = vbcast.lane.b32.xlu0 %v768_v16, 256  ;;  %19450 = vst [vmem:[#allocation133_spill] sm:$0xff] %v11527_v37  ;;  %v3216_v60 = vcombine.high %v441_v62, %v452_v61  ;;  %v790_v28 = vrot.slane %v11426_v12, %v10687_v11 }
 0x11f   :  { %19451 = vst [vmem:[#allocation134_spill] sm:$0xff] %v11536_v34  ;;  %19452 = vst [vmem:[#allocation135_spill] sm:$0xff] %v11539_v5  ;;  %v11547_v52 = vrot.slane %v3560_v8, %v10735_v0  ;;  %v11550_v47 = vrot.slane %v3592_v22, %v10735_v0  ;;  %v3223_v14 = vrot.slane %v3215_v59, %v10726_v54 }
 0x120   :  { %v467_v18 = vpop.permute.xlu1 %466  ;;  %v463_v16 = vpop.permute.xlu0 %462  ;;  %19453 = vst [vmem:[#allocation136_spill] sm:$0xff] %v11542_v6  ;;  %v11558_v62 = vrot.slane %v3575_v10, %v10735_v0  ;;  %v11561_v21 = vrot.slane %v3607_v27, %v10735_v0  ;;  %v3631_v22 = vcombine.low %v11484_v26, %v11503_v4  ;;  %v3230_v1 = vrot.slane %v3216_v60, %v10726_v54 }
 0x121   :  { %19454 = vst [vmem:[#allocation137_spill] sm:$0xff] %v11547_v52  ;;  %19455 = vst [vmem:[#allocation138_spill] sm:$0xff] %v11550_v47  ;;  %v3632_v27 = vcombine.high %v11484_v26, %v11503_v4  ;;  %v3247_v34 = vcombine.low %v3223_v14, %v3223_v14  ;;  %v3248_v10 = vcombine.high %v3223_v14, %v3223_v14 }
 0x122   :  { %785 = vbcast.lane.b32.xlu1 %v779_v32, 264  ;;  %781 = vbcast.lane.b32.xlu0 %v779_v32, 256  ;;  %19456 = vst [vmem:[#allocation139_spill] sm:$0xff] %v11558_v62  ;;  %19457 = vst [vmem:[#allocation140_spill] sm:$0xff] %v11561_v21  ;;  %v801_v32 = vrot.slane %v11426_v12, %v10691_v13  ;;  %v3263_v50 = vcombine.low %v3230_v1, %v3230_v1 }
 0x123   :  { %v11592_v14 = vrot.slane %v3247_v34, %v10735_v0  ;;  %v11609_v34 = vrot.slane %v3248_v10, %v10735_v0 }
 0x124   :  { %v478_v61 = vpop.permute.xlu1 %477  ;;  %v474_v63 = vpop.permute.xlu0 %473  ;;  %v11614_v5 = vrot.slane %v3263_v50, %v10735_v0 }
 0x125   :  { %v3647_v8 = vcombine.low %v467_v18, %v478_v61  ;;  %v3231_v48 = vcombine.low %v463_v16, %v474_v63  ;;  %v3232_v37 = vcombine.high %v463_v16, %v474_v63  ;;  %v3648_v42 = vcombine.high %v467_v18, %v478_v61  ;;  %19459 = vst [vmem:[#allocation142_spill] sm:$0xff] %v11592_v14 }
 0x126   :  { %796 = vbcast.lane.b32.xlu1 %v790_v28, 264  ;;  %792 = vbcast.lane.b32.xlu0 %v790_v28, 256  ;;  %v3639_v16 = vrot.slane %v3631_v22, %v10726_v54  ;;  %v812_v28 = vrot.slane %v11426_v12, %v10695_v15  ;;  %v823_v22 = vrot.slane %v11426_v12, %v10699_v17 }
 0x127   :  { %v3239_v55 = vrot.slane %v3231_v48, %v10726_v54  ;;  %v3246_v59 = vrot.slane %v3232_v37, %v10726_v54  ;;  %v3655_v26 = vrot.slane %v3647_v8, %v10726_v54  ;;  %v11587_v37 = vrot.slane %v3632_v27, %v10726_v54  ;;  %19464 = vst [vmem:[#allocation147_spill] sm:$0xff] %v11609_v34 }
 0x128   :  { %v11578_v60 = vpop.permute.xlu1 %488  ;;  %v485_v4 = vpop.permute.xlu0 %484  ;;  %v11595_v8 = vrot.slane %v3648_v42, %v10726_v54  ;;  %v3264_v27 = vcombine.high %v3230_v1, %v3230_v1  ;;  %v3664_v42 = vcombine.high %v3639_v16, %v3639_v16  ;;  %19465 = vst [vmem:[#allocation148_spill] sm:$0xff] %v11614_v5 }
 0x129   :  { %v3279_v18 = vcombine.low %v3239_v55, %v3239_v55  ;;  %v3280_v61 = vcombine.high %v3239_v55, %v3239_v55  ;;  %v3295_v48 = vcombine.low %v3246_v59, %v3246_v59  ;;  %19458 = vst [vmem:[#allocation141_spill] sm:$0xff] %v11587_v37  ;;  %v3296_v47 = vcombine.high %v3246_v59, %v3246_v59 }
 0x12a   :  { %807 = vbcast.lane.b32.xlu1 %v801_v32, 264  ;;  %803 = vbcast.lane.b32.xlu0 %v801_v32, 256  ;;  %19460 = vst [vmem:[#allocation143_spill] sm:$0xff] %v11595_v8  ;;  %v3663_v32 = vcombine.low %v3639_v16, %v3639_v16  ;;  %v3695_v12 = vcombine.low %v3655_v26, %v3655_v26 }
 0x12b   :  { %v11600_v55 = vrot.slane %v3279_v18, %v10735_v0  ;;  %v11603_v62 = vrot.slane %v3280_v61, %v10735_v0  ;;  %v11606_v59 = vrot.slane %v3295_v48, %v10735_v0  ;;  %v3696_v52 = vcombine.high %v3655_v26, %v3655_v26  ;;  %v11616_v48 = vld [vmem:[#allocation2 + $0x48] sm:$0xff] }
 0x12c   :  { %v11597_v63 = vpop.permute.xlu1 %499  ;;  %v496_v21 = vpop.permute.xlu0 %495  ;;  %v11623_v16 = vrot.slane %v3296_v47, %v10735_v0  ;;  %v3679_v26 = vcombine.low %v11587_v37, %v11587_v37  ;;  %v3711_v50 = vcombine.low %v11595_v8, %v11595_v8  ;;  %v11632_v14 = vrot.slane %v3264_v27, %v10735_v0 }
 0x12d   :  { %19461 = vst [vmem:[#allocation144_spill] sm:$0xff] %v11600_v55  ;;  %19462 = vst [vmem:[#allocation145_spill] sm:$0xff] %v11603_v62  ;;  %v3319_v61 = vcombine.low %v485_v4, %v496_v21  ;;  %v11635_v1 = vrot.slane %v3663_v32, %v10735_v0  ;;  %v11638_v47 = vrot.slane %v3695_v12, %v10735_v0 }
 0x12e   :  { %19463 = vst [vmem:[#allocation146_spill] sm:$0xff] %v11606_v59  ;;  %818 = vbcast.lane.b32.xlu1 %v812_v28, 264  ;;  %814 = vbcast.lane.b32.xlu0 %v812_v28, 256  ;;  %19466 = vst [vmem:[#allocation149_spill] sm:$0xff] %v11623_v16  ;;  %v3320_v10 = vcombine.high %v485_v4, %v496_v21  ;;  %v834_v62 = vrot.slane %v11616_v48, %v10674_v3 }
 0x12f   :  { %19467 = vst [vmem:[#allocation150_spill] sm:$0xff] %v11632_v14  ;;  %19468 = vst [vmem:[#allocation151_spill] sm:$0xff] %v11635_v1  ;;  %v11643_v34 = vrot.slane %v3664_v42, %v10735_v0  ;;  %v11646_v28 = vrot.slane %v3696_v52, %v10735_v0  ;;  %v3327_v27 = vrot.slane %v3319_v61, %v10726_v54 }
 0x130   :  { %v511_v18 = vpop.permute.xlu1 %510  ;;  %v507_v6 = vpop.permute.xlu0 %506  ;;  %19469 = vst [vmem:[#allocation152_spill] sm:$0xff] %v11638_v47  ;;  %v11654_v4 = vrot.slane %v3679_v26, %v10735_v0  ;;  %v11657_v5 = vrot.slane %v3711_v50, %v10735_v0  ;;  %v3735_v52 = vcombine.low %v11578_v60, %v11597_v63  ;;  %v3334_v12 = vrot.slane %v3320_v10, %v10726_v54 }
 0x131   :  { %19470 = vst [vmem:[#allocation153_spill] sm:$0xff] %v11643_v34  ;;  %19471 = vst [vmem:[#allocation154_spill] sm:$0xff] %v11646_v28  ;;  %v3736_v50 = vcombine.high %v11578_v60, %v11597_v63  ;;  %v3352_v14 = vcombine.high %v3327_v27, %v3327_v27  ;;  %v3351_v26 = vcombine.low %v3327_v27, %v3327_v27 }
 0x132   :  { %829 = vbcast.lane.b32.xlu1 %v823_v22, 264  ;;  %825 = vbcast.lane.b32.xlu0 %v823_v22, 256  ;;  %19472 = vst [vmem:[#allocation155_spill] sm:$0xff] %v11654_v4  ;;  %19473 = vst [vmem:[#allocation156_spill] sm:$0xff] %v11657_v5  ;;  %v845_v22 = vrot.slane %v11616_v48, %v10671_v2  ;;  %v3367_v55 = vcombine.low %v3334_v12, %v3334_v12 }
 0x133   :  { %v11688_v27 = vrot.slane %v3352_v14, %v10735_v0  ;;  %v11705_v14 = vrot.slane %v3351_v26, %v10735_v0 }
 0x134   :  { %v522_v21 = vpop.permute.xlu1 %521  ;;  %v518_v59 = vpop.permute.xlu0 %517  ;;  %v11710_v47 = vrot.slane %v3367_v55, %v10735_v0 }
 0x135   :  { %v3751_v42 = vcombine.low %v511_v18, %v522_v21  ;;  %v3335_v32 = vcombine.low %v507_v6, %v518_v59  ;;  %v3336_v16 = vcombine.high %v507_v6, %v518_v59  ;;  %v3752_v8 = vcombine.high %v511_v18, %v522_v21  ;;  %19474 = vst [vmem:[#allocation157_spill] sm:$0xff] %v11688_v27 }
 0x136   :  { %840 = vbcast.lane.b32.xlu1 %v834_v62, 264  ;;  %836 = vbcast.lane.b32.xlu0 %v834_v62, 256  ;;  %v3743_v59 = vrot.slane %v3735_v52, %v10726_v54  ;;  %v856_v62 = vrot.slane %v11616_v48, %v10679_v7  ;;  %v867_v52 = vrot.slane %v11616_v48, %v10683_v9 }
 0x137   :  { %v3343_v37 = vrot.slane %v3335_v32, %v10726_v54  ;;  %v3350_v61 = vrot.slane %v3336_v16, %v10726_v54  ;;  %v3759_v60 = vrot.slane %v3751_v42, %v10726_v54  ;;  %v11683_v16 = vrot.slane %v3736_v50, %v10726_v54  ;;  %19479 = vst [vmem:[#allocation162_spill] sm:$0xff] %v11705_v14 }
 0x138   :  { %v11674_v10 = vpop.permute.xlu1 %532  ;;  %v529_v63 = vpop.permute.xlu0 %528  ;;  %v11691_v42 = vrot.slane %v3752_v8, %v10726_v54  ;;  %v3368_v50 = vcombine.high %v3334_v12, %v3334_v12  ;;  %v3768_v8 = vcombine.high %v3743_v59, %v3743_v59  ;;  %19480 = vst [vmem:[#allocation163_spill] sm:$0xff] %v11710_v47 }
 0x139   :  { %v3383_v18 = vcombine.low %v3343_v37, %v3343_v37  ;;  %v3384_v21 = vcombine.high %v3343_v37, %v3343_v37  ;;  %v3399_v32 = vcombine.low %v3350_v61, %v3350_v61  ;;  %v3400_v28 = vcombine.high %v3350_v61, %v3350_v61 }
 0x13a   :  { %851 = vbcast.lane.b32.xlu1 %v845_v22, 264  ;;  %847 = vbcast.lane.b32.xlu0 %v845_v22, 256  ;;  %19475 = vst [vmem:[#allocation158_spill] sm:$0xff] %v11691_v42  ;;  %v3767_v22 = vcombine.low %v3743_v59, %v3743_v59  ;;  %v3799_v5 = vcombine.low %v3759_v60, %v3759_v60 }
 0x13b   :  { %v11696_v37 = vrot.slane %v3383_v18, %v10735_v0  ;;  %v11699_v4 = vrot.slane %v3384_v21, %v10735_v0  ;;  %v11702_v61 = vrot.slane %v3399_v32, %v10735_v0  ;;  %v3800_v1 = vcombine.high %v3759_v60, %v3759_v60 }
 0x13c   :  { %v11693_v6 = vpop.permute.xlu1 %543  ;;  %v540_v34 = vpop.permute.xlu0 %539  ;;  %v11717_v26 = vrot.slane %v3400_v28, %v10735_v0  ;;  %v3783_v59 = vcombine.low %v11683_v16, %v11683_v16  ;;  %v3815_v60 = vcombine.low %v11691_v42, %v11691_v42  ;;  %v11726_v30 = vrot.slane %v3368_v50, %v10735_v0 }
 0x13d   :  { %19476 = vst [vmem:[#allocation159_spill] sm:$0xff] %v11696_v37  ;;  %19477 = vst [vmem:[#allocation160_spill] sm:$0xff] %v11699_v4  ;;  %v3423_v21 = vcombine.low %v529_v63, %v540_v34  ;;  %v11729_v32 = vrot.slane %v3767_v22, %v10735_v0  ;;  %v11732_v28 = vrot.slane %v3799_v5, %v10735_v0 }
 0x13e   :  { %19478 = vst [vmem:[#allocation161_spill] sm:$0xff] %v11702_v61  ;;  %862 = vbcast.lane.b32.xlu1 %v856_v62, 264  ;;  %858 = vbcast.lane.b32.xlu0 %v856_v62, 256  ;;  %19481 = vst [vmem:[#allocation164_spill] sm:$0xff] %v11717_v26  ;;  %v3424_v12 = vcombine.high %v529_v63, %v540_v34  ;;  %v878_v4 = vrot.slane %v11616_v48, %v10687_v11 }
 0x13f   :  { %19482 = vst [vmem:[#allocation165_spill] sm:$0xff] %v11726_v30  ;;  %19483 = vst [vmem:[#allocation166_spill] sm:$0xff] %v11729_v32  ;;  %v11737_v27 = vrot.slane %v3768_v8, %v10735_v0  ;;  %v11740_v55 = vrot.slane %v3800_v1, %v10735_v0  ;;  %v3431_v50 = vrot.slane %v3423_v21, %v10726_v54 }
 0x140   :  { %v555_v18 = vpop.permute.xlu1 %554  ;;  %v551_v62 = vpop.permute.xlu0 %550  ;;  %19484 = vst [vmem:[#allocation167_spill] sm:$0xff] %v11732_v28  ;;  %v11748_v63 = vrot.slane %v3783_v59, %v10735_v0  ;;  %v11751_v47 = vrot.slane %v3815_v60, %v10735_v0  ;;  %v3839_v1 = vcombine.low %v11674_v10, %v11693_v6  ;;  %v3438_v5 = vrot.slane %v3424_v12, %v10726_v54 }
 0x141   :  { %19485 = vst [vmem:[#allocation168_spill] sm:$0xff] %v11737_v27  ;;  %19486 = vst [vmem:[#allocation169_spill] sm:$0xff] %v11740_v55  ;;  %v3840_v60 = vcombine.high %v11674_v10, %v11693_v6  ;;  %v3455_v30 = vcombine.low %v3431_v50, %v3431_v50  ;;  %v3456_v59 = vcombine.high %v3431_v50, %v3431_v50 }
 0x142   :  { %873 = vbcast.lane.b32.xlu1 %v867_v52, 264  ;;  %869 = vbcast.lane.b32.xlu0 %v867_v52, 256  ;;  %19487 = vst [vmem:[#allocation170_spill] sm:$0xff] %v11748_v63  ;;  %19488 = vst [vmem:[#allocation171_spill] sm:$0xff] %v11751_v47  ;;  %v889_v52 = vrot.slane %v11616_v48, %v10691_v13  ;;  %v3471_v14 = vcombine.low %v3438_v5, %v3438_v5 }
 0x143   :  { %v11782_v50 = vrot.slane %v3455_v30, %v10735_v0  ;;  %v11799_v30 = vrot.slane %v3456_v59, %v10735_v0 }
 0x144   :  { %v566_v34 = vpop.permute.xlu1 %565  ;;  %v562_v61 = vpop.permute.xlu0 %561  ;;  %v11804_v32 = vrot.slane %v3471_v14, %v10735_v0 }
 0x145   :  { %v3855_v8 = vcombine.low %v555_v18, %v566_v34  ;;  %v3439_v22 = vcombine.low %v551_v62, %v562_v61  ;;  %v3440_v26 = vcombine.high %v551_v62, %v562_v61  ;;  %v3856_v37 = vcombine.high %v555_v18, %v566_v34  ;;  %19489 = vst [vmem:[#allocation172_spill] sm:$0xff] %v11782_v50 }
 0x146   :  { %884 = vbcast.lane.b32.xlu1 %v878_v4, 264  ;;  %880 = vbcast.lane.b32.xlu0 %v878_v4, 256  ;;  %v3847_v62 = vrot.slane %v3839_v1, %v10726_v54  ;;  %v900_v4 = vrot.slane %v11616_v48, %v10695_v15  ;;  %v911_v1 = vrot.slane %v11616_v48, %v10699_v17 }
 0x147   :  { %v3447_v42 = vrot.slane %v3439_v22, %v10726_v54  ;;  %v3454_v21 = vrot.slane %v3440_v26, %v10726_v54  ;;  %v3863_v10 = vrot.slane %v3855_v8, %v10726_v54  ;;  %v11777_v26 = vrot.slane %v3840_v60, %v10726_v54  ;;  %19494 = vst [vmem:[#allocation177_spill] sm:$0xff] %v11799_v30 }
 0x148   :  { %v11768_v12 = vpop.permute.xlu1 %576  ;;  %v573_v6 = vpop.permute.xlu0 %572  ;;  %v11785_v8 = vrot.slane %v3856_v37, %v10726_v54  ;;  %v3472_v60 = vcombine.high %v3438_v5, %v3438_v5  ;;  %v3872_v37 = vcombine.high %v3847_v62, %v3847_v62  ;;  %19495 = vst [vmem:[#allocation178_spill] sm:$0xff] %v11804_v32 }
 0x149   :  { %v3487_v18 = vcombine.low %v3447_v42, %v3447_v42  ;;  %v3488_v34 = vcombine.high %v3447_v42, %v3447_v42  ;;  %v3503_v22 = vcombine.low %v3454_v21, %v3454_v21  ;;  %v3504_v55 = vcombine.high %v3454_v21, %v3454_v21 }
 0x14a   :  { %895 = vbcast.lane.b32.xlu1 %v889_v52, 264  ;;  %891 = vbcast.lane.b32.xlu0 %v889_v52, 256  ;;  %19490 = vst [vmem:[#allocation173_spill] sm:$0xff] %v11785_v8  ;;  %v3871_v52 = vcombine.low %v3847_v62, %v3847_v62  ;;  %v3903_v48 = vcombine.low %v3863_v10, %v3863_v10 }
 0x14b   :  { %v11790_v42 = vrot.slane %v3487_v18, %v10735_v0  ;;  %v11793_v63 = vrot.slane %v3488_v34, %v10735_v0  ;;  %v11796_v21 = vrot.slane %v3503_v22, %v10735_v0  ;;  %v3904_v27 = vcombine.high %v3863_v10, %v3863_v10  ;;  %v11806_v22 = vld [vmem:[#allocation2 + $0x50] sm:$0xff] }
 0x14c   :  { %v11787_v61 = vpop.permute.xlu1 %587  ;;  %v584_v47 = vpop.permute.xlu0 %583  ;;  %v11813_v62 = vrot.slane %v3504_v55, %v10735_v0  ;;  %v1912_v10 = vcombine.high %v10752_v35, %v10752_v35  ;;  %v3887_v14 = vcombine.low %v11777_v26, %v11777_v26  ;;  %v11824_v50 = vrot.slane %v3472_v60, %v10735_v0 }
 0x14d   :  { %19491 = vst [vmem:[#allocation174_spill] sm:$0xff] %v11790_v42  ;;  %19492 = vst [vmem:[#allocation175_spill] sm:$0xff] %v11793_v63  ;;  %v3943_v34 = vcombine.low %v573_v6, %v584_v47  ;;  %v11827_v55 = vrot.slane %v3871_v52, %v10735_v0  ;;  %v11830_v59 = vrot.slane %v3903_v48, %v10735_v0 }
 0x14e   :  { %19493 = vst [vmem:[#allocation176_spill] sm:$0xff] %v11796_v21  ;;  %906 = vbcast.lane.b32.xlu1 %v900_v4, 264  ;;  %902 = vbcast.lane.b32.xlu0 %v900_v4, 256  ;;  %19496 = vst [vmem:[#allocation179_spill] sm:$0xff] %v11813_v62  ;;  %v3919_v4 = vcombine.low %v11785_v8, %v11785_v8  ;;  %v3944_v35 = vcombine.high %v573_v6, %v584_v47 }
 0x14f   :  { %19497 = vst [vmem:[#allocation180_spill] sm:$0xff] %v11824_v50  ;;  %19498 = vst [vmem:[#allocation181_spill] sm:$0xff] %v11827_v55  ;;  %v922_v63 = vrot.slane %v11806_v22, %v10674_v3  ;;  %v11835_v30 = vrot.slane %v3872_v37, %v10735_v0  ;;  %v11838_v28 = vrot.slane %v3904_v27, %v10735_v0 }
 0x150   :  { %v599_v18 = vpop.permute.xlu1 %598  ;;  %v595_v5 = vpop.permute.xlu0 %594  ;;  %19499 = vst [vmem:[#allocation182_spill] sm:$0xff] %v11830_v59  ;;  %v3951_v60 = vrot.slane %v3943_v34, %v10726_v54  ;;  %v11848_v32 = vrot.slane %v3887_v14, %v10735_v0  ;;  %v11851_v37 = vrot.slane %v3919_v4, %v10735_v0  ;;  %v11854_v27 = vrot.slane %v1912_v10, %v10735_v0 }
 0x151   :  { %19500 = vst [vmem:[#allocation183_spill] sm:$0xff] %v11835_v30  ;;  %19501 = vst [vmem:[#allocation184_spill] sm:$0xff] %v11838_v28  ;;  %v933_v48 = vrot.slane %v11806_v22, %v10671_v2  ;;  %v3958_v14 = vrot.slane %v3944_v35, %v10726_v54  ;;  %v4360_v4 = vcombine.high %v11768_v12, %v11787_v61 }
 0x152   :  { %917 = vbcast.lane.b32.xlu1 %v911_v1, 264  ;;  %913 = vbcast.lane.b32.xlu0 %v911_v1, 256  ;;  %19502 = vst [vmem:[#allocation185_spill] sm:$0xff] %v11848_v32  ;;  %19503 = vst [vmem:[#allocation186_spill] sm:$0xff] %v11851_v37  ;;  %v4359_v1 = vcombine.low %v11768_v12, %v11787_v61  ;;  %v3976_v21 = vcombine.high %v3951_v60, %v3951_v60 }
 0x153   :  { %19504 = vst [vmem:[#allocation187_spill] sm:$0xff] %v11854_v27  ;;  %v3975_v61 = vcombine.low %v3951_v60, %v3951_v60  ;;  %v944_v8 = vrot.slane %v11806_v22, %v10679_v7  ;;  %v955_v60 = vrot.slane %v11806_v22, %v10683_v9  ;;  %v966_v29 = vrot.slane %v11806_v22, %v10687_v11 }
 0x154   :  { %v610_v6 = vpop.permute.xlu1 %609  ;;  %v606_v52 = vpop.permute.xlu0 %605  ;;  %v4367_v12 = vrot.slane %v4359_v1, %v10726_v54  ;;  %v11889_v1 = vrot.slane %v3976_v21, %v10735_v0  ;;  %v988_v19 = vrot.slane %v11806_v22, %v10695_v15 }
 0x155   :  { %v4375_v34 = vcombine.low %v599_v18, %v610_v6  ;;  %v3959_v62 = vcombine.low %v595_v5, %v606_v52  ;;  %v3960_v50 = vcombine.high %v595_v5, %v606_v52  ;;  %v4376_v47 = vcombine.high %v599_v18, %v610_v6 }
 0x156   :  { %928 = vbcast.lane.b32.xlu1 %v922_v63, 264  ;;  %924 = vbcast.lane.b32.xlu0 %v922_v63, 256  ;;  %v3991_v18 = vcombine.low %v3958_v14, %v3958_v14  ;;  %19505 = vst [vmem:[#allocation188_spill] sm:$0xff] %v11889_v1  ;;  %v11906_v21 = vrot.slane %v3975_v61, %v10735_v0 }
 0x157   :  { %v3967_v35 = vrot.slane %v3959_v62, %v10726_v54  ;;  %v3974_v5 = vrot.slane %v3960_v50, %v10726_v54  ;;  %v4383_v63 = vrot.slane %v4375_v34, %v10726_v54  ;;  %v11884_v50 = vrot.slane %v4360_v4, %v10726_v54 }
 0x158   :  { %v11873_v52 = vpop.permute.xlu1 %620  ;;  %v11879_v55 = vpop.permute.xlu0 %616  ;;  %v11892_v34 = vrot.slane %v4376_v47, %v10726_v54  ;;  %19509 = vst [vmem:[#allocation192_spill] sm:$0xff] %v11906_v21  ;;  %v4392_v47 = vcombine.high %v4367_v12, %v4367_v12  ;;  %v11911_v40 = vrot.slane %v3991_v18, %v10735_v0 }
 0x159   :  { %v4007_v6 = vcombine.low %v3967_v35, %v3967_v35  ;;  %v4008_v62 = vcombine.high %v3967_v35, %v3967_v35  ;;  %v4023_v42 = vcombine.low %v3974_v5, %v3974_v5  ;;  %v4024_v28 = vcombine.high %v3974_v5, %v3974_v5 }
 0x15a   :  { %939 = vbcast.lane.b32.xlu1 %v933_v48, 264  ;;  %935 = vbcast.lane.b32.xlu0 %v933_v48, 256  ;;  %v4391_v48 = vcombine.low %v4367_v12, %v4367_v12  ;;  %v3992_v5 = vcombine.high %v3958_v14, %v3958_v14  ;;  %v4423_v37 = vcombine.low %v4383_v63, %v4383_v63 }
 0x15b   :  { %v11897_v35 = vrot.slane %v4007_v6, %v10735_v0  ;;  %v11900_v32 = vrot.slane %v4008_v62, %v10735_v0  ;;  %v11903_v4 = vrot.slane %v4023_v42, %v10735_v0  ;;  %v4424_v59 = vcombine.high %v4383_v63, %v4383_v63  ;;  %19510 = vst [vmem:[#allocation193_spill] sm:$0xff] %v11911_v40 }
 0x15c   :  { %v11894_v10 = vpop.permute.xlu1 %631  ;;  %v628_v30 = vpop.permute.xlu0 %627  ;;  %v11919_v61 = vrot.slane %v4024_v28, %v10735_v0  ;;  %v4407_v63 = vcombine.low %v11884_v50, %v11884_v50  ;;  %v4439_v18 = vcombine.low %v11892_v34, %v11892_v34  ;;  %v11932_v28 = vrot.slane %v3992_v5, %v10735_v0 }
 0x15d   :  { %19506 = vst [vmem:[#allocation189_spill] sm:$0xff] %v11897_v35  ;;  %19507 = vst [vmem:[#allocation190_spill] sm:$0xff] %v11900_v32  ;;  %v4047_v62 = vcombine.low %v11879_v55, %v628_v30  ;;  %v11935_v32 = vrot.slane %v4391_v48, %v10735_v0  ;;  %v11938_v12 = vrot.slane %v4423_v37, %v10735_v0 }
 0x15e   :  { %19508 = vst [vmem:[#allocation191_spill] sm:$0xff] %v11903_v4  ;;  %950 = vbcast.lane.b32.xlu1 %v944_v8, 264  ;;  %946 = vbcast.lane.b32.xlu0 %v944_v8, 256  ;;  %19511 = vst [vmem:[#allocation194_spill] sm:$0xff] %v11919_v61  ;;  %v4048_v1 = vcombine.high %v11879_v55, %v628_v30  ;;  %v11944_v8 = vrot.slane %v4392_v47, %v10735_v0 }
 0x15f   :  { %19512 = vst [vmem:[#allocation195_spill] sm:$0xff] %v11932_v28  ;;  %19513 = vst [vmem:[#allocation196_spill] sm:$0xff] %v11935_v32  ;;  %v11947_v42 = vrot.slane %v4424_v59, %v10735_v0  ;;  %v4055_v5 = vrot.slane %v4047_v62, %v10726_v54  ;;  %v11961_v40 = vrot.slane %v4407_v63, %v10735_v0 }
 0x160   :  { %v643_v6 = vpop.permute.xlu1 %642  ;;  %v639_v14 = vpop.permute.xlu0 %638  ;;  %19514 = vst [vmem:[#allocation197_spill] sm:$0xff] %v11938_v12  ;;  %19515 = vst [vmem:[#allocation198_spill] sm:$0xff] %v11944_v8  ;;  %v4463_v62 = vcombine.low %v11873_v52, %v11894_v10  ;;  %v977_v30 = vrot.slane %v11806_v22, %v10691_v13  ;;  %v4062_v47 = vrot.slane %v4048_v1, %v10726_v54 }
 0x161   :  { %19516 = vst [vmem:[#allocation199_spill] sm:$0xff] %v11947_v42  ;;  %19517 = vst [vmem:[#allocation200_spill] sm:$0xff] %v11961_v40  ;;  %v4079_v4 = vcombine.low %v4055_v5, %v4055_v5 }
 0x162   :  { %961 = vbcast.lane.b32.xlu1 %v955_v60, 264  ;;  %957 = vbcast.lane.b32.xlu0 %v955_v60, 256  ;;  %v11964_v60 = vrot.slane %v4439_v18, %v10735_v0  ;;  %v4464_v18 = vcombine.high %v11873_v52, %v11894_v10  ;;  %v4471_v10 = vrot.slane %v4463_v62, %v10726_v54 }
 0x163   :  { %v4080_v52 = vcombine.high %v4055_v5, %v4055_v5  ;;  %v999_v5 = vrot.slane %v11806_v22, %v10699_v17 }
 0x164   :  { %v654_v59 = vpop.permute.xlu1 %653  ;;  %19518 = vst [vmem:[#allocation201_spill] sm:$0xff] %v11964_v60  ;;  %v650_v48 = vpop.permute.xlu0 %649 }
 0x165   :  { %v4479_v37 = vcombine.low %v643_v6, %v654_v59  ;;  %v4063_v61 = vcombine.low %v639_v14, %v650_v48  ;;  %v4064_v28 = vcombine.high %v639_v14, %v650_v48  ;;  %v4480_v55 = vcombine.high %v643_v6, %v654_v59 }
 0x166   :  { %972 = vbcast.lane.b32.xlu1 %v966_v29, 264  ;;  %968 = vbcast.lane.b32.xlu0 %v966_v29, 256  ;;  %v4095_v6 = vcombine.low %v4062_v47, %v4062_v47 }
 0x167   :  { %v4071_v1 = vrot.slane %v4063_v61, %v10726_v54  ;;  %v4078_v14 = vrot.slane %v4064_v28, %v10726_v54  ;;  %v4487_v29 = vrot.slane %v4479_v37, %v10726_v54  ;;  %v11994_v28 = vrot.slane %v4464_v18, %v10726_v54 }
 0x168   :  { %v11983_v48 = vpop.permute.xlu1 %664  ;;  %v11989_v32 = vpop.permute.xlu0 %660  ;;  %v11999_v37 = vrot.slane %v4079_v4, %v10735_v0  ;;  %v12002_v62 = vrot.slane %v4480_v55, %v10726_v54  ;;  %v12016_v4 = vrot.slane %v4080_v52, %v10735_v0  ;;  %v4496_v55 = vcombine.high %v4471_v10, %v4471_v10 }
 0x169   :  { %v4111_v59 = vcombine.low %v4071_v1, %v4071_v1  ;;  %v4112_v61 = vcombine.high %v4071_v1, %v4071_v1  ;;  %v4127_v25 = vcombine.low %v4078_v14, %v4078_v14  ;;  %19519 = vst [vmem:[#allocation202_spill] sm:$0xff] %v11994_v28  ;;  %v4128_v42 = vcombine.high %v4078_v14, %v4078_v14 }
 0x16a   :  { %983 = vbcast.lane.b32.xlu1 %v977_v30, 264  ;;  %979 = vbcast.lane.b32.xlu0 %v977_v30, 256  ;;  %19520 = vst [vmem:[#allocation203_spill] sm:$0xff] %v11999_v37  ;;  %19521 = vst [vmem:[#allocation204_spill] sm:$0xff] %v12002_v62  ;;  %v4495_v30 = vcombine.low %v4471_v10, %v4471_v10  ;;  %v4096_v14 = vcombine.high %v4062_v47, %v4062_v47 }
 0x16b   :  { %v12007_v1 = vrot.slane %v4111_v59, %v10735_v0  ;;  %v12010_v40 = vrot.slane %v4112_v61, %v10735_v0  ;;  %v12013_v18 = vrot.slane %v4127_v25, %v10735_v0  ;;  %v4527_v22 = vcombine.low %v4487_v29, %v4487_v29  ;;  %19525 = vst [vmem:[#allocation208_spill] sm:$0xff] %v12016_v4  ;;  %v12024_v25 = vld [vmem:[#allocation2 + $0x58] sm:$0xff] }
 0x16c   :  { %v12004_v63 = vpop.permute.xlu1 %675  ;;  %v672_v60 = vpop.permute.xlu0 %671  ;;  %v4528_v8 = vcombine.high %v4487_v29, %v4487_v29  ;;  %v12021_v12 = vrot.slane %v4095_v6, %v10735_v0  ;;  %v12031_v10 = vrot.slane %v4128_v42, %v10735_v0  ;;  %v4511_v6 = vcombine.low %v11994_v28, %v11994_v28 }
 0x16d   :  { %19522 = vst [vmem:[#allocation205_spill] sm:$0xff] %v12007_v1  ;;  %19523 = vst [vmem:[#allocation206_spill] sm:$0xff] %v12010_v40  ;;  %v4151_v61 = vcombine.low %v11989_v32, %v672_v60  ;;  %v12044_v42 = vrot.slane %v4096_v14, %v10735_v0  ;;  %v12047_v40 = vrot.slane %v4495_v30, %v10735_v0 }
 0x16e   :  { %19524 = vst [vmem:[#allocation207_spill] sm:$0xff] %v12013_v18  ;;  %994 = vbcast.lane.b32.xlu1 %v988_v19, 264  ;;  %19526 = vst [vmem:[#allocation209_spill] sm:$0xff] %v12021_v12  ;;  %990 = vbcast.lane.b32.xlu0 %v988_v19, 256  ;;  %v4543_v19 = vcombine.low %v12002_v62, %v12002_v62  ;;  %v12050_v29 = vrot.slane %v4527_v22, %v10735_v0 }
 0x16f   :  { %19527 = vst [vmem:[#allocation210_spill] sm:$0xff] %v12031_v10  ;;  %19528 = vst [vmem:[#allocation211_spill] sm:$0xff] %v12044_v42  ;;  %v4152_v4 = vcombine.high %v11989_v32, %v672_v60  ;;  %v1010_v62 = vrot.slane %v12024_v25, %v10674_v3  ;;  %v12056_v58 = vrot.slane %v4496_v55, %v10735_v0 }
 0x170   :  { %v687_v59 = vpop.permute.xlu1 %686  ;;  %v683_v52 = vpop.permute.xlu0 %682  ;;  %19529 = vst [vmem:[#allocation212_spill] sm:$0xff] %v12047_v40  ;;  %19530 = vst [vmem:[#allocation213_spill] sm:$0xff] %v12050_v29  ;;  %v12059_v47 = vrot.slane %v4528_v8, %v10735_v0  ;;  %v4159_v14 = vrot.slane %v4151_v61, %v10726_v54  ;;  %v12073_v12 = vrot.slane %v4511_v6, %v10735_v0 }
 0x171   :  { %19531 = vst [vmem:[#allocation214_spill] sm:$0xff] %v12056_v58  ;;  %v4567_v61 = vcombine.low %v11983_v48, %v12004_v63  ;;  %v1021_v32 = vrot.slane %v12024_v25, %v10671_v2  ;;  %v4166_v55 = vrot.slane %v4152_v4, %v10726_v54  ;;  %v1032_v28 = vrot.slane %v12024_v25, %v10679_v7 }
 0x172   :  { %1005 = vbcast.lane.b32.xlu1 %v999_v5, 264  ;;  %19532 = vst [vmem:[#allocation215_spill] sm:$0xff] %v12059_v47  ;;  %1001 = vbcast.lane.b32.xlu0 %v999_v5, 256  ;;  %19533 = vst [vmem:[#allocation216_spill] sm:$0xff] %v12073_v12  ;;  %v12076_v5 = vrot.slane %v4543_v19, %v10735_v0  ;;  %v4568_v19 = vcombine.high %v11983_v48, %v12004_v63 }
 0x173   :  { %v4184_v18 = vcombine.high %v4159_v14, %v4159_v14  ;;  %v4575_v63 = vrot.slane %v4567_v61, %v10726_v54  ;;  %v4183_v48 = vcombine.low %v4159_v14, %v4159_v14  ;;  %v4199_v39 = vcombine.low %v4166_v55, %v4166_v55 }
 0x174   :  { %v698_v8 = vpop.permute.xlu1 %697  ;;  %19534 = vst [vmem:[#allocation217_spill] sm:$0xff] %v12076_v5  ;;  %v694_v30 = vpop.permute.xlu0 %693  ;;  %v1043_v61 = vrot.slane %v12024_v25, %v10683_v9 }
 0x175   :  { %v4583_v22 = vcombine.low %v687_v59, %v698_v8  ;;  %v4167_v10 = vcombine.low %v683_v52, %v694_v30  ;;  %v4168_v42 = vcombine.high %v683_v52, %v694_v30  ;;  %v4584_v60 = vcombine.high %v687_v59, %v698_v8 }
 0x176   :  { %1016 = vbcast.lane.b32.xlu1 %v1010_v62, 264  ;;  %1012 = vbcast.lane.b32.xlu0 %v1010_v62, 256  ;;  %v12109_v14 = vrot.slane %v4184_v18, %v10735_v0  ;;  %v12126_v18 = vrot.slane %v4183_v48, %v10735_v0  ;;  %v12131_v43 = vrot.slane %v4199_v39, %v10735_v0 }
 0x177   :  { %v4175_v4 = vrot.slane %v4167_v10, %v10726_v54  ;;  %v4182_v52 = vrot.slane %v4168_v42, %v10726_v54  ;;  %v4591_v62 = vrot.slane %v4583_v22, %v10726_v54  ;;  %v12104_v42 = vrot.slane %v4568_v19, %v10726_v54 }
 0x178   :  { %v12095_v30 = vpop.permute.xlu1 %708  ;;  %v705_v40 = vpop.permute.xlu0 %704  ;;  %19536 = vst [vmem:[#allocation219_spill] sm:$0xff] %v12109_v14  ;;  %v12112_v22 = vrot.slane %v4584_v60, %v10726_v54  ;;  %19541 = vst [vmem:[#allocation224_spill] sm:$0xff] %v12126_v18  ;;  %v4600_v60 = vcombine.high %v4575_v63, %v4575_v63  ;;  %v1054_v14 = vrot.slane %v12024_v25, %v10687_v11 }
 0x179   :  { %v4215_v59 = vcombine.low %v4175_v4, %v4175_v4  ;;  %v4216_v8 = vcombine.high %v4175_v4, %v4175_v4  ;;  %v4231_v10 = vcombine.low %v4182_v52, %v4182_v52  ;;  %19535 = vst [vmem:[#allocation218_spill] sm:$0xff] %v12104_v42  ;;  %v4232_v47 = vcombine.high %v4182_v52, %v4182_v52 }
 0x17a   :  { %1027 = vbcast.lane.b32.xlu1 %v1021_v32, 264  ;;  %1023 = vbcast.lane.b32.xlu0 %v1021_v32, 256  ;;  %19537 = vst [vmem:[#allocation220_spill] sm:$0xff] %v12112_v22  ;;  %v4599_v32 = vcombine.low %v4575_v63, %v4575_v63  ;;  %v4200_v52 = vcombine.high %v4166_v55, %v4166_v55  ;;  %19542 = vst [vmem:[#allocation225_spill] sm:$0xff] %v12131_v43 }
 0x17b   :  { %v12117_v4 = vrot.slane %v4215_v59, %v10735_v0  ;;  %v12120_v12 = vrot.slane %v4216_v8, %v10735_v0  ;;  %v12123_v19 = vrot.slane %v4231_v10, %v10735_v0  ;;  %v4631_v5 = vcombine.low %v4591_v62, %v4591_v62 }
 0x17c   :  { %v12114_v6 = vpop.permute.xlu1 %719  ;;  %v716_v58 = vpop.permute.xlu0 %715  ;;  %v4632_v29 = vcombine.high %v4591_v62, %v4591_v62  ;;  %v12138_v48 = vrot.slane %v4232_v47, %v10735_v0  ;;  %v4615_v62 = vcombine.low %v12104_v42, %v12104_v42  ;;  %v4647_v39 = vcombine.low %v12112_v22, %v12112_v22 }
 0x17d   :  { %19538 = vst [vmem:[#allocation221_spill] sm:$0xff] %v12117_v4  ;;  %19539 = vst [vmem:[#allocation222_spill] sm:$0xff] %v12120_v12  ;;  %v4255_v8 = vcombine.low %v705_v40, %v716_v58  ;;  %v4256_v10 = vcombine.high %v705_v40, %v716_v58  ;;  %v12149_v55 = vrot.slane %v4200_v52, %v10735_v0 }
 0x17e   :  { %19540 = vst [vmem:[#allocation223_spill] sm:$0xff] %v12123_v19  ;;  %1038 = vbcast.lane.b32.xlu1 %v1032_v28, 264  ;;  %1034 = vbcast.lane.b32.xlu0 %v1032_v28, 256  ;;  %19543 = vst [vmem:[#allocation226_spill] sm:$0xff] %v12138_v48  ;;  %v12152_v47 = vrot.slane %v4599_v32, %v10735_v0  ;;  %v12155_v63 = vrot.slane %v4631_v5, %v10735_v0 }
 0x17f   :  { %19544 = vst [vmem:[#allocation227_spill] sm:$0xff] %v12149_v55  ;;  %v12162_v28 = vrot.slane %v4600_v60, %v10735_v0  ;;  %v12165_v40 = vrot.slane %v4632_v29, %v10735_v0  ;;  %v4671_v58 = vcombine.low %v12095_v30, %v12114_v6  ;;  %v4263_v32 = vrot.slane %v4255_v8, %v10726_v54 }
 0x180   :  { %v731_v59 = vpop.permute.xlu1 %730  ;;  %v727_v18 = vpop.permute.xlu0 %726  ;;  %19545 = vst [vmem:[#allocation228_spill] sm:$0xff] %v12152_v47  ;;  %19546 = vst [vmem:[#allocation229_spill] sm:$0xff] %v12155_v63  ;;  %v1065_v60 = vrot.slane %v12024_v25, %v10691_v13  ;;  %v12179_v19 = vrot.slane %v4615_v62, %v10735_v0  ;;  %v12182_v4 = vrot.slane %v4647_v39, %v10735_v0  ;;  %v12195_v39 = vld [vmem:[#allocation2 + $0x60] sm:$0xff] }
 0x181   :  { %19547 = vst [vmem:[#allocation230_spill] sm:$0xff] %v12162_v28  ;;  %19548 = vst [vmem:[#allocation231_spill] sm:$0xff] %v12165_v40  ;;  %v1076_v52 = vrot.slane %v12024_v25, %v10695_v15  ;;  %v12193_v62 = vrot.slane %v12024_v25, %v10699_v17  ;;  %v4672_v29 = vcombine.high %v12095_v30, %v12114_v6 }
 0x182   :  { %1049 = vbcast.lane.b32.xlu1 %v1043_v61, 264  ;;  %1045 = vbcast.lane.b32.xlu0 %v1043_v61, 256  ;;  %19550 = vst [vmem:[#allocation232_spill] sm:$0xff] %v12179_v19  ;;  %19551 = vst [vmem:[#allocation233_spill] sm:$0xff] %v12182_v4  ;;  %v12185_v61 = vrot.slane %v4256_v10, %v10726_v54  ;;  %v4679_v42 = vrot.slane %v4671_v58, %v10726_v54 }
 0x183   :  { %v4287_v23 = vcombine.low %v4263_v32, %v4263_v32  ;;  %v4288_v10 = vcombine.high %v4263_v32, %v4263_v32 }
 0x184   :  { %v742_v12 = vpop.permute.xlu1 %741  ;;  %v738_v5 = vpop.permute.xlu0 %737  ;;  %v4303_v6 = vcombine.low %v12185_v61, %v12185_v61  ;;  %v4703_v63 = vcombine.low %v4679_v42, %v4679_v42  ;;  %v4704_v32 = vcombine.high %v4679_v42, %v4679_v42  ;;  %v4304_v42 = vcombine.high %v12185_v61, %v12185_v61 }
 0x185   :  { %v4687_v8 = vcombine.low %v731_v59, %v742_v12  ;;  %v4271_v55 = vcombine.low %v727_v18, %v738_v5  ;;  %v4272_v22 = vcombine.high %v727_v18, %v738_v5  ;;  %v4688_v5 = vcombine.high %v731_v59, %v742_v12 }
 0x186   :  { %1060 = vbcast.lane.b32.xlu1 %v1054_v14, 264  ;;  %1056 = vbcast.lane.b32.xlu0 %v1054_v14, 256  ;;  %v12213_v14 = vrot.slane %v12195_v39, %v10674_v3  ;;  %v12219_v19 = vrot.slane %v4287_v23, %v10735_v0  ;;  %v12236_v28 = vrot.slane %v4288_v10, %v10735_v0 }
 0x187   :  { %v4279_v48 = vrot.slane %v4271_v55, %v10726_v54  ;;  %v4286_v25 = vrot.slane %v4272_v22, %v10726_v54  ;;  %v4695_v30 = vrot.slane %v4687_v8, %v10726_v54  ;;  %v12216_v22 = vrot.slane %v4672_v29, %v10726_v54 }
 0x188   :  { %v753_v47 = vpop.permute.xlu1 %752  ;;  %v749_v58 = vpop.permute.xlu0 %748  ;;  %19553 = vst [vmem:[#allocation235_spill] sm:$0xff] %v12219_v19  ;;  %v12222_v8 = vrot.slane %v4688_v5, %v10726_v54  ;;  %19558 = vst [vmem:[#allocation240_spill] sm:$0xff] %v12236_v28  ;;  %v12263_v10 = vrot.slane %v4703_v63, %v10735_v0 }
 0x189   :  { %v4319_v12 = vcombine.low %v4279_v48, %v4279_v48  ;;  %v4320_v59 = vcombine.high %v4279_v48, %v4279_v48  ;;  %v4335_v55 = vcombine.low %v4286_v25, %v4286_v25  ;;  %v4336_v18 = vcombine.high %v4286_v25, %v4286_v25  ;;  %19552 = vst [vmem:[#allocation234_spill] sm:$0xff] %v12216_v22 }
 0x18a   :  { %1071 = vbcast.lane.b32.xlu1 %v1065_v60, 264  ;;  %1067 = vbcast.lane.b32.xlu0 %v1065_v60, 256  ;;  %19554 = vst [vmem:[#allocation236_spill] sm:$0xff] %v12222_v8  ;;  %v4735_v60 = vcombine.low %v4695_v30, %v4695_v30  ;;  %v4736_v5 = vcombine.high %v4695_v30, %v4695_v30  ;;  %19562 = vst [vmem:[#allocation244_spill] sm:$0xff] %v12263_v10 }
 0x18b   :  { %v12225_v40 = vrot.slane %v4319_v12, %v10735_v0  ;;  %v12228_v48 = vrot.slane %v4320_v59, %v10735_v0  ;;  %v12231_v25 = vrot.slane %v4335_v55, %v10735_v0  ;;  %v12241_v59 = vrot.slane %v4303_v6, %v10735_v0 }
 0x18c   :  { %v764_v4 = vpop.permute.xlu1 %763  ;;  %v760_v23 = vpop.permute.xlu0 %759  ;;  %v12244_v55 = vrot.slane %v4336_v18, %v10735_v0  ;;  %v4719_v30 = vcombine.low %v12216_v22, %v12216_v22  ;;  %v4751_v12 = vcombine.low %v12222_v8, %v12222_v8  ;;  %v12266_v61 = vrot.slane %v4735_v60, %v10735_v0 }
 0x18d   :  { %19555 = vst [vmem:[#allocation237_spill] sm:$0xff] %v12225_v40  ;;  %19556 = vst [vmem:[#allocation238_spill] sm:$0xff] %v12228_v48  ;;  %v5191_v29 = vcombine.low %v753_v47, %v764_v4  ;;  %v5192_v46 = vcombine.high %v753_v47, %v764_v4  ;;  %v4775_v43 = vcombine.low %v749_v58, %v760_v23 }
 0x18e   :  { %19557 = vst [vmem:[#allocation239_spill] sm:$0xff] %v12231_v25  ;;  %1082 = vbcast.lane.b32.xlu1 %v1076_v52, 264  ;;  %19559 = vst [vmem:[#allocation241_spill] sm:$0xff] %v12241_v59  ;;  %1078 = vbcast.lane.b32.xlu0 %v1076_v52, 256  ;;  %v4776_v6 = vcombine.high %v749_v58, %v760_v23  ;;  %v12260_v52 = vrot.slane %v4304_v42, %v10735_v0 }
 0x18f   :  { %19560 = vst [vmem:[#allocation242_spill] sm:$0xff] %v12244_v55  ;;  %v12257_v4 = vrot.slane %v5191_v29, %v10726_v54  ;;  %19563 = vst [vmem:[#allocation245_spill] sm:$0xff] %v12266_v61  ;;  %v1109_v58 = vrot.slane %v12195_v39, %v10671_v2  ;;  %v12273_v23 = vrot.slane %v12195_v39, %v10679_v7 }
 0x190   :  { %v775_v19 = vpop.permute.xlu1 %774  ;;  %v771_v47 = vpop.permute.xlu0 %770  ;;  %19561 = vst [vmem:[#allocation243_spill] sm:$0xff] %v12260_v52  ;;  %v12276_v29 = vrot.slane %v4704_v32, %v10735_v0  ;;  %v12279_v42 = vrot.slane %v4736_v5, %v10735_v0  ;;  %v12282_v63 = vrot.slane %v5192_v46, %v10726_v54  ;;  %v4783_v60 = vrot.slane %v4775_v43, %v10726_v54 }
 0x191   :  { %v12291_v25 = vrot.slane %v4776_v6, %v10726_v54  ;;  %v12295_v5 = vrot.slane %v12195_v39, %v10683_v9  ;;  %v12298_v46 = vrot.slane %v4719_v30, %v10735_v0  ;;  %v12301_v43 = vrot.slane %v4751_v12, %v10735_v0 }
 0x192   :  { %1093 = vbcast.lane.b32.xlu1 %v12193_v62, 264  ;;  %19564 = vst [vmem:[#allocation246_spill] sm:$0xff] %v12276_v29  ;;  %19565 = vst [vmem:[#allocation247_spill] sm:$0xff] %v12279_v42  ;;  %1089 = vbcast.lane.b32.xlu0 %v12193_v62, 256  ;;  %v5223_v62 = vcombine.low %v12257_v4, %v12257_v4  ;;  %v5224_v28 = vcombine.high %v12257_v4, %v12257_v4 }
 0x193   :  { %19566 = vst [vmem:[#allocation248_spill] sm:$0xff] %v12282_v63  ;;  %19567 = vst [vmem:[#allocation249_spill] sm:$0xff] %v12298_v46  ;;  %v19569_v4 = vcombine.high %v10755_v36, %v10755_v36  ;;  %v4807_v42 = vcombine.low %v4783_v60, %v4783_v60 }
 0x194   :  { %v786_v32 = vpop.permute.xlu1 %785  ;;  %19568 = vst [vmem:[#allocation250_spill] sm:$0xff] %v12301_v43  ;;  %v782_v59 = vpop.permute.xlu0 %781 }
 0x195   :  { %v5207_v18 = vcombine.low %v775_v19, %v786_v32  ;;  %v5208_v48 = vcombine.high %v775_v19, %v786_v32  ;;  %v4791_v55 = vcombine.low %v771_v47, %v782_v59  ;;  %v4792_v52 = vcombine.high %v771_v47, %v782_v59 }
 0x196   :  { %1104 = vbcast.lane.b32.xlu1 %v12213_v14, 264  ;;  %v5239_v19 = vcombine.low %v12282_v63, %v12282_v63  ;;  %v4808_v32 = vcombine.high %v4783_v60, %v4783_v60  ;;  %1100 = vbcast.lane.b32.xlu0 %v12213_v14, 256  ;;  %v12328_v30 = vrot.slane %v19569_v4, %v10735_v0 }
 0x197   :  { %v5215_v8 = vrot.slane %v5207_v18, %v10726_v54  ;;  %v4799_v59 = vrot.slane %v4791_v55, %v10726_v54  ;;  %v4806_v47 = vrot.slane %v4792_v52, %v10726_v54  ;;  %v4823_v18 = vcombine.low %v12291_v25, %v12291_v25 }
 0x198   :  { %v12320_v6 = vpop.permute.xlu1 %796  ;;  %19570 = vst [vmem:[#allocation251_spill] sm:$0xff] %v12328_v30  ;;  %v793_v29 = vpop.permute.xlu0 %792  ;;  %v12333_v55 = vrot.slane %v5223_v62, %v10735_v0  ;;  %v12336_v52 = vrot.slane %v5208_v48, %v10726_v54  ;;  %v12347_v48 = vrot.slane %v4808_v32, %v10735_v0  ;;  %v12359_v4 = vrot.slane %v4807_v42, %v10735_v0 }
 0x199   :  { %v5255_v14 = vcombine.low %v5215_v8, %v5215_v8  ;;  %v4839_v10 = vcombine.low %v4799_v59, %v4799_v59  ;;  %v4840_v12 = vcombine.high %v4799_v59, %v4799_v59  ;;  %v4855_v46 = vcombine.low %v4806_v47, %v4806_v47 }
 0x19a   :  { %19571 = vst [vmem:[#allocation252_spill] sm:$0xff] %v12333_v55  ;;  %19572 = vst [vmem:[#allocation253_spill] sm:$0xff] %v12336_v52  ;;  %1115 = vbcast.lane.b32.xlu1 %v1109_v58, 264  ;;  %v5256_v43 = vcombine.high %v5215_v8, %v5215_v8  ;;  %v4856_v36 = vcombine.high %v4806_v47, %v4806_v47  ;;  %1111 = vbcast.lane.b32.xlu0 %v1109_v58, 256 }
 0x19b   :  { %v12339_v60 = vrot.slane %v5255_v14, %v10735_v0  ;;  %v12344_v62 = vrot.slane %v4839_v10, %v10735_v0  ;;  %19575 = vst [vmem:[#allocation256_spill] sm:$0xff] %v12347_v48  ;;  %v12350_v59 = vrot.slane %v4840_v12, %v10735_v0  ;;  %v12353_v8 = vrot.slane %v4855_v46, %v10735_v0  ;;  %v19583_v46 = vld [vmem:[#allocation94_spill] sm:$0xff] }
 0x19c   :  { %v808_v61 = vpop.permute.xlu1 %807  ;;  %v4824_v58 = vcombine.high %v12291_v25, %v12291_v25  ;;  %v804_v14 = vpop.permute.xlu0 %803  ;;  %19578 = vst [vmem:[#allocation259_spill] sm:$0xff] %v12359_v4  ;;  %v5271_v32 = vcombine.low %v12336_v52, %v12336_v52  ;;  %v12369_v12 = vrot.slane %v4823_v18, %v10735_v0  ;;  %v12372_v25 = vrot.slane %v5224_v28, %v10735_v0  ;;  %v19587_v18 = vld [vmem:[#allocation109_spill] sm:$0xff] }
 0x19d   :  { %19573 = vst [vmem:[#allocation254_spill] sm:$0xff] %v12339_v60  ;;  %19574 = vst [vmem:[#allocation255_spill] sm:$0xff] %v12344_v62  ;;  %v5295_v47 = vcombine.low %v12320_v6, %v808_v61  ;;  %v12380_v55 = vrot.slane %v4856_v36, %v10735_v0  ;;  %v12383_v60 = vrot.slane %v5256_v43, %v10735_v0 }
 0x19e   :  { %19576 = vst [vmem:[#allocation257_spill] sm:$0xff] %v12350_v59  ;;  %19577 = vst [vmem:[#allocation258_spill] sm:$0xff] %v12353_v8  ;;  %1126 = vbcast.lane.b32.xlu1 %v12273_v23, 264  ;;  %1122 = vbcast.lane.b32.xlu0 %v12273_v23, 256  ;;  %v4879_v27 = vcombine.low %v793_v29, %v804_v14  ;;  %v4880_v10 = vcombine.high %v793_v29, %v804_v14 }
 0x19f   :  { %19579 = vst [vmem:[#allocation260_spill] sm:$0xff] %v12369_v12  ;;  %19580 = vst [vmem:[#allocation261_spill] sm:$0xff] %v12372_v25  ;;  %v12392_v30 = vrot.slane %v5295_v47, %v10726_v54  ;;  %v12397_v52 = vrot.slane %v4824_v58, %v10735_v0  ;;  %v5296_v28 = vcombine.high %v12320_v6, %v808_v61 }
 0x1a0   :  { %19581 = vst [vmem:[#allocation262_spill] sm:$0xff] %v12380_v55  ;;  %19582 = vst [vmem:[#allocation263_spill] sm:$0xff] %v12383_v60  ;;  %v819_v23 = vpop.permute.xlu1 %818  ;;  %v815_v36 = vpop.permute.xlu0 %814  ;;  %v1142_v42 = vrot.slane %v12195_v39, %v10687_v11  ;;  %v12406_v47 = vrot.slane %v5239_v19, %v10735_v0  ;;  %v12416_v61 = vrot.slane %v5271_v32, %v10735_v0 }
 0x1a1   :  { %19586 = vst [vmem:[#allocation94_spill] sm:$0xff] %v12397_v52  ;;  %v4887_v6 = vrot.slane %v4879_v27, %v10726_v54  ;;  %v1153_v19 = vrot.slane %v12195_v39, %v10691_v13  ;;  %v12425_v29 = vrot.slane %v12195_v39, %v10699_v17  ;;  %v5327_v58 = vcombine.low %v12392_v30, %v12392_v30 }
 0x1a2   :  { %1137 = vbcast.lane.b32.xlu1 %v12295_v5, 264  ;;  %19588 = vst [vmem:[#allocation109_spill] sm:$0xff] %v12406_v47  ;;  %1133 = vbcast.lane.b32.xlu0 %v12295_v5, 256  ;;  %19589 = vst [vmem:[#allocation264_spill] sm:$0xff] %v12416_v61  ;;  %v1164_v5 = vrot.slane %v12195_v39, %v10695_v15  ;;  %v12430_v14 = vrot.slane %v4880_v10, %v10726_v54 }
 0x1a3   :  { %v12435_v55 = vrot.slane %v5296_v28, %v10726_v54  ;;  %v5328_v39 = vcombine.high %v12392_v30, %v12392_v30  ;;  %v19591_v27 = vcombine.high %v10936_v56, %v10936_v56  ;;  %v4911_v28 = vcombine.low %v4887_v6, %v4887_v6 }
 0x1a4   :  { %v830_v43 = vpop.permute.xlu1 %829  ;;  %v826_v22 = vpop.permute.xlu0 %825  ;;  %v19593_v30 = vcombine.high %v10940_v45, %v10940_v45  ;;  %v4928_v45 = vcombine.high %v12430_v14, %v12430_v14 }
 0x1a5   :  { %v5311_v32 = vcombine.low %v819_v23, %v830_v43  ;;  %19590 = vst [vmem:[#allocation265_spill] sm:$0xff] %v12435_v55  ;;  %v5312_v52 = vcombine.high %v819_v23, %v830_v43  ;;  %v4895_v12 = vcombine.low %v815_v36, %v826_v22  ;;  %v4896_v8 = vcombine.high %v815_v36, %v826_v22 }
 0x1a6   :  { %1148 = vbcast.lane.b32.xlu1 %v1142_v42, 264  ;;  %1144 = vbcast.lane.b32.xlu0 %v1142_v42, 256  ;;  %v12446_v60 = vrot.slane %v19591_v27, %v10735_v0  ;;  %v12454_v42 = vrot.slane %v19593_v30, %v10735_v0  ;;  %v4912_v43 = vcombine.high %v4887_v6, %v4887_v6 }
 0x1a7   :  { %v5319_v63 = vrot.slane %v5311_v32, %v10726_v54  ;;  %v4903_v23 = vrot.slane %v4895_v12, %v10726_v54  ;;  %v4910_v22 = vrot.slane %v4896_v8, %v10726_v54  ;;  %v4927_v32 = vcombine.low %v12430_v14, %v12430_v14 }
 0x1a8   :  { %19592 = vst [vmem:[#allocation266_spill] sm:$0xff] %v12446_v60  ;;  %v841_v36 = vpop.permute.xlu1 %840  ;;  %19594 = vst [vmem:[#allocation267_spill] sm:$0xff] %v12454_v42  ;;  %v837_v56 = vpop.permute.xlu0 %836  ;;  %v12459_v27 = vrot.slane %v5327_v58, %v10735_v0  ;;  %v12462_v12 = vrot.slane %v5312_v52, %v10726_v54  ;;  %v12472_v59 = vrot.slane %v4911_v28, %v10735_v0 }
 0x1a9   :  { %v5359_v10 = vcombine.low %v5319_v63, %v5319_v63  ;;  %v4943_v8 = vcombine.low %v4903_v23, %v4903_v23  ;;  %v4944_v47 = vcombine.high %v4903_v23, %v4903_v23  ;;  %v4959_v61 = vcombine.low %v4910_v22, %v4910_v22 }
 0x1aa   :  { %19595 = vst [vmem:[#allocation268_spill] sm:$0xff] %v12459_v27  ;;  %19596 = vst [vmem:[#allocation269_spill] sm:$0xff] %v12462_v12  ;;  %1159 = vbcast.lane.b32.xlu1 %v1153_v19, 264  ;;  %v4960_v30 = vcombine.high %v4910_v22, %v4910_v22  ;;  %1155 = vbcast.lane.b32.xlu0 %v1153_v19, 256  ;;  %v5360_v19 = vcombine.high %v5319_v63, %v5319_v63 }
 0x1ab   :  { %v12467_v6 = vrot.slane %v5359_v10, %v10735_v0  ;;  %19598 = vst [vmem:[#allocation271_spill] sm:$0xff] %v12472_v59  ;;  %v12475_v52 = vrot.slane %v4943_v8, %v10735_v0  ;;  %v12478_v23 = vrot.slane %v4944_v47, %v10735_v0  ;;  %v12481_v14 = vrot.slane %v4959_v61, %v10735_v0 }
 0x1ac   :  { %v852_v58 = vpop.permute.xlu1 %851  ;;  %v848_v10 = vpop.permute.xlu0 %847  ;;  %v12484_v48 = vrot.slane %v4912_v43, %v10735_v0  ;;  %v5343_v28 = vcombine.low %v12435_v55, %v12435_v55  ;;  %v5375_v8 = vcombine.low %v12462_v12, %v12462_v12  ;;  %v12495_v63 = vrot.slane %v4927_v32, %v10735_v0  ;;  %v12497_v43 = vld [vmem:[#allocation2 + $0x68] sm:$0xff] }
 0x1ad   :  { %19597 = vst [vmem:[#allocation270_spill] sm:$0xff] %v12467_v6  ;;  %19599 = vst [vmem:[#allocation272_spill] sm:$0xff] %v12475_v52  ;;  %v5399_v22 = vcombine.low %v841_v36, %v852_v58  ;;  %v5400_v61 = vcombine.high %v841_v36, %v852_v58  ;;  %v12504_v6 = vrot.slane %v4960_v30, %v10735_v0  ;;  %v19605_v36 = vld [vmem:[#allocation111_spill] sm:$0xff] }
 0x1ae   :  { %19600 = vst [vmem:[#allocation273_spill] sm:$0xff] %v12478_v23  ;;  %19601 = vst [vmem:[#allocation274_spill] sm:$0xff] %v12481_v14  ;;  %1170 = vbcast.lane.b32.xlu1 %v1164_v5, 264  ;;  %1166 = vbcast.lane.b32.xlu0 %v1164_v5, 256  ;;  %v4983_v47 = vcombine.low %v837_v56, %v848_v10  ;;  %v4984_v42 = vcombine.high %v837_v56, %v848_v10 }
 0x1af   :  { %19602 = vst [vmem:[#allocation275_spill] sm:$0xff] %v12484_v48  ;;  %19603 = vst [vmem:[#allocation276_spill] sm:$0xff] %v12495_v63  ;;  %v12507_v60 = vrot.slane %v5399_v22, %v10726_v54  ;;  %v12514_v25 = vrot.slane %v4928_v45, %v10735_v0  ;;  %v12517_v27 = vrot.slane %v5328_v39, %v10735_v0 }
 0x1b0   :  { %19604 = vst [vmem:[#allocation277_spill] sm:$0xff] %v12504_v6  ;;  %v863_v32 = vpop.permute.xlu1 %862  ;;  %v859_v12 = vpop.permute.xlu0 %858  ;;  %v12520_v30 = vrot.slane %v5360_v19, %v10735_v0  ;;  %v1186_v56 = vrot.slane %v12497_v43, %v10674_v3  ;;  %v1197_v22 = vrot.slane %v12497_v43, %v10671_v2  ;;  %v12529_v10 = vrot.slane %v12497_v43, %v10679_v7 }
 0x1b1   :  { %19606 = vst [vmem:[#allocation111_spill] sm:$0xff] %v12514_v25  ;;  %19607 = vst [vmem:[#allocation278_spill] sm:$0xff] %v12517_v27  ;;  %v12532_v45 = vrot.slane %v5343_v28, %v10735_v0  ;;  %v12535_v39 = vrot.slane %v5400_v61, %v10726_v54  ;;  %v12543_v58 = vrot.slane %v5375_v8, %v10735_v0 }
 0x1b2   :  { %19608 = vst [vmem:[#allocation279_spill] sm:$0xff] %v12520_v30  ;;  %1181 = vbcast.lane.b32.xlu1 %v12425_v29, 264  ;;  %1177 = vbcast.lane.b32.xlu0 %v12425_v29, 256  ;;  %v5431_v63 = vcombine.low %v12507_v60, %v12507_v60  ;;  %v4991_v28 = vrot.slane %v4983_v47, %v10726_v54 }
 0x1b3   :  { %19609 = vst [vmem:[#allocation280_spill] sm:$0xff] %v12532_v45  ;;  %19610 = vst [vmem:[#allocation281_spill] sm:$0xff] %v12535_v39  ;;  %v12549_v14 = vrot.slane %v4984_v42, %v10726_v54  ;;  %v12553_v29 = vrot.slane %v12497_v43, %v10683_v9  ;;  %v5432_v47 = vcombine.high %v12507_v60, %v12507_v60 }
 0x1b4   :  { %19611 = vst [vmem:[#allocation282_spill] sm:$0xff] %v12543_v58  ;;  %v874_v61 = vpop.permute.xlu1 %873  ;;  %v870_v48 = vpop.permute.xlu0 %869  ;;  %v19612_v25 = vcombine.high %v11118_v38, %v11118_v38  ;;  %v19614_v60 = vcombine.high %v11122_v44, %v11122_v44  ;;  %v5016_v8 = vcombine.high %v4991_v28, %v4991_v28  ;;  %v12586_v58 = vrot.slane %v5431_v63, %v10735_v0 }
 0x1b5   :  { %v5415_v19 = vcombine.low %v863_v32, %v874_v61  ;;  %v5416_v23 = vcombine.high %v863_v32, %v874_v61  ;;  %v4999_v6 = vcombine.low %v859_v12, %v870_v48  ;;  %v5000_v42 = vcombine.high %v859_v12, %v870_v48 }
 0x1b6   :  { %1192 = vbcast.lane.b32.xlu1 %v1186_v56, 264  ;;  %v12565_v55 = vrot.slane %v19612_v25, %v10735_v0  ;;  %v5447_v32 = vcombine.low %v12535_v39, %v12535_v39  ;;  %1188 = vbcast.lane.b32.xlu0 %v1186_v56, 256  ;;  %v12576_v48 = vrot.slane %v19614_v60, %v10735_v0 }
 0x1b7   :  { %v5423_v61 = vrot.slane %v5415_v19, %v10726_v54  ;;  %v5015_v12 = vcombine.low %v4991_v28, %v4991_v28  ;;  %v5007_v38 = vrot.slane %v4999_v6, %v10726_v54  ;;  %v5014_v25 = vrot.slane %v5000_v42, %v10726_v54  ;;  %19617 = vst [vmem:[#allocation286_spill] sm:$0xff] %v12586_v58 }
 0x1b8   :  { %19613 = vst [vmem:[#allocation283_spill] sm:$0xff] %v12565_v55  ;;  %19615 = vst [vmem:[#allocation284_spill] sm:$0xff] %v12576_v48  ;;  %v885_v30 = vpop.permute.xlu1 %884  ;;  %v5031_v19 = vcombine.low %v12549_v14, %v12549_v14  ;;  %v12583_v56 = vrot.slane %v5416_v23, %v10726_v54  ;;  %v881_v45 = vpop.permute.xlu0 %880  ;;  %v5032_v6 = vcombine.high %v12549_v14, %v12549_v14 }
 0x1b9   :  { %v5463_v5 = vcombine.low %v5423_v61, %v5423_v61  ;;  %v5464_v44 = vcombine.high %v5423_v61, %v5423_v61  ;;  %v5047_v60 = vcombine.low %v5007_v38, %v5007_v38  ;;  %v5048_v27 = vcombine.high %v5007_v38, %v5007_v38 }
 0x1ba   :  { %19616 = vst [vmem:[#allocation285_spill] sm:$0xff] %v12583_v56  ;;  %v5063_v28 = vcombine.low %v5014_v25, %v5014_v25  ;;  %1203 = vbcast.lane.b32.xlu1 %v1197_v22, 264  ;;  %v5064_v42 = vcombine.high %v5014_v25, %v5014_v25  ;;  %1199 = vbcast.lane.b32.xlu0 %v1197_v22, 256 }
 0x1bb   :  { %v12591_v39 = vrot.slane %v5463_v5, %v10735_v0  ;;  %v12596_v63 = vrot.slane %v5047_v60, %v10735_v0  ;;  %v12599_v61 = vrot.slane %v5016_v8, %v10735_v0  ;;  %v12602_v38 = vrot.slane %v5048_v27, %v10735_v0 }
 0x1bc   :  { %v896_v59 = vpop.permute.xlu1 %895  ;;  %v12605_v14 = vrot.slane %v5063_v28, %v10735_v0  ;;  %v892_v25 = vpop.permute.xlu0 %891  ;;  %v12608_v5 = vrot.slane %v5015_v12, %v10735_v0  ;;  %v12613_v60 = vrot.slane %v5432_v47, %v10735_v0  ;;  %v5479_v8 = vcombine.low %v12583_v56, %v12583_v56  ;;  %v19629_v56 = vld [vmem:[#allocation112_spill] sm:$0xff] }
 0x1bd   :  { %19618 = vst [vmem:[#allocation287_spill] sm:$0xff] %v12591_v39  ;;  %19619 = vst [vmem:[#allocation288_spill] sm:$0xff] %v12596_v63  ;;  %v5503_v22 = vcombine.low %v885_v30, %v896_v59  ;;  %v12621_v28 = vrot.slane %v5031_v19, %v10735_v0  ;;  %v12624_v12 = vrot.slane %v5464_v44, %v10735_v0  ;;  %v19628_v39 = vld [vmem:[#allocation125_spill] sm:$0xff]  ;;  %v19630_v44 = vld [vmem:[#allocation110_spill] sm:$0xff] }
 0x1be   :  { %19620 = vst [vmem:[#allocation289_spill] sm:$0xff] %v12599_v61  ;;  %19621 = vst [vmem:[#allocation290_spill] sm:$0xff] %v12602_v38  ;;  %1214 = vbcast.lane.b32.xlu1 %v12529_v10, 264  ;;  %v5087_v55 = vcombine.low %v881_v45, %v892_v25  ;;  %1210 = vbcast.lane.b32.xlu0 %v12529_v10, 256  ;;  %v12632_v58 = vrot.slane %v5064_v42, %v10735_v0 }
 0x1bf   :  { %19622 = vst [vmem:[#allocation291_spill] sm:$0xff] %v12605_v14  ;;  %19623 = vst [vmem:[#allocation292_spill] sm:$0xff] %v12608_v5  ;;  %v5504_v19 = vcombine.high %v885_v30, %v896_v59  ;;  %v12641_v4 = vrot.slane %v5503_v22, %v10726_v54  ;;  %v5088_v47 = vcombine.high %v881_v45, %v892_v25 }
 0x1c0   :  { %19624 = vst [vmem:[#allocation293_spill] sm:$0xff] %v12613_v60  ;;  %19625 = vst [vmem:[#allocation294_spill] sm:$0xff] %v12621_v28  ;;  %v907_v48 = vpop.permute.xlu1 %906  ;;  %v903_v5 = vpop.permute.xlu0 %902  ;;  %v1230_v42 = vrot.slane %v12497_v43, %v10687_v11  ;;  %v12646_v23 = vrot.slane %v5032_v6, %v10735_v0  ;;  %v12650_v59 = vrot.slane %v5447_v32, %v10735_v0 }
 0x1c1   :  { %19626 = vst [vmem:[#allocation295_spill] sm:$0xff] %v12624_v12  ;;  %19627 = vst [vmem:[#allocation296_spill] sm:$0xff] %v12632_v58  ;;  %v12653_v30 = vrot.slane %v5479_v8, %v10735_v0  ;;  %v19634_v22 = vcombine.high %v11305_v41, %v11305_v41  ;;  %v19636_v25 = vcombine.high %v19583_v46, %v19583_v46 }
 0x1c2   :  { %19631 = vst [vmem:[#allocation125_spill] sm:$0xff] %v12646_v23  ;;  %1225 = vbcast.lane.b32.xlu1 %v12553_v29, 264  ;;  %19632 = vst [vmem:[#allocation297_spill] sm:$0xff] %v12650_v59  ;;  %v5095_v10 = vrot.slane %v5087_v55, %v10726_v54  ;;  %1221 = vbcast.lane.b32.xlu0 %v12553_v29, 256  ;;  %v1241_v46 = vrot.slane %v12497_v43, %v10691_v13 }
 0x1c3   :  { %19633 = vst [vmem:[#allocation298_spill] sm:$0xff] %v12653_v30  ;;  %v12659_v45 = vrot.slane %v19634_v22, %v10735_v0  ;;  %v12665_v6 = vrot.slane %v19636_v25, %v10735_v0  ;;  %v12676_v22 = vrot.slane %v5504_v19, %v10726_v54  ;;  %v1252_v55 = vrot.slane %v12497_v43, %v10695_v15 }
 0x1c4   :  { %v918_v52 = vpop.permute.xlu1 %917  ;;  %v12684_v29 = vrot.slane %v12497_v43, %v10699_v17  ;;  %v5535_v25 = vcombine.low %v12641_v4, %v12641_v4  ;;  %v12689_v8 = vrot.slane %v5088_v47, %v10726_v54  ;;  %v914_v19 = vpop.permute.xlu0 %913  ;;  %v5536_v27 = vcombine.high %v12641_v4, %v12641_v4 }
 0x1c5   :  { %19635 = vst [vmem:[#allocation299_spill] sm:$0xff] %v12659_v45  ;;  %19637 = vst [vmem:[#allocation300_spill] sm:$0xff] %v12665_v6  ;;  %v5519_v41 = vcombine.low %v907_v48, %v918_v52  ;;  %v5520_v58 = vcombine.high %v907_v48, %v918_v52  ;;  %v5103_v23 = vcombine.low %v903_v5, %v914_v19 }
 0x1c6   :  { %19638 = vst [vmem:[#allocation301_spill] sm:$0xff] %v12676_v22  ;;  %v5104_v28 = vcombine.high %v903_v5, %v914_v19  ;;  %1236 = vbcast.lane.b32.xlu1 %v1230_v42, 264  ;;  %v5119_v43 = vcombine.low %v5095_v10, %v5095_v10  ;;  %1232 = vbcast.lane.b32.xlu0 %v1230_v42, 256 }
 0x1c7   :  { %v5527_v14 = vrot.slane %v5519_v41, %v10726_v54  ;;  %v5111_v61 = vrot.slane %v5103_v23, %v10726_v54  ;;  %v19639_v4 = vcombine.high %v10844_v53, %v10844_v53  ;;  %v19641_v48 = vcombine.high %v10848_v57, %v10848_v57 }
 0x1c8   :  { %v5118_v32 = vrot.slane %v5104_v28, %v10726_v54  ;;  %v929_v12 = vpop.permute.xlu1 %928  ;;  %v5120_v42 = vcombine.high %v5095_v10, %v5095_v10  ;;  %v5135_v41 = vcombine.low %v12689_v8, %v12689_v8  ;;  %v925_v19 = vpop.permute.xlu0 %924  ;;  %v12717_v28 = vrot.slane %v5535_v25, %v10735_v0 }
 0x1c9   :  { %v12706_v52 = vrot.slane %v19639_v4, %v10735_v0  ;;  %v12712_v5 = vrot.slane %v19641_v48, %v10735_v0  ;;  %v5567_v23 = vcombine.low %v5527_v14, %v5527_v14  ;;  %v12720_v38 = vrot.slane %v5520_v58, %v10726_v54 }
 0x1ca   :  { %19643 = vst [vmem:[#allocation304_spill] sm:$0xff] %v12717_v28  ;;  %v5151_v53 = vcombine.low %v5111_v61, %v5111_v61  ;;  %v5152_v4 = vcombine.high %v5111_v61, %v5111_v61  ;;  %v5167_v47 = vcombine.low %v5118_v32, %v5118_v32  ;;  %1247 = vbcast.lane.b32.xlu1 %v1241_v46, 264 }
 0x1cb   :  { %19640 = vst [vmem:[#allocation302_spill] sm:$0xff] %v12706_v52  ;;  %19642 = vst [vmem:[#allocation303_spill] sm:$0xff] %v12712_v5  ;;  %v5136_v57 = vcombine.high %v12689_v8, %v12689_v8  ;;  %v5168_v48 = vcombine.high %v5118_v32, %v5118_v32  ;;  %1243 = vbcast.lane.b32.xlu0 %v1241_v46, 256  ;;  %v12725_v10 = vrot.slane %v5567_v23, %v10735_v0  ;;  %v19653_v52 = vld [vmem:[#allocation127_spill] sm:$0xff] }
 0x1cc   :  { %19644 = vst [vmem:[#allocation305_spill] sm:$0xff] %v12720_v38  ;;  %v940_v25 = vpop.permute.xlu1 %939  ;;  %v12730_v30 = vrot.slane %v5119_v43, %v10735_v0  ;;  %v12733_v58 = vrot.slane %v5151_v53, %v10735_v0  ;;  %v12736_v61 = vrot.slane %v5152_v4, %v10735_v0  ;;  %v12739_v8 = vrot.slane %v5167_v47, %v10735_v0  ;;  %v936_v23 = vpop.permute.xlu0 %935 }
 0x1cd   :  { %19645 = vst [vmem:[#allocation306_spill] sm:$0xff] %v12725_v10  ;;  %v5568_v32 = vcombine.high %v5527_v14, %v5527_v14  ;;  %v6023_v46 = vcombine.low %v929_v12, %v940_v25  ;;  %v12742_v60 = vrot.slane %v5120_v42, %v10735_v0  ;;  %v5551_v43 = vcombine.low %v12676_v22, %v12676_v22  ;;  %v12755_v42 = vld [vmem:[#allocation2 + $0x70] sm:$0xff] }
 0x1ce   :  { %19646 = vst [vmem:[#allocation307_spill] sm:$0xff] %v12730_v30  ;;  %19647 = vst [vmem:[#allocation308_spill] sm:$0xff] %v12733_v58  ;;  %v5583_v53 = vcombine.low %v12720_v38, %v12720_v38  ;;  %1258 = vbcast.lane.b32.xlu1 %v1252_v55, 264  ;;  %v12753_v14 = vrot.slane %v5135_v41, %v10735_v0  ;;  %v6024_v4 = vcombine.high %v929_v12, %v940_v25 }
 0x1cf   :  { %19648 = vst [vmem:[#allocation309_spill] sm:$0xff] %v12736_v61  ;;  %19649 = vst [vmem:[#allocation310_spill] sm:$0xff] %v12739_v8  ;;  %1254 = vbcast.lane.b32.xlu0 %v1252_v55, 256  ;;  %v12762_v10 = vrot.slane %v5168_v48, %v10735_v0  ;;  %v3608_v5 = vcombine.high %v19653_v52, %v19653_v52  ;;  %v5607_v47 = vcombine.low %v925_v19, %v936_v23 }
 0x1d0   :  { %19650 = vst [vmem:[#allocation311_spill] sm:$0xff] %v12742_v60  ;;  %19651 = vst [vmem:[#allocation312_spill] sm:$0xff] %v12753_v14  ;;  %v5608_v45 = vcombine.high %v925_v19, %v936_v23  ;;  %v951_v41 = vpop.permute.xlu1 %950  ;;  %v12769_v55 = vrot.slane %v6023_v46, %v10726_v54  ;;  %v947_v25 = vpop.permute.xlu0 %946  ;;  %v12772_v59 = vrot.slane %v5136_v57, %v10735_v0  ;;  %v12984_v23 = vld [vmem:[#allocation2 + $0x78] sm:$0xff] }
 0x1d1   :  { %19652 = vst [vmem:[#allocation313_spill] sm:$0xff] %v12762_v10  ;;  %v12775_v28 = vrot.slane %v5536_v27, %v10735_v0  ;;  %v12778_v48 = vrot.slane %v5568_v32, %v10735_v0  ;;  %v1274_v52 = vrot.slane %v12755_v42, %v10674_v3  ;;  %v1285_v19 = vrot.slane %v12755_v42, %v10671_v2 }
 0x1d2   :  { %19654 = vst [vmem:[#allocation127_spill] sm:$0xff] %v12772_v59  ;;  %1269 = vbcast.lane.b32.xlu1 %v12684_v29, 264  ;;  %v12788_v57 = vrot.slane %v5551_v43, %v10735_v0  ;;  %v12791_v27 = vrot.slane %v6024_v4, %v10726_v54  ;;  %v12799_v8 = vrot.slane %v5583_v53, %v10735_v0 }
 0x1d3   :  { %19655 = vst [vmem:[#allocation314_spill] sm:$0xff] %v12775_v28  ;;  %19656 = vst [vmem:[#allocation315_spill] sm:$0xff] %v12778_v48  ;;  %1265 = vbcast.lane.b32.xlu0 %v12684_v29, 256  ;;  %v5615_v61 = vrot.slane %v5607_v47, %v10726_v54  ;;  %v12803_v12 = vrot.slane %v5608_v45, %v10726_v54  ;;  %v1296_v4 = vrot.slane %v12755_v42, %v10679_v7 }
 0x1d4   :  { %19659 = vst [vmem:[#allocation316_spill] sm:$0xff] %v12788_v57  ;;  %19660 = vst [vmem:[#allocation317_spill] sm:$0xff] %v12791_v27  ;;  %v962_v43 = vpop.permute.xlu1 %961  ;;  %v12809_v29 = vrot.slane %v12755_v42, %v10683_v9  ;;  %v6055_v32 = vcombine.low %v12769_v55, %v12769_v55  ;;  %v958_v10 = vpop.permute.xlu0 %957  ;;  %v6056_v47 = vcombine.high %v12769_v55, %v12769_v55 }
 0x1d5   :  { %19661 = vst [vmem:[#allocation318_spill] sm:$0xff] %v12799_v8  ;;  %v6039_v14 = vcombine.low %v951_v41, %v962_v43  ;;  %v6040_v59 = vcombine.high %v951_v41, %v962_v43  ;;  %v5623_v60 = vcombine.low %v947_v25, %v958_v10  ;;  %v5624_v6 = vcombine.high %v947_v25, %v958_v10 }
 0x1d6   :  { %1280 = vbcast.lane.b32.xlu1 %v1274_v52, 264  ;;  %v6071_v38 = vcombine.low %v12791_v27, %v12791_v27  ;;  %v19662_v45 = vcombine.high %v19628_v39, %v19628_v39  ;;  %v5640_v55 = vcombine.high %v5615_v61, %v5615_v61  ;;  %v12833_v43 = vrot.slane %v3608_v5, %v10735_v0 }
 0x1d7   :  { %v6047_v22 = vrot.slane %v6039_v14, %v10726_v54  ;;  %1276 = vbcast.lane.b32.xlu0 %v1274_v52, 256  ;;  %v5631_v41 = vrot.slane %v5623_v60, %v10726_v54  ;;  %v5638_v10 = vrot.slane %v5624_v6, %v10726_v54  ;;  %v5639_v14 = vcombine.low %v5615_v61, %v5615_v61 }
 0x1d8   :  { %v12828_v53 = vrot.slane %v19662_v45, %v10735_v0  ;;  %v973_v25 = vpop.permute.xlu1 %972  ;;  %19664 = vst [vmem:[#allocation320_spill] sm:$0xff] %v12833_v43  ;;  %v5655_v52 = vcombine.low %v12803_v12, %v12803_v12  ;;  %v969_v57 = vpop.permute.xlu0 %968  ;;  %v12838_v8 = vrot.slane %v6055_v32, %v10735_v0  ;;  %v12841_v39 = vrot.slane %v6040_v59, %v10726_v54 }
 0x1d9   :  { %v6087_v46 = vcombine.low %v6047_v22, %v6047_v22  ;;  %v5671_v45 = vcombine.low %v5631_v41, %v5631_v41  ;;  %v5672_v60 = vcombine.high %v5631_v41, %v5631_v41  ;;  %v5687_v48 = vcombine.low %v5638_v10, %v5638_v10 }
 0x1da   :  { %19663 = vst [vmem:[#allocation319_spill] sm:$0xff] %v12828_v53  ;;  %19665 = vst [vmem:[#allocation321_spill] sm:$0xff] %v12838_v8  ;;  %1291 = vbcast.lane.b32.xlu1 %v1285_v19, 264  ;;  %v6088_v6 = vcombine.high %v6047_v22, %v6047_v22  ;;  %v5688_v28 = vcombine.high %v5638_v10, %v5638_v10  ;;  %v12852_v59 = vrot.slane %v5640_v55, %v10735_v0 }
 0x1db   :  { %19666 = vst [vmem:[#allocation322_spill] sm:$0xff] %v12841_v39  ;;  %1287 = vbcast.lane.b32.xlu0 %v1285_v19, 256  ;;  %v12844_v5 = vrot.slane %v6087_v46, %v10735_v0  ;;  %v12849_v32 = vrot.slane %v5671_v45, %v10735_v0  ;;  %v12855_v41 = vrot.slane %v5672_v60, %v10735_v0 }
 0x1dc   :  { %v984_v27 = vpop.permute.xlu1 %983  ;;  %19669 = vst [vmem:[#allocation325_spill] sm:$0xff] %v12852_v59  ;;  %v12858_v22 = vrot.slane %v5687_v48, %v10735_v0  ;;  %v5656_v19 = vcombine.high %v12803_v12, %v12803_v12  ;;  %v980_v10 = vpop.permute.xlu0 %979  ;;  %v12863_v61 = vrot.slane %v5639_v14, %v10735_v0  ;;  %v6103_v55 = vcombine.low %v12841_v39, %v12841_v39  ;;  %v19679_v59 = vld [vmem:[#allocation158_spill] sm:$0xff] }
 0x1dd   :  { %19667 = vst [vmem:[#allocation323_spill] sm:$0xff] %v12844_v5  ;;  %19668 = vst [vmem:[#allocation324_spill] sm:$0xff] %v12849_v32  ;;  %v6127_v46 = vcombine.low %v973_v25, %v984_v27  ;;  %v12872_v48 = vrot.slane %v5655_v52, %v10735_v0  ;;  %v12875_v12 = vrot.slane %v6056_v47, %v10735_v0 }
 0x1de   :  { %19670 = vst [vmem:[#allocation326_spill] sm:$0xff] %v12855_v41  ;;  %19671 = vst [vmem:[#allocation327_spill] sm:$0xff] %v12858_v22  ;;  %1302 = vbcast.lane.b32.xlu1 %v1296_v4, 264  ;;  %v12882_v8 = vrot.slane %v5688_v28, %v10735_v0  ;;  %v12885_v5 = vrot.slane %v6088_v6, %v10735_v0  ;;  %v6128_v53 = vcombine.high %v973_v25, %v984_v27 }
 0x1df   :  { %19672 = vst [vmem:[#allocation328_spill] sm:$0xff] %v12863_v61  ;;  %19673 = vst [vmem:[#allocation329_spill] sm:$0xff] %v12872_v48  ;;  %1298 = vbcast.lane.b32.xlu0 %v1296_v4, 256  ;;  %v5711_v43 = vcombine.low %v969_v57, %v980_v10  ;;  %v12894_v45 = vrot.slane %v6127_v46, %v10726_v54  ;;  %v5712_v28 = vcombine.high %v969_v57, %v980_v10 }
 0x1e0   :  { %19674 = vst [vmem:[#allocation330_spill] sm:$0xff] %v12875_v12  ;;  %19675 = vst [vmem:[#allocation331_spill] sm:$0xff] %v12882_v8  ;;  %v995_v47 = vpop.permute.xlu1 %994  ;;  %v991_v41 = vpop.permute.xlu0 %990  ;;  %v12897_v6 = vrot.slane %v5656_v19, %v10735_v0  ;;  %v1318_v27 = vrot.slane %v12755_v42, %v10687_v11  ;;  %v1329_v25 = vrot.slane %v12755_v42, %v10691_v13 }
 0x1e1   :  { %19676 = vst [vmem:[#allocation332_spill] sm:$0xff] %v12885_v5  ;;  %v12907_v4 = vrot.slane %v6071_v38, %v10735_v0  ;;  %v12917_v10 = vrot.slane %v6103_v55, %v10735_v0  ;;  %v12920_v52 = vrot.slane %v6128_v53, %v10726_v54  ;;  %v5719_v38 = vrot.slane %v5711_v43, %v10726_v54 }
 0x1e2   :  { %19678 = vst [vmem:[#allocation333_spill] sm:$0xff] %v12897_v6  ;;  %1313 = vbcast.lane.b32.xlu1 %v12809_v29, 264  ;;  %v12927_v57 = vrot.slane %v12755_v42, %v10699_v17  ;;  %v6159_v19 = vcombine.low %v12894_v45, %v12894_v45  ;;  %v12932_v46 = vrot.slane %v5712_v28, %v10726_v54 }
 0x1e3   :  { %19680 = vst [vmem:[#allocation158_spill] sm:$0xff] %v12907_v4  ;;  %1309 = vbcast.lane.b32.xlu0 %v12809_v29, 256  ;;  %19681 = vst [vmem:[#allocation334_spill] sm:$0xff] %v12917_v10  ;;  %v1340_v29 = vrot.slane %v12755_v42, %v10695_v15  ;;  %v19683_v42 = vcombine.high %v11026_v31, %v11026_v31  ;;  %v6160_v39 = vcombine.high %v12894_v45, %v12894_v45 }
 0x1e4   :  { %19682 = vst [vmem:[#allocation335_spill] sm:$0xff] %v12920_v52  ;;  %v1006_v14 = vpop.permute.xlu1 %1005  ;;  %v1002_v8 = vpop.permute.xlu0 %1001  ;;  %v6175_v31 = vcombine.low %v12920_v52, %v12920_v52  ;;  %v12960_v4 = vrot.slane %v6159_v19, %v10735_v0 }
 0x1e5   :  { %v6143_v55 = vcombine.low %v995_v47, %v1006_v14  ;;  %v6144_v43 = vcombine.high %v995_v47, %v1006_v14  ;;  %v5727_v6 = vcombine.low %v991_v41, %v1002_v8  ;;  %v5728_v48 = vcombine.high %v991_v41, %v1002_v8 }
 0x1e6   :  { %1324 = vbcast.lane.b32.xlu1 %v1318_v27, 264  ;;  %v12940_v22 = vrot.slane %v19683_v42, %v10735_v0  ;;  %v19685_v8 = vcombine.high %v11030_v51, %v11030_v51  ;;  %v5743_v14 = vcombine.low %v5719_v38, %v5719_v38  ;;  %19687 = vst [vmem:[#allocation338_spill] sm:$0xff] %v12960_v4 }
 0x1e7   :  { %v6151_v28 = vrot.slane %v6143_v55, %v10726_v54  ;;  %1320 = vbcast.lane.b32.xlu0 %v1318_v27, 256  ;;  %v5735_v47 = vrot.slane %v5727_v6, %v10726_v54  ;;  %v5742_v45 = vrot.slane %v5728_v48, %v10726_v54  ;;  %v5744_v55 = vcombine.high %v5719_v38, %v5719_v38 }
 0x1e8   :  { %19684 = vst [vmem:[#allocation336_spill] sm:$0xff] %v12940_v22  ;;  %v12951_v41 = vrot.slane %v19685_v8, %v10735_v0  ;;  %v1017_v42 = vpop.permute.xlu1 %1016  ;;  %v5759_v27 = vcombine.low %v12932_v46, %v12932_v46  ;;  %v1013_v53 = vpop.permute.xlu0 %1012  ;;  %v12963_v51 = vrot.slane %v6144_v43, %v10726_v54  ;;  %v5760_v48 = vcombine.high %v12932_v46, %v12932_v46 }
 0x1e9   :  { %v6191_v60 = vcombine.low %v6151_v28, %v6151_v28  ;;  %v5775_v8 = vcombine.low %v5735_v47, %v5735_v47  ;;  %v5776_v10 = vcombine.high %v5735_v47, %v5735_v47  ;;  %v5791_v5 = vcombine.low %v5742_v45, %v5742_v45 }
 0x1ea   :  { %19686 = vst [vmem:[#allocation337_spill] sm:$0xff] %v12951_v41  ;;  %19688 = vst [vmem:[#allocation339_spill] sm:$0xff] %v12963_v51  ;;  %1335 = vbcast.lane.b32.xlu1 %v1329_v25, 264  ;;  %v5792_v6 = vcombine.high %v5742_v45, %v5742_v45  ;;  %v12973_v52 = vrot.slane %v5743_v14, %v10735_v0  ;;  %v12987_v12 = vrot.slane %v5744_v55, %v10735_v0 }
 0x1eb   :  { %1331 = vbcast.lane.b32.xlu0 %v1329_v25, 256  ;;  %v12968_v38 = vrot.slane %v6191_v60, %v10735_v0  ;;  %v12976_v43 = vrot.slane %v5775_v8, %v10735_v0  ;;  %v12979_v47 = vrot.slane %v5776_v10, %v10735_v0  ;;  %v12982_v46 = vrot.slane %v5791_v5, %v10735_v0 }
 0x1ec   :  { %v1028_v19 = vpop.permute.xlu1 %1027  ;;  %19690 = vst [vmem:[#allocation341_spill] sm:$0xff] %v12973_v52  ;;  %v6192_v25 = vcombine.high %v6151_v28, %v6151_v28  ;;  %v1024_v60 = vpop.permute.xlu0 %1023  ;;  %19694 = vst [vmem:[#allocation345_spill] sm:$0xff] %v12987_v12  ;;  %v6207_v8 = vcombine.low %v12963_v51, %v12963_v51  ;;  %v12996_v10 = vrot.slane %v5759_v27, %v10735_v0  ;;  %v19725_v12 = vld [vmem:[#allocation142_spill] sm:$0xff] }
 0x1ed   :  { %19689 = vst [vmem:[#allocation340_spill] sm:$0xff] %v12968_v38  ;;  %19691 = vst [vmem:[#allocation342_spill] sm:$0xff] %v12976_v43  ;;  %v6231_v45 = vcombine.low %v1017_v42, %v1028_v19  ;;  %v6232_v22 = vcombine.high %v1017_v42, %v1028_v19  ;;  %v5815_v28 = vcombine.low %v1013_v53, %v1024_v60 }
 0x1ee   :  { %19692 = vst [vmem:[#allocation343_spill] sm:$0xff] %v12979_v47  ;;  %19693 = vst [vmem:[#allocation344_spill] sm:$0xff] %v12982_v46  ;;  %1346 = vbcast.lane.b32.xlu1 %v1340_v29, 264  ;;  %v13003_v14 = vrot.slane %v5792_v6, %v10735_v0  ;;  %v5816_v19 = vcombine.high %v1013_v53, %v1024_v60  ;;  %v1362_v27 = vrot.slane %v12984_v23, %v10674_v3  ;;  %v19724_v47 = vld [vmem:[#allocation144_spill] sm:$0xff] }
 0x1ef   :  { %19695 = vst [vmem:[#allocation346_spill] sm:$0xff] %v12996_v10  ;;  %1342 = vbcast.lane.b32.xlu0 %v1340_v29, 256  ;;  %v13006_v42 = vrot.slane %v6231_v45, %v10726_v54  ;;  %v1373_v55 = vrot.slane %v12984_v23, %v10671_v2  ;;  %v13015_v41 = vrot.slane %v5760_v48, %v10735_v0 }
 0x1f0   :  { %19696 = vst [vmem:[#allocation347_spill] sm:$0xff] %v13003_v14  ;;  %v1039_v4 = vpop.permute.xlu1 %1038  ;;  %v1035_v5 = vpop.permute.xlu0 %1034  ;;  %v13018_v6 = vrot.slane %v6160_v39, %v10735_v0  ;;  %v13021_v45 = vrot.slane %v6192_v25, %v10735_v0  ;;  %v13024_v53 = vrot.slane %v6232_v22, %v10726_v54  ;;  %v13029_v3 = vrot.slane %v12984_v23, %v10679_v7 }
 0x1f1   :  { %19697 = vst [vmem:[#allocation348_spill] sm:$0xff] %v13015_v41  ;;  %v13033_v2 = vrot.slane %v12984_v23, %v10683_v9  ;;  %v13036_v48 = vrot.slane %v6175_v31, %v10735_v0  ;;  %v5823_v39 = vrot.slane %v5815_v28, %v10726_v54  ;;  %v13045_v7 = vrot.slane %v6207_v8, %v10735_v0 }
 0x1f2   :  { %19698 = vst [vmem:[#allocation349_spill] sm:$0xff] %v13018_v6  ;;  %19699 = vst [vmem:[#allocation350_spill] sm:$0xff] %v13021_v45  ;;  %1357 = vbcast.lane.b32.xlu1 %v12927_v57, 264  ;;  %v6263_v9 = vcombine.low %v13006_v42, %v13006_v42  ;;  %v13050_v60 = vrot.slane %v5816_v19, %v10726_v54  ;;  %v19705_v25 = vcombine.high %v11212_v20, %v11212_v20 }
 0x1f3   :  { %19700 = vst [vmem:[#allocation351_spill] sm:$0xff] %v13024_v53  ;;  %19701 = vst [vmem:[#allocation352_spill] sm:$0xff] %v13036_v48  ;;  %1353 = vbcast.lane.b32.xlu0 %v12927_v57, 256  ;;  %v19703_v57 = vcombine.high %v11208_v24, %v11208_v24  ;;  %v6264_v8 = vcombine.high %v13006_v42, %v13006_v42  ;;  %v5848_v20 = vcombine.high %v5823_v39, %v5823_v39 }
 0x1f4   :  { %19702 = vst [vmem:[#allocation353_spill] sm:$0xff] %v13045_v7  ;;  %v1050_v31 = vpop.permute.xlu1 %1049  ;;  %v13062_v22 = vrot.slane %v19705_v25, %v10735_v0  ;;  %v1046_v38 = vpop.permute.xlu0 %1045  ;;  %v19707_v19 = vcombine.high %v11683_v16, %v11683_v16  ;;  %v5863_v16 = vcombine.low %v13050_v60, %v13050_v60 }
 0x1f5   :  { %v13056_v28 = vrot.slane %v19703_v57, %v10735_v0  ;;  %v6247_v29 = vcombine.low %v1039_v4, %v1050_v31  ;;  %v6248_v57 = vcombine.high %v1039_v4, %v1050_v31  ;;  %v5831_v41 = vcombine.low %v1035_v5, %v1046_v38 }
 0x1f6   :  { %19706 = vst [vmem:[#allocation355_spill] sm:$0xff] %v13062_v22  ;;  %v5832_v10 = vcombine.high %v1035_v5, %v1046_v38  ;;  %1368 = vbcast.lane.b32.xlu1 %v1362_v27, 264  ;;  %v13079_v46 = vrot.slane %v19707_v19, %v10735_v0  ;;  %v19709_v38 = vcombine.high %v19679_v59, %v19679_v59 }
 0x1f7   :  { %19704 = vst [vmem:[#allocation354_spill] sm:$0xff] %v13056_v28  ;;  %v6255_v25 = vrot.slane %v6247_v29, %v10726_v54  ;;  %1364 = vbcast.lane.b32.xlu0 %v1362_v27, 256  ;;  %v5839_v14 = vrot.slane %v5831_v41, %v10726_v54  ;;  %v5847_v29 = vcombine.low %v5823_v39, %v5823_v39 }
 0x1f8   :  { %19708 = vst [vmem:[#allocation356_spill] sm:$0xff] %v13079_v46  ;;  %v5846_v4 = vrot.slane %v5832_v10, %v10726_v54  ;;  %v13083_v31 = vpop.permute.xlu1 %1060  ;;  %v13089_v5 = vrot.slane %v19709_v38, %v10735_v0  ;;  %v1057_v42 = vpop.permute.xlu0 %1056  ;;  %v13096_v41 = vrot.slane %v6263_v9, %v10735_v0  ;;  %v13099_v10 = vrot.slane %v6248_v57, %v10726_v54 }
 0x1f9   :  { %v6295_v19 = vcombine.low %v6255_v25, %v6255_v25  ;;  %v5879_v24 = vcombine.low %v5839_v14, %v5839_v14  ;;  %v5880_v48 = vcombine.high %v5839_v14, %v5839_v14  ;;  %v6296_v38 = vcombine.high %v6255_v25, %v6255_v25 }
 0x1fa   :  { %19710 = vst [vmem:[#allocation357_spill] sm:$0xff] %v13089_v5  ;;  %19711 = vst [vmem:[#allocation358_spill] sm:$0xff] %v13096_v41  ;;  %v5895_v59 = vcombine.low %v5846_v4, %v5846_v4  ;;  %1379 = vbcast.lane.b32.xlu1 %v1373_v55, 264  ;;  %v5896_v7 = vcombine.high %v5846_v4, %v5846_v4  ;;  %v13110_v57 = vrot.slane %v5848_v20, %v10735_v0 }
 0x1fb   :  { %19712 = vst [vmem:[#allocation359_spill] sm:$0xff] %v13099_v10  ;;  %1375 = vbcast.lane.b32.xlu0 %v1373_v55, 256  ;;  %v13102_v39 = vrot.slane %v6295_v19, %v10735_v0  ;;  %v13107_v9 = vrot.slane %v5879_v24, %v10735_v0  ;;  %v13113_v14 = vrot.slane %v5880_v48, %v10735_v0  ;;  %v19723_v48 = vld [vmem:[#allocation143_spill] sm:$0xff] }
 0x1fc   :  { %v1072_v45 = vpop.permute.xlu1 %1071  ;;  %19715 = vst [vmem:[#allocation362_spill] sm:$0xff] %v13110_v57  ;;  %v13116_v25 = vrot.slane %v5895_v59, %v10735_v0  ;;  %v5864_v55 = vcombine.high %v13050_v60, %v13050_v60  ;;  %v1068_v19 = vpop.permute.xlu0 %1067  ;;  %v13122_v27 = vrot.slane %v5847_v29, %v10735_v0  ;;  %v6311_v20 = vcombine.low %v13099_v10, %v13099_v10  ;;  %v19727_v57 = vld [vmem:[#allocation162_spill] sm:$0xff] }
 0x1fd   :  { %19713 = vst [vmem:[#allocation360_spill] sm:$0xff] %v13102_v39  ;;  %19714 = vst [vmem:[#allocation361_spill] sm:$0xff] %v13107_v9  ;;  %v6335_v4 = vcombine.low %v13083_v31, %v1072_v45  ;;  %v13132_v59 = vrot.slane %v5863_v16, %v10735_v0  ;;  %v13135_v60 = vrot.slane %v6264_v8, %v10735_v0 }
 0x1fe   :  { %19716 = vst [vmem:[#allocation363_spill] sm:$0xff] %v13113_v14  ;;  %19717 = vst [vmem:[#allocation364_spill] sm:$0xff] %v13116_v25  ;;  %1390 = vbcast.lane.b32.xlu1 %v13029_v3, 264  ;;  %v13143_v6 = vrot.slane %v5896_v7, %v10735_v0  ;;  %v13146_v41 = vrot.slane %v6296_v38, %v10735_v0  ;;  %v5919_v39 = vcombine.low %v1057_v42, %v1068_v19  ;;  %v19726_v14 = vld [vmem:[#allocation159_spill] sm:$0xff]  ;;  %v19732_v38 = vld [vmem:[#allocation173_spill] sm:$0xff] }
 0x1ff   :  { %19718 = vst [vmem:[#allocation365_spill] sm:$0xff] %v13122_v27  ;;  %19719 = vst [vmem:[#allocation366_spill] sm:$0xff] %v13132_v59  ;;  %1386 = vbcast.lane.b32.xlu0 %v13029_v3, 256  ;;  %v13155_v46 = vrot.slane %v6335_v4, %v10726_v54  ;;  %v5920_v24 = vcombine.high %v1057_v42, %v1068_v19  ;;  %v13160_v5 = vrot.slane %v5864_v55, %v10735_v0 }
 0x200   :  { %19720 = vst [vmem:[#allocation367_spill] sm:$0xff] %v13135_v60  ;;  %19721 = vst [vmem:[#allocation368_spill] sm:$0xff] %v13143_v6  ;;  %v1083_v8 = vpop.permute.xlu1 %1082  ;;  %v1079_v7 = vpop.permute.xlu0 %1078  ;;  %v1406_v3 = vrot.slane %v12984_v23, %v10687_v11  ;;  %v19729_v4 = vcombine.low %v13024_v53, %v13024_v53  ;;  %v13174_v19 = vrot.slane %v6311_v20, %v10735_v0 }
 0x201   :  { %19722 = vst [vmem:[#allocation369_spill] sm:$0xff] %v13146_v41  ;;  %19728 = vst [vmem:[#allocation143_spill] sm:$0xff] %v13160_v5  ;;  %v6336_v55 = vcombine.high %v13083_v31, %v1072_v45  ;;  %v5927_v59 = vrot.slane %v5919_v39, %v10726_v54  ;;  %v1417_v45 = vrot.slane %v12984_v23, %v10691_v13  ;;  %v19733_v31 = vld [vmem:[#allocation174_spill] sm:$0xff] }
 0x202   :  { %1401 = vbcast.lane.b32.xlu1 %v13033_v2, 264  ;;  %v13171_v42 = vrot.slane %v19729_v4, %v10735_v0  ;;  %19731 = vst [vmem:[#allocation371_spill] sm:$0xff] %v13174_v19  ;;  %v6367_v29 = vcombine.low %v13155_v46, %v13155_v46  ;;  %v5934_v16 = vrot.slane %v5920_v24, %v10726_v54 }
 0x203   :  { %1397 = vbcast.lane.b32.xlu0 %v13033_v2, 256  ;;  %v19734_v2 = vld [vmem:[#allocation172_spill] sm:$0xff]  ;;  %v1428_v13 = vrot.slane %v12984_v23, %v10695_v15  ;;  %v13199_v53 = vrot.slane %v6336_v55, %v10726_v54  ;;  %v1439_v24 = vrot.slane %v12984_v23, %v10699_v17  ;;  %v5952_v55 = vcombine.high %v5927_v59, %v5927_v59 }
 0x204   :  { %19730 = vst [vmem:[#allocation370_spill] sm:$0xff] %v13171_v42  ;;  %v1094_v20 = vpop.permute.xlu1 %1093  ;;  %v1090_v5 = vpop.permute.xlu0 %1089  ;;  %v5967_v11 = vcombine.low %v5934_v16, %v5934_v16 }
 0x205   :  { %v6351_v6 = vcombine.low %v1083_v8, %v1094_v20  ;;  %v6352_v4 = vcombine.high %v1083_v8, %v1094_v20  ;;  %v5935_v10 = vcombine.low %v1079_v7, %v1090_v5  ;;  %v5936_v39 = vcombine.high %v1079_v7, %v1090_v5  ;;  %19735 = vst [vmem:[#allocation173_spill] sm:$0xff] %v13199_v53 }
 0x206   :  { %1412 = vbcast.lane.b32.xlu1 %v1406_v3, 264  ;;  %v6368_v8 = vcombine.high %v13155_v46, %v13155_v46  ;;  %v5951_v5 = vcombine.low %v5927_v59, %v5927_v59  ;;  %v6383_v46 = vcombine.low %v13199_v53, %v13199_v53 }
 0x207   :  { %v6359_v25 = vrot.slane %v6351_v6, %v10726_v54  ;;  %1408 = vbcast.lane.b32.xlu0 %v1406_v3, 256  ;;  %v5943_v7 = vrot.slane %v5935_v10, %v10726_v54  ;;  %v5950_v15 = vrot.slane %v5936_v39, %v10726_v54  ;;  %v13211_v3 = vrot.slane %v6367_v29, %v10735_v0 }
 0x208   :  { %v1105_v20 = vpop.permute.xlu1 %1104  ;;  %v1101_v6 = vpop.permute.xlu0 %1100  ;;  %v13214_v17 = vrot.slane %v6352_v4, %v10726_v54  ;;  %v5968_v10 = vcombine.high %v5934_v16, %v5934_v16  ;;  %v13222_v29 = vrot.slane %v5951_v5, %v10735_v0 }
 0x209   :  { %v6399_v41 = vcombine.low %v6359_v25, %v6359_v25  ;;  %19736 = vst [vmem:[#allocation372_spill] sm:$0xff] %v13211_v3  ;;  %v5983_v23 = vcombine.low %v5943_v7, %v5943_v7  ;;  %v5984_v51 = vcombine.high %v5943_v7, %v5943_v7  ;;  %v5999_v42 = vcombine.low %v5950_v15, %v5950_v15 }
 0x20a   :  { %19737 = vst [vmem:[#allocation373_spill] sm:$0xff] %v13214_v17  ;;  %1423 = vbcast.lane.b32.xlu1 %v1417_v45, 264  ;;  %v6000_v39 = vcombine.high %v5950_v15, %v5950_v15  ;;  %19739 = vst [vmem:[#allocation375_spill] sm:$0xff] %v13222_v29  ;;  %v6400_v53 = vcombine.high %v6359_v25, %v6359_v25  ;;  %v6415_v5 = vcombine.low %v13214_v17, %v13214_v17 }
 0x20b   :  { %1419 = vbcast.lane.b32.xlu0 %v1417_v45, 256  ;;  %v13219_v59 = vrot.slane %v6399_v41, %v10735_v0  ;;  %v13225_v4 = vrot.slane %v5983_v23, %v10735_v0  ;;  %v13228_v7 = vrot.slane %v5984_v51, %v10735_v0  ;;  %v13231_v60 = vrot.slane %v5999_v42, %v10735_v0 }
 0x20c   :  { %v1116_v19 = vpop.permute.xlu1 %1115  ;;  %v1112_v15 = vpop.permute.xlu0 %1111  ;;  %v13234_v45 = vrot.slane %v5952_v55, %v10735_v0  ;;  %v13243_v42 = vrot.slane %v5967_v11, %v10735_v0  ;;  %v13250_v41 = vrot.slane %v6000_v39, %v10735_v0  ;;  %v4440_v55 = vcombine.high %v11892_v34, %v11892_v34 }
 0x20d   :  { %19738 = vst [vmem:[#allocation374_spill] sm:$0xff] %v13219_v59  ;;  %19740 = vst [vmem:[#allocation376_spill] sm:$0xff] %v13225_v4  ;;  %v6855_v16 = vcombine.low %v1105_v20, %v1116_v19  ;;  %v6856_v23 = vcombine.high %v1105_v20, %v1116_v19  ;;  %v6439_v25 = vcombine.low %v1101_v6, %v1112_v15 }
 0x20e   :  { %19741 = vst [vmem:[#allocation377_spill] sm:$0xff] %v13228_v7  ;;  %19742 = vst [vmem:[#allocation378_spill] sm:$0xff] %v13231_v60  ;;  %1434 = vbcast.lane.b32.xlu1 %v1428_v13, 264  ;;  %v4408_v19 = vcombine.high %v11884_v50, %v11884_v50  ;;  %v6440_v51 = vcombine.high %v1101_v6, %v1112_v15  ;;  %v13262_v28 = vrot.slane %v5968_v10, %v10735_v0 }
 0x20f   :  { %19743 = vst [vmem:[#allocation379_spill] sm:$0xff] %v13234_v45  ;;  %19744 = vst [vmem:[#allocation380_spill] sm:$0xff] %v13243_v42  ;;  %1430 = vbcast.lane.b32.xlu0 %v1428_v13, 256  ;;  %v13255_v20 = vrot.slane %v6855_v16, %v10726_v54  ;;  %v13265_v39 = vrot.slane %v6368_v8, %v10735_v0  ;;  %v13268_v50 = vrot.slane %v6400_v53, %v10735_v0  ;;  %v19760_v45 = vld [vmem:[#allocation12_spill] sm:$0xff] }
 0x210   :  { %19745 = vst [vmem:[#allocation381_spill] sm:$0xff] %v13250_v41  ;;  %v1127_v11 = vpop.permute.xlu1 %1126  ;;  %v1123_v3 = vpop.permute.xlu0 %1122  ;;  %19746 = vst [vmem:[#allocation382_spill] sm:$0xff] %v13262_v28  ;;  %v13271_v16 = vrot.slane %v6856_v23, %v10726_v54  ;;  %v13278_v15 = vrot.slane %v6383_v46, %v10735_v0  ;;  %v6447_v10 = vrot.slane %v6439_v25, %v10726_v54 }
 0x211   :  { %19747 = vst [vmem:[#allocation383_spill] sm:$0xff] %v13265_v39  ;;  %19748 = vst [vmem:[#allocation384_spill] sm:$0xff] %v13268_v50  ;;  %v13286_v23 = vrot.slane %v6415_v5, %v10735_v0  ;;  %v6887_v13 = vcombine.low %v13255_v20, %v13255_v20  ;;  %v13291_v34 = vrot.slane %v6440_v51, %v10726_v54  ;;  %v19759_v51 = vld [vmem:[#allocation10_spill] sm:$0xff] }
 0x212   :  { %19749 = vst [vmem:[#allocation385_spill] sm:$0xff] %v13271_v16  ;;  %1445 = vbcast.lane.b32.xlu1 %v1439_v24, 264  ;;  %19750 = vst [vmem:[#allocation386_spill] sm:$0xff] %v13278_v15  ;;  %v19754_v8 = vcombine.high %v19605_v36, %v19605_v36  ;;  %v6888_v5 = vcombine.high %v13255_v20, %v13255_v20  ;;  %v19756_v36 = vld [vmem:[#allocation24_spill] sm:$0xff]  ;;  %v6472_v20 = vcombine.high %v6447_v10, %v6447_v10 }
 0x213   :  { %1441 = vbcast.lane.b32.xlu0 %v1439_v24, 256  ;;  %19751 = vst [vmem:[#allocation387_spill] sm:$0xff] %v13286_v23  ;;  %v19752_v24 = vcombine.high %v19587_v18, %v19587_v18  ;;  %v19761_v17 = vcombine.high %v19759_v51, %v19760_v45  ;;  %v6471_v18 = vcombine.low %v6447_v10, %v6447_v10  ;;  %v19768_v15 = vld [vmem:[#allocation40_spill] sm:$0xff] }
 0x214   :  { %v1138_v46 = vpop.permute.xlu1 %1137  ;;  %v13303_v53 = vrot.slane %v19754_v8, %v10735_v0  ;;  %v1134_v59 = vpop.permute.xlu0 %1133  ;;  %v19757_v8 = vld [vmem:[#allocation26_spill] sm:$0xff] }
 0x215   :  { %v13297_v25 = vrot.slane %v19752_v24, %v10735_v0  ;;  %v6871_v6 = vcombine.low %v1127_v11, %v1138_v46  ;;  %v6872_v24 = vcombine.high %v1127_v11, %v1138_v46  ;;  %v6455_v28 = vcombine.low %v1123_v3, %v1134_v59 }
 0x216   :  { %19755 = vst [vmem:[#allocation389_spill] sm:$0xff] %v13303_v53  ;;  %v6456_v42 = vcombine.high %v1123_v3, %v1134_v59  ;;  %v19758_v60 = vcombine.high %v19756_v36, %v19757_v8  ;;  %v13325_v11 = vrot.slane %v4408_v19, %v10735_v0  ;;  %v13341_v19 = vrot.slane %v6887_v13, %v10735_v0  ;;  %v19767_v36 = vld [vmem:[#allocation38_spill] sm:$0xff]  ;;  %v19805_v53 = vld [vmem:[#allocation128_spill] sm:$0xff] }
 0x217   :  { %19753 = vst [vmem:[#allocation388_spill] sm:$0xff] %v13297_v25  ;;  %v6879_v7 = vrot.slane %v6871_v6, %v10726_v54  ;;  %8135 = vrot.lane.b32.xlu0 %v19761_v17, %s10637_s0  ;;  %v6463_v3 = vrot.slane %v6455_v28, %v10726_v54  ;;  %v6487_v17 = vcombine.low %v13291_v34, %v13291_v34  ;;  %v19804_v25 = vld [vmem:[#allocation131_spill] sm:$0xff] }
 0x218   :  { %8137 = vrot.lane.b32.xlu1 %v19758_v60, %s10637_s0  ;;  %19762 = vst [vmem:[#allocation390_spill] sm:$0xff] %v13325_v11  ;;  %v6470_v59 = vrot.slane %v6456_v42, %v10726_v54  ;;  %v13329_v46 = vpop.permute.xlu1 %1148  ;;  %v13332_v60 = vrot.slane %v4440_v55, %v10735_v0  ;;  %v13338_v45 = vpop.permute.xlu0 %1144  ;;  %19764 = vst [vmem:[#allocation392_spill] sm:$0xff] %v13341_v19  ;;  %v13344_v28 = vrot.slane %v6872_v24, %v10726_v54  ;;  %v19789_v11 = vld [vmem:[#allocation224_spill] sm:$0xff]  ;;  %v19792_v19 = vld [vmem:[#allocation235_spill] sm:$0xff] }
 0x219   :  { %v6919_v41 = vcombine.low %v6879_v7, %v6879_v7  ;;  %v6503_v42 = vcombine.low %v6463_v3, %v6463_v3  ;;  %v6504_v51 = vcombine.high %v6463_v3, %v6463_v3  ;;  %v19766_v6 = vcombine.high %v11033_v49, %v11039_v33  ;;  %v19781_v49 = vld [vmem:[#allocation66_spill] sm:$0xff] }
 0x21a   :  { %19763 = vst [vmem:[#allocation391_spill] sm:$0xff] %v13332_v60  ;;  %19765 = vst [vmem:[#allocation393_spill] sm:$0xff] %v13344_v28  ;;  %v6519_v55 = vcombine.low %v6470_v59, %v6470_v59  ;;  %v6920_v10 = vcombine.high %v6879_v7, %v6879_v7  ;;  %v6520_v8 = vcombine.high %v6470_v59, %v6470_v59 }
 0x21b   :  { %v19769_v23 = vcombine.high %v19767_v36, %v19768_v15  ;;  %v13355_v13 = vrot.slane %v6919_v41, %v10735_v0  ;;  %v13360_v50 = vrot.slane %v6503_v42, %v10735_v0  ;;  %v13363_v33 = vrot.slane %v6472_v20, %v10735_v0  ;;  %v19777_v15 = vld [vmem:[#allocation82_spill] sm:$0xff]  ;;  %v19782_v42 = vld [vmem:[#allocation68_spill] sm:$0xff] }
 0x21c   :  { %8141 = vrot.lane.b32.xlu1 %v19766_v6, %s10637_s0  ;;  %v1160_v3 = vpop.permute.xlu1 %1159  ;;  %v13366_v7 = vrot.slane %v6504_v51, %v10735_v0  ;;  %v13369_v59 = vrot.slane %v6519_v55, %v10735_v0  ;;  %v6488_v41 = vcombine.high %v13291_v34, %v13291_v34  ;;  %v1156_v6 = vpop.permute.xlu0 %1155  ;;  %v13375_v24 = vrot.slane %v6471_v18, %v10735_v0  ;;  %v19776_v51 = vld [vmem:[#allocation80_spill] sm:$0xff]  ;;  %v19786_v34 = vld [vmem:[#allocation218_spill] sm:$0xff] }
 0x21d   :  { %8139 = vrot.lane.b32.xlu0 %v19769_v23, %s10637_s0  ;;  %19770 = vst [vmem:[#allocation394_spill] sm:$0xff] %v13355_v13  ;;  %19771 = vst [vmem:[#allocation395_spill] sm:$0xff] %v13360_v50  ;;  %v6959_v23 = vcombine.low %v13329_v46, %v1160_v3  ;;  %v6935_v20 = vcombine.low %v13344_v28, %v13344_v28  ;;  %v19778_v55 = vcombine.high %v19776_v51, %v19777_v15  ;;  %v19787_v51 = vld [vmem:[#allocation220_spill] sm:$0xff] }
 0x21e   :  { %19772 = vst [vmem:[#allocation396_spill] sm:$0xff] %v13363_v33  ;;  %19773 = vst [vmem:[#allocation397_spill] sm:$0xff] %v13366_v7  ;;  %v13388_v36 = vrot.slane %v6487_v17, %v10735_v0  ;;  %v13391_v18 = vrot.slane %v6888_v5, %v10735_v0  ;;  %v19783_v39 = vcombine.high %v19781_v49, %v19782_v42 }
 0x21f   :  { %19774 = vst [vmem:[#allocation398_spill] sm:$0xff] %v13369_v59  ;;  %19775 = vst [vmem:[#allocation399_spill] sm:$0xff] %v13375_v24  ;;  %v13402_v15 = vrot.slane %v6520_v8, %v10735_v0  ;;  %v13405_v17 = vrot.slane %v6920_v10, %v10735_v0  ;;  %v13416_v8 = vrot.slane %v6959_v23, %v10726_v54  ;;  %v19788_v10 = vld [vmem:[#allocation221_spill] sm:$0xff]  ;;  %v19800_v59 = vld [vmem:[#allocation272_spill] sm:$0xff] }
 0x220   :  { %8145 = vrot.lane.b32.xlu1 %v19778_v55, %s10637_s0  ;;  %19779 = vst [vmem:[#allocation400_spill] sm:$0xff] %v13388_v36  ;;  %19780 = vst [vmem:[#allocation401_spill] sm:$0xff] %v13391_v18  ;;  %v1171_v42 = vpop.permute.xlu1 %1170  ;;  %v6960_v55 = vcombine.high %v13329_v46, %v1160_v3  ;;  %v1167_v49 = vpop.permute.xlu0 %1166  ;;  %v13421_v5 = vrot.slane %v6488_v41, %v10735_v0  ;;  %v6544_v13 = vcombine.high %v13338_v45, %v1156_v6  ;;  %v19793_v3 = vld [vmem:[#allocation259_spill] sm:$0xff] }
 0x221   :  { %8143 = vrot.lane.b32.xlu0 %v19783_v39, %s10637_s0  ;;  %19784 = vst [vmem:[#allocation402_spill] sm:$0xff] %v13402_v15  ;;  %19785 = vst [vmem:[#allocation403_spill] sm:$0xff] %v13405_v17  ;;  %v6543_v39 = vcombine.low %v13338_v45, %v1156_v6  ;;  %v19791_v28 = vcombine.high %v19630_v44, %v19629_v56  ;;  %v19794_v60 = vcombine.low %v13271_v16, %v13271_v16  ;;  %v19796_v41 = vld [vmem:[#allocation95_spill] sm:$0xff]  ;;  %v19797_v45 = vld [vmem:[#allocation97_spill] sm:$0xff] }
 0x222   :  { %19790 = vst [vmem:[#allocation218_spill] sm:$0xff] %v13421_v5  ;;  %v19798_v6 = vcombine.high %v19796_v41, %v19797_v45  ;;  %v13449_v56 = vrot.slane %v6935_v20, %v10735_v0  ;;  %v19801_v16 = vld [vmem:[#allocation271_spill] sm:$0xff]  ;;  %v13459_v46 = vrot.slane %v6960_v55, %v10726_v54  ;;  %v6991_v23 = vcombine.low %v13416_v8, %v13416_v8 }
 0x223   :  { %v13436_v36 = vrot.slane %v19794_v60, %v10735_v0  ;;  %v6551_v60 = vrot.slane %v6543_v39, %v10726_v54  ;;  %v6558_v15 = vrot.slane %v6544_v13, %v10726_v54  ;;  %v19806_v22 = vcombine.high %v19804_v25, %v19805_v53 }
 0x224   :  { %8149 = vrot.lane.b32.xlu1 %v19791_v28, %s10637_s0  ;;  %19799 = vst [vmem:[#allocation404_spill] sm:$0xff] %v13449_v56  ;;  %v1182_v44 = vpop.permute.xlu1 %1181  ;;  %v19802_v28 = vld [vmem:[#allocation292_spill] sm:$0xff]  ;;  %v1178_v41 = vpop.permute.xlu0 %1177  ;;  %v13488_v13 = vrot.slane %v6991_v23, %v10735_v0 }
 0x225   :  { %19795 = vst [vmem:[#allocation220_spill] sm:$0xff] %v13436_v36  ;;  %8147 = vrot.lane.b32.xlu0 %v19798_v6, %s10637_s0  ;;  %v6975_v20 = vcombine.low %v1171_v42, %v1182_v44  ;;  %v6559_v7 = vcombine.low %v1167_v49, %v1178_v41  ;;  %v6560_v5 = vcombine.high %v1167_v49, %v1178_v41 }
 0x226   :  { %v19803_v6 = vcombine.high %v19725_v12, %v19724_v47  ;;  %v6976_v45 = vcombine.high %v1171_v42, %v1182_v44  ;;  %v6992_v41 = vcombine.high %v13416_v8, %v13416_v8  ;;  %v6576_v55 = vcombine.high %v6551_v60, %v6551_v60  ;;  %19807 = vst [vmem:[#allocation405_spill] sm:$0xff] %v13488_v13 }
 0x227   :  { %v6983_v33 = vrot.slane %v6975_v20, %v10726_v54  ;;  %v6567_v39 = vrot.slane %v6559_v7, %v10726_v54  ;;  %v6574_v44 = vrot.slane %v6560_v5, %v10726_v54  ;;  %v7007_v20 = vcombine.low %v13459_v46, %v13459_v46 }
 0x228   :  { %8153 = vrot.lane.b32.xlu1 %v19803_v6, %s10637_s0  ;;  %v6575_v6 = vcombine.low %v6551_v60, %v6551_v60  ;;  %v1193_v42 = vpop.permute.xlu1 %1192  ;;  %v1189_v53 = vpop.permute.xlu0 %1188  ;;  %v6591_v25 = vcombine.low %v6558_v15, %v6558_v15  ;;  %v19808_v7 = vcombine.high %v19734_v2, %v19733_v31  ;;  %v6592_v5 = vcombine.high %v6558_v15, %v6558_v15 }
 0x229   :  { %8151 = vrot.lane.b32.xlu0 %v19806_v22, %s10637_s0  ;;  %v7023_v22 = vcombine.low %v6983_v33, %v6983_v33  ;;  %v6607_v49 = vcombine.low %v6567_v39, %v6567_v39  ;;  %v6608_v47 = vcombine.high %v6567_v39, %v6567_v39  ;;  %v6623_v12 = vcombine.low %v6574_v44, %v6574_v44 }
 0x22a   :  { %v13495_v8 = vrot.slane %v6976_v45, %v10726_v54  ;;  %v6624_v36 = vcombine.high %v6574_v44, %v6574_v44  ;;  %v19809_v60 = vcombine.high %v19727_v57, %v19726_v14  ;;  %v13505_v56 = vrot.slane %v6575_v6, %v10735_v0 }
 0x22b   :  { %v13502_v23 = vrot.slane %v7023_v22, %v10735_v0  ;;  %v13508_v31 = vrot.slane %v6607_v49, %v10735_v0  ;;  %v13511_v15 = vrot.slane %v6608_v47, %v10735_v0  ;;  %v13514_v45 = vrot.slane %v6623_v12, %v10735_v0 }
 0x22c   :  { %8157 = vrot.lane.b32.xlu1 %v19808_v7, %s10637_s0  ;;  %v1204_v39 = vpop.permute.xlu1 %1203  ;;  %19811 = vst [vmem:[#allocation407_spill] sm:$0xff] %v13505_v56  ;;  %v7024_v44 = vcombine.high %v6983_v33, %v6983_v33  ;;  %v1200_v14 = vpop.permute.xlu0 %1199  ;;  %v19814_v49 = vcombine.high %v11999_v37, %v12007_v1  ;;  %v13528_v33 = vrot.slane %v6591_v25, %v10735_v0 }
 0x22d   :  { %8155 = vrot.lane.b32.xlu0 %v19809_v60, %s10637_s0  ;;  %19810 = vst [vmem:[#allocation406_spill] sm:$0xff] %v13502_v23  ;;  %19812 = vst [vmem:[#allocation408_spill] sm:$0xff] %v13508_v31  ;;  %v7063_v7 = vcombine.low %v1193_v42, %v1204_v39  ;;  %v13517_v60 = vrot.slane %v6576_v55, %v10735_v0  ;;  %v7064_v6 = vcombine.high %v1193_v42, %v1204_v39 }
 0x22e   :  { %19813 = vst [vmem:[#allocation409_spill] sm:$0xff] %v13514_v45  ;;  %v6647_v57 = vcombine.low %v1189_v53, %v1200_v14  ;;  %19815 = vst [vmem:[#allocation410_spill] sm:$0xff] %v13528_v33  ;;  %v7039_v47 = vcombine.low %v13495_v8, %v13495_v8  ;;  %v19816_v55 = vcombine.high %v11906_v21, %v11897_v35  ;;  %v19818_v35 = vld [vmem:[#allocation141_spill] sm:$0xff] }
 0x22f   :  { %v13544_v25 = vrot.slane %v7063_v7, %v10726_v54  ;;  %v6648_v12 = vcombine.high %v1189_v53, %v1200_v14  ;;  %v13555_v39 = vrot.slane %v6592_v5, %v10735_v0  ;;  %v13561_v7 = vrot.slane %v7024_v44, %v10735_v0 }
 0x230   :  { %8161 = vrot.lane.b32.xlu1 %v19814_v49, %s10637_s0  ;;  %v13541_v49 = vrot.slane %v6624_v36, %v10735_v0  ;;  %v1215_v22 = vpop.permute.xlu1 %1214  ;;  %v1211_v42 = vpop.permute.xlu0 %1210  ;;  %v13558_v36 = vrot.slane %v6992_v41, %v10735_v0  ;;  %v13564_v14 = vrot.slane %v7007_v20, %v10735_v0  ;;  %v13567_v53 = vrot.slane %v7064_v6, %v10726_v54 }
 0x231   :  { %8159 = vrot.lane.b32.xlu0 %v19816_v55, %s10637_s0  ;;  %v19819_v55 = vcombine.high %v19818_v35, %v19818_v35  ;;  %19821 = vst [vmem:[#allocation412_spill] sm:$0xff] %v13555_v39  ;;  %19823 = vst [vmem:[#allocation414_spill] sm:$0xff] %v13561_v7  ;;  %v6655_v35 = vrot.slane %v6647_v57, %v10726_v54  ;;  %v19827_v41 = vcombine.high %v19723_v48, %v19723_v48  ;;  %v19869_v7 = vld [vmem:[#allocation204_spill] sm:$0xff] }
 0x232   :  { %19817 = vst [vmem:[#allocation411_spill] sm:$0xff] %v13541_v49  ;;  %19822 = vst [vmem:[#allocation413_spill] sm:$0xff] %v13558_v36  ;;  %v19829_v20 = vcombine.high %v11777_v26, %v11777_v26  ;;  %v19831_v57 = vcombine.high %v19789_v11, %v19788_v10  ;;  %v13595_v48 = vrot.slane %v7039_v47, %v10735_v0 }
 0x233   :  { %v13552_v21 = vrot.slane %v19819_v55, %v10735_v0  ;;  %19824 = vst [vmem:[#allocation415_spill] sm:$0xff] %v13564_v14  ;;  %19825 = vst [vmem:[#allocation416_spill] sm:$0xff] %v13567_v53  ;;  %v19826_v55 = vcombine.high %v19792_v19, %v12225_v40  ;;  %v13578_v5 = vrot.slane %v19827_v41, %v10735_v0 }
 0x234   :  { %v13584_v44 = vrot.slane %v19829_v20, %v10735_v0  ;;  %19832 = vst [vmem:[#allocation419_spill] sm:$0xff] %v13595_v48  ;;  %v19833_v26 = vcombine.high %v19732_v38, %v19732_v38  ;;  %v7095_v20 = vcombine.low %v13544_v25, %v13544_v25  ;;  %v13608_v6 = vrot.slane %v6648_v12, %v10726_v54  ;;  %v1226_v1 = vpop.permute.xlu1 %1225 }
 0x235   :  { %19820 = vst [vmem:[#allocation141_spill] sm:$0xff] %v13552_v21  ;;  %8165 = vrot.lane.b32.xlu1 %v19826_v55, %s10637_s0  ;;  %19828 = vst [vmem:[#allocation417_spill] sm:$0xff] %v13578_v5  ;;  %8163 = vrot.lane.b32.xlu0 %v19831_v57, %s10637_s0  ;;  %v7096_v57 = vcombine.high %v13544_v25, %v13544_v25  ;;  %v19835_v47 = vcombine.high %v19786_v34, %v19786_v34  ;;  %v20012_v5 = vld [vmem:[#allocation222_spill] sm:$0xff]  ;;  %v20014_v21 = vld [vmem:[#allocation115_spill] sm:$0xff] }
 0x236   :  { %19830 = vst [vmem:[#allocation418_spill] sm:$0xff] %v13584_v44  ;;  %v13601_v41 = vrot.slane %v19833_v26, %v10735_v0  ;;  %v7079_v10 = vcombine.low %v1215_v22, %v1226_v1  ;;  %v7080_v38 = vcombine.high %v1215_v22, %v1226_v1  ;;  %v1222_v26 = vpop.permute.xlu0 %1221  ;;  %v7111_v12 = vcombine.low %v13567_v53, %v13567_v53  ;;  %v20038_v53 = vld [vmem:[#allocation326_spill] sm:$0xff]  ;;  %v20076_v44 = vld [vmem:[#allocation379_spill] sm:$0xff] }
 0x237   :  { %v13614_v55 = vrot.slane %v19835_v47, %v10735_v0  ;;  %v6679_v25 = vcombine.low %v6655_v35, %v6655_v35  ;;  %v6663_v19 = vcombine.low %v1211_v42, %v1222_v26  ;;  %v6664_v37 = vcombine.high %v1211_v42, %v1222_v26 }
 0x238   :  { %19834 = vst [vmem:[#allocation420_spill] sm:$0xff] %v13601_v41  ;;  %v19837_v34 = vcombine.high %v19801_v16, %v19800_v59  ;;  %v6680_v47 = vcombine.high %v6655_v35, %v6655_v35  ;;  %v7087_v1 = vrot.slane %v7079_v10, %v10726_v54  ;;  %v19838_v22 = vcombine.high %v19793_v3, %v12344_v62 }
 0x239   :  { %19836 = vst [vmem:[#allocation421_spill] sm:$0xff] %v13614_v55  ;;  %v19839_v42 = vcombine.high %v19787_v51, %v19787_v51  ;;  %v6671_v11 = vrot.slane %v6663_v19, %v10726_v54  ;;  %v6678_v35 = vrot.slane %v6664_v37, %v10726_v54  ;;  %v6695_v40 = vcombine.low %v13608_v6, %v13608_v6 }
 0x23a   :  { %8169 = vrot.lane.b32.xlu1 %v19837_v34, %s10637_s0  ;;  %8167 = vrot.lane.b32.xlu0 %v19838_v22, %s10637_s0  ;;  %v13641_v34 = vpop.permute.xlu1 %1236  ;;  %v13650_v62 = vrot.slane %v7080_v38, %v10726_v54  ;;  %v7127_v51 = vcombine.low %v7087_v1, %v7087_v1  ;;  %v13653_v19 = vrot.slane %v7095_v20, %v10735_v0 }
 0x23b   :  { %v13637_v26 = vrot.slane %v19839_v42, %v10735_v0  ;;  %19841 = vst [vmem:[#allocation423_spill] sm:$0xff] %v13641_v34  ;;  %v1233_v42 = vpop.permute.xlu0 %1232  ;;  %v7128_v37 = vcombine.high %v7087_v1, %v7087_v1  ;;  %v6711_v3 = vcombine.low %v6671_v11, %v6671_v11  ;;  %v6712_v59 = vcombine.high %v6671_v11, %v6671_v11 }
 0x23c   :  { %19842 = vst [vmem:[#allocation424_spill] sm:$0xff] %v13650_v62  ;;  %19843 = vst [vmem:[#allocation425_spill] sm:$0xff] %v13653_v19  ;;  %v6727_v16 = vcombine.low %v6678_v35, %v6678_v35  ;;  %v19844_v10 = vcombine.high %v12730_v30, %v12733_v58  ;;  %v6696_v22 = vcombine.high %v13608_v6, %v13608_v6 }
 0x23d   :  { %19840 = vst [vmem:[#allocation422_spill] sm:$0xff] %v13637_v26  ;;  %v6728_v2 = vcombine.high %v6678_v35, %v6678_v35  ;;  %v19845_v38 = vcombine.high %v19802_v28, %v12596_v63  ;;  %v13666_v20 = vrot.slane %v7127_v51, %v10735_v0  ;;  %v13673_v58 = vrot.slane %v6711_v3, %v10735_v0  ;;  %v20046_v26 = vld [vmem:[#allocation363_spill] sm:$0xff] }
 0x23e   :  { %8173 = vrot.lane.b32.xlu1 %v19844_v10, %s10637_s0  ;;  %v13670_v1 = vpop.permute.xlu1 %1247  ;;  %v13676_v10 = vrot.slane %v6680_v47, %v10735_v0  ;;  %v13679_v6 = vrot.slane %v6712_v59, %v10735_v0  ;;  %v13682_v35 = vrot.slane %v6727_v16, %v10735_v0  ;;  %v13687_v11 = vrot.slane %v6679_v25, %v10735_v0 }
 0x23f   :  { %8171 = vrot.lane.b32.xlu0 %v19845_v38, %s10637_s0  ;;  %19846 = vst [vmem:[#allocation426_spill] sm:$0xff] %v13666_v20  ;;  %19847 = vst [vmem:[#allocation427_spill] sm:$0xff] %v13670_v1  ;;  %v7167_v51 = vcombine.low %v13641_v34, %v13670_v1  ;;  %v1244_v38 = vpop.permute.xlu0 %1243  ;;  %v13692_v63 = vrot.slane %v7096_v57, %v10735_v0  ;;  %v7143_v59 = vcombine.low %v13650_v62, %v13650_v62  ;;  %v20031_v1 = vld [vmem:[#allocation175_spill] sm:$0xff] }
 0x240   :  { %19848 = vst [vmem:[#allocation428_spill] sm:$0xff] %v13673_v58  ;;  %19849 = vst [vmem:[#allocation429_spill] sm:$0xff] %v13682_v35  ;;  %v19852_v16 = vcombine.high %v12973_v52, %v12976_v43  ;;  %v13703_v25 = vrot.slane %v6695_v40, %v10735_v0  ;;  %v13706_v28 = vrot.slane %v7128_v37, %v10735_v0 }
 0x241   :  { %19850 = vst [vmem:[#allocation430_spill] sm:$0xff] %v13687_v11  ;;  %19851 = vst [vmem:[#allocation431_spill] sm:$0xff] %v13692_v63  ;;  %v6751_v3 = vcombine.low %v1233_v42, %v1244_v38  ;;  %v19855_v57 = vcombine.high %v12863_v61, %v12849_v32  ;;  %v13717_v47 = vrot.slane %v6728_v2, %v10735_v0 }
 0x242   :  { %8177 = vrot.lane.b32.xlu1 %v19852_v16, %s10637_s0  ;;  %19853 = vst [vmem:[#allocation432_spill] sm:$0xff] %v13703_v25  ;;  %19854 = vst [vmem:[#allocation433_spill] sm:$0xff] %v13706_v28  ;;  %v13719_v40 = vpop.permute.xlu1 %1258  ;;  %v6016_v37 = vcombine.high %v13222_v29, %v13225_v4  ;;  %v13726_v32 = vrot.slane %v7167_v51, %v10726_v54  ;;  %v5912_v30 = vcombine.high %v13122_v27, %v13107_v9 }
 0x243   :  { %8175 = vrot.lane.b32.xlu0 %v19855_v57, %s10637_s0  ;;  %19856 = vst [vmem:[#allocation434_spill] sm:$0xff] %v13717_v47  ;;  %19857 = vst [vmem:[#allocation435_spill] sm:$0xff] %v13719_v40  ;;  %v6752_v57 = vcombine.high %v1233_v42, %v1244_v38  ;;  %v1255_v61 = vpop.permute.xlu0 %1254  ;;  %v13731_v16 = vrot.slane %v6696_v22, %v10735_v0  ;;  %v13735_v2 = vrot.slane %v7111_v12, %v10735_v0 }
 0x244   :  { %v13738_v4 = vrot.slane %v7143_v59, %v10735_v0  ;;  %v6759_v43 = vrot.slane %v6751_v3, %v10726_v54  ;;  %v6536_v12 = vcombine.high %v13375_v24, %v13360_v50  ;;  %v6640_v59 = vcombine.high %v13505_v56, %v13508_v31 }
 0x245   :  { %19858 = vst [vmem:[#allocation436_spill] sm:$0xff] %v13731_v16  ;;  %19859 = vst [vmem:[#allocation437_spill] sm:$0xff] %v13735_v2  ;;  %v6766_v3 = vrot.slane %v6752_v57, %v10726_v54  ;;  %v19862_v57 = vld [vmem:[#allocation202_spill] sm:$0xff]  ;;  %v7200_v31 = vcombine.high %v13726_v32, %v13726_v32  ;;  %v19906_v16 = vld [vmem:[#allocation265_spill] sm:$0xff] }
 0x246   :  { %8181 = vrot.lane.b32.xlu1 %v6016_v37, %s10637_s0  ;;  %19860 = vst [vmem:[#allocation438_spill] sm:$0xff] %v13738_v4  ;;  %v13748_v38 = vpop.permute.xlu1 %1269  ;;  %v6783_v50 = vcombine.low %v6759_v43, %v6759_v43  ;;  %v4512_v56 = vcombine.high %v19862_v57, %v19862_v57  ;;  %v6784_v27 = vcombine.high %v6759_v43, %v6759_v43 }
 0x247   :  { %8179 = vrot.lane.b32.xlu0 %v5912_v30, %s10637_s0  ;;  %19861 = vst [vmem:[#allocation439_spill] sm:$0xff] %v13748_v38  ;;  %v7199_v30 = vcombine.low %v13726_v32, %v13726_v32  ;;  %v7183_v37 = vcombine.low %v13719_v40, %v13748_v38  ;;  %v1266_v51 = vpop.permute.xlu0 %1265  ;;  %v6800_v48 = vcombine.high %v6766_v3, %v6766_v3 }
 0x248   :  { %v6767_v42 = vcombine.low %v1255_v61, %v1266_v51  ;;  %v6768_v9 = vcombine.high %v1255_v61, %v1266_v51  ;;  %v6799_v61 = vcombine.low %v6766_v3, %v6766_v3 }
 0x249   :  { %v7191_v24 = vrot.slane %v7183_v37, %v10726_v54  ;;  %v6744_v37 = vcombine.high %v13687_v11, %v13673_v58  ;;  %v13788_v11 = vrot.slane %v6784_v27, %v10735_v0 }
 0x24a   :  { %8185 = vrot.lane.b32.xlu1 %v6640_v59, %s10637_s0  ;;  %v6775_v29 = vrot.slane %v6767_v42, %v10726_v54  ;;  %v6782_v22 = vrot.slane %v6768_v9, %v10726_v54  ;;  %v1281_v52 = vpop.permute.xlu1 %1280  ;;  %v13779_v9 = vrot.slane %v6783_v50, %v10735_v0 }
 0x24b   :  { %8183 = vrot.lane.b32.xlu0 %v6536_v12, %s10637_s0  ;;  %v7231_v51 = vcombine.low %v7191_v24, %v7191_v24  ;;  %v1277_v59 = vpop.permute.xlu0 %1276  ;;  %v13773_v12 = vrot.slane %v7199_v30, %v10735_v0 }
 0x24c   :  { %v6815_v14 = vcombine.low %v6775_v29, %v6775_v29  ;;  %v6816_v57 = vcombine.high %v6775_v29, %v6775_v29  ;;  %v6831_v43 = vcombine.low %v6782_v22, %v6782_v22  ;;  %v6832_v42 = vcombine.high %v6782_v22, %v6782_v22  ;;  %19864 = vst [vmem:[#allocation440_spill] sm:$0xff] %v13779_v9 }
 0x24d   :  { %19863 = vst [vmem:[#allocation202_spill] sm:$0xff] %v13773_v12  ;;  %v13782_v2 = vrot.slane %v7231_v51, %v10735_v0  ;;  %v7232_v22 = vcombine.high %v7191_v24, %v7191_v24 }
 0x24e   :  { %v1292_v58 = vpop.permute.xlu1 %1291  ;;  %v13785_v30 = vrot.slane %v6815_v14, %v10735_v0  ;;  %v13791_v32 = vrot.slane %v6816_v57, %v10735_v0  ;;  %v13794_v29 = vrot.slane %v6831_v43, %v10735_v0  ;;  %v4544_v43 = vcombine.high %v19869_v7, %v19869_v7 }
 0x24f   :  { %8187 = vrot.lane.b32.xlu0 %v6744_v37, %s10637_s0  ;;  %19865 = vst [vmem:[#allocation441_spill] sm:$0xff] %v13782_v2  ;;  %v7687_v3 = vcombine.low %v1281_v52, %v1292_v58  ;;  %v1288_v50 = vpop.permute.xlu0 %1287  ;;  %v13797_v37 = vrot.slane %v6799_v61, %v10735_v0  ;;  %v7688_v14 = vcombine.high %v1281_v52, %v1292_v58  ;;  %v19871_v58 = vld [vmem:[#allocation248_spill] sm:$0xff] }
 0x250   :  { %19866 = vst [vmem:[#allocation442_spill] sm:$0xff] %v13785_v30  ;;  %19867 = vst [vmem:[#allocation443_spill] sm:$0xff] %v13794_v29  ;;  %v7271_v4 = vcombine.low %v1277_v59, %v1288_v50  ;;  %v6848_v27 = vcombine.high %v13779_v9, %v13785_v30  ;;  %v13812_v36 = vrot.slane %v6832_v42, %v10735_v0  ;;  %v19877_v9 = vld [vmem:[#allocation253_spill] sm:$0xff] }
 0x251   :  { %19868 = vst [vmem:[#allocation444_spill] sm:$0xff] %v13797_v37  ;;  %v5240_v52 = vcombine.high %v19871_v58, %v19871_v58  ;;  %v13817_v51 = vrot.slane %v7687_v3, %v10726_v54  ;;  %v7272_v28 = vcombine.high %v1277_v59, %v1288_v50  ;;  %v13824_v61 = vrot.slane %v6800_v48, %v10735_v0  ;;  %v19875_v3 = vld [vmem:[#allocation234_spill] sm:$0xff]  ;;  %v19876_v50 = vld [vmem:[#allocation236_spill] sm:$0xff] }
 0x252   :  { %19870 = vst [vmem:[#allocation204_spill] sm:$0xff] %v13812_v36  ;;  %8189 = vrot.lane.b32.xlu1 %v6848_v27, %s10637_s0  ;;  %v1303_v57 = vpop.permute.xlu1 %1302  ;;  %v7279_v24 = vrot.slane %v7271_v4, %v10726_v54  ;;  %v13827_v42 = vrot.slane %v7200_v31, %v10735_v0  ;;  %v13830_v58 = vrot.slane %v7232_v22, %v10735_v0 }
 0x253   :  { %v1299_v30 = vpop.permute.xlu0 %1298  ;;  %19872 = vst [vmem:[#allocation248_spill] sm:$0xff] %v13824_v61  ;;  %v5272_v7 = vcombine.high %v19877_v9, %v19877_v9  ;;  %v13839_v4 = vrot.slane %v7688_v14, %v10726_v54  ;;  %v13846_v22 = vrot.slane %v4512_v56, %v10735_v0  ;;  %v13849_v59 = vrot.slane %v4544_v43, %v10735_v0 }
 0x254   :  { %19873 = vst [vmem:[#allocation445_spill] sm:$0xff] %v13827_v42  ;;  %19874 = vst [vmem:[#allocation446_spill] sm:$0xff] %v13830_v58  ;;  %v7719_v27 = vcombine.low %v13817_v51, %v13817_v51  ;;  %v7720_v9 = vcombine.high %v13817_v51, %v13817_v51  ;;  %v7286_v14 = vrot.slane %v7272_v28, %v10726_v54 }
 0x255   :  { %19878 = vst [vmem:[#allocation234_spill] sm:$0xff] %v13839_v4  ;;  %19879 = vst [vmem:[#allocation236_spill] sm:$0xff] %v13846_v22  ;;  %v13857_v48 = vrot.slane %v5240_v52, %v10735_v0  ;;  %v7303_v17 = vcombine.low %v7279_v24, %v7279_v24  ;;  %v7735_v12 = vcombine.low %v13839_v4, %v13839_v4 }
 0x256   :  { %19880 = vst [vmem:[#allocation253_spill] sm:$0xff] %v13849_v59  ;;  %v1314_v63 = vpop.permute.xlu1 %1313  ;;  %v7304_v28 = vcombine.high %v7279_v24, %v7279_v24  ;;  %v13867_v52 = vrot.slane %v5272_v7, %v10735_v0  ;;  %v7319_v20 = vcombine.low %v7286_v14, %v7286_v14  ;;  %v13881_v7 = vrot.slane %v7719_v27, %v10735_v0 }
 0x257   :  { %19881 = vst [vmem:[#allocation447_spill] sm:$0xff] %v13857_v48  ;;  %v7703_v31 = vcombine.low %v1303_v57, %v1314_v63  ;;  %v1310_v18 = vpop.permute.xlu0 %1309  ;;  %v7704_v2 = vcombine.high %v1303_v57, %v1314_v63  ;;  %v5344_v37 = vcombine.high %v19906_v16, %v19906_v16 }
 0x258   :  { %v7287_v51 = vcombine.low %v1299_v30, %v1310_v18  ;;  %v7288_v13 = vcombine.high %v1299_v30, %v1310_v18  ;;  %19882 = vst [vmem:[#allocation448_spill] sm:$0xff] %v13867_v52  ;;  %v7320_v18 = vcombine.high %v7286_v14, %v7286_v14  ;;  %19887 = vst [vmem:[#allocation451_spill] sm:$0xff] %v13881_v7 }
 0x259   :  { %v7711_v23 = vrot.slane %v7703_v31, %v10726_v54  ;;  %v13878_v31 = vrot.slane %v7303_v17, %v10735_v0  ;;  %v13884_v19 = vrot.slane %v7704_v2, %v10726_v54  ;;  %v13897_v27 = vrot.slane %v7304_v28, %v10735_v0 }
 0x25a   :  { %v7295_v56 = vrot.slane %v7287_v51, %v10726_v54  ;;  %v7302_v43 = vrot.slane %v7288_v13, %v10726_v54  ;;  %v13873_v58 = vpop.permute.xlu1 %1324  ;;  %v13913_v14 = vrot.slane %v7720_v9, %v10735_v0  ;;  %v13940_v63 = vrot.slane %v7320_v18, %v10735_v0 }
 0x25b   :  { %19883 = vst [vmem:[#allocation449_spill] sm:$0xff] %v13873_v58  ;;  %v7751_v30 = vcombine.low %v7711_v23, %v7711_v23  ;;  %v1321_v24 = vpop.permute.xlu0 %1320  ;;  %19886 = vst [vmem:[#allocation450_spill] sm:$0xff] %v13878_v31  ;;  %v7752_v61 = vcombine.high %v7711_v23, %v7711_v23 }
 0x25c   :  { %19888 = vst [vmem:[#allocation452_spill] sm:$0xff] %v13884_v19  ;;  %v7335_v51 = vcombine.low %v7295_v56, %v7295_v56  ;;  %v7336_v36 = vcombine.high %v7295_v56, %v7295_v56  ;;  %v7351_v13 = vcombine.low %v7302_v43, %v7302_v43  ;;  %v7352_v49 = vcombine.high %v7302_v43, %v7302_v43 }
 0x25d   :  { %v13887_v39 = vrot.slane %v7751_v30, %v10735_v0  ;;  %v13908_v30 = vrot.slane %v7319_v20, %v10735_v0  ;;  %19894 = vst [vmem:[#allocation458_spill] sm:$0xff] %v13913_v14  ;;  %v13929_v9 = vrot.slane %v7752_v61, %v10735_v0  ;;  %19898 = vst [vmem:[#allocation462_spill] sm:$0xff] %v13940_v63  ;;  %v19907_v14 = vld [vmem:[#allocation269_spill] sm:$0xff] }
 0x25e   :  { %v13891_v57 = vpop.permute.xlu1 %1335  ;;  %v13894_v17 = vrot.slane %v7335_v51, %v10735_v0  ;;  %v13900_v2 = vrot.slane %v7336_v36, %v10735_v0  ;;  %v13903_v23 = vrot.slane %v7351_v13, %v10735_v0  ;;  %v7767_v36 = vcombine.low %v13884_v19, %v13884_v19  ;;  %v19996_v19 = vld [vmem:[#allocation157_spill] sm:$0xff] }
 0x25f   :  { %19889 = vst [vmem:[#allocation453_spill] sm:$0xff] %v13887_v39  ;;  %19890 = vst [vmem:[#allocation454_spill] sm:$0xff] %v13891_v57  ;;  %v7791_v56 = vcombine.low %v13873_v58, %v13891_v57  ;;  %v1332_v43 = vpop.permute.xlu0 %1331  ;;  %v13926_v51 = vrot.slane %v7352_v49, %v10735_v0  ;;  %v13944_v61 = vrot.slane %v7735_v12, %v10735_v0 }
 0x260   :  { %19891 = vst [vmem:[#allocation455_spill] sm:$0xff] %v13894_v17  ;;  %19892 = vst [vmem:[#allocation456_spill] sm:$0xff] %v13903_v23  ;;  %v7375_v28 = vcombine.low %v1321_v24, %v1332_v43  ;;  %v7368_v13 = vcombine.high %v13878_v31, %v13894_v17  ;;  %v7376_v7 = vcombine.high %v1321_v24, %v1332_v43 }
 0x261   :  { %19893 = vst [vmem:[#allocation457_spill] sm:$0xff] %v13908_v30  ;;  %19895 = vst [vmem:[#allocation459_spill] sm:$0xff] %v13926_v51  ;;  %v13937_v47 = vrot.slane %v7791_v56, %v10726_v54  ;;  %v19900_v24 = vcombine.high %v19875_v3, %v19875_v3  ;;  %v19902_v56 = vcombine.high %v19876_v50, %v19876_v50 }
 0x262   :  { %19896 = vst [vmem:[#allocation460_spill] sm:$0xff] %v13929_v9  ;;  %8191 = vrot.lane.b32.xlu0 %v7368_v13, %s10637_s0  ;;  %v13932_v39 = vpop.permute.xlu1 %1346  ;;  %v7383_v49 = vrot.slane %v7375_v28, %v10726_v54  ;;  %19899 = vst [vmem:[#allocation463_spill] sm:$0xff] %v13944_v61  ;;  %v13965_v42 = vrot.slane %v7767_v36, %v10735_v0  ;;  %v7390_v3 = vrot.slane %v7376_v7, %v10726_v54 }
 0x263   :  { %19897 = vst [vmem:[#allocation461_spill] sm:$0xff] %v13932_v39  ;;  %v1343_v20 = vpop.permute.xlu0 %1342  ;;  %v13950_v43 = vrot.slane %v19900_v24, %v10735_v0  ;;  %v13956_v13 = vrot.slane %v19902_v56, %v10735_v0  ;;  %v7823_v50 = vcombine.low %v13937_v47, %v13937_v47 }
 0x264   :  { %19904 = vst [vmem:[#allocation466_spill] sm:$0xff] %v13965_v42  ;;  %v7407_v17 = vcombine.low %v7383_v49, %v7383_v49  ;;  %v7408_v51 = vcombine.high %v7383_v49, %v7383_v49  ;;  %v7423_v29 = vcombine.low %v7390_v3, %v7390_v3  ;;  %v7824_v49 = vcombine.high %v13937_v47, %v13937_v47 }
 0x265   :  { %19901 = vst [vmem:[#allocation464_spill] sm:$0xff] %v13950_v43  ;;  %19903 = vst [vmem:[#allocation465_spill] sm:$0xff] %v13956_v13  ;;  %v13990_v7 = vrot.slane %v7823_v50, %v10735_v0  ;;  %v7424_v63 = vcombine.high %v7390_v3, %v7390_v3  ;;  %v20019_v43 = vld [vmem:[#allocation257_spill] sm:$0xff] }
 0x266   :  { %v13968_v24 = vpop.permute.xlu1 %1357 }
 0x267   :  { %19905 = vst [vmem:[#allocation467_spill] sm:$0xff] %v13968_v24  ;;  %v7807_v56 = vcombine.low %v13932_v39, %v13968_v24  ;;  %v1354_v18 = vpop.permute.xlu0 %1353  ;;  %19908 = vst [vmem:[#allocation265_spill] sm:$0xff] %v13990_v7 }
 0x268   :  { %v7391_v31 = vcombine.low %v1343_v20, %v1354_v18  ;;  %v7392_v12 = vcombine.high %v1343_v20, %v1354_v18  ;;  %v5376_v20 = vcombine.high %v19907_v14, %v19907_v14 }
 0x269   :  { %v7815_v36 = vrot.slane %v7807_v56, %v10726_v54 }
 0x26a   :  { %v7399_v33 = vrot.slane %v7391_v31, %v10726_v54  ;;  %v7406_v28 = vrot.slane %v7392_v12, %v10726_v54  ;;  %v1369_v9 = vpop.permute.xlu1 %1368  ;;  %v13993_v31 = vrot.slane %v7407_v17, %v10735_v0  ;;  %v13996_v12 = vrot.slane %v7408_v51, %v10735_v0 }
 0x26b   :  { %v7855_v18 = vcombine.low %v7815_v36, %v7815_v36  ;;  %v1365_v56 = vpop.permute.xlu0 %1364  ;;  %v7856_v17 = vcombine.high %v7815_v36, %v7815_v36 }
 0x26c   :  { %v7439_v61 = vcombine.low %v7399_v33, %v7399_v33  ;;  %v7440_v16 = vcombine.high %v7399_v33, %v7399_v33  ;;  %v7455_v42 = vcombine.low %v7406_v28, %v7406_v28  ;;  %v7456_v45 = vcombine.high %v7406_v28, %v7406_v28  ;;  %19909 = vst [vmem:[#allocation269_spill] sm:$0xff] %v13993_v31 }
 0x26d   :  { %v13999_v14 = vrot.slane %v7855_v18, %v10735_v0  ;;  %v14008_v33 = vrot.slane %v7423_v29, %v10735_v0 }
 0x26e   :  { %v1380_v47 = vpop.permute.xlu1 %1379  ;;  %v14002_v30 = vrot.slane %v7439_v61, %v10735_v0  ;;  %v14005_v50 = vrot.slane %v7440_v16, %v10735_v0  ;;  %v14011_v28 = vrot.slane %v7455_v42, %v10735_v0  ;;  %v14025_v36 = vrot.slane %v7456_v45, %v10735_v0 }
 0x26f   :  { %19910 = vst [vmem:[#allocation468_spill] sm:$0xff] %v13999_v14  ;;  %19912 = vst [vmem:[#allocation470_spill] sm:$0xff] %v14008_v33  ;;  %v7895_v3 = vcombine.low %v1369_v9, %v1380_v47  ;;  %v7896_v51 = vcombine.high %v1369_v9, %v1380_v47  ;;  %v1376_v23 = vpop.permute.xlu0 %1375  ;;  %v19915_v47 = vld [vmem:[#allocation281_spill] sm:$0xff]  ;;  %v14037_v9 = vrot.slane %v7424_v63, %v10735_v0 }
 0x270   :  { %19911 = vst [vmem:[#allocation469_spill] sm:$0xff] %v14002_v30  ;;  %19913 = vst [vmem:[#allocation471_spill] sm:$0xff] %v14011_v28  ;;  %v7479_v25 = vcombine.low %v1365_v56, %v1376_v23  ;;  %v7480_v35 = vcombine.high %v1365_v56, %v1376_v23  ;;  %v7472_v61 = vcombine.high %v13993_v31, %v14002_v30 }
 0x271   :  { %v7903_v29 = vrot.slane %v7895_v3, %v10726_v54  ;;  %19914 = vst [vmem:[#allocation472_spill] sm:$0xff] %v14025_v36  ;;  %v5448_v23 = vcombine.high %v19915_v47, %v19915_v47  ;;  %v14030_v56 = vrot.slane %v7896_v51, %v10726_v54  ;;  %19917 = vst [vmem:[#allocation473_spill] sm:$0xff] %v14037_v9  ;;  %v19920_v51 = vld [vmem:[#allocation285_spill] sm:$0xff] }
 0x272   :  { %v7487_v18 = vrot.slane %v7479_v25, %v10726_v54  ;;  %8193 = vrot.lane.b32.xlu1 %v7472_v61, %s10637_s0  ;;  %v1391_v3 = vpop.permute.xlu1 %1390  ;;  %v14040_v45 = vrot.slane %v7824_v49, %v10735_v0  ;;  %v14043_v47 = vrot.slane %v7856_v17, %v10735_v0  ;;  %v5480_v30 = vcombine.high %v19920_v51, %v19920_v51 }
 0x273   :  { %19916 = vst [vmem:[#allocation281_spill] sm:$0xff] %v14030_v56  ;;  %v1387_v16 = vpop.permute.xlu0 %1386  ;;  %v14048_v25 = vrot.slane %v7480_v35, %v10726_v54  ;;  %v14051_v61 = vrot.slane %v5344_v37, %v10735_v0  ;;  %v7927_v42 = vcombine.low %v7903_v29, %v7903_v29  ;;  %v14058_v31 = vrot.slane %v5376_v20, %v10735_v0 }
 0x274   :  { %19918 = vst [vmem:[#allocation474_spill] sm:$0xff] %v14040_v45  ;;  %19919 = vst [vmem:[#allocation475_spill] sm:$0xff] %v14043_v47  ;;  %v7928_v17 = vcombine.high %v7903_v29, %v7903_v29  ;;  %v7943_v51 = vcombine.low %v14030_v56, %v14030_v56  ;;  %v7511_v7 = vcombine.low %v7487_v18, %v7487_v18 }
 0x275   :  { %19921 = vst [vmem:[#allocation285_spill] sm:$0xff] %v14051_v61  ;;  %19922 = vst [vmem:[#allocation476_spill] sm:$0xff] %v14058_v31  ;;  %v14063_v14 = vrot.slane %v5448_v23, %v10735_v0  ;;  %v7512_v37 = vcombine.high %v7487_v18, %v7487_v18  ;;  %v7527_v20 = vcombine.low %v14048_v25, %v14048_v25 }
 0x276   :  { %v1402_v35 = vpop.permute.xlu1 %1401  ;;  %v7528_v9 = vcombine.high %v14048_v25, %v14048_v25  ;;  %v14075_v18 = vrot.slane %v7927_v42, %v10735_v0  ;;  %v14095_v58 = vrot.slane %v7511_v7, %v10735_v0 }
 0x277   :  { %19923 = vst [vmem:[#allocation477_spill] sm:$0xff] %v14063_v14  ;;  %v7911_v33 = vcombine.low %v1391_v3, %v1402_v35  ;;  %v7912_v28 = vcombine.high %v1391_v3, %v1402_v35  ;;  %v1398_v39 = vpop.permute.xlu0 %1397  ;;  %v14078_v3 = vrot.slane %v5480_v30, %v10735_v0  ;;  %v14092_v30 = vrot.slane %v7928_v17, %v10735_v0 }
 0x278   :  { %v7495_v49 = vcombine.low %v1387_v16, %v1398_v39  ;;  %v7496_v29 = vcombine.high %v1387_v16, %v1398_v39  ;;  %19924 = vst [vmem:[#allocation478_spill] sm:$0xff] %v14075_v18  ;;  %19931 = vst [vmem:[#allocation483_spill] sm:$0xff] %v14095_v58  ;;  %v14098_v39 = vrot.slane %v7512_v37, %v10735_v0  ;;  %v19945_v18 = vld [vmem:[#allocation317_spill] sm:$0xff] }
 0x279   :  { %v7919_v23 = vrot.slane %v7911_v33, %v10726_v54  ;;  %19925 = vst [vmem:[#allocation479_spill] sm:$0xff] %v14078_v3  ;;  %v14089_v33 = vrot.slane %v7912_v28, %v10726_v54  ;;  %19930 = vst [vmem:[#allocation482_spill] sm:$0xff] %v14092_v30  ;;  %v14114_v7 = vrot.slane %v7527_v20, %v10735_v0  ;;  %v19950_v3 = vld [vmem:[#allocation322_spill] sm:$0xff] }
 0x27a   :  { %v7503_v35 = vrot.slane %v7495_v49, %v10726_v54  ;;  %v7510_v63 = vrot.slane %v7496_v29, %v10726_v54  ;;  %v14082_v56 = vpop.permute.xlu1 %1412 }
 0x27b   :  { %19926 = vst [vmem:[#allocation480_spill] sm:$0xff] %v14082_v56  ;;  %19929 = vst [vmem:[#allocation481_spill] sm:$0xff] %v14089_v33  ;;  %v7959_v42 = vcombine.low %v7919_v23, %v7919_v23  ;;  %v7960_v47 = vcombine.high %v7919_v23, %v7919_v23  ;;  %v1409_v45 = vpop.permute.xlu0 %1408  ;;  %v7975_v37 = vcombine.low %v14089_v33, %v14089_v33 }
 0x27c   :  { %v7543_v49 = vcombine.low %v7503_v35, %v7503_v35  ;;  %v7544_v24 = vcombine.high %v7503_v35, %v7503_v35  ;;  %v7559_v29 = vcombine.low %v7510_v63, %v7510_v63  ;;  %v7560_v57 = vcombine.high %v7510_v63, %v7510_v63  ;;  %19935 = vst [vmem:[#allocation487_spill] sm:$0xff] %v14114_v7  ;;  %v19946_v7 = vld [vmem:[#allocation11_spill] sm:$0xff] }
 0x27d   :  { %v14101_v25 = vrot.slane %v7959_v42, %v10735_v0  ;;  %v14126_v16 = vrot.slane %v7960_v47, %v10735_v0 }
 0x27e   :  { %v14105_v23 = vpop.permute.xlu1 %1423  ;;  %v14108_v17 = vrot.slane %v7543_v49, %v10735_v0  ;;  %v14111_v35 = vrot.slane %v7544_v24, %v10735_v0  ;;  %v14117_v63 = vrot.slane %v7559_v29, %v10735_v0  ;;  %v14138_v49 = vrot.slane %v7560_v57, %v10735_v0 }
 0x27f   :  { %19932 = vst [vmem:[#allocation484_spill] sm:$0xff] %v14101_v25  ;;  %19933 = vst [vmem:[#allocation485_spill] sm:$0xff] %v14105_v23  ;;  %v7999_v42 = vcombine.low %v14082_v56, %v14105_v23  ;;  %v1420_v28 = vpop.permute.xlu0 %1419  ;;  %v14151_v23 = vrot.slane %v7943_v51, %v10735_v0  ;;  %v14154_v57 = vrot.slane %v7975_v37, %v10735_v0 }
 0x280   :  { %19934 = vst [vmem:[#allocation486_spill] sm:$0xff] %v14108_v17  ;;  %19936 = vst [vmem:[#allocation488_spill] sm:$0xff] %v14117_v63  ;;  %v7583_v24 = vcombine.low %v1409_v45, %v1420_v28  ;;  %v7584_v36 = vcombine.high %v1409_v45, %v1420_v28  ;;  %v7576_v20 = vcombine.high %v14095_v58, %v14108_v17 }
 0x281   :  { %19937 = vst [vmem:[#allocation489_spill] sm:$0xff] %v14126_v16  ;;  %v8007_v14 = vrot.slane %v7999_v42, %v10726_v54  ;;  %19938 = vst [vmem:[#allocation490_spill] sm:$0xff] %v14138_v49  ;;  %v14147_v42 = vrot.slane %v7528_v9, %v10735_v0  ;;  %v19943_v9 = vld [vmem:[#allocation301_spill] sm:$0xff]  ;;  %v6072_v37 = vcombine.high %v19945_v18, %v19945_v18 }
 0x282   :  { %v7591_v47 = vrot.slane %v7583_v24, %v10726_v54  ;;  %8195 = vrot.lane.b32.xlu0 %v7576_v20, %s10637_s0  ;;  %v14142_v45 = vpop.permute.xlu1 %1434  ;;  %v7598_v56 = vrot.slane %v7584_v36, %v10726_v54  ;;  %19941 = vst [vmem:[#allocation493_spill] sm:$0xff] %v14151_v23  ;;  %19942 = vst [vmem:[#allocation494_spill] sm:$0xff] %v14154_v57  ;;  %v5552_v58 = vcombine.high %v19943_v9, %v19943_v9  ;;  %v19944_v36 = vld [vmem:[#allocation305_spill] sm:$0xff] }
 0x283   :  { %19939 = vst [vmem:[#allocation491_spill] sm:$0xff] %v14142_v45  ;;  %v1431_v29 = vpop.permute.xlu0 %1430  ;;  %19940 = vst [vmem:[#allocation492_spill] sm:$0xff] %v14147_v42  ;;  %v8031_v24 = vcombine.low %v8007_v14, %v8007_v14  ;;  %v5584_v51 = vcombine.high %v19944_v36, %v19944_v36  ;;  %v19947_v20 = vld [vmem:[#allocation13_spill] sm:$0xff]  ;;  %v8032_v49 = vcombine.high %v8007_v14, %v8007_v14  ;;  %v19952_v36 = vld [vmem:[#allocation39_spill] sm:$0xff] }
 0x284   :  { %v7615_v25 = vcombine.low %v7591_v47, %v7591_v47  ;;  %v19948_v63 = vcombine.low %v19946_v7, %v19947_v20  ;;  %v7616_v28 = vcombine.high %v7591_v47, %v7591_v47  ;;  %v6104_v18 = vcombine.high %v19950_v3, %v19950_v3  ;;  %v19953_v16 = vld [vmem:[#allocation41_spill] sm:$0xff] }
 0x285   :  { %v7631_v33 = vcombine.low %v7598_v56, %v7598_v56  ;;  %v7632_v48 = vcombine.high %v7598_v56, %v7598_v56  ;;  %v14182_v52 = vrot.slane %v8031_v24, %v10735_v0  ;;  %v19954_v3 = vcombine.low %v19952_v36, %v19953_v16 }
 0x286   :  { %8263 = vrot.lane.b32.xlu0 %v19948_v63, %s10638_s13  ;;  %v14172_v17 = vpop.permute.xlu1 %1445 }
 0x287   :  { %19949 = vst [vmem:[#allocation301_spill] sm:$0xff] %v14172_v17  ;;  %v8015_v9 = vcombine.low %v14142_v45, %v14172_v17  ;;  %v1442_v42 = vpop.permute.xlu0 %1441  ;;  %19951 = vst [vmem:[#allocation305_spill] sm:$0xff] %v14182_v52  ;;  %v14198_v17 = vrot.slane %v7616_v28, %v10735_v0  ;;  %v19963_v28 = vld [vmem:[#allocation67_spill] sm:$0xff] }
 0x288   :  { %v7599_v61 = vcombine.low %v1431_v29, %v1442_v42  ;;  %v7600_v31 = vcombine.high %v1431_v29, %v1442_v42  ;;  %v14193_v29 = vrot.slane %v7615_v25, %v10735_v0  ;;  %v14207_v25 = vrot.slane %v7632_v48, %v10735_v0  ;;  %v19972_v42 = vld [vmem:[#allocation98_spill] sm:$0xff] }
 0x289   :  { %v8023_v63 = vrot.slane %v8015_v9, %v10726_v54 }
 0x28a   :  { %v7607_v47 = vrot.slane %v7599_v61, %v10726_v54  ;;  %v7614_v45 = vrot.slane %v7600_v31, %v10726_v54  ;;  %8267 = vrot.lane.b32.xlu0 %v19954_v3, %s10638_s13  ;;  %19955 = vst [vmem:[#allocation317_spill] sm:$0xff] %v14193_v29  ;;  %v14201_v61 = vrot.slane %v8032_v49, %v10735_v0  ;;  %19960 = vst [vmem:[#allocation322_spill] sm:$0xff] %v14207_v25  ;;  %v19964_v49 = vld [vmem:[#allocation69_spill] sm:$0xff]  ;;  %v19995_v25 = vld [vmem:[#allocation339_spill] sm:$0xff]  ;;  %v14374_v62 = vpop.permute.xlu1 %8137 }
 0x28b   :  { %v8063_v24 = vcombine.low %v8023_v63, %v8023_v63  ;;  %v8064_v30 = vcombine.high %v8023_v63, %v8023_v63  ;;  %v14204_v3 = vrot.slane %v7631_v33, %v10735_v0  ;;  %v19965_v56 = vcombine.low %v19963_v28, %v19964_v49  ;;  %v20025_v54 = vld [vmem:[#allocation359_spill] sm:$0xff] }
 0x28c   :  { %19958 = vst [vmem:[#allocation11_spill] sm:$0xff] %v14201_v61  ;;  %v7647_v31 = vcombine.low %v7607_v47, %v7607_v47  ;;  %v7648_v14 = vcombine.high %v7607_v47, %v7607_v47  ;;  %v7663_v23 = vcombine.low %v7614_v45, %v7614_v45  ;;  %v7664_v57 = vcombine.high %v7614_v45, %v7614_v45  ;;  %v20000_v61 = vld [vmem:[#allocation55_spill] sm:$0xff] }
 0x28d   :  { %19959 = vst [vmem:[#allocation13_spill] sm:$0xff] %v14204_v3  ;;  %v14210_v9 = vrot.slane %v8063_v24, %v10735_v0  ;;  %v14213_v63 = vrot.slane %v8064_v30, %v10735_v0  ;;  %v14263_v30 = vrot.slane %v6072_v37, %v10735_v0  ;;  %v14266_v24 = vrot.slane %v6104_v18, %v10735_v0  ;;  %v19990_v3 = vld [vmem:[#allocation27_spill] sm:$0xff]  ;;  %v19997_v18 = vld [vmem:[#allocation160_spill] sm:$0xff] }
 0x28e   :  { %8271 = vrot.lane.b32.xlu0 %v19965_v56, %s10638_s13  ;;  %v14220_v47 = vrot.slane %v7647_v31, %v10735_v0  ;;  %v14223_v33 = vrot.slane %v7648_v14, %v10735_v0  ;;  %v14226_v48 = vrot.slane %v7663_v23, %v10735_v0  ;;  %v14229_v45 = vrot.slane %v7664_v57, %v10735_v0  ;;  %v20005_v23 = vld [vmem:[#allocation188_spill] sm:$0xff] }
 0x28f   :  { %19961 = vst [vmem:[#allocation39_spill] sm:$0xff] %v14210_v9  ;;  %19962 = vst [vmem:[#allocation41_spill] sm:$0xff] %v14213_v63  ;;  %v14236_v56 = vrot.slane %v5552_v58, %v10735_v0  ;;  %v14239_v31 = vrot.slane %v5584_v51, %v10735_v0  ;;  %v19971_v51 = vld [vmem:[#allocation96_spill] sm:$0xff]  ;;  %v19986_v58 = vld [vmem:[#allocation126_spill] sm:$0xff]  ;;  %v6208_v37 = vcombine.high %v19995_v25, %v19995_v25  ;;  %v14312_v25 = vpop.permute.xlu0 %8135 }
 0x290   :  { %19966 = vst [vmem:[#allocation67_spill] sm:$0xff] %v14220_v47  ;;  %19967 = vst [vmem:[#allocation69_spill] sm:$0xff] %v14226_v48  ;;  %v7680_v14 = vcombine.high %v14193_v29, %v14220_v47  ;;  %v19973_v52 = vcombine.low %v19971_v51, %v19972_v42  ;;  %v19994_v63 = vld [vmem:[#allocation335_spill] sm:$0xff]  ;;  %v19998_v48 = vcombine.low %v19996_v19, %v19997_v18  ;;  %v20008_v29 = vld [vmem:[#allocation81_spill] sm:$0xff] }
 0x291   :  { %19968 = vst [vmem:[#allocation495_spill] sm:$0xff] %v14229_v45  ;;  %19969 = vst [vmem:[#allocation496_spill] sm:$0xff] %v14236_v56  ;;  %v19987_v56 = vld [vmem:[#allocation129_spill] sm:$0xff]  ;;  %v6176_v45 = vcombine.high %v19994_v63, %v19994_v63  ;;  %v14310_v63 = vrot.slane %v6208_v37, %v10735_v0  ;;  %v6312_v40 = vcombine.high %v20025_v54, %v20025_v54 }
 0x292   :  { %19970 = vst [vmem:[#allocation497_spill] sm:$0xff] %v14239_v31  ;;  %8275 = vrot.lane.b32.xlu0 %v19973_v52, %s10638_s13  ;;  %8197 = vrot.lane.b32.xlu1 %v7680_v14, %s10637_s0  ;;  %19974 = vst [vmem:[#allocation96_spill] sm:$0xff] %v14263_v30  ;;  %v19988_v31 = vcombine.low %v19986_v58, %v19987_v56  ;;  %v19989_v52 = vld [vmem:[#allocation25_spill] sm:$0xff]  ;;  %v20006_v14 = vld [vmem:[#allocation190_spill] sm:$0xff] }
 0x293   :  { %19975 = vst [vmem:[#allocation98_spill] sm:$0xff] %v14266_v24  ;;  %v19991_v9 = vcombine.low %v19989_v52, %v19990_v3  ;;  %v14307_v47 = vrot.slane %v6176_v45, %v10735_v0  ;;  %20003 = vst [vmem:[#allocation129_spill] sm:$0xff] %v14310_v63  ;;  %v20009_v30 = vld [vmem:[#allocation83_spill] sm:$0xff]  ;;  %v14332_v4 = vpop.permute.xlu0 %8139  ;;  %v14362_v54 = vrot.slane %v6312_v40, %v10735_v0  ;;  %v20045_v40 = vld [vmem:[#allocation362_spill] sm:$0xff] }
 0x294   :  { %20004 = vst [vmem:[#allocation25_spill] sm:$0xff] %v14312_v25  ;;  %v20011_v45 = vld [vmem:[#allocation219_spill] sm:$0xff]  ;;  %v20015_v25 = vld [vmem:[#allocation113_spill] sm:$0xff]  ;;  %20017 = vst [vmem:[#allocation27_spill] sm:$0xff] %v14332_v4 }
 0x295   :  { %20002 = vst [vmem:[#allocation126_spill] sm:$0xff] %v14307_v47  ;;  %v20013_v37 = vcombine.low %v20011_v45, %v20012_v5  ;;  %v20016_v24 = vcombine.low %v20014_v21, %v20015_v25  ;;  %v20024_v63 = vld [vmem:[#allocation351_spill] sm:$0xff]  ;;  %v20028_v4 = vld [vmem:[#allocation290_spill] sm:$0xff]  ;;  %20036 = vst [vmem:[#allocation157_spill] sm:$0xff] %v14362_v54 }
 0x296   :  { %8279 = vrot.lane.b32.xlu0 %v19988_v31, %s10638_s13  ;;  %8265 = vrot.lane.b32.xlu1 %v19991_v9, %s10638_s13  ;;  %v19999_v31 = vld [vmem:[#allocation53_spill] sm:$0xff]  ;;  %20043 = vst [vmem:[#allocation160_spill] sm:$0xff] %v14374_v62 }
 0x297   :  { %v20001_v57 = vcombine.low %v19999_v31, %v20000_v61  ;;  %v20022_v9 = vld [vmem:[#allocation145_spill] sm:$0xff]  ;;  %v14346_v38 = vpop.permute.xlu0 %8143 }
 0x298   :  { %20026 = vst [vmem:[#allocation335_spill] sm:$0xff] %v14346_v38  ;;  %v20037_v38 = vld [vmem:[#allocation325_spill] sm:$0xff] }
 0x299   :  { %v20057_v54 = vld [vmem:[#allocation273_spill] sm:$0xff] }
 0x29a   :  { %8283 = vrot.lane.b32.xlu0 %v19998_v48, %s10638_s13  ;;  %8269 = vrot.lane.b32.xlu1 %v20001_v57, %s10638_s13  ;;  %v20007_v48 = vcombine.low %v20005_v23, %v20006_v14  ;;  %v20010_v57 = vcombine.low %v20008_v29, %v20009_v30 }
 0x29e   :  { %8287 = vrot.lane.b32.xlu0 %v20007_v48, %s10638_s13  ;;  %8273 = vrot.lane.b32.xlu1 %v20010_v57, %s10638_s13  ;;  %v20018_v48 = vld [vmem:[#allocation256_spill] sm:$0xff]  ;;  %v20021_v57 = vld [vmem:[#allocation147_spill] sm:$0xff] }
 0x29f   :  { %v20020_v13 = vcombine.low %v20018_v48, %v20019_v43  ;;  %v20023_v47 = vcombine.low %v20021_v57, %v20022_v9  ;;  %v20039_v9 = vcombine.low %v20037_v38, %v20038_v53  ;;  %v20048_v53 = vld [vmem:[#allocation240_spill] sm:$0xff] }
 0x2a2   :  { %8291 = vrot.lane.b32.xlu0 %v20013_v37, %s10638_s13  ;;  %8277 = vrot.lane.b32.xlu1 %v20016_v24, %s10638_s13  ;;  %v6280_v37 = vcombine.high %v20024_v63, %v20024_v63  ;;  %v20027_v24 = vld [vmem:[#allocation289_spill] sm:$0xff] }
 0x2a3   :  { %v20029_v34 = vcombine.low %v20027_v24, %v20028_v4  ;;  %v20041_v4 = vld [vmem:[#allocation206_spill] sm:$0xff] }
 0x2a4   :  { %v14359_v63 = vrot.slane %v6280_v37, %v10735_v0  ;;  %v14376_v37 = vpop.permute.xlu0 %8147 }
 0x2a5   :  { %20044 = vst [vmem:[#allocation53_spill] sm:$0xff] %v14376_v37  ;;  %v20056_v37 = vld [vmem:[#allocation275_spill] sm:$0xff] }
 0x2a6   :  { %8295 = vrot.lane.b32.xlu0 %v20020_v13, %s10638_s13  ;;  %8281 = vrot.lane.b32.xlu1 %v20023_v47, %s10638_s13  ;;  %v20030_v13 = vld [vmem:[#allocation177_spill] sm:$0xff]  ;;  %20035 = vst [vmem:[#allocation339_spill] sm:$0xff] %v14359_v63  ;;  %v20047_v47 = vcombine.low %v20045_v40, %v20046_v26 }
 0x2a7   :  { %v20032_v55 = vcombine.low %v20030_v13, %v20031_v1  ;;  %v14386_v1 = vpop.permute.xlu1 %8141  ;;  %v20054_v63 = vld [vmem:[#allocation397_spill] sm:$0xff] }
 0x2a8   :  { %20051 = vst [vmem:[#allocation55_spill] sm:$0xff] %v14386_v1  ;;  %v20060_v40 = vld [vmem:[#allocation373_spill] sm:$0xff]  ;;  %v20062_v1 = vld [vmem:[#allocation311_spill] sm:$0xff] }
 0x2aa   :  { %8299 = vrot.lane.b32.xlu0 %v20029_v34, %s10638_s13  ;;  %8285 = vrot.lane.b32.xlu1 %v20032_v55, %s10638_s13  ;;  %v20040_v34 = vld [vmem:[#allocation208_spill] sm:$0xff] }
 0x2ab   :  { %v20042_v24 = vcombine.low %v20040_v34, %v20041_v4  ;;  %v20053_v55 = vld [vmem:[#allocation396_spill] sm:$0xff]  ;;  %v20058_v4 = vcombine.low %v20056_v37, %v20057_v54  ;;  %v20080_v54 = vcombine.low %v13517_v60, %v13511_v15 }
 0x2ac   :  { %v20055_v62 = vcombine.low %v20053_v55, %v20054_v63  ;;  %v20063_v63 = vld [vmem:[#allocation309_spill] sm:$0xff] }
 0x2ae   :  { %8303 = vrot.lane.b32.xlu0 %v20039_v9, %s10638_s13  ;;  %8289 = vrot.lane.b32.xlu1 %v20042_v24, %s10638_s13  ;;  %v20049_v9 = vld [vmem:[#allocation238_spill] sm:$0xff]  ;;  %v14388_v24 = vpop.permute.xlu0 %8151 }
 0x2af   :  { %v20050_v38 = vcombine.low %v20048_v53, %v20049_v9  ;;  %20052 = vst [vmem:[#allocation188_spill] sm:$0xff] %v14388_v24  ;;  %v20061_v24 = vcombine.low %v13676_v10, %v13679_v6 }
 0x2b2   :  { %8307 = vrot.lane.b32.xlu0 %v20047_v47, %s10638_s13  ;;  %8293 = vrot.lane.b32.xlu1 %v20050_v38, %s10638_s13  ;;  %v20059_v47 = vld [vmem:[#allocation173_spill] sm:$0xff]  ;;  %v6416_v38 = vcombine.high %v20060_v40, %v20060_v40  ;;  %v14414_v37 = vpop.permute.xlu0 %8155 }
 0x2b3   :  { %v6384_v26 = vcombine.high %v20059_v47, %v20059_v47  ;;  %20066 = vst [vmem:[#allocation81_spill] sm:$0xff] %v14414_v37 }
 0x2b4   :  { %v14420_v40 = vrot.slane %v6416_v38, %v10735_v0  ;;  %v20075_v38 = vcombine.low %v14098_v39, %v14111_v35 }
 0x2b5   :  { %v14417_v47 = vrot.slane %v6384_v26, %v10735_v0 }
 0x2b6   :  { %8311 = vrot.lane.b32.xlu0 %v20055_v62, %s10638_s13  ;;  %8297 = vrot.lane.b32.xlu1 %v20058_v4, %s10638_s13  ;;  %v20064_v62 = vcombine.low %v20062_v1, %v20063_v63  ;;  %v14412_v4 = vpop.permute.xlu1 %8145  ;;  %20068 = vst [vmem:[#allocation219_spill] sm:$0xff] %v14420_v40  ;;  %v20071_v63 = vld [vmem:[#allocation343_spill] sm:$0xff]  ;;  %v14434_v26 = vpop.permute.xlu0 %8159 }
 0x2b7   :  { %20065 = vst [vmem:[#allocation190_spill] sm:$0xff] %v14412_v4  ;;  %20067 = vst [vmem:[#allocation83_spill] sm:$0xff] %v14417_v47 }
 0x2b8   :  { %20074 = vst [vmem:[#allocation115_spill] sm:$0xff] %v14434_v26  ;;  %v20081_v26 = vld [vmem:[#allocation385_spill] sm:$0xff] }
 0x2ba   :  { %8315 = vrot.lane.b32.xlu0 %v20061_v24, %s10638_s13  ;;  %8301 = vrot.lane.b32.xlu1 %v20064_v62, %s10638_s13  ;;  %v20069_v24 = vcombine.low %v13897_v27, %v13900_v2  ;;  %v20070_v62 = vld [vmem:[#allocation345_spill] sm:$0xff]  ;;  %v14432_v41 = vpop.permute.xlu1 %8149 }
 0x2bb   :  { %v20072_v1 = vcombine.low %v20070_v62, %v20071_v63  ;;  %20073 = vst [vmem:[#allocation222_spill] sm:$0xff] %v14432_v41  ;;  %v6904_v41 = vcombine.high %v20081_v26, %v20081_v26  ;;  %v20158_v26 = vld [vmem:[#allocation311_spill] sm:$0xff] }
 0x2bd   :  { %v14471_v40 = vrot.slane %v6904_v41, %v10735_v0 }
 0x2be   :  { %8319 = vrot.lane.b32.xlu0 %v20069_v24, %s10638_s13  ;;  %8305 = vrot.lane.b32.xlu1 %v20072_v1, %s10638_s13  ;;  %v20077_v24 = vld [vmem:[#allocation377_spill] sm:$0xff]  ;;  %v20079_v1 = vcombine.high %v19946_v7, %v19947_v20  ;;  %v14456_v47 = vpop.permute.xlu1 %8153  ;;  %v20085_v7 = vcombine.high %v19952_v36, %v19953_v16  ;;  %v20086_v20 = vcombine.low %v13788_v11, %v13791_v32 }
 0x2bf   :  { %v20078_v37 = vcombine.low %v20076_v44, %v20077_v24  ;;  %20083 = vst [vmem:[#allocation113_spill] sm:$0xff] %v14456_v47  ;;  %20089 = vst [vmem:[#allocation257_spill] sm:$0xff] %v14471_v40  ;;  %v20093_v16 = vcombine.high %v19963_v28, %v19964_v49  ;;  %v20094_v36 = vcombine.low %v13996_v12, %v14005_v50 }
 0x2c2   :  { %8323 = vrot.lane.b32.xlu0 %v20075_v38, %s10638_s13  ;;  %8309 = vrot.lane.b32.xlu1 %v20078_v37, %s10638_s13  ;;  %v20082_v38 = vld [vmem:[#allocation393_spill] sm:$0xff]  ;;  %v14458_v37 = vpop.permute.xlu0 %8163 }
 0x2c3   :  { %v6936_v4 = vcombine.high %v20082_v38, %v20082_v38  ;;  %20084 = vst [vmem:[#allocation256_spill] sm:$0xff] %v14458_v37  ;;  %v14476_v37 = vpop.permute.xlu1 %8157 }
 0x2c4   :  { %20091 = vst [vmem:[#allocation351_spill] sm:$0xff] %v14476_v37  ;;  %v20254_v37 = vld [vmem:[#allocation329_spill] sm:$0xff] }
 0x2c5   :  { %v14474_v38 = vrot.slane %v6936_v4, %v10735_v0  ;;  %v20095_v4 = vcombine.high %v19971_v51, %v19972_v42  ;;  %v7008_v42 = vcombine.high %v13459_v46, %v13459_v46  ;;  %v7040_v51 = vcombine.high %v13495_v8, %v13495_v8 }
 0x2c6   :  { %8391 = vrot.lane.b32.xlu0 %v20079_v1, %s10639_s14  ;;  %8313 = vrot.lane.b32.xlu1 %v20080_v54, %s10638_s13  ;;  %v14478_v47 = vpop.permute.xlu0 %8167  ;;  %v20201_v54 = vld [vmem:[#allocation101_spill] sm:$0xff]  ;;  %v20209_v1 = vld [vmem:[#allocation130_spill] sm:$0xff] }
 0x2c7   :  { %20090 = vst [vmem:[#allocation147_spill] sm:$0xff] %v14474_v38  ;;  %20092 = vst [vmem:[#allocation359_spill] sm:$0xff] %v14478_v47  ;;  %v14498_v28 = vpop.permute.xlu1 %8161  ;;  %v14532_v8 = vrot.slane %v7040_v51, %v10735_v0  ;;  %v20121_v51 = vld [vmem:[#allocation290_spill] sm:$0xff]  ;;  %v20289_v38 = vld [vmem:[#allocation456_spill] sm:$0xff] }
 0x2c8   :  { %20097 = vst [vmem:[#allocation177_spill] sm:$0xff] %v14498_v28  ;;  %v20253_v28 = vld [vmem:[#allocation327_spill] sm:$0xff] }
 0x2c9   :  { %20106 = vst [vmem:[#allocation173_spill] sm:$0xff] %v14532_v8  ;;  %v20288_v8 = vld [vmem:[#allocation346_spill] sm:$0xff] }
 0x2ca   :  { %8395 = vrot.lane.b32.xlu0 %v20085_v7, %s10639_s14  ;;  %8317 = vrot.lane.b32.xlu1 %v20086_v20, %s10638_s13  ;;  %v20096_v7 = vcombine.low %v14198_v17, %v14223_v33  ;;  %v14500_v49 = vpop.permute.xlu0 %8171  ;;  %v20099_v20 = vcombine.high %v19986_v58, %v19987_v56  ;;  %v20103_v56 = vcombine.high %v19996_v19, %v19997_v18 }
 0x2cb   :  { %20098 = vst [vmem:[#allocation208_spill] sm:$0xff] %v14500_v49  ;;  %v14529_v58 = vrot.slane %v7008_v42, %v10735_v0  ;;  %v20108_v19 = vcombine.high %v20008_v29, %v20009_v30  ;;  %v20115_v30 = vcombine.high %v20018_v48, %v20019_v43  ;;  %v20119_v42 = vld [vmem:[#allocation424_spill] sm:$0xff]  ;;  %v20123_v43 = vld [vmem:[#allocation175_spill] sm:$0xff] }
 0x2cc   :  { %v20124_v48 = vcombine.high %v20030_v13, %v20123_v43  ;;  %v20245_v49 = vld [vmem:[#allocation291_spill] sm:$0xff] }
 0x2cd   :  { %20105 = vst [vmem:[#allocation396_spill] sm:$0xff] %v14529_v58  ;;  %v20287_v58 = vld [vmem:[#allocation344_spill] sm:$0xff] }
 0x2ce   :  { %8399 = vrot.lane.b32.xlu0 %v20093_v16, %s10639_s14  ;;  %8321 = vrot.lane.b32.xlu1 %v20094_v36, %s10638_s13  ;;  %v20100_v16 = vcombine.high %v19989_v52, %v19990_v3  ;;  %v14514_v36 = vpop.permute.xlu1 %8165  ;;  %v20104_v3 = vcombine.high %v19999_v31, %v20000_v61  ;;  %v20107_v52 = vcombine.high %v20005_v23, %v20006_v14  ;;  %v20159_v61 = vld [vmem:[#allocation309_spill] sm:$0xff] }
 0x2cf   :  { %20101 = vst [vmem:[#allocation240_spill] sm:$0xff] %v14514_v36  ;;  %v20112_v23 = vcombine.high %v20014_v21, %v20015_v25  ;;  %v7144_v21 = vcombine.high %v20119_v42, %v20119_v42  ;;  %v20120_v25 = vld [vmem:[#allocation289_spill] sm:$0xff]  ;;  %v20133_v42 = vld [vmem:[#allocation439_spill] sm:$0xff]  ;;  %v5811_v40 = vcombine.low %v20288_v8, %v20287_v58 }
 0x2d0   :  { %v20252_v36 = vld [vmem:[#allocation209_spill] sm:$0xff] }
 0x2d2   :  { %8403 = vrot.lane.b32.xlu0 %v20095_v4, %s10639_s14  ;;  %8325 = vrot.lane.b32.xlu1 %v20096_v7, %s10638_s13  ;;  %v14516_v4 = vpop.permute.xlu0 %8175  ;;  %v14544_v18 = vpop.permute.xlu1 %8169  ;;  %v20111_v7 = vcombine.high %v20011_v45, %v20012_v5  ;;  %v20118_v5 = vld [vmem:[#allocation416_spill] sm:$0xff] }
 0x2d3   :  { %20102 = vst [vmem:[#allocation238_spill] sm:$0xff] %v14516_v4  ;;  %20109 = vst [vmem:[#allocation373_spill] sm:$0xff] %v14544_v18  ;;  %v7112_v45 = vcombine.high %v20118_v5, %v20118_v5  ;;  %v20244_v4 = vld [vmem:[#allocation178_spill] sm:$0xff] }
 0x2d6   :  { %8407 = vrot.lane.b32.xlu0 %v20099_v20, %s10639_s14  ;;  %8393 = vrot.lane.b32.xlu1 %v20100_v16, %s10639_s14  ;;  %v14546_v31 = vpop.permute.xlu0 %8179  ;;  %v14556_v14 = vpop.permute.xlu1 %8173  ;;  %v20116_v20 = vld [vmem:[#allocation145_spill] sm:$0xff] }
 0x2d7   :  { %20110 = vst [vmem:[#allocation345_spill] sm:$0xff] %v14546_v31  ;;  %20113 = vst [vmem:[#allocation343_spill] sm:$0xff] %v14556_v14  ;;  %v20117_v16 = vcombine.high %v20021_v57, %v20116_v20  ;;  %v20131_v20 = vld [vmem:[#allocation427_spill] sm:$0xff]  ;;  %v20141_v57 = vld [vmem:[#allocation8_spill] sm:$0xff] }
 0x2d8   :  { %v20246_v14 = vld [vmem:[#allocation294_spill] sm:$0xff] }
 0x2d9   :  { %v5083_v47 = vcombine.low %v20246_v14, %v20245_v49 }
 0x2da   :  { %8411 = vrot.lane.b32.xlu0 %v20103_v56, %s10639_s14  ;;  %8397 = vrot.lane.b32.xlu1 %v20104_v3, %s10639_s14  ;;  %v14558_v29 = vpop.permute.xlu0 %8183  ;;  %v20122_v56 = vcombine.high %v20120_v25, %v20121_v51  ;;  %v20134_v25 = vld [vmem:[#allocation435_spill] sm:$0xff]  ;;  %v20135_v51 = vld [vmem:[#allocation325_spill] sm:$0xff] }
 0x2db   :  { %20114 = vst [vmem:[#allocation379_spill] sm:$0xff] %v14558_v29  ;;  %v7184_v13 = vcombine.high %v20134_v25, %v20133_v42  ;;  %v20145_v25 = vld [vmem:[#allocation362_spill] sm:$0xff]  ;;  %v20196_v3 = vld [vmem:[#allocation461_spill] sm:$0xff]  ;;  %v20238_v29 = vld [vmem:[#allocation260_spill] sm:$0xff] }
 0x2de   :  { %8415 = vrot.lane.b32.xlu0 %v20107_v52, %s10639_s14  ;;  %8401 = vrot.lane.b32.xlu1 %v20108_v19, %s10639_s14  ;;  %v14582_v19 = vpop.permute.xlu1 %8177 }
 0x2df   :  { %20127 = vst [vmem:[#allocation377_spill] sm:$0xff] %v14582_v19 }
 0x2e2   :  { %8419 = vrot.lane.b32.xlu0 %v20111_v7, %s10639_s14  ;;  %8405 = vrot.lane.b32.xlu1 %v20112_v23, %s10639_s14  ;;  %v14584_v7 = vpop.permute.xlu0 %8187  ;;  %v14587_v23 = vrot.slane %v7112_v45, %v10735_v0  ;;  %v14614_v42 = vpop.permute.xlu1 %8181  ;;  %v20160_v45 = vcombine.high %v20158_v26, %v20159_v61 }
 0x2e3   :  { %20128 = vst [vmem:[#allocation385_spill] sm:$0xff] %v14584_v7  ;;  %20144 = vst [vmem:[#allocation290_spill] sm:$0xff] %v14614_v42 }
 0x2e4   :  { %20129 = vst [vmem:[#allocation393_spill] sm:$0xff] %v14587_v23 }
 0x2e6   :  { %8423 = vrot.lane.b32.xlu0 %v20115_v30, %s10639_s14  ;;  %8409 = vrot.lane.b32.xlu1 %v20117_v16, %s10639_s14  ;;  %v14590_v30 = vrot.slane %v7144_v21, %v10735_v0  ;;  %v20132_v16 = vld [vmem:[#allocation423_spill] sm:$0xff]  ;;  %v14606_v21 = vpop.permute.xlu0 %8191 }
 0x2e7   :  { %v7168_v5 = vcombine.high %v20132_v16, %v20131_v20  ;;  %20140 = vst [vmem:[#allocation416_spill] sm:$0xff] %v14606_v21  ;;  %v14612_v16 = vrot.slane %v7184_v13, %v20141_v57 }
 0x2e8   :  { %20130 = vst [vmem:[#allocation145_spill] sm:$0xff] %v14590_v30 }
 0x2e9   :  { %v14609_v20 = vrot.slane %v7168_v5, %v20141_v57  ;;  %20143 = vst [vmem:[#allocation289_spill] sm:$0xff] %v14612_v16  ;;  %v7247_v13 = vcombine.low %v14612_v16, %v14612_v16  ;;  %v20279_v16 = vld [vmem:[#allocation429_spill] sm:$0xff] }
 0x2ea   :  { %8427 = vrot.lane.b32.xlu0 %v20122_v56, %s10639_s14  ;;  %8413 = vrot.lane.b32.xlu1 %v20124_v48, %s10639_s14  ;;  %v20136_v56 = vld [vmem:[#allocation326_spill] sm:$0xff] }
 0x2eb   :  { %v20137_v43 = vcombine.high %v20135_v51, %v20136_v56  ;;  %v20138_v48 = vld [vmem:[#allocation206_spill] sm:$0xff]  ;;  %20142 = vst [vmem:[#allocation424_spill] sm:$0xff] %v14609_v20  ;;  %v20146_v51 = vld [vmem:[#allocation363_spill] sm:$0xff]  ;;  %v7215_v5 = vcombine.low %v14609_v20, %v14609_v20  ;;  %v20280_v20 = vld [vmem:[#allocation432_spill] sm:$0xff] }
 0x2ec   :  { %v20139_v46 = vcombine.high %v20040_v34, %v20138_v48  ;;  %v20147_v56 = vcombine.high %v20145_v25, %v20146_v51  ;;  %v20148_v34 = vcombine.high %v20048_v53, %v20049_v9  ;;  %v20152_v25 = vld [vmem:[#allocation275_spill] sm:$0xff]  ;;  %v20153_v51 = vld [vmem:[#allocation273_spill] sm:$0xff]  ;;  %v14638_v53 = vpop.permute.xlu1 %8185  ;;  %v6747_v23 = vcombine.low %v20280_v20, %v20279_v16 }
 0x2ed   :  { %20155 = vst [vmem:[#allocation427_spill] sm:$0xff] %v14638_v53  ;;  %v20239_v53 = vld [vmem:[#allocation281_spill] sm:$0xff] }
 0x2ee   :  { %8431 = vrot.lane.b32.xlu0 %v20137_v43, %s10639_s14  ;;  %8417 = vrot.lane.b32.xlu1 %v20139_v46, %s10639_s14  ;;  %v20150_v43 = vld [vmem:[#allocation397_spill] sm:$0xff]  ;;  %v7944_v31 = vcombine.high %v20239_v53, %v20239_v53 }
 0x2ef   :  { %v20151_v48 = vcombine.high %v20053_v55, %v20150_v43  ;;  %v14651_v55 = vrot.slane %v7215_v5, %v10735_v0  ;;  %v14654_v43 = vrot.slane %v7247_v13, %v10735_v0  ;;  %v20171_v5 = vcombine.high %v14098_v39, %v14111_v35  ;;  %v20176_v13 = vld [vmem:[#allocation16_spill] sm:$0xff]  ;;  %v20178_v39 = vld [vmem:[#allocation234_spill] sm:$0xff]  ;;  %v20259_v53 = vld [vmem:[#allocation301_spill] sm:$0xff] }
 0x2f0   :  { %v7736_v35 = vcombine.high %v20178_v39, %v20178_v39 }
 0x2f1   :  { %20161 = vst [vmem:[#allocation439_spill] sm:$0xff] %v14651_v55  ;;  %20162 = vst [vmem:[#allocation435_spill] sm:$0xff] %v14654_v43  ;;  %v20258_v55 = vld [vmem:[#allocation480_spill] sm:$0xff] }
 0x2f2   :  { %8435 = vrot.lane.b32.xlu0 %v20147_v56, %s10639_s14  ;;  %8421 = vrot.lane.b32.xlu1 %v20148_v34, %s10639_s14  ;;  %v20154_v56 = vcombine.high %v20152_v25, %v20153_v51  ;;  %v20157_v34 = vcombine.high %v13676_v10, %v13679_v6  ;;  %v20167_v10 = vcombine.high %v13897_v27, %v13900_v2  ;;  %v20183_v51 = vld [vmem:[#allocation44_spill] sm:$0xff] }
 0x2f3   :  { %v20168_v6 = vcombine.high %v20070_v62, %v20071_v63  ;;  %v20172_v27 = vcombine.high %v20076_v44, %v20077_v24  ;;  %v20175_v62 = vld [vmem:[#allocation14_spill] sm:$0xff]  ;;  %v14719_v59 = vrot.slane %v7736_v35, %v10735_v0 }
 0x2f4   :  { %v14624_v46 = vpop.permute.xlu0 %8195 }
 0x2f5   :  { %20149 = vst [vmem:[#allocation175_spill] sm:$0xff] %v14624_v46  ;;  %20191 = vst [vmem:[#allocation309_spill] sm:$0xff] %v14719_v59  ;;  %v20265_v59 = vld [vmem:[#allocation364_spill] sm:$0xff] }
 0x2f6   :  { %8439 = vrot.lane.b32.xlu0 %v20151_v48, %s10639_s14  ;;  %8425 = vrot.lane.b32.xlu1 %v20154_v56, %s10639_s14  ;;  %v14658_v56 = vpop.permute.xlu1 %8189  ;;  %v20190_v48 = vld [vmem:[#allocation72_spill] sm:$0xff] }
 0x2f7   :  { %20165 = vst [vmem:[#allocation325_spill] sm:$0xff] %v14658_v56  ;;  %v20235_v56 = vld [vmem:[#allocation146_spill] sm:$0xff] }
 0x2f8   :  { %v14640_v9 = vpop.permute.xlu0 %8263 }
 0x2f9   :  { %20156 = vst [vmem:[#allocation423_spill] sm:$0xff] %v14640_v9  ;;  %v20225_v9 = vld [vmem:[#allocation191_spill] sm:$0xff] }
 0x2fa   :  { %8443 = vrot.lane.b32.xlu0 %v20157_v34, %s10639_s14  ;;  %8429 = vrot.lane.b32.xlu1 %v20160_v45, %s10639_s14  ;;  %v14672_v61 = vpop.permute.xlu1 %8193  ;;  %v1547_v34 = vcombine.low %v20176_v13, %v20175_v62 }
 0x2fb   :  { %20169 = vst [vmem:[#allocation206_spill] sm:$0xff] %v14672_v61  ;;  %v20189_v61 = vld [vmem:[#allocation70_spill] sm:$0xff] }
 0x2fc   :  { %v14660_v41 = vpop.permute.xlu0 %8267  ;;  %v2379_v25 = vcombine.low %v20190_v48, %v20189_v61 }
 0x2fd   :  { %20166 = vst [vmem:[#allocation326_spill] sm:$0xff] %v14660_v41 }
 0x2fe   :  { %8447 = vrot.lane.b32.xlu0 %v20167_v10, %s10639_s14  ;;  %8433 = vrot.lane.b32.xlu1 %v20168_v6, %s10639_s14  ;;  %v20177_v10 = vcombine.high %v13517_v60, %v13511_v15  ;;  %v20179_v6 = vld [vmem:[#allocation452_spill] sm:$0xff]  ;;  %v20184_v15 = vcombine.high %v13788_v11, %v13791_v32  ;;  %v20193_v11 = vld [vmem:[#allocation454_spill] sm:$0xff]  ;;  %v20194_v32 = vld [vmem:[#allocation449_spill] sm:$0xff] }
 0x2ff   :  { %v7768_v44 = vcombine.high %v20179_v6, %v20179_v6 }
 0x300   :  { %v14674_v45 = vpop.permute.xlu0 %8271 }
 0x301   :  { %20170 = vst [vmem:[#allocation8_spill] sm:$0xff] %v14674_v45  ;;  %v14722_v22 = vrot.slane %v7768_v44, %v10735_v0  ;;  %v20224_v45 = vld [vmem:[#allocation86_spill] sm:$0xff] }
 0x302   :  { %8451 = vrot.lane.b32.xlu0 %v20171_v5, %s10639_s14  ;;  %8437 = vrot.lane.b32.xlu1 %v20172_v27, %s10639_s14  ;;  %v20182_v27 = vld [vmem:[#allocation42_spill] sm:$0xff] }
 0x303   :  { %v1755_v26 = vcombine.low %v20183_v51, %v20182_v27  ;;  %20192 = vst [vmem:[#allocation14_spill] sm:$0xff] %v14722_v22  ;;  %v20266_v22 = vld [vmem:[#allocation366_spill] sm:$0xff] }
 0x304   :  { %v14684_v2 = vpop.permute.xlu1 %8197  ;;  %v14686_v63 = vpop.permute.xlu0 %8275 }
 0x305   :  { %20173 = vst [vmem:[#allocation362_spill] sm:$0xff] %v14684_v2  ;;  %20174 = vst [vmem:[#allocation363_spill] sm:$0xff] %v14686_v63  ;;  %v20223_v2 = vld [vmem:[#allocation84_spill] sm:$0xff] }
 0x306   :  { %8441 = vrot.lane.b32.xlu1 %v20177_v10, %s10639_s14  ;;  %8519 = vrot.lane.b32.xlu0 %v1547_v34, %s10634_s10  ;;  %v20197_v10 = vcombine.high %v13996_v12, %v14005_v50  ;;  %v20200_v34 = vld [vmem:[#allocation99_spill] sm:$0xff]  ;;  %v20204_v12 = vcombine.high %v14198_v17, %v14223_v33  ;;  %v2483_v41 = vcombine.low %v20224_v45, %v20223_v2 }
 0x308   :  { %v14699_v24 = vpop.permute.xlu1 %8265  ;;  %v14701_v5 = vpop.permute.xlu0 %8279 }
 0x309   :  { %20180 = vst [vmem:[#allocation397_spill] sm:$0xff] %v14699_v24  ;;  %20181 = vst [vmem:[#allocation275_spill] sm:$0xff] %v14701_v5  ;;  %v20229_v24 = vld [vmem:[#allocation114_spill] sm:$0xff] }
 0x30a   :  { %8445 = vrot.lane.b32.xlu1 %v20184_v15, %s10639_s14  ;;  %8523 = vrot.lane.b32.xlu0 %v1755_v26, %s10634_s10  ;;  %v7792_v15 = vcombine.high %v20194_v32, %v20193_v11  ;;  %v20195_v26 = vld [vmem:[#allocation467_spill] sm:$0xff]  ;;  %v2587_v11 = vcombine.low %v20201_v54, %v20200_v34 }
 0x30b   :  { %v7808_v52 = vcombine.high %v20196_v3, %v20195_v26  ;;  %v20208_v26 = vld [vmem:[#allocation30_spill] sm:$0xff] }
 0x30c   :  { %v14712_v39 = vpop.permute.xlu1 %8269  ;;  %v14714_v6 = vpop.permute.xlu0 %8283  ;;  %v14742_v32 = vrot.slane %v7792_v15, %v20141_v57  ;;  %v20210_v15 = vld [vmem:[#allocation132_spill] sm:$0xff] }
 0x30d   :  { %20187 = vst [vmem:[#allocation273_spill] sm:$0xff] %v14712_v39  ;;  %20188 = vst [vmem:[#allocation311_spill] sm:$0xff] %v14714_v6  ;;  %v14745_v3 = vrot.slane %v7808_v52, %v20141_v57  ;;  %v20216_v6 = vld [vmem:[#allocation163_spill] sm:$0xff] }
 0x30e   :  { %8449 = vrot.lane.b32.xlu1 %v20197_v10, %s10639_s14  ;;  %8527 = vrot.lane.b32.xlu0 %v2379_v25, %s10634_s10  ;;  %20202 = vst [vmem:[#allocation452_spill] sm:$0xff] %v14742_v32  ;;  %v20207_v10 = vld [vmem:[#allocation28_spill] sm:$0xff]  ;;  %v7839_v52 = vcombine.low %v14742_v32, %v14742_v32 }
 0x30f   :  { %20203 = vst [vmem:[#allocation42_spill] sm:$0xff] %v14745_v3  ;;  %v1651_v35 = vcombine.low %v20208_v26, %v20207_v10 }
 0x310   :  { %v14735_v60 = vpop.permute.xlu1 %8273  ;;  %v14737_v44 = vpop.permute.xlu0 %8287  ;;  %v14777_v5 = vrot.slane %v7839_v52, %v10735_v0 }
 0x311   :  { %20198 = vst [vmem:[#allocation16_spill] sm:$0xff] %v14735_v60  ;;  %20199 = vst [vmem:[#allocation234_spill] sm:$0xff] %v14737_v44  ;;  %v3211_v44 = vcombine.low %v20210_v15, %v20209_v1  ;;  %v7871_v60 = vcombine.low %v14745_v3, %v14745_v3  ;;  %v20263_v3 = vld [vmem:[#allocation239_spill] sm:$0xff] }
 0x312   :  { %8453 = vrot.lane.b32.xlu1 %v20204_v12, %s10639_s14  ;;  %8531 = vrot.lane.b32.xlu0 %v2587_v11, %s10634_s10  ;;  %v20213_v11 = vld [vmem:[#allocation56_spill] sm:$0xff]  ;;  %v20214_v12 = vld [vmem:[#allocation58_spill] sm:$0xff]  ;;  %20217 = vst [vmem:[#allocation449_spill] sm:$0xff] %v14777_v5  ;;  %v5707_v5 = vcombine.low %v20254_v37, %v20253_v28 }
 0x314   :  { %v14752_v50 = vpop.permute.xlu1 %8277  ;;  %v14754_v25 = vpop.permute.xlu0 %8291 }
 0x315   :  { %20205 = vst [vmem:[#allocation44_spill] sm:$0xff] %v14752_v50  ;;  %20206 = vst [vmem:[#allocation70_spill] sm:$0xff] %v14754_v25  ;;  %v1859_v25 = vcombine.low %v20214_v12, %v20213_v11  ;;  %v20215_v50 = vld [vmem:[#allocation161_spill] sm:$0xff] }
 0x316   :  { %8521 = vrot.lane.b32.xlu1 %v1651_v35, %s10634_s10  ;;  %8535 = vrot.lane.b32.xlu0 %v3211_v44, %s10634_s10  ;;  %v3419_v39 = vcombine.low %v20216_v6, %v20215_v50  ;;  %v14780_v35 = vrot.slane %v7871_v60, %v10735_v0  ;;  %v20230_v44 = vld [vmem:[#allocation116_spill] sm:$0xff] }
 0x317   :  { %v20236_v60 = vld [vmem:[#allocation148_spill] sm:$0xff] }
 0x318   :  { %v14766_v17 = vpop.permute.xlu1 %8281  ;;  %v14768_v33 = vpop.permute.xlu0 %8295  ;;  %20218 = vst [vmem:[#allocation467_spill] sm:$0xff] %v14780_v35  ;;  %v3315_v7 = vcombine.low %v20236_v60, %v20235_v56  ;;  %v14841_v35 = vrot.slane %v7944_v31, %v10735_v0 }
 0x319   :  { %20211 = vst [vmem:[#allocation72_spill] sm:$0xff] %v14766_v17  ;;  %20212 = vst [vmem:[#allocation454_spill] sm:$0xff] %v14768_v33  ;;  %v2691_v17 = vcombine.low %v20230_v44, %v20229_v24 }
 0x31a   :  { %8525 = vrot.lane.b32.xlu1 %v1859_v25, %s10634_s10  ;;  %8539 = vrot.lane.b32.xlu0 %v3419_v39, %s10634_s10  ;;  %v20226_v25 = vld [vmem:[#allocation193_spill] sm:$0xff]  ;;  %20255 = vst [vmem:[#allocation163_spill] sm:$0xff] %v14841_v35  ;;  %v20274_v35 = vld [vmem:[#allocation400_spill] sm:$0xff] }
 0x31b   :  { %v4043_v46 = vcombine.low %v20226_v25, %v20225_v9 }
 0x31c   :  { %v14784_v33 = vpop.permute.xlu1 %8285  ;;  %v14786_v63 = vpop.permute.xlu0 %8299 }
 0x31d   :  { %20221 = vst [vmem:[#allocation461_spill] sm:$0xff] %v14784_v33  ;;  %20222 = vst [vmem:[#allocation99_spill] sm:$0xff] %v14786_v63  ;;  %v20231_v63 = vld [vmem:[#allocation223_spill] sm:$0xff]  ;;  %v20232_v33 = vld [vmem:[#allocation225_spill] sm:$0xff] }
 0x31e   :  { %8529 = vrot.lane.b32.xlu1 %v2483_v41, %s10634_s10  ;;  %8543 = vrot.lane.b32.xlu0 %v4043_v46, %s10634_s10  ;;  %v4251_v21 = vcombine.low %v20232_v33, %v20231_v63 }
 0x320   :  { %v14796_v39 = vpop.permute.xlu1 %8289  ;;  %v14798_v52 = vpop.permute.xlu0 %8303 }
 0x321   :  { %20227 = vst [vmem:[#allocation101_spill] sm:$0xff] %v14796_v39  ;;  %20228 = vst [vmem:[#allocation28_spill] sm:$0xff] %v14798_v52  ;;  %v20237_v39 = vld [vmem:[#allocation258_spill] sm:$0xff] }
 0x322   :  { %8533 = vrot.lane.b32.xlu1 %v2691_v17, %s10634_s10  ;;  %8547 = vrot.lane.b32.xlu0 %v4251_v21, %s10634_s10  ;;  %v4875_v52 = vcombine.low %v20238_v29, %v20237_v39  ;;  %v20240_v17 = vld [vmem:[#allocation481_spill] sm:$0xff] }
 0x323   :  { %v7976_v21 = vcombine.high %v20240_v17, %v20240_v17 }
 0x324   :  { %v14806_v41 = vpop.permute.xlu1 %8293  ;;  %v14808_v46 = vpop.permute.xlu0 %8307 }
 0x325   :  { %20233 = vst [vmem:[#allocation30_spill] sm:$0xff] %v14806_v41  ;;  %20234 = vst [vmem:[#allocation130_spill] sm:$0xff] %v14808_v46  ;;  %v20243_v46 = vld [vmem:[#allocation176_spill] sm:$0xff] }
 0x326   :  { %8537 = vrot.lane.b32.xlu1 %v3315_v7, %s10634_s10  ;;  %8551 = vrot.lane.b32.xlu0 %v4875_v52, %s10634_s10  ;;  %v3523_v19 = vcombine.low %v20244_v4, %v20243_v46  ;;  %v20260_v7 = vld [vmem:[#allocation491_spill] sm:$0xff] }
 0x327   :  { %v8016_v52 = vcombine.high %v20260_v7, %v20259_v53  ;;  %v20271_v53 = vld [vmem:[#allocation274_spill] sm:$0xff] }
 0x328   :  { %v14820_v42 = vpop.permute.xlu1 %8297  ;;  %v14822_v41 = vpop.permute.xlu0 %8311 }
 0x329   :  { %20241 = vst [vmem:[#allocation132_spill] sm:$0xff] %v14820_v42  ;;  %20242 = vst [vmem:[#allocation56_spill] sm:$0xff] %v14822_v41  ;;  %v20251_v42 = vld [vmem:[#allocation207_spill] sm:$0xff] }
 0x32a   :  { %8541 = vrot.lane.b32.xlu1 %v3523_v19, %s10634_s10  ;;  %8555 = vrot.lane.b32.xlu0 %v5083_v47, %s10634_s10  ;;  %v4147_v41 = vcombine.low %v20252_v36, %v20251_v42  ;;  %v14844_v19 = vrot.slane %v7976_v21, %v10735_v0  ;;  %v20257_v47 = vld [vmem:[#allocation485_spill] sm:$0xff] }
 0x32b   :  { %v8000_v43 = vcombine.high %v20258_v55, %v20257_v47  ;;  %v20264_v21 = vld [vmem:[#allocation241_spill] sm:$0xff]  ;;  %v5915_v55 = vcombine.low %v20266_v22, %v20265_v59 }
 0x32c   :  { %v14832_v18 = vpop.permute.xlu1 %8301  ;;  %v14834_v17 = vpop.permute.xlu0 %8315  ;;  %20256 = vst [vmem:[#allocation84_spill] sm:$0xff] %v14844_v19  ;;  %v4355_v32 = vcombine.low %v20264_v21, %v20263_v3 }
 0x32d   :  { %20249 = vst [vmem:[#allocation58_spill] sm:$0xff] %v14832_v18  ;;  %20250 = vst [vmem:[#allocation161_spill] sm:$0xff] %v14834_v17  ;;  %v14863_v47 = vrot.slane %v8000_v43, %v20141_v57  ;;  %v20272_v17 = vld [vmem:[#allocation276_spill] sm:$0xff] }
 0x32e   :  { %8545 = vrot.lane.b32.xlu1 %v4147_v41, %s10634_s10  ;;  %8559 = vrot.lane.b32.xlu0 %v5707_v5, %s10634_s10  ;;  %v14866_v41 = vrot.slane %v8016_v52, %v20141_v57 }
 0x32f   :  { %20267 = vst [vmem:[#allocation193_spill] sm:$0xff] %v14863_v47  ;;  %v8047_v43 = vcombine.low %v14863_v47, %v14863_v47  ;;  %v20293_v47 = vld [vmem:[#allocation378_spill] sm:$0xff] }
 0x330   :  { %v14854_v18 = vpop.permute.xlu1 %8305  ;;  %v14856_v31 = vpop.permute.xlu0 %8319  ;;  %20268 = vst [vmem:[#allocation114_spill] sm:$0xff] %v14866_v41  ;;  %v8079_v57 = vcombine.low %v14866_v41, %v14866_v41 }
 0x331   :  { %20261 = vst [vmem:[#allocation86_spill] sm:$0xff] %v14854_v18  ;;  %20262 = vst [vmem:[#allocation191_spill] sm:$0xff] %v14856_v31  ;;  %v4979_v31 = vcombine.low %v20272_v17, %v20271_v53  ;;  %v20273_v18 = vld [vmem:[#allocation398_spill] sm:$0xff]  ;;  %v14895_v41 = vrot.slane %v8047_v43, %v10735_v0 }
 0x332   :  { %8549 = vrot.lane.b32.xlu1 %v4355_v32, %s10634_s10  ;;  %8563 = vrot.lane.b32.xlu0 %v5915_v55, %s10634_s10  ;;  %v6539_v19 = vcombine.low %v20274_v35, %v20273_v18  ;;  %v20277_v55 = vld [vmem:[#allocation310_spill] sm:$0xff] }
 0x333   :  { %20281 = vst [vmem:[#allocation148_spill] sm:$0xff] %v14895_v41 }
 0x334   :  { %v14870_v5 = vpop.permute.xlu1 %8309  ;;  %v14872_v7 = vpop.permute.xlu0 %8323 }
 0x335   :  { %20269 = vst [vmem:[#allocation116_spill] sm:$0xff] %v14870_v5  ;;  %20270 = vst [vmem:[#allocation223_spill] sm:$0xff] %v14872_v7  ;;  %v20278_v7 = vld [vmem:[#allocation312_spill] sm:$0xff] }
 0x336   :  { %8553 = vrot.lane.b32.xlu1 %v4979_v31, %s10634_s10  ;;  %8567 = vrot.lane.b32.xlu0 %v6539_v19, %s10634_s10  ;;  %v5187_v5 = vcombine.low %v20278_v7, %v20277_v55  ;;  %v14898_v31 = vrot.slane %v8079_v57, %v10735_v0 }
 0x338   :  { %v14884_v32 = vpop.permute.xlu1 %8313  ;;  %v14886_v52 = vpop.permute.xlu0 %8391  ;;  %20282 = vst [vmem:[#allocation258_spill] sm:$0xff] %v14898_v31  ;;  %v20305_v31 = vld [vmem:[#allocation444_spill] sm:$0xff] }
 0x339   :  { %20275 = vst [vmem:[#allocation225_spill] sm:$0xff] %v14884_v32  ;;  %20276 = vst [vmem:[#allocation146_spill] sm:$0xff] %v14886_v52  ;;  %v20295_v32 = vld [vmem:[#allocation488_spill] sm:$0xff] }
 0x33a   :  { %8557 = vrot.lane.b32.xlu1 %v5187_v5, %s10634_s10  ;;  %8571 = vrot.lane.b32.xlu0 %v6747_v23, %s10634_s10  ;;  %v20290_v5 = vld [vmem:[#allocation457_spill] sm:$0xff]  ;;  %v20300_v23 = vld [vmem:[#allocation410_spill] sm:$0xff] }
 0x33b   :  { %v7371_v16 = vcombine.low %v20290_v5, %v20289_v38  ;;  %v20299_v38 = vld [vmem:[#allocation409_spill] sm:$0xff] }
 0x33c   :  { %v14902_v52 = vpop.permute.xlu1 %8317  ;;  %v14904_v30 = vpop.permute.xlu0 %8395  ;;  %v6643_v41 = vcombine.low %v20300_v23, %v20299_v38 }
 0x33d   :  { %20285 = vst [vmem:[#allocation260_spill] sm:$0xff] %v14902_v52  ;;  %20286 = vst [vmem:[#allocation281_spill] sm:$0xff] %v14904_v30  ;;  %v20294_v52 = vld [vmem:[#allocation380_spill] sm:$0xff]  ;;  %v20296_v30 = vld [vmem:[#allocation487_spill] sm:$0xff] }
 0x33e   :  { %8561 = vrot.lane.b32.xlu1 %v5811_v40, %s10634_s10  ;;  %8575 = vrot.lane.b32.xlu0 %v7371_v16, %s10634_s10  ;;  %v6019_v19 = vcombine.low %v20294_v52, %v20293_v47  ;;  %v7579_v0 = vcombine.low %v20296_v30, %v20295_v32 }
 0x340   :  { %v14914_v43 = vpop.permute.xlu1 %8321  ;;  %v14916_v57 = vpop.permute.xlu0 %8399 }
 0x341   :  { %20291 = vst [vmem:[#allocation481_spill] sm:$0xff] %v14914_v43  ;;  %20292 = vst [vmem:[#allocation176_spill] sm:$0xff] %v14916_v57  ;;  %v20301_v43 = vcombine.high %v20176_v13, %v20175_v62  ;;  %v20311_v13 = vld [vmem:[#allocation471_spill] sm:$0xff] }
 0x342   :  { %8565 = vrot.lane.b32.xlu1 %v6019_v19, %s10634_s10  ;;  %8579 = vrot.lane.b32.xlu0 %v7579_v0, %s10634_s10  ;;  %v20304_v0 = vld [vmem:[#allocation443_spill] sm:$0xff] }
 0x344   :  { %v14924_v40 = vpop.permute.xlu1 %8325  ;;  %v14926_v16 = vpop.permute.xlu0 %8403 }
 0x345   :  { %20297 = vst [vmem:[#allocation178_spill] sm:$0xff] %v14924_v40  ;;  %20298 = vst [vmem:[#allocation291_spill] sm:$0xff] %v14926_v16  ;;  %v6851_v40 = vcombine.low %v20305_v31, %v20304_v0  ;;  %v20306_v16 = vcombine.high %v20183_v51, %v20182_v27  ;;  %v20316_v27 = vld [vmem:[#allocation69_spill] sm:$0xff] }
 0x346   :  { %8569 = vrot.lane.b32.xlu1 %v6643_v41, %s10634_s10  ;;  %8647 = vrot.lane.b32.xlu0 %v20301_v43, %s10640_s15  ;;  %v20312_v43 = vld [vmem:[#allocation470_spill] sm:$0xff]  ;;  %v20318_v41 = vcombine.high %v20201_v54, %v20200_v34  ;;  %v20325_v54 = vcombine.high %v20214_v12, %v20213_v11  ;;  %v20326_v34 = vcombine.high %v20216_v6, %v20215_v50 }
 0x347   :  { %v20332_v11 = vcombine.high %v20226_v25, %v20225_v9  ;;  %v20335_v50 = vcombine.high %v20230_v44, %v20229_v24  ;;  %v20339_v9 = vcombine.high %v20236_v60, %v20235_v56  ;;  %v20340_v25 = vcombine.high %v20238_v29, %v20237_v39  ;;  %v20427_v60 = vld [vmem:[#allocation195_spill] sm:$0xff] }
 0x348   :  { %v14935_v57 = vpop.permute.xlu1 %8393  ;;  %v14937_v19 = vpop.permute.xlu0 %8407  ;;  %v20349_v39 = vcombine.high %v20252_v36, %v20251_v42 }
 0x349   :  { %20302 = vst [vmem:[#allocation294_spill] sm:$0xff] %v14935_v57  ;;  %20303 = vst [vmem:[#allocation207_spill] sm:$0xff] %v14937_v19  ;;  %v7475_v19 = vcombine.low %v20312_v43, %v20311_v13 }
 0x34a   :  { %8573 = vrot.lane.b32.xlu1 %v6851_v40, %s10634_s10  ;;  %8651 = vrot.lane.b32.xlu0 %v20306_v16, %s10640_s15  ;;  %v20313_v40 = vcombine.high %v20190_v48, %v20189_v61  ;;  %v20317_v16 = vld [vmem:[#allocation13_spill] sm:$0xff]  ;;  %v20321_v48 = vcombine.high %v20208_v26, %v20207_v10  ;;  %v20322_v61 = vcombine.high %v20210_v15, %v20209_v1  ;;  %v20432_v10 = vld [vmem:[#allocation118_spill] sm:$0xff] }
 0x34b   :  { %v7683_v23 = vcombine.low %v20317_v16, %v20316_v27  ;;  %v20331_v15 = vcombine.high %v20224_v45, %v20223_v2 }
 0x34c   :  { %v14948_v32 = vpop.permute.xlu1 %8397  ;;  %v14950_v62 = vpop.permute.xlu0 %8411 }
 0x34d   :  { %20309 = vst [vmem:[#allocation209_spill] sm:$0xff] %v14948_v32  ;;  %20310 = vst [vmem:[#allocation327_spill] sm:$0xff] %v14950_v62 }
 0x34e   :  { %8577 = vrot.lane.b32.xlu1 %v7475_v19, %s10634_s10  ;;  %8655 = vrot.lane.b32.xlu0 %v20313_v40, %s10640_s15 }
 0x350   :  { %v14959_v57 = vpop.permute.xlu1 %8401  ;;  %v14961_v51 = vpop.permute.xlu0 %8415 }
 0x351   :  { %20314 = vst [vmem:[#allocation329_spill] sm:$0xff] %v14959_v57  ;;  %20315 = vst [vmem:[#allocation485_spill] sm:$0xff] %v14961_v51  ;;  %v20499_v51 = vld [vmem:[#allocation459_spill] sm:$0xff] }
 0x352   :  { %8581 = vrot.lane.b32.xlu1 %v7683_v23, %s10634_s10  ;;  %8659 = vrot.lane.b32.xlu0 %v20318_v41, %s10640_s15  ;;  %v20409_v41 = vld [vmem:[#allocation134_spill] sm:$0xff] }
 0x354   :  { %v14970_v19 = vpop.permute.xlu1 %8405  ;;  %v14972_v38 = vpop.permute.xlu0 %8419 }
 0x355   :  { %20319 = vst [vmem:[#allocation480_spill] sm:$0xff] %v14970_v19  ;;  %20320 = vst [vmem:[#allocation301_spill] sm:$0xff] %v14972_v38  ;;  %v20496_v38 = vld [vmem:[#allocation347_spill] sm:$0xff] }
 0x356   :  { %8649 = vrot.lane.b32.xlu1 %v20321_v48, %s10640_s15  ;;  %8663 = vrot.lane.b32.xlu0 %v20322_v61, %s10640_s15  ;;  %v20336_v61 = vcombine.high %v20232_v33, %v20231_v63  ;;  %v20343_v63 = vcombine.high %v20244_v4, %v20243_v46  ;;  %v20344_v33 = vcombine.high %v20246_v14, %v20245_v49 }
 0x357   :  { %v20350_v4 = vcombine.high %v20254_v37, %v20253_v28  ;;  %v20353_v14 = vcombine.high %v20264_v21, %v20263_v3  ;;  %v20357_v37 = vcombine.high %v20272_v17, %v20271_v53  ;;  %v20358_v28 = vcombine.high %v20274_v35, %v20273_v18 }
 0x358   :  { %v14982_v23 = vpop.permute.xlu1 %8409  ;;  %v14984_v40 = vpop.permute.xlu0 %8423  ;;  %v20368_v35 = vcombine.high %v20288_v8, %v20287_v58 }
 0x359   :  { %20323 = vst [vmem:[#allocation491_spill] sm:$0xff] %v14982_v23  ;;  %20324 = vst [vmem:[#allocation239_spill] sm:$0xff] %v14984_v40 }
 0x35a   :  { %8653 = vrot.lane.b32.xlu1 %v20325_v54, %s10640_s15  ;;  %8667 = vrot.lane.b32.xlu0 %v20326_v34, %s10640_s15 }
 0x35c   :  { %v14996_v48 = vpop.permute.xlu1 %8413  ;;  %v14998_v1 = vpop.permute.xlu0 %8427 }
 0x35d   :  { %20329 = vst [vmem:[#allocation241_spill] sm:$0xff] %v14996_v48  ;;  %20330 = vst [vmem:[#allocation364_spill] sm:$0xff] %v14998_v1  ;;  %v20489_v48 = vld [vmem:[#allocation436_spill] sm:$0xff] }
 0x35e   :  { %8657 = vrot.lane.b32.xlu1 %v20331_v15, %s10640_s15  ;;  %8671 = vrot.lane.b32.xlu0 %v20332_v11, %s10640_s15  ;;  %v20354_v15 = vcombine.high %v20266_v22, %v20265_v59  ;;  %v20361_v59 = vcombine.high %v20278_v7, %v20277_v55  ;;  %v20362_v22 = vld [vmem:[#allocation429_spill] sm:$0xff]  ;;  %v20369_v7 = vld [vmem:[#allocation456_spill] sm:$0xff] }
 0x35f   :  { %v20363_v11 = vcombine.high %v20280_v20, %v20362_v22  ;;  %v20370_v55 = vcombine.high %v20290_v5, %v20369_v7  ;;  %v20378_v5 = vld [vmem:[#allocation410_spill] sm:$0xff]  ;;  %v20410_v7 = vld [vmem:[#allocation133_spill] sm:$0xff] }
 0x360   :  { %v15008_v12 = vpop.permute.xlu1 %8417  ;;  %v15010_v6 = vpop.permute.xlu0 %8431  ;;  %v20411_v54 = vcombine.low %v20409_v41, %v20410_v7 }
 0x361   :  { %20333 = vst [vmem:[#allocation366_spill] sm:$0xff] %v15008_v12  ;;  %20334 = vst [vmem:[#allocation274_spill] sm:$0xff] %v15010_v6 }
 0x362   :  { %8661 = vrot.lane.b32.xlu1 %v20335_v50, %s10640_s15  ;;  %8675 = vrot.lane.b32.xlu0 %v20336_v61, %s10640_s15 }
 0x364   :  { %v15020_v45 = vpop.permute.xlu1 %8421  ;;  %v15022_v2 = vpop.permute.xlu0 %8435 }
 0x365   :  { %20337 = vst [vmem:[#allocation276_spill] sm:$0xff] %v15020_v45  ;;  %20338 = vst [vmem:[#allocation398_spill] sm:$0xff] %v15022_v2  ;;  %v20480_v45 = vld [vmem:[#allocation402_spill] sm:$0xff] }
 0x366   :  { %8665 = vrot.lane.b32.xlu1 %v20339_v9, %s10640_s15  ;;  %8679 = vrot.lane.b32.xlu0 %v20340_v25, %s10640_s15  ;;  %v20373_v25 = vcombine.high %v20294_v52, %v20293_v47 }
 0x368   :  { %v15032_v24 = vpop.permute.xlu1 %8425  ;;  %v15034_v44 = vpop.permute.xlu0 %8439 }
 0x369   :  { %20341 = vst [vmem:[#allocation400_spill] sm:$0xff] %v15032_v24  ;;  %20342 = vst [vmem:[#allocation310_spill] sm:$0xff] %v15034_v44  ;;  %v20476_v44 = vld [vmem:[#allocation111_spill] sm:$0xff]  ;;  %v20477_v24 = vld [vmem:[#allocation277_spill] sm:$0xff] }
 0x36a   :  { %8669 = vrot.lane.b32.xlu1 %v20343_v63, %s10640_s15  ;;  %8683 = vrot.lane.b32.xlu0 %v20344_v33, %s10640_s15  ;;  %v20374_v63 = vld [vmem:[#allocation488_spill] sm:$0xff]  ;;  %v20478_v2 = vcombine.low %v20476_v44, %v20477_v24 }
 0x36b   :  { %v20375_v33 = vcombine.high %v20296_v30, %v20374_v63  ;;  %v20386_v30 = vcombine.high %v20305_v31, %v20304_v0  ;;  %v20394_v63 = vcombine.high %v20312_v43, %v20311_v13  ;;  %v20395_v31 = vld [vmem:[#allocation73_spill] sm:$0xff]  ;;  %v20396_v0 = vld [vmem:[#allocation71_spill] sm:$0xff] }
 0x36c   :  { %v15046_v34 = vpop.permute.xlu1 %8429  ;;  %v15048_v29 = vpop.permute.xlu0 %8443 }
 0x36d   :  { %20347 = vst [vmem:[#allocation312_spill] sm:$0xff] %v15046_v34  ;;  %20348 = vst [vmem:[#allocation432_spill] sm:$0xff] %v15048_v29  ;;  %v20474_v34 = vld [vmem:[#allocation424_spill] sm:$0xff] }
 0x36e   :  { %8673 = vrot.lane.b32.xlu1 %v20349_v39, %s10640_s15  ;;  %8687 = vrot.lane.b32.xlu0 %v20350_v4, %s10640_s15  ;;  %v20379_v39 = vld [vmem:[#allocation409_spill] sm:$0xff] }
 0x36f   :  { %v20380_v4 = vcombine.high %v20378_v5, %v20379_v39 }
 0x370   :  { %v15058_v46 = vpop.permute.xlu1 %8433  ;;  %v15060_v49 = vpop.permute.xlu0 %8447 }
 0x371   :  { %20351 = vst [vmem:[#allocation344_spill] sm:$0xff] %v15058_v46  ;;  %20352 = vst [vmem:[#allocation346_spill] sm:$0xff] %v15060_v49 }
 0x372   :  { %8677 = vrot.lane.b32.xlu1 %v20353_v14, %s10640_s15  ;;  %8691 = vrot.lane.b32.xlu0 %v20354_v15, %s10640_s15  ;;  %v20381_v14 = vld [vmem:[#allocation17_spill] sm:$0xff]  ;;  %v20382_v15 = vld [vmem:[#allocation15_spill] sm:$0xff] }
 0x373   :  { %v20383_v47 = vcombine.low %v20381_v14, %v20382_v15 }
 0x374   :  { %v15070_v36 = vpop.permute.xlu1 %8437  ;;  %v15072_v42 = vpop.permute.xlu0 %8451 }
 0x375   :  { %20355 = vst [vmem:[#allocation457_spill] sm:$0xff] %v15070_v36  ;;  %20356 = vst [vmem:[#allocation378_spill] sm:$0xff] %v15072_v42  ;;  %v20461_v42 = vld [vmem:[#allocation333_spill] sm:$0xff] }
 0x376   :  { %8681 = vrot.lane.b32.xlu1 %v20357_v37, %s10640_s15  ;;  %8695 = vrot.lane.b32.xlu0 %v20358_v28, %s10640_s15  ;;  %v20387_v28 = vld [vmem:[#allocation45_spill] sm:$0xff] }
 0x378   :  { %v15082_v3 = vpop.permute.xlu1 %8441  ;;  %v15084_v21 = vpop.permute.xlu0 %8519 }
 0x379   :  { %20359 = vst [vmem:[#allocation380_spill] sm:$0xff] %v15082_v3  ;;  %20360 = vst [vmem:[#allocation487_spill] sm:$0xff] %v15084_v21  ;;  %v20418_v3 = vld [vmem:[#allocation164_spill] sm:$0xff] }
 0x37a   :  { %8685 = vrot.lane.b32.xlu1 %v20361_v59, %s10640_s15  ;;  %8699 = vrot.lane.b32.xlu0 %v20363_v11, %s10640_s15  ;;  %v20388_v59 = vld [vmem:[#allocation43_spill] sm:$0xff] }
 0x37b   :  { %v20389_v22 = vcombine.low %v20387_v28, %v20388_v59  ;;  %v20424_v11 = vld [vmem:[#allocation87_spill] sm:$0xff] }
 0x37c   :  { %v15096_v61 = vpop.permute.xlu1 %8445  ;;  %v15098_v18 = vpop.permute.xlu0 %8523 }
 0x37d   :  { %20366 = vst [vmem:[#allocation443_spill] sm:$0xff] %v15096_v61  ;;  %20367 = vst [vmem:[#allocation444_spill] sm:$0xff] %v15098_v18  ;;  %v20417_v61 = vld [vmem:[#allocation165_spill] sm:$0xff] }
 0x37e   :  { %8689 = vrot.lane.b32.xlu1 %v20368_v35, %s10640_s15  ;;  %8703 = vrot.lane.b32.xlu0 %v20370_v55, %s10640_s15  ;;  %v20419_v17 = vcombine.low %v20417_v61, %v20418_v3  ;;  %v20425_v35 = vld [vmem:[#allocation85_spill] sm:$0xff] }
 0x37f   :  { %v20426_v56 = vcombine.low %v20424_v11, %v20425_v35 }
 0x380   :  { %v15108_v9 = vpop.permute.xlu1 %8449  ;;  %v15110_v20 = vpop.permute.xlu0 %8527 }
 0x381   :  { %20371 = vst [vmem:[#allocation471_spill] sm:$0xff] %v15108_v9  ;;  %20372 = vst [vmem:[#allocation470_spill] sm:$0xff] %v15110_v20  ;;  %v20466_v20 = vld [vmem:[#allocation243_spill] sm:$0xff] }
 0x382   :  { %8693 = vrot.lane.b32.xlu1 %v20373_v25, %s10640_s15  ;;  %8707 = vrot.lane.b32.xlu0 %v20375_v33, %s10640_s15  ;;  %v20397_v33 = vcombine.low %v20395_v31, %v20396_v0 }
 0x384   :  { %v15120_v58 = vpop.permute.xlu1 %8453  ;;  %v15122_v8 = vpop.permute.xlu0 %8531 }
 0x385   :  { %20376 = vst [vmem:[#allocation69_spill] sm:$0xff] %v15120_v58  ;;  %20377 = vst [vmem:[#allocation13_spill] sm:$0xff] %v15122_v8 }
 0x386   :  { %8697 = vrot.lane.b32.xlu1 %v20380_v4, %s10640_s15  ;;  %8775 = vrot.lane.b32.xlu0 %v20383_v47, %s10641_s16  ;;  %v20400_v4 = vcombine.high %v20317_v16, %v20316_v27  ;;  %v20401_v47 = vld [vmem:[#allocation102_spill] sm:$0xff] }
 0x388   :  { %v15132_v52 = vpop.permute.xlu1 %8521  ;;  %v15134_v37 = vpop.permute.xlu0 %8535 }
 0x389   :  { %20384 = vst [vmem:[#allocation429_spill] sm:$0xff] %v15132_v52  ;;  %20385 = vst [vmem:[#allocation456_spill] sm:$0xff] %v15134_v37  ;;  %v20449_v37 = vld [vmem:[#allocation179_spill] sm:$0xff]  ;;  %v20452_v52 = vld [vmem:[#allocation296_spill] sm:$0xff] }
 0x38a   :  { %8701 = vrot.lane.b32.xlu1 %v20386_v30, %s10640_s15  ;;  %8779 = vrot.lane.b32.xlu0 %v20389_v22, %s10641_s16  ;;  %v20402_v30 = vld [vmem:[#allocation100_spill] sm:$0xff] }
 0x38b   :  { %v20403_v22 = vcombine.low %v20401_v47, %v20402_v30 }
 0x38c   :  { %v15146_v55 = vpop.permute.xlu1 %8525  ;;  %v15148_v25 = vpop.permute.xlu0 %8539 }
 0x38d   :  { %20392 = vst [vmem:[#allocation488_spill] sm:$0xff] %v15146_v55  ;;  %20393 = vst [vmem:[#allocation410_spill] sm:$0xff] %v15148_v25 }
 0x38e   :  { %8705 = vrot.lane.b32.xlu1 %v20394_v63, %s10640_s15  ;;  %8783 = vrot.lane.b32.xlu0 %v20397_v33, %s10641_s16  ;;  %v20406_v63 = vld [vmem:[#allocation31_spill] sm:$0xff]  ;;  %v20407_v33 = vld [vmem:[#allocation29_spill] sm:$0xff] }
 0x38f   :  { %v20408_v50 = vcombine.low %v20406_v63, %v20407_v33 }
 0x390   :  { %v15158_v5 = vpop.permute.xlu1 %8529  ;;  %v15160_v39 = vpop.permute.xlu0 %8543 }
 0x391   :  { %20398 = vst [vmem:[#allocation409_spill] sm:$0xff] %v15158_v5  ;;  %20399 = vst [vmem:[#allocation17_spill] sm:$0xff] %v15160_v39  ;;  %v20441_v39 = vld [vmem:[#allocation149_spill] sm:$0xff]  ;;  %v20444_v5 = vld [vmem:[#allocation262_spill] sm:$0xff] }
 0x392   :  { %8709 = vrot.lane.b32.xlu1 %v20400_v4, %s10640_s15  ;;  %8787 = vrot.lane.b32.xlu0 %v20403_v22, %s10641_s16  ;;  %v20414_v4 = vld [vmem:[#allocation59_spill] sm:$0xff]  ;;  %v20415_v22 = vld [vmem:[#allocation57_spill] sm:$0xff] }
 0x393   :  { %v20416_v9 = vcombine.low %v20414_v4, %v20415_v22 }
 0x394   :  { %v15170_v13 = vpop.permute.xlu1 %8533  ;;  %v15172_v43 = vpop.permute.xlu0 %8547 }
 0x395   :  { %20404 = vst [vmem:[#allocation15_spill] sm:$0xff] %v15170_v13  ;;  %20405 = vst [vmem:[#allocation45_spill] sm:$0xff] %v15172_v43 }
 0x396   :  { %8777 = vrot.lane.b32.xlu1 %v20408_v50, %s10641_s16  ;;  %8791 = vrot.lane.b32.xlu0 %v20411_v54, %s10641_s16  ;;  %v20433_v50 = vld [vmem:[#allocation117_spill] sm:$0xff] }
 0x397   :  { %v20434_v53 = vcombine.low %v20432_v10, %v20433_v50 }
 0x398   :  { %v15182_v27 = vpop.permute.xlu1 %8537  ;;  %v15184_v16 = vpop.permute.xlu0 %8551 }
 0x399   :  { %20412 = vst [vmem:[#allocation43_spill] sm:$0xff] %v15182_v27  ;;  %20413 = vst [vmem:[#allocation73_spill] sm:$0xff] %v15184_v16 }
 0x39a   :  { %8781 = vrot.lane.b32.xlu1 %v20416_v9, %s10641_s16  ;;  %8795 = vrot.lane.b32.xlu0 %v20419_v17, %s10641_s16  ;;  %v20428_v9 = vld [vmem:[#allocation194_spill] sm:$0xff] }
 0x39b   :  { %v20429_v16 = vcombine.low %v20427_v60, %v20428_v9 }
 0x39c   :  { %v15196_v26 = vpop.permute.xlu1 %8541  ;;  %v15198_v54 = vpop.permute.xlu0 %8555 }
 0x39d   :  { %20422 = vst [vmem:[#allocation71_spill] sm:$0xff] %v15196_v26  ;;  %20423 = vst [vmem:[#allocation102_spill] sm:$0xff] %v15198_v54  ;;  %v20435_v54 = vld [vmem:[#allocation227_spill] sm:$0xff]  ;;  %v20436_v26 = vld [vmem:[#allocation226_spill] sm:$0xff] }
 0x39e   :  { %8785 = vrot.lane.b32.xlu1 %v20426_v56, %s10641_s16  ;;  %8799 = vrot.lane.b32.xlu0 %v20429_v16, %s10641_s16  ;;  %v20437_v43 = vcombine.low %v20435_v54, %v20436_v26  ;;  %v20440_v16 = vld [vmem:[#allocation150_spill] sm:$0xff] }
 0x3a0   :  { %v15208_v27 = vpop.permute.xlu1 %8545  ;;  %v15210_v17 = vpop.permute.xlu0 %8559 }
 0x3a1   :  { %20430 = vst [vmem:[#allocation100_spill] sm:$0xff] %v15208_v27  ;;  %20431 = vst [vmem:[#allocation31_spill] sm:$0xff] %v15210_v17  ;;  %v20442_v27 = vcombine.low %v20440_v16, %v20441_v39  ;;  %v20443_v17 = vld [vmem:[#allocation94_spill] sm:$0xff] }
 0x3a2   :  { %8789 = vrot.lane.b32.xlu1 %v20434_v53, %s10641_s16  ;;  %8803 = vrot.lane.b32.xlu0 %v20437_v43, %s10641_s16  ;;  %v20445_v25 = vcombine.low %v20443_v17, %v20444_v5  ;;  %v20448_v43 = vld [vmem:[#allocation180_spill] sm:$0xff] }
 0x3a4   :  { %v15220_v56 = vpop.permute.xlu1 %8549  ;;  %v15222_v13 = vpop.permute.xlu0 %8563 }
 0x3a5   :  { %20438 = vst [vmem:[#allocation29_spill] sm:$0xff] %v15220_v56  ;;  %20439 = vst [vmem:[#allocation134_spill] sm:$0xff] %v15222_v13  ;;  %v20450_v56 = vcombine.low %v20448_v43, %v20449_v37  ;;  %v20451_v13 = vld [vmem:[#allocation125_spill] sm:$0xff] }
 0x3a6   :  { %8793 = vrot.lane.b32.xlu1 %v20442_v27, %s10641_s16  ;;  %8807 = vrot.lane.b32.xlu0 %v20445_v25, %s10641_s16  ;;  %v20453_v8 = vcombine.low %v20451_v13, %v20452_v52  ;;  %v20467_v27 = vld [vmem:[#allocation242_spill] sm:$0xff] }
 0x3a7   :  { %v20468_v58 = vcombine.low %v20466_v20, %v20467_v27 }
 0x3a8   :  { %v15232_v53 = vpop.permute.xlu1 %8553  ;;  %v15234_v55 = vpop.permute.xlu0 %8567 }
 0x3a9   :  { %20446 = vst [vmem:[#allocation133_spill] sm:$0xff] %v15232_v53  ;;  %20447 = vst [vmem:[#allocation59_spill] sm:$0xff] %v15234_v55  ;;  %v20458_v53 = vld [vmem:[#allocation211_spill] sm:$0xff]  ;;  %v20459_v55 = vld [vmem:[#allocation210_spill] sm:$0xff] }
 0x3aa   :  { %8797 = vrot.lane.b32.xlu1 %v20450_v56, %s10641_s16  ;;  %8811 = vrot.lane.b32.xlu0 %v20453_v8, %s10641_s16  ;;  %v20460_v21 = vcombine.low %v20458_v53, %v20459_v55  ;;  %v20462_v56 = vld [vmem:[#allocation331_spill] sm:$0xff] }
 0x3ab   :  { %v20463_v36 = vcombine.low %v20461_v42, %v20462_v56 }
 0x3ac   :  { %v15246_v18 = vpop.permute.xlu1 %8557  ;;  %v15248_v25 = vpop.permute.xlu0 %8571 }
 0x3ad   :  { %20456 = vst [vmem:[#allocation57_spill] sm:$0xff] %v15246_v18  ;;  %20457 = vst [vmem:[#allocation165_spill] sm:$0xff] %v15248_v25  ;;  %v20469_v25 = vld [vmem:[#allocation143_spill] sm:$0xff]  ;;  %v20470_v18 = vld [vmem:[#allocation368_spill] sm:$0xff] }
 0x3ae   :  { %8801 = vrot.lane.b32.xlu1 %v20460_v21, %s10641_s16  ;;  %8815 = vrot.lane.b32.xlu0 %v20463_v36, %s10641_s16  ;;  %v20471_v46 = vcombine.low %v20469_v25, %v20470_v18  ;;  %v7216_v36 = vcombine.high %v20474_v34, %v20474_v34  ;;  %v20486_v34 = vld [vmem:[#allocation127_spill] sm:$0xff] }
 0x3b0   :  { %v15258_v49 = vpop.permute.xlu1 %8561  ;;  %v15260_v8 = vpop.permute.xlu0 %8575 }
 0x3b1   :  { %20464 = vst [vmem:[#allocation164_spill] sm:$0xff] %v15258_v49  ;;  %20465 = vst [vmem:[#allocation87_spill] sm:$0xff] %v15260_v8  ;;  %v20475_v49 = vld [vmem:[#allocation289_spill] sm:$0xff] }
 0x3b2   :  { %8805 = vrot.lane.b32.xlu1 %v20468_v58, %s10641_s16  ;;  %8819 = vrot.lane.b32.xlu0 %v20471_v46, %s10641_s16  ;;  %v7248_v8 = vcombine.high %v20475_v49, %v20475_v49  ;;  %v20479_v58 = vld [vmem:[#allocation218_spill] sm:$0xff]  ;;  %v20487_v49 = vld [vmem:[#allocation313_spill] sm:$0xff] }
 0x3b3   :  { %v20481_v6 = vcombine.low %v20479_v58, %v20480_v45  ;;  %v20488_v1 = vcombine.low %v20486_v34, %v20487_v49 }
 0x3b4   :  { %v15270_v21 = vpop.permute.xlu1 %8565  ;;  %v15272_v29 = vpop.permute.xlu0 %8579 }
 0x3b5   :  { %20472 = vst [vmem:[#allocation85_spill] sm:$0xff] %v15270_v21  ;;  %20473 = vst [vmem:[#allocation195_spill] sm:$0xff] %v15272_v29  ;;  %v20484_v29 = vld [vmem:[#allocation9_spill] sm:$0xff] }
 0x3b6   :  { %8809 = vrot.lane.b32.xlu1 %v20478_v2, %s10641_s16  ;;  %8823 = vrot.lane.b32.xlu0 %v20481_v6, %s10641_s16  ;;  %v15291_v12 = vrot.slane %v7216_v36, %v20484_v29  ;;  %v20490_v2 = vld [vmem:[#allocation434_spill] sm:$0xff]  ;;  %v15302_v23 = vrot.slane %v7248_v8, %v20484_v29  ;;  %v20504_v36 = vld [vmem:[#allocation381_spill] sm:$0xff] }
 0x3b7   :  { %v20491_v40 = vcombine.low %v20489_v48, %v20490_v2 }
 0x3b8   :  { %v15286_v46 = vpop.permute.xlu1 %8569  ;;  %v15288_v21 = vpop.permute.xlu0 %8647  ;;  %20485 = vst [vmem:[#allocation117_spill] sm:$0xff] %v15291_v12  ;;  %20492 = vst [vmem:[#allocation227_spill] sm:$0xff] %v15302_v23  ;;  %v20507_v23 = vld [vmem:[#allocation490_spill] sm:$0xff] }
 0x3b9   :  { %20482 = vst [vmem:[#allocation194_spill] sm:$0xff] %v15286_v46  ;;  %20483 = vst [vmem:[#allocation118_spill] sm:$0xff] %v15288_v21  ;;  %v20506_v21 = vld [vmem:[#allocation492_spill] sm:$0xff] }
 0x3ba   :  { %8813 = vrot.lane.b32.xlu1 %v20488_v1, %s10641_s16  ;;  %8827 = vrot.lane.b32.xlu0 %v20491_v40, %s10641_s16  ;;  %v20495_v1 = vld [vmem:[#allocation348_spill] sm:$0xff]  ;;  %v20498_v40 = vld [vmem:[#allocation462_spill] sm:$0xff]  ;;  %v20508_v12 = vcombine.low %v20506_v21, %v20507_v23 }
 0x3bb   :  { %v20497_v19 = vcombine.low %v20495_v1, %v20496_v38  ;;  %v20500_v8 = vcombine.low %v20498_v40, %v20499_v51  ;;  %v20512_v51 = vld [vmem:[#allocation411_spill] sm:$0xff] }
 0x3bc   :  { %v15304_v6 = vpop.permute.xlu1 %8573  ;;  %v15306_v46 = vpop.permute.xlu0 %8651 }
 0x3bd   :  { %20493 = vst [vmem:[#allocation226_spill] sm:$0xff] %v15304_v6  ;;  %20494 = vst [vmem:[#allocation150_spill] sm:$0xff] %v15306_v46  ;;  %v20503_v46 = vld [vmem:[#allocation382_spill] sm:$0xff] }
 0x3be   :  { %8817 = vrot.lane.b32.xlu1 %v20497_v19, %s10641_s16  ;;  %8831 = vrot.lane.b32.xlu0 %v20500_v8, %s10641_s16  ;;  %v20505_v62 = vcombine.low %v20503_v46, %v20504_v36  ;;  %v20511_v8 = vld [vmem:[#allocation412_spill] sm:$0xff] }
 0x3c0   :  { %v15320_v57 = vpop.permute.xlu1 %8577  ;;  %v15322_v6 = vpop.permute.xlu0 %8655 }
 0x3c1   :  { %20501 = vst [vmem:[#allocation149_spill] sm:$0xff] %v15320_v57  ;;  %20502 = vst [vmem:[#allocation94_spill] sm:$0xff] %v15322_v6  ;;  %v20513_v57 = vcombine.low %v20511_v8, %v20512_v51  ;;  %v20514_v6 = vcombine.high %v20381_v14, %v20382_v15  ;;  %v20525_v15 = vld [vmem:[#allocation473_spill] sm:$0xff] }
 0x3c2   :  { %8821 = vrot.lane.b32.xlu1 %v20505_v62, %s10641_s16  ;;  %8835 = vrot.lane.b32.xlu0 %v20508_v12, %s10641_s16  ;;  %v20517_v12 = vld [vmem:[#allocation248_spill] sm:$0xff] }
 0x3c4   :  { %v15332_v19 = vpop.permute.xlu1 %8581  ;;  %v15334_v32 = vpop.permute.xlu0 %8659 }
 0x3c5   :  { %20509 = vst [vmem:[#allocation262_spill] sm:$0xff] %v15332_v19  ;;  %20510 = vst [vmem:[#allocation180_spill] sm:$0xff] %v15334_v32  ;;  %v20518_v19 = vld [vmem:[#allocation204_spill] sm:$0xff]  ;;  %v20520_v32 = vcombine.high %v20387_v28, %v20388_v59  ;;  %v20531_v28 = vld [vmem:[#allocation322_spill] sm:$0xff] }
 0x3c6   :  { %8825 = vrot.lane.b32.xlu1 %v20513_v57, %s10641_s16  ;;  %8903 = vrot.lane.b32.xlu0 %v20514_v6, %s10642_s17  ;;  %v20519_v23 = vcombine.low %v20517_v12, %v20518_v19  ;;  %v20526_v6 = vld [vmem:[#allocation472_spill] sm:$0xff]  ;;  %v20532_v59 = vld [vmem:[#allocation495_spill] sm:$0xff]  ;;  %v20534_v57 = vcombine.high %v20401_v47, %v20402_v30  ;;  %v20540_v47 = vcombine.high %v20409_v41, %v20410_v7 }
 0x3c7   :  { %v20533_v8 = vcombine.low %v20531_v28, %v20532_v59  ;;  %v20546_v41 = vcombine.high %v20417_v61, %v20418_v3  ;;  %v20550_v3 = vcombine.high %v20427_v60, %v20428_v9  ;;  %v20557_v60 = vcombine.high %v20440_v16, %v20441_v39 }
 0x3c8   :  { %v15344_v62 = vpop.permute.xlu1 %8649  ;;  %v15346_v36 = vpop.permute.xlu0 %8663  ;;  %v20558_v9 = vcombine.high %v20443_v17, %v20444_v5  ;;  %v20567_v17 = vcombine.high %v20458_v53, %v20459_v55 }
 0x3c9   :  { %20515 = vst [vmem:[#allocation179_spill] sm:$0xff] %v15344_v62  ;;  %20516 = vst [vmem:[#allocation125_spill] sm:$0xff] %v15346_v36  ;;  %v20527_v36 = vcombine.low %v20525_v15, %v20526_v6 }
 0x3ca   :  { %8829 = vrot.lane.b32.xlu1 %v20519_v23, %s10641_s16  ;;  %8907 = vrot.lane.b32.xlu0 %v20520_v32, %s10642_s17  ;;  %v20528_v23 = vcombine.high %v20395_v31, %v20396_v0  ;;  %v20537_v31 = vld [vmem:[#allocation452_spill] sm:$0xff] }
 0x3cb   :  { %v7840_v0 = vcombine.high %v20537_v31, %v20537_v31 }
 0x3cc   :  { %v15358_v21 = vpop.permute.xlu1 %8653  ;;  %v15360_v14 = vpop.permute.xlu0 %8667 }
 0x3cd   :  { %20523 = vst [vmem:[#allocation296_spill] sm:$0xff] %v15358_v21  ;;  %20524 = vst [vmem:[#allocation211_spill] sm:$0xff] %v15360_v14 }
 0x3ce   :  { %8833 = vrot.lane.b32.xlu1 %v20527_v36, %s10641_s16  ;;  %8911 = vrot.lane.b32.xlu0 %v20528_v23, %s10642_s17  ;;  %v20538_v23 = vld [vmem:[#allocation42_spill] sm:$0xff] }
 0x3d0   :  { %v15370_v62 = vpop.permute.xlu1 %8657  ;;  %v15372_v32 = vpop.permute.xlu0 %8671 }
 0x3d1   :  { %20529 = vst [vmem:[#allocation210_spill] sm:$0xff] %v15370_v62  ;;  %20530 = vst [vmem:[#allocation333_spill] sm:$0xff] %v15372_v32  ;;  %v7872_v32 = vcombine.high %v20538_v23, %v20538_v23  ;;  %v20539_v62 = vcombine.high %v20406_v63, %v20407_v33  ;;  %v20545_v63 = vcombine.high %v20414_v4, %v20415_v22 }
 0x3d2   :  { %8837 = vrot.lane.b32.xlu1 %v20533_v8, %s10641_s16  ;;  %8915 = vrot.lane.b32.xlu0 %v20534_v57, %s10642_s17  ;;  %v15403_v57 = vrot.slane %v7840_v0, %v20484_v29  ;;  %v20549_v4 = vcombine.high %v20424_v11, %v20425_v35  ;;  %v20553_v0 = vcombine.high %v20432_v10, %v20433_v50 }
 0x3d3   :  { %v15406_v31 = vrot.slane %v7872_v32, %v20484_v29  ;;  %v20554_v23 = vcombine.high %v20435_v54, %v20436_v26  ;;  %v20561_v26 = vcombine.high %v20448_v43, %v20449_v37  ;;  %v20562_v54 = vcombine.high %v20451_v13, %v20452_v52 }
 0x3d4   :  { %v15382_v36 = vpop.permute.xlu1 %8661  ;;  %v15384_v51 = vpop.permute.xlu0 %8675  ;;  %20543 = vst [vmem:[#allocation368_spill] sm:$0xff] %v15403_v57  ;;  %v20568_v37 = vcombine.high %v20461_v42, %v20462_v56  ;;  %v20571_v13 = vcombine.high %v20466_v20, %v20467_v27  ;;  %v20575_v42 = vld [vmem:[#allocation193_spill] sm:$0xff]  ;;  %v20577_v20 = vcombine.high %v20476_v44, %v20477_v24  ;;  %v20583_v24 = vcombine.high %v20489_v48, %v20490_v2  ;;  %v20588_v48 = vld [vmem:[#allocation459_spill] sm:$0xff] }
 0x3d5   :  { %20535 = vst [vmem:[#allocation331_spill] sm:$0xff] %v15382_v36  ;;  %20536 = vst [vmem:[#allocation243_spill] sm:$0xff] %v15384_v51  ;;  %v8048_v56 = vcombine.high %v20575_v42, %v20575_v42 }
 0x3d6   :  { %8905 = vrot.lane.b32.xlu1 %v20539_v62, %s10642_s17  ;;  %8919 = vrot.lane.b32.xlu0 %v20540_v47, %s10642_s17  ;;  %20544 = vst [vmem:[#allocation424_spill] sm:$0xff] %v15406_v31  ;;  %v20629_v47 = vld [vmem:[#allocation167_spill] sm:$0xff] }
 0x3d8   :  { %v15398_v30 = vpop.permute.xlu1 %8665  ;;  %v15400_v8 = vpop.permute.xlu0 %8679 }
 0x3d9   :  { %20541 = vst [vmem:[#allocation242_spill] sm:$0xff] %v15398_v30  ;;  %20542 = vst [vmem:[#allocation143_spill] sm:$0xff] %v15400_v8  ;;  %v20684_v30 = vld [vmem:[#allocation451_spill] sm:$0xff] }
 0x3da   :  { %8909 = vrot.lane.b32.xlu1 %v20545_v63, %s10642_s17  ;;  %8923 = vrot.lane.b32.xlu0 %v20546_v41, %s10642_s17  ;;  %v20572_v41 = vcombine.high %v20469_v25, %v20470_v18  ;;  %v20578_v18 = vcombine.high %v20479_v58, %v20480_v45 }
 0x3dc   :  { %v15420_v62 = vpop.permute.xlu1 %8669  ;;  %v15422_v32 = vpop.permute.xlu0 %8683 }
 0x3dd   :  { %20547 = vst [vmem:[#allocation289_spill] sm:$0xff] %v15420_v62  ;;  %20548 = vst [vmem:[#allocation111_spill] sm:$0xff] %v15422_v32 }
 0x3de   :  { %8913 = vrot.lane.b32.xlu1 %v20549_v4, %s10642_s17  ;;  %8927 = vrot.lane.b32.xlu0 %v20550_v3, %s10642_s17  ;;  %v20576_v4 = vld [vmem:[#allocation114_spill] sm:$0xff] }
 0x3df   :  { %v8080_v3 = vcombine.high %v20576_v4, %v20576_v4  ;;  %v20602_v4 = vld [vmem:[#allocation411_spill] sm:$0xff] }
 0x3e0   :  { %v15432_v61 = vpop.permute.xlu1 %8673  ;;  %v15434_v22 = vpop.permute.xlu0 %8687 }
 0x3e1   :  { %20551 = vst [vmem:[#allocation277_spill] sm:$0xff] %v15432_v61  ;;  %20552 = vst [vmem:[#allocation218_spill] sm:$0xff] %v15434_v22  ;;  %v15526_v45 = vrot.slane %v8080_v3, %v20484_v29 }
 0x3e2   :  { %8917 = vrot.lane.b32.xlu1 %v20553_v0, %s10642_s17  ;;  %8931 = vrot.lane.b32.xlu0 %v20554_v23, %s10642_s17  ;;  %v15515_v0 = vrot.slane %v8048_v56, %v20484_v29  ;;  %v20582_v23 = vcombine.high %v20486_v34, %v20487_v49  ;;  %v20587_v34 = vcombine.high %v20495_v1, %v20496_v38  ;;  %v20601_v56 = vld [vmem:[#allocation412_spill] sm:$0xff] }
 0x3e3   :  { %20584 = vst [vmem:[#allocation472_spill] sm:$0xff] %v15526_v45  ;;  %v20589_v29 = vcombine.high %v20498_v40, %v20588_v48  ;;  %v20599_v40 = vld [vmem:[#allocation18_spill] sm:$0xff]  ;;  %v20603_v3 = vcombine.high %v20601_v56, %v20602_v4  ;;  %v20618_v4 = vcombine.high %v20531_v28, %v20532_v59  ;;  %v20635_v45 = vld [vmem:[#allocation197_spill] sm:$0xff] }
 0x3e4   :  { %v15444_v11 = vpop.permute.xlu1 %8677  ;;  %v15446_v35 = vpop.permute.xlu0 %8691  ;;  %20581 = vst [vmem:[#allocation473_spill] sm:$0xff] %v15515_v0  ;;  %v20627_v59 = vld [vmem:[#allocation62_spill] sm:$0xff]  ;;  %v20636_v0 = vld [vmem:[#allocation196_spill] sm:$0xff] }
 0x3e5   :  { %20555 = vst [vmem:[#allocation402_spill] sm:$0xff] %v15444_v11  ;;  %20556 = vst [vmem:[#allocation9_spill] sm:$0xff] %v15446_v35  ;;  %v4455_v31 = vcombine.low %v20636_v0, %v20635_v45 }
 0x3e6   :  { %8921 = vrot.lane.b32.xlu1 %v20557_v60, %s10642_s17  ;;  %8935 = vrot.lane.b32.xlu0 %v20558_v9, %s10642_s17  ;;  %v20630_v60 = vld [vmem:[#allocation166_spill] sm:$0xff] }
 0x3e7   :  { %v3831_v7 = vcombine.low %v20630_v60, %v20629_v47 }
 0x3e8   :  { %v15456_v10 = vpop.permute.xlu1 %8681  ;;  %v15458_v50 = vpop.permute.xlu0 %8695 }
 0x3e9   :  { %20559 = vst [vmem:[#allocation127_spill] sm:$0xff] %v15456_v10  ;;  %20560 = vst [vmem:[#allocation313_spill] sm:$0xff] %v15458_v50  ;;  %v20672_v10 = vld [vmem:[#allocation392_spill] sm:$0xff] }
 0x3ea   :  { %8925 = vrot.lane.b32.xlu1 %v20561_v26, %s10642_s17  ;;  %8939 = vrot.lane.b32.xlu0 %v20562_v54, %s10642_s17  ;;  %v20592_v26 = vld [vmem:[#allocation381_spill] sm:$0xff] }
 0x3eb   :  { %v20593_v54 = vcombine.high %v20503_v46, %v20592_v26  ;;  %v20611_v26 = vld [vmem:[#allocation76_spill] sm:$0xff] }
 0x3ec   :  { %v15470_v63 = vpop.permute.xlu1 %8685  ;;  %v15472_v5 = vpop.permute.xlu0 %8699 }
 0x3ed   :  { %20565 = vst [vmem:[#allocation436_spill] sm:$0xff] %v15470_v63  ;;  %20566 = vst [vmem:[#allocation434_spill] sm:$0xff] %v15472_v5  ;;  %v20666_v5 = vld [vmem:[#allocation358_spill] sm:$0xff] }
 0x3ee   :  { %8929 = vrot.lane.b32.xlu1 %v20567_v17, %s10642_s17  ;;  %8943 = vrot.lane.b32.xlu0 %v20568_v37, %s10642_s17  ;;  %v20594_v17 = vld [vmem:[#allocation492_spill] sm:$0xff]  ;;  %v20595_v37 = vld [vmem:[#allocation490_spill] sm:$0xff] }
 0x3f0   :  { %v15482_v43 = vpop.permute.xlu1 %8689  ;;  %v15484_v52 = vpop.permute.xlu0 %8703 }
 0x3f1   :  { %20569 = vst [vmem:[#allocation348_spill] sm:$0xff] %v15482_v43  ;;  %20570 = vst [vmem:[#allocation347_spill] sm:$0xff] %v15484_v52 }
 0x3f2   :  { %8933 = vrot.lane.b32.xlu1 %v20571_v13, %s10642_s17  ;;  %8947 = vrot.lane.b32.xlu0 %v20572_v41, %s10642_s17  ;;  %v20596_v13 = vcombine.high %v20594_v17, %v20595_v37  ;;  %v20600_v41 = vld [vmem:[#allocation20_spill] sm:$0xff]  ;;  %v20613_v37 = vcombine.high %v20525_v15, %v20526_v6  ;;  %v20621_v6 = vld [vmem:[#allocation34_spill] sm:$0xff] }
 0x3f3   :  { %v1959_v42 = vcombine.low %v20600_v41, %v20599_v40 }
 0x3f4   :  { %v15494_v55 = vpop.permute.xlu1 %8693  ;;  %v15496_v53 = vpop.permute.xlu0 %8707 }
 0x3f5   :  { %20573 = vst [vmem:[#allocation462_spill] sm:$0xff] %v15494_v55  ;;  %20574 = vst [vmem:[#allocation382_spill] sm:$0xff] %v15496_v53  ;;  %v20690_v53 = vld [vmem:[#allocation478_spill] sm:$0xff] }
 0x3f6   :  { %8937 = vrot.lane.b32.xlu1 %v20577_v20, %s10642_s17  ;;  %8951 = vrot.lane.b32.xlu0 %v20578_v18, %s10642_s17  ;;  %v20606_v18 = vld [vmem:[#allocation48_spill] sm:$0xff] }
 0x3f8   :  { %v15510_v27 = vpop.permute.xlu1 %8697  ;;  %v15512_v25 = vpop.permute.xlu0 %8775 }
 0x3f9   :  { %20579 = vst [vmem:[#allocation248_spill] sm:$0xff] %v15510_v27  ;;  %20580 = vst [vmem:[#allocation204_spill] sm:$0xff] %v15512_v25  ;;  %v20678_v25 = vld [vmem:[#allocation425_spill] sm:$0xff] }
 0x3fa   :  { %8941 = vrot.lane.b32.xlu1 %v20582_v23, %s10642_s17  ;;  %8955 = vrot.lane.b32.xlu0 %v20583_v24, %s10642_s17  ;;  %v20607_v23 = vld [vmem:[#allocation46_spill] sm:$0xff] }
 0x3fb   :  { %v2167_v24 = vcombine.low %v20607_v23, %v20606_v18 }
 0x3fc   :  { %v15528_v44 = vpop.permute.xlu1 %8701  ;;  %v15530_v58 = vpop.permute.xlu0 %8779 }
 0x3fd   :  { %20585 = vst [vmem:[#allocation322_spill] sm:$0xff] %v15528_v44  ;;  %20586 = vst [vmem:[#allocation495_spill] sm:$0xff] %v15530_v58 }
 0x3fe   :  { %8945 = vrot.lane.b32.xlu1 %v20587_v34, %s10642_s17  ;;  %8959 = vrot.lane.b32.xlu0 %v20589_v29, %s10642_s17  ;;  %v20608_v34 = vcombine.high %v20517_v12, %v20518_v19  ;;  %v20616_v12 = vld [vmem:[#allocation104_spill] sm:$0xff] }
 0x400   :  { %v15544_v49 = vpop.permute.xlu1 %8705  ;;  %v15546_v2 = vpop.permute.xlu0 %8783 }
 0x401   :  { %20590 = vst [vmem:[#allocation452_spill] sm:$0xff] %v15544_v49  ;;  %20591 = vst [vmem:[#allocation42_spill] sm:$0xff] %v15546_v2  ;;  %v20660_v2 = vld [vmem:[#allocation321_spill] sm:$0xff] }
 0x402   :  { %8949 = vrot.lane.b32.xlu1 %v20593_v54, %s10642_s17  ;;  %8963 = vrot.lane.b32.xlu0 %v20596_v13, %s10642_s17  ;;  %v20612_v54 = vld [vmem:[#allocation74_spill] sm:$0xff] }
 0x403   :  { %v2791_v17 = vcombine.low %v20612_v54, %v20611_v26 }
 0x404   :  { %v15556_v38 = vpop.permute.xlu1 %8709  ;;  %v15558_v1 = vpop.permute.xlu0 %8787 }
 0x405   :  { %20597 = vst [vmem:[#allocation193_spill] sm:$0xff] %v15556_v38  ;;  %20598 = vst [vmem:[#allocation114_spill] sm:$0xff] %v15558_v1 }
 0x406   :  { %8953 = vrot.lane.b32.xlu1 %v20603_v3, %s10642_s17  ;;  %9031 = vrot.lane.b32.xlu0 %v1959_v42, %s10643_s18  ;;  %v20617_v42 = vld [vmem:[#allocation103_spill] sm:$0xff] }
 0x407   :  { %v2999_v56 = vcombine.low %v20617_v42, %v20616_v12 }
 0x408   :  { %v15567_v46 = vpop.permute.xlu1 %8777  ;;  %v15569_v20 = vpop.permute.xlu0 %8791 }
 0x409   :  { %20604 = vst [vmem:[#allocation459_spill] sm:$0xff] %v15567_v46  ;;  %20605 = vst [vmem:[#allocation381_spill] sm:$0xff] %v15569_v20  ;;  %v20654_v20 = vld [vmem:[#allocation286_spill] sm:$0xff] }
 0x40a   :  { %8957 = vrot.lane.b32.xlu1 %v20608_v34, %s10642_s17  ;;  %9035 = vrot.lane.b32.xlu0 %v2167_v24, %s10643_s18  ;;  %v20622_v24 = vld [vmem:[#allocation32_spill] sm:$0xff] }
 0x40b   :  { %v2063_v34 = vcombine.low %v20622_v24, %v20621_v6 }
 0x40c   :  { %v15578_v48 = vpop.permute.xlu1 %8781  ;;  %v15580_v29 = vpop.permute.xlu0 %8795 }
 0x40d   :  { %20609 = vst [vmem:[#allocation492_spill] sm:$0xff] %v15578_v48  ;;  %20610 = vst [vmem:[#allocation490_spill] sm:$0xff] %v15580_v29 }
 0x40e   :  { %8961 = vrot.lane.b32.xlu1 %v20613_v37, %s10642_s17  ;;  %9039 = vrot.lane.b32.xlu0 %v2791_v17, %s10643_s18  ;;  %v20623_v17 = vld [vmem:[#allocation136_spill] sm:$0xff]  ;;  %v20624_v37 = vld [vmem:[#allocation135_spill] sm:$0xff] }
 0x40f   :  { %v3623_v9 = vcombine.low %v20624_v37, %v20623_v17 }
 0x410   :  { %v15589_v13 = vpop.permute.xlu1 %8785  ;;  %v15591_v19 = vpop.permute.xlu0 %8799 }
 0x411   :  { %20614 = vst [vmem:[#allocation18_spill] sm:$0xff] %v15589_v13  ;;  %20615 = vst [vmem:[#allocation20_spill] sm:$0xff] %v15591_v19  ;;  %v20648_v19 = vld [vmem:[#allocation252_spill] sm:$0xff] }
 0x412   :  { %8965 = vrot.lane.b32.xlu1 %v20618_v4, %s10642_s17  ;;  %9043 = vrot.lane.b32.xlu0 %v2999_v56, %s10643_s18  ;;  %v20628_v56 = vld [vmem:[#allocation60_spill] sm:$0xff] }
 0x413   :  { %v2271_v4 = vcombine.low %v20628_v56, %v20627_v59 }
 0x414   :  { %v15600_v3 = vpop.permute.xlu1 %8789  ;;  %v15602_v15 = vpop.permute.xlu0 %8803 }
 0x415   :  { %20619 = vst [vmem:[#allocation412_spill] sm:$0xff] %v15600_v3  ;;  %20620 = vst [vmem:[#allocation411_spill] sm:$0xff] %v15602_v15 }
 0x416   :  { %9033 = vrot.lane.b32.xlu1 %v2063_v34, %s10643_s18  ;;  %9047 = vrot.lane.b32.xlu0 %v3623_v9, %s10643_s18  ;;  %v20633_v34 = vld [vmem:[#allocation89_spill] sm:$0xff]  ;;  %v20634_v9 = vld [vmem:[#allocation88_spill] sm:$0xff] }
 0x417   :  { %v2895_v27 = vcombine.low %v20634_v9, %v20633_v34 }
 0x418   :  { %v15610_v33 = vpop.permute.xlu1 %8793  ;;  %v15612_v28 = vpop.permute.xlu0 %8807 }
 0x419   :  { %20625 = vst [vmem:[#allocation48_spill] sm:$0xff] %v15610_v33  ;;  %20626 = vst [vmem:[#allocation46_spill] sm:$0xff] %v15612_v28  ;;  %v20642_v28 = vld [vmem:[#allocation228_spill] sm:$0xff] }
 0x41a   :  { %9037 = vrot.lane.b32.xlu1 %v2271_v4, %s10643_s18  ;;  %9051 = vrot.lane.b32.xlu0 %v3831_v7, %s10643_s18  ;;  %v20639_v4 = vld [vmem:[#allocation120_spill] sm:$0xff]  ;;  %v20640_v7 = vld [vmem:[#allocation119_spill] sm:$0xff] }
 0x41b   :  { %v3103_v16 = vcombine.low %v20640_v7, %v20639_v4 }
 0x41c   :  { %v15620_v49 = vpop.permute.xlu1 %8797  ;;  %v15622_v44 = vpop.permute.xlu0 %8811 }
 0x41d   :  { %20631 = vst [vmem:[#allocation76_spill] sm:$0xff] %v15620_v49  ;;  %20632 = vst [vmem:[#allocation74_spill] sm:$0xff] %v15622_v44  ;;  %v20641_v49 = vld [vmem:[#allocation229_spill] sm:$0xff] }
 0x41e   :  { %9041 = vrot.lane.b32.xlu1 %v2895_v27, %s10643_s18  ;;  %9055 = vrot.lane.b32.xlu0 %v4455_v31, %s10643_s18  ;;  %v4663_v44 = vcombine.low %v20642_v28, %v20641_v49  ;;  %v20645_v27 = vld [vmem:[#allocation152_spill] sm:$0xff]  ;;  %v20646_v31 = vld [vmem:[#allocation151_spill] sm:$0xff] }
 0x41f   :  { %v3727_v3 = vcombine.low %v20646_v31, %v20645_v27 }
 0x420   :  { %v15630_v57 = vpop.permute.xlu1 %8801  ;;  %v15632_v39 = vpop.permute.xlu0 %8815 }
 0x421   :  { %20637 = vst [vmem:[#allocation104_spill] sm:$0xff] %v15630_v57  ;;  %20638 = vst [vmem:[#allocation103_spill] sm:$0xff] %v15632_v39  ;;  %v20647_v57 = vld [vmem:[#allocation254_spill] sm:$0xff] }
 0x422   :  { %9045 = vrot.lane.b32.xlu1 %v3103_v16, %s10643_s18  ;;  %9059 = vrot.lane.b32.xlu0 %v4663_v44, %s10643_s18  ;;  %v5287_v39 = vcombine.low %v20648_v19, %v20647_v57  ;;  %v20651_v16 = vld [vmem:[#allocation182_spill] sm:$0xff]  ;;  %v20652_v44 = vld [vmem:[#allocation181_spill] sm:$0xff] }
 0x423   :  { %v3935_v48 = vcombine.low %v20652_v44, %v20651_v16 }
 0x424   :  { %v15640_v33 = vpop.permute.xlu1 %8805  ;;  %v15642_v15 = vpop.permute.xlu0 %8819 }
 0x425   :  { %20643 = vst [vmem:[#allocation34_spill] sm:$0xff] %v15640_v33  ;;  %20644 = vst [vmem:[#allocation32_spill] sm:$0xff] %v15642_v15  ;;  %v20653_v33 = vld [vmem:[#allocation287_spill] sm:$0xff] }
 0x426   :  { %9049 = vrot.lane.b32.xlu1 %v3727_v3, %s10643_s18  ;;  %9063 = vrot.lane.b32.xlu0 %v5287_v39, %s10643_s18  ;;  %v5495_v15 = vcombine.low %v20654_v20, %v20653_v33  ;;  %v20657_v3 = vld [vmem:[#allocation213_spill] sm:$0xff]  ;;  %v20658_v39 = vld [vmem:[#allocation212_spill] sm:$0xff] }
 0x427   :  { %v4559_v38 = vcombine.low %v20658_v39, %v20657_v3 }
 0x428   :  { %v15650_v13 = vpop.permute.xlu1 %8809  ;;  %v15652_v29 = vpop.permute.xlu0 %8823 }
 0x429   :  { %20649 = vst [vmem:[#allocation136_spill] sm:$0xff] %v15650_v13  ;;  %20650 = vst [vmem:[#allocation135_spill] sm:$0xff] %v15652_v29  ;;  %v20659_v13 = vld [vmem:[#allocation323_spill] sm:$0xff] }
 0x42a   :  { %9053 = vrot.lane.b32.xlu1 %v3935_v48, %s10643_s18  ;;  %9067 = vrot.lane.b32.xlu0 %v5495_v15, %s10643_s18  ;;  %v6119_v29 = vcombine.low %v20660_v2, %v20659_v13  ;;  %v20663_v48 = vld [vmem:[#allocation245_spill] sm:$0xff]  ;;  %v20664_v15 = vld [vmem:[#allocation244_spill] sm:$0xff] }
 0x42b   :  { %v4767_v43 = vcombine.low %v20664_v15, %v20663_v48 }
 0x42c   :  { %v15660_v46 = vpop.permute.xlu1 %8813  ;;  %v15662_v1 = vpop.permute.xlu0 %8827 }
 0x42d   :  { %20655 = vst [vmem:[#allocation62_spill] sm:$0xff] %v15660_v46  ;;  %20656 = vst [vmem:[#allocation60_spill] sm:$0xff] %v15662_v1  ;;  %v20665_v46 = vld [vmem:[#allocation360_spill] sm:$0xff] }
 0x42e   :  { %9057 = vrot.lane.b32.xlu1 %v4559_v38, %s10643_s18  ;;  %9071 = vrot.lane.b32.xlu0 %v6119_v29, %s10643_s18  ;;  %v6327_v1 = vcombine.low %v20666_v5, %v20665_v46  ;;  %v20669_v38 = vld [vmem:[#allocation270_spill] sm:$0xff]  ;;  %v20670_v29 = vld [vmem:[#allocation268_spill] sm:$0xff] }
 0x42f   :  { %v5391_v50 = vcombine.low %v20670_v29, %v20669_v38 }
 0x430   :  { %v15670_v55 = vpop.permute.xlu1 %8817  ;;  %v15672_v52 = vpop.permute.xlu0 %8831 }
 0x431   :  { %20661 = vst [vmem:[#allocation167_spill] sm:$0xff] %v15670_v55  ;;  %20662 = vst [vmem:[#allocation166_spill] sm:$0xff] %v15672_v52  ;;  %v20671_v55 = vld [vmem:[#allocation394_spill] sm:$0xff] }
 0x432   :  { %9061 = vrot.lane.b32.xlu1 %v4767_v43, %s10643_s18  ;;  %9075 = vrot.lane.b32.xlu0 %v6327_v1, %s10643_s18  ;;  %v6951_v52 = vcombine.low %v20672_v10, %v20671_v55  ;;  %v20675_v43 = vld [vmem:[#allocation306_spill] sm:$0xff]  ;;  %v20676_v1 = vld [vmem:[#allocation304_spill] sm:$0xff] }
 0x433   :  { %v5599_v22 = vcombine.low %v20676_v1, %v20675_v43 }
 0x434   :  { %v15680_v63 = vpop.permute.xlu1 %8821  ;;  %v15682_v58 = vpop.permute.xlu0 %8835 }
 0x435   :  { %20667 = vst [vmem:[#allocation89_spill] sm:$0xff] %v15680_v63  ;;  %20668 = vst [vmem:[#allocation88_spill] sm:$0xff] %v15682_v58  ;;  %v20677_v63 = vld [vmem:[#allocation426_spill] sm:$0xff] }
 0x436   :  { %9065 = vrot.lane.b32.xlu1 %v5391_v50, %s10643_s18  ;;  %9079 = vrot.lane.b32.xlu0 %v6951_v52, %s10643_s18  ;;  %v7159_v61 = vcombine.low %v20678_v25, %v20677_v63  ;;  %v20681_v50 = vld [vmem:[#allocation340_spill] sm:$0xff]  ;;  %v20682_v52 = vld [vmem:[#allocation338_spill] sm:$0xff] }
 0x437   :  { %v6223_v8 = vcombine.low %v20682_v52, %v20681_v50 }
 0x438   :  { %v15690_v35 = vpop.permute.xlu1 %8825  ;;  %v15692_v11 = vpop.permute.xlu0 %8903 }
 0x439   :  { %20673 = vst [vmem:[#allocation197_spill] sm:$0xff] %v15690_v35  ;;  %20674 = vst [vmem:[#allocation196_spill] sm:$0xff] %v15692_v11  ;;  %v20683_v35 = vld [vmem:[#allocation453_spill] sm:$0xff] }
 0x43a   :  { %9069 = vrot.lane.b32.xlu1 %v5599_v22, %s10643_s18  ;;  %9083 = vrot.lane.b32.xlu0 %v7159_v61, %s10643_s18  ;;  %v7783_v11 = vcombine.low %v20684_v30, %v20683_v35  ;;  %v20687_v22 = vld [vmem:[#allocation374_spill] sm:$0xff]  ;;  %v20688_v61 = vld [vmem:[#allocation372_spill] sm:$0xff] }
 0x43b   :  { %v6431_v36 = vcombine.low %v20688_v61, %v20687_v22 }
 0x43c   :  { %v15700_v32 = vpop.permute.xlu1 %8829  ;;  %v15702_v62 = vpop.permute.xlu0 %8907 }
 0x43d   :  { %20679 = vst [vmem:[#allocation120_spill] sm:$0xff] %v15700_v32  ;;  %20680 = vst [vmem:[#allocation119_spill] sm:$0xff] %v15702_v62  ;;  %v20689_v32 = vld [vmem:[#allocation484_spill] sm:$0xff] }
 0x43e   :  { %9073 = vrot.lane.b32.xlu1 %v6223_v8, %s10643_s18  ;;  %9087 = vrot.lane.b32.xlu0 %v7783_v11, %s10643_s18  ;;  %v7991_v62 = vcombine.low %v20690_v53, %v20689_v32  ;;  %v20693_v8 = vld [vmem:[#allocation406_spill] sm:$0xff]  ;;  %v20694_v11 = vld [vmem:[#allocation405_spill] sm:$0xff] }
 0x43f   :  { %v7055_v35 = vcombine.low %v20694_v11, %v20693_v8  ;;  %v20699_v32 = vld [vmem:[#allocation202_spill] sm:$0xff] }
 0x440   :  { %v15710_v58 = vpop.permute.xlu1 %8833  ;;  %v15712_v51 = vpop.permute.xlu0 %8911 }
 0x441   :  { %20685 = vst [vmem:[#allocation229_spill] sm:$0xff] %v15710_v58  ;;  %20686 = vst [vmem:[#allocation228_spill] sm:$0xff] %v15712_v51  ;;  %v20695_v58 = vcombine.high %v20600_v41, %v20599_v40  ;;  %v20703_v40 = vld [vmem:[#allocation468_spill] sm:$0xff] }
 0x442   :  { %9077 = vrot.lane.b32.xlu1 %v6431_v36, %s10643_s18  ;;  %9091 = vrot.lane.b32.xlu0 %v7991_v62, %s10643_s18  ;;  %v20698_v62 = vld [vmem:[#allocation441_spill] sm:$0xff] }
 0x444   :  { %v15720_v14 = vpop.permute.xlu1 %8837  ;;  %v15722_v21 = vpop.permute.xlu0 %8915 }
 0x445   :  { %20691 = vst [vmem:[#allocation152_spill] sm:$0xff] %v15720_v14  ;;  %20692 = vst [vmem:[#allocation151_spill] sm:$0xff] %v15722_v21  ;;  %v7263_v14 = vcombine.low %v20699_v32, %v20698_v62  ;;  %v20700_v21 = vcombine.high %v20607_v23, %v20606_v18  ;;  %v20708_v18 = vld [vmem:[#allocation39_spill] sm:$0xff] }
 0x446   :  { %9081 = vrot.lane.b32.xlu1 %v7055_v35, %s10643_s18  ;;  %9159 = vrot.lane.b32.xlu0 %v20695_v58, %s10644_s19  ;;  %v20704_v58 = vld [vmem:[#allocation265_spill] sm:$0xff] }
 0x447   :  { %v7887_v41 = vcombine.low %v20704_v58, %v20703_v40 }
 0x448   :  { %v15731_v51 = vpop.permute.xlu1 %8905  ;;  %v15733_v36 = vpop.permute.xlu0 %8919 }
 0x449   :  { %20696 = vst [vmem:[#allocation254_spill] sm:$0xff] %v15731_v51  ;;  %20697 = vst [vmem:[#allocation252_spill] sm:$0xff] %v15733_v36  ;;  %v20705_v36 = vcombine.high %v20612_v54, %v20611_v26  ;;  %v20713_v26 = vcombine.high %v20622_v24, %v20621_v6  ;;  %v20714_v54 = vcombine.high %v20624_v37, %v20623_v17 }
 0x44a   :  { %9085 = vrot.lane.b32.xlu1 %v7263_v14, %s10643_s18  ;;  %9163 = vrot.lane.b32.xlu0 %v20700_v21, %s10644_s19  ;;  %v20709_v21 = vld [vmem:[#allocation305_spill] sm:$0xff]  ;;  %v20721_v17 = vcombine.high %v20634_v9, %v20633_v34  ;;  %v20722_v37 = vcombine.high %v20636_v0, %v20635_v45  ;;  %v20729_v0 = vcombine.high %v20646_v31, %v20645_v27 }
 0x44b   :  { %v8095_v23 = vcombine.low %v20709_v21, %v20708_v18  ;;  %v20730_v45 = vcombine.high %v20648_v19, %v20647_v57  ;;  %v20737_v57 = vcombine.high %v20658_v39, %v20657_v3  ;;  %v20738_v19 = vcombine.high %v20660_v2, %v20659_v13 }
 0x44c   :  { %v15742_v35 = vpop.permute.xlu1 %8909  ;;  %v15744_v8 = vpop.permute.xlu0 %8923  ;;  %v20745_v2 = vcombine.high %v20670_v29, %v20669_v38  ;;  %v20746_v13 = vcombine.high %v20672_v10, %v20671_v55  ;;  %v20753_v10 = vcombine.high %v20682_v52, %v20681_v50  ;;  %v20754_v55 = vld [vmem:[#allocation453_spill] sm:$0xff] }
 0x44d   :  { %20701 = vst [vmem:[#allocation182_spill] sm:$0xff] %v15742_v35  ;;  %20702 = vst [vmem:[#allocation181_spill] sm:$0xff] %v15744_v8  ;;  %v20710_v8 = vcombine.high %v20617_v42, %v20616_v12  ;;  %v20717_v12 = vcombine.high %v20628_v56, %v20627_v59  ;;  %v20718_v42 = vcombine.high %v20630_v60, %v20629_v47 }
 0x44e   :  { %9089 = vrot.lane.b32.xlu1 %v7887_v41, %s10643_s18  ;;  %9167 = vrot.lane.b32.xlu0 %v20705_v36, %s10644_s19  ;;  %v20725_v47 = vcombine.high %v20640_v7, %v20639_v4  ;;  %v20726_v60 = vcombine.high %v20642_v28, %v20641_v49  ;;  %v20733_v49 = vcombine.high %v20652_v44, %v20651_v16 }
 0x44f   :  { %v20734_v28 = vcombine.high %v20654_v20, %v20653_v33  ;;  %v20741_v33 = vcombine.high %v20664_v15, %v20663_v48  ;;  %v20742_v20 = vcombine.high %v20666_v5, %v20665_v46  ;;  %v20749_v5 = vcombine.high %v20676_v1, %v20675_v43 }
 0x450   :  { %v15753_v14 = vpop.permute.xlu1 %8913  ;;  %v15755_v51 = vpop.permute.xlu0 %8927  ;;  %v20750_v46 = vcombine.high %v20678_v25, %v20677_v63  ;;  %v20758_v63 = vcombine.high %v20688_v61, %v20687_v22  ;;  %v20759_v25 = vld [vmem:[#allocation484_spill] sm:$0xff] }
 0x451   :  { %20706 = vst [vmem:[#allocation287_spill] sm:$0xff] %v15753_v14  ;;  %20707 = vst [vmem:[#allocation286_spill] sm:$0xff] %v15755_v51  ;;  %v20863_v51 = vld [vmem:[#allocation431_spill] sm:$0xff]  ;;  %v20864_v14 = vld [vmem:[#allocation433_spill] sm:$0xff] }
 0x452   :  { %9093 = vrot.lane.b32.xlu1 %v8095_v23, %s10643_s18  ;;  %9171 = vrot.lane.b32.xlu0 %v20710_v8, %s10644_s19  ;;  %v20755_v8 = vcombine.high %v20684_v30, %v20754_v55  ;;  %v20763_v30 = vld [vmem:[#allocation406_spill] sm:$0xff] }
 0x453   :  { %v20792_v55 = vld [vmem:[#allocation138_spill] sm:$0xff] }
 0x454   :  { %v15764_v41 = vpop.permute.xlu1 %8917  ;;  %v15766_v35 = vpop.permute.xlu0 %8931 }
 0x455   :  { %20711 = vst [vmem:[#allocation213_spill] sm:$0xff] %v15764_v41  ;;  %20712 = vst [vmem:[#allocation212_spill] sm:$0xff] %v15766_v35  ;;  %v20856_v35 = vld [vmem:[#allocation403_spill] sm:$0xff] }
 0x456   :  { %9161 = vrot.lane.b32.xlu1 %v20713_v26, %s10644_s19  ;;  %9175 = vrot.lane.b32.xlu0 %v20714_v54, %s10644_s19  ;;  %v20760_v26 = vcombine.high %v20690_v53, %v20759_v25  ;;  %v20764_v54 = vcombine.high %v20694_v11, %v20763_v30  ;;  %v20770_v53 = vcombine.high %v20699_v32, %v20698_v62  ;;  %v20797_v25 = vld [vmem:[#allocation63_spill] sm:$0xff]  ;;  %v20799_v30 = vld [vmem:[#allocation168_spill] sm:$0xff] }
 0x458   :  { %v15776_v36 = vpop.permute.xlu1 %8921  ;;  %v15778_v23 = vpop.permute.xlu0 %8935 }
 0x459   :  { %20715 = vst [vmem:[#allocation323_spill] sm:$0xff] %v15776_v36  ;;  %20716 = vst [vmem:[#allocation321_spill] sm:$0xff] %v15778_v23  ;;  %v20848_v23 = vld [vmem:[#allocation369_spill] sm:$0xff] }
 0x45a   :  { %9165 = vrot.lane.b32.xlu1 %v20717_v12, %s10644_s19  ;;  %9179 = vrot.lane.b32.xlu0 %v20718_v42, %s10644_s19  ;;  %v20765_v12 = vld [vmem:[#allocation21_spill] sm:$0xff]  ;;  %v20766_v42 = vld [vmem:[#allocation19_spill] sm:$0xff] }
 0x45b   :  { %v20767_v22 = vcombine.low %v20765_v12, %v20766_v42 }
 0x45c   :  { %v15788_v6 = vpop.permute.xlu1 %8925  ;;  %v15790_v24 = vpop.permute.xlu0 %8939 }
 0x45d   :  { %20719 = vst [vmem:[#allocation245_spill] sm:$0xff] %v15788_v6  ;;  %20720 = vst [vmem:[#allocation244_spill] sm:$0xff] %v15790_v24  ;;  %v20840_v24 = vld [vmem:[#allocation332_spill] sm:$0xff] }
 0x45e   :  { %9169 = vrot.lane.b32.xlu1 %v20721_v17, %s10644_s19  ;;  %9183 = vrot.lane.b32.xlu0 %v20722_v37, %s10644_s19  ;;  %v20771_v37 = vld [vmem:[#allocation47_spill] sm:$0xff] }
 0x460   :  { %v15800_v59 = vpop.permute.xlu1 %8929  ;;  %v15802_v56 = vpop.permute.xlu0 %8943 }
 0x461   :  { %20723 = vst [vmem:[#allocation360_spill] sm:$0xff] %v15800_v59  ;;  %20724 = vst [vmem:[#allocation358_spill] sm:$0xff] %v15802_v56  ;;  %v20832_v56 = vld [vmem:[#allocation295_spill] sm:$0xff] }
 0x462   :  { %9173 = vrot.lane.b32.xlu1 %v20725_v47, %s10644_s19  ;;  %9187 = vrot.lane.b32.xlu0 %v20726_v60, %s10644_s19  ;;  %v20772_v47 = vld [vmem:[#allocation49_spill] sm:$0xff] }
 0x463   :  { %v20773_v11 = vcombine.low %v20771_v37, %v20772_v47 }
 0x464   :  { %v15812_v34 = vpop.permute.xlu1 %8933  ;;  %v15814_v9 = vpop.permute.xlu0 %8947 }
 0x465   :  { %20727 = vst [vmem:[#allocation270_spill] sm:$0xff] %v15812_v34  ;;  %20728 = vst [vmem:[#allocation268_spill] sm:$0xff] %v15814_v9  ;;  %v20824_v9 = vld [vmem:[#allocation263_spill] sm:$0xff] }
 0x466   :  { %9177 = vrot.lane.b32.xlu1 %v20729_v0, %s10644_s19  ;;  %9191 = vrot.lane.b32.xlu0 %v20730_v45, %s10644_s19  ;;  %v20776_v45 = vcombine.high %v20704_v58, %v20703_v40 }
 0x468   :  { %v15824_v4 = vpop.permute.xlu1 %8937  ;;  %v15826_v7 = vpop.permute.xlu0 %8951 }
 0x469   :  { %20731 = vst [vmem:[#allocation394_spill] sm:$0xff] %v15824_v4  ;;  %20732 = vst [vmem:[#allocation392_spill] sm:$0xff] %v15826_v7  ;;  %v20823_v4 = vld [vmem:[#allocation261_spill] sm:$0xff] }
 0x46a   :  { %9181 = vrot.lane.b32.xlu1 %v20733_v49, %s10644_s19  ;;  %9195 = vrot.lane.b32.xlu0 %v20734_v28, %s10644_s19  ;;  %v20777_v49 = vld [vmem:[#allocation75_spill] sm:$0xff]  ;;  %v20778_v28 = vld [vmem:[#allocation77_spill] sm:$0xff]  ;;  %v20825_v34 = vcombine.low %v20823_v4, %v20824_v9 }
 0x46c   :  { %v15836_v27 = vpop.permute.xlu1 %8941  ;;  %v15838_v31 = vpop.permute.xlu0 %8955 }
 0x46d   :  { %20735 = vst [vmem:[#allocation306_spill] sm:$0xff] %v15836_v27  ;;  %20736 = vst [vmem:[#allocation304_spill] sm:$0xff] %v15838_v31  ;;  %v20821_v27 = vld [vmem:[#allocation154_spill] sm:$0xff] }
 0x46e   :  { %9185 = vrot.lane.b32.xlu1 %v20737_v57, %s10644_s19  ;;  %9199 = vrot.lane.b32.xlu0 %v20738_v19, %s10644_s19  ;;  %v20779_v57 = vcombine.low %v20777_v49, %v20778_v28  ;;  %v20782_v19 = vcombine.high %v20709_v21, %v20708_v18 }
 0x470   :  { %v15848_v16 = vpop.permute.xlu1 %8945  ;;  %v15850_v44 = vpop.permute.xlu0 %8959 }
 0x471   :  { %20739 = vst [vmem:[#allocation426_spill] sm:$0xff] %v15848_v16  ;;  %20740 = vst [vmem:[#allocation425_spill] sm:$0xff] %v15850_v44  ;;  %v20816_v44 = vld [vmem:[#allocation231_spill] sm:$0xff] }
 0x472   :  { %9189 = vrot.lane.b32.xlu1 %v20741_v33, %s10644_s19  ;;  %9203 = vrot.lane.b32.xlu0 %v20742_v20, %s10644_s19  ;;  %v20783_v33 = vld [vmem:[#allocation105_spill] sm:$0xff]  ;;  %v20784_v20 = vld [vmem:[#allocation106_spill] sm:$0xff] }
 0x474   :  { %v15860_v3 = vpop.permute.xlu1 %8949  ;;  %v15862_v39 = vpop.permute.xlu0 %8963 }
 0x475   :  { %20743 = vst [vmem:[#allocation340_spill] sm:$0xff] %v15860_v3  ;;  %20744 = vst [vmem:[#allocation338_spill] sm:$0xff] %v15862_v39  ;;  %v20815_v3 = vld [vmem:[#allocation230_spill] sm:$0xff] }
 0x476   :  { %9193 = vrot.lane.b32.xlu1 %v20745_v2, %s10644_s19  ;;  %9207 = vrot.lane.b32.xlu0 %v20746_v13, %s10644_s19  ;;  %v20785_v2 = vcombine.low %v20783_v33, %v20784_v20  ;;  %v20788_v13 = vld [vmem:[#allocation33_spill] sm:$0xff]  ;;  %v20817_v16 = vcombine.low %v20815_v3, %v20816_v44  ;;  %v20885_v39 = vld [vmem:[#allocation414_spill] sm:$0xff] }
 0x478   :  { %v15872_v48 = vpop.permute.xlu1 %8953  ;;  %v15874_v15 = vpop.permute.xlu0 %9031 }
 0x479   :  { %20747 = vst [vmem:[#allocation451_spill] sm:$0xff] %v15872_v48  ;;  %20748 = vst [vmem:[#allocation374_spill] sm:$0xff] %v15874_v15 }
 0x47a   :  { %9197 = vrot.lane.b32.xlu1 %v20749_v5, %s10644_s19  ;;  %9211 = vrot.lane.b32.xlu0 %v20750_v46, %s10644_s19  ;;  %v20789_v5 = vld [vmem:[#allocation35_spill] sm:$0xff] }
 0x47b   :  { %v20790_v46 = vcombine.low %v20788_v13, %v20789_v5 }
 0x47c   :  { %v15884_v38 = vpop.permute.xlu1 %8957  ;;  %v15886_v29 = vpop.permute.xlu0 %9035 }
 0x47d   :  { %20751 = vst [vmem:[#allocation372_spill] sm:$0xff] %v15884_v38  ;;  %20752 = vst [vmem:[#allocation478_spill] sm:$0xff] %v15886_v29  ;;  %v20813_v38 = vld [vmem:[#allocation122_spill] sm:$0xff]  ;;  %v20877_v29 = vld [vmem:[#allocation384_spill] sm:$0xff] }
 0x47e   :  { %9201 = vrot.lane.b32.xlu1 %v20753_v10, %s10644_s19  ;;  %9215 = vrot.lane.b32.xlu0 %v20755_v8, %s10644_s19  ;;  %v20791_v10 = vld [vmem:[#allocation137_spill] sm:$0xff] }
 0x47f   :  { %v20793_v8 = vcombine.low %v20791_v10, %v20792_v55 }
 0x480   :  { %v15896_v43 = vpop.permute.xlu1 %8961  ;;  %v15898_v1 = vpop.permute.xlu0 %9039 }
 0x481   :  { %20756 = vst [vmem:[#allocation405_spill] sm:$0xff] %v15896_v43  ;;  %20757 = vst [vmem:[#allocation441_spill] sm:$0xff] %v15898_v1 }
 0x482   :  { %9205 = vrot.lane.b32.xlu1 %v20758_v63, %s10644_s19  ;;  %9219 = vrot.lane.b32.xlu0 %v20760_v26, %s10644_s19  ;;  %v20796_v63 = vld [vmem:[#allocation61_spill] sm:$0xff] }
 0x483   :  { %v20798_v26 = vcombine.low %v20796_v63, %v20797_v25 }
 0x484   :  { %v15908_v50 = vpop.permute.xlu1 %8965  ;;  %v15910_v52 = vpop.permute.xlu0 %9043 }
 0x485   :  { %20761 = vst [vmem:[#allocation202_spill] sm:$0xff] %v15908_v50  ;;  %20762 = vst [vmem:[#allocation468_spill] sm:$0xff] %v15910_v52  ;;  %v20872_v52 = vld [vmem:[#allocation460_spill] sm:$0xff] }
 0x486   :  { %9209 = vrot.lane.b32.xlu1 %v20764_v54, %s10644_s19  ;;  %9287 = vrot.lane.b32.xlu0 %v20767_v22, %s10645_s20  ;;  %v20800_v54 = vld [vmem:[#allocation169_spill] sm:$0xff] }
 0x487   :  { %v20801_v22 = vcombine.low %v20799_v30, %v20800_v54 }
 0x488   :  { %v15920_v61 = vpop.permute.xlu1 %9033  ;;  %v15922_v17 = vpop.permute.xlu0 %9047 }
 0x489   :  { %20768 = vst [vmem:[#allocation265_spill] sm:$0xff] %v15920_v61  ;;  %20769 = vst [vmem:[#allocation39_spill] sm:$0xff] %v15922_v17  ;;  %v20869_v17 = vld [vmem:[#allocation350_spill] sm:$0xff] }
 0x48a   :  { %9213 = vrot.lane.b32.xlu1 %v20770_v53, %s10644_s19  ;;  %9291 = vrot.lane.b32.xlu0 %v20773_v11, %s10645_s20  ;;  %v20871_v61 = vld [vmem:[#allocation458_spill] sm:$0xff] }
 0x48b   :  { %v20873_v50 = vcombine.low %v20871_v61, %v20872_v52 }
 0x48c   :  { %v15932_v60 = vpop.permute.xlu1 %9037  ;;  %v15934_v0 = vpop.permute.xlu0 %9051 }
 0x48d   :  { %20774 = vst [vmem:[#allocation305_spill] sm:$0xff] %v15932_v60  ;;  %20775 = vst [vmem:[#allocation453_spill] sm:$0xff] %v15934_v0  ;;  %v20865_v0 = vcombine.low %v20863_v51, %v20864_v14 }
 0x48e   :  { %9217 = vrot.lane.b32.xlu1 %v20776_v45, %s10644_s19  ;;  %9295 = vrot.lane.b32.xlu0 %v20779_v57, %s10645_s20  ;;  %v20804_v45 = vld [vmem:[#allocation90_spill] sm:$0xff]  ;;  %v20805_v57 = vld [vmem:[#allocation91_spill] sm:$0xff] }
 0x490   :  { %v15944_v32 = vpop.permute.xlu1 %9041  ;;  %v15946_v62 = vpop.permute.xlu0 %9055 }
 0x491   :  { %20780 = vst [vmem:[#allocation484_spill] sm:$0xff] %v15944_v32  ;;  %20781 = vst [vmem:[#allocation406_spill] sm:$0xff] %v15946_v62  ;;  %v20861_v32 = vld [vmem:[#allocation315_spill] sm:$0xff] }
 0x492   :  { %9221 = vrot.lane.b32.xlu1 %v20782_v19, %s10644_s19  ;;  %9299 = vrot.lane.b32.xlu0 %v20785_v2, %s10645_s20  ;;  %v20806_v19 = vcombine.low %v20804_v45, %v20805_v57  ;;  %v20807_v2 = vld [vmem:[#allocation198_spill] sm:$0xff] }
 0x494   :  { %v15956_v40 = vpop.permute.xlu1 %9045  ;;  %v15958_v58 = vpop.permute.xlu0 %9059 }
 0x495   :  { %20786 = vst [vmem:[#allocation21_spill] sm:$0xff] %v15956_v40  ;;  %20787 = vst [vmem:[#allocation19_spill] sm:$0xff] %v15958_v58  ;;  %v20853_v40 = vld [vmem:[#allocation279_spill] sm:$0xff] }
 0x496   :  { %9289 = vrot.lane.b32.xlu1 %v20790_v46, %s10645_s20  ;;  %9303 = vrot.lane.b32.xlu0 %v20793_v8, %s10645_s20  ;;  %v20808_v46 = vld [vmem:[#allocation199_spill] sm:$0xff] }
 0x497   :  { %v20809_v8 = vcombine.low %v20807_v2, %v20808_v46 }
 0x498   :  { %v15968_v18 = vpop.permute.xlu1 %9049  ;;  %v15970_v21 = vpop.permute.xlu0 %9063 }
 0x499   :  { %20794 = vst [vmem:[#allocation47_spill] sm:$0xff] %v15968_v18  ;;  %20795 = vst [vmem:[#allocation49_spill] sm:$0xff] %v15970_v21  ;;  %v20845_v18 = vld [vmem:[#allocation247_spill] sm:$0xff] }
 0x49a   :  { %9293 = vrot.lane.b32.xlu1 %v20798_v26, %s10645_s20  ;;  %9307 = vrot.lane.b32.xlu0 %v20801_v22, %s10645_s20  ;;  %v20812_v22 = vld [vmem:[#allocation121_spill] sm:$0xff] }
 0x49b   :  { %v20814_v48 = vcombine.low %v20812_v22, %v20813_v38 }
 0x49c   :  { %v15980_v53 = vpop.permute.xlu1 %9053  ;;  %v15982_v11 = vpop.permute.xlu0 %9067 }
 0x49d   :  { %20802 = vst [vmem:[#allocation75_spill] sm:$0xff] %v15980_v53  ;;  %20803 = vst [vmem:[#allocation77_spill] sm:$0xff] %v15982_v11  ;;  %v20837_v53 = vld [vmem:[#allocation215_spill] sm:$0xff] }
 0x49e   :  { %9297 = vrot.lane.b32.xlu1 %v20806_v19, %s10645_s20  ;;  %9311 = vrot.lane.b32.xlu0 %v20809_v8, %s10645_s20  ;;  %v20820_v8 = vld [vmem:[#allocation153_spill] sm:$0xff] }
 0x49f   :  { %v20822_v7 = vcombine.low %v20820_v8, %v20821_v27 }
 0x4a0   :  { %v15992_v26 = vpop.permute.xlu1 %9057  ;;  %v15994_v43 = vpop.permute.xlu0 %9071 }
 0x4a1   :  { %20810 = vst [vmem:[#allocation105_spill] sm:$0xff] %v15992_v26  ;;  %20811 = vst [vmem:[#allocation106_spill] sm:$0xff] %v15994_v43  ;;  %v20829_v26 = vld [vmem:[#allocation184_spill] sm:$0xff] }
 0x4a2   :  { %9301 = vrot.lane.b32.xlu1 %v20814_v48, %s10645_s20  ;;  %9315 = vrot.lane.b32.xlu0 %v20817_v16, %s10645_s20  ;;  %v20828_v16 = vld [vmem:[#allocation183_spill] sm:$0xff] }
 0x4a4   :  { %v16004_v19 = vpop.permute.xlu1 %9061  ;;  %v16006_v31 = vpop.permute.xlu0 %9075 }
 0x4a5   :  { %20818 = vst [vmem:[#allocation33_spill] sm:$0xff] %v16004_v19  ;;  %20819 = vst [vmem:[#allocation35_spill] sm:$0xff] %v16006_v31  ;;  %v20830_v19 = vcombine.low %v20828_v16, %v20829_v26  ;;  %v20831_v31 = vld [vmem:[#allocation293_spill] sm:$0xff] }
 0x4a6   :  { %9305 = vrot.lane.b32.xlu1 %v20822_v7, %s10645_s20  ;;  %9319 = vrot.lane.b32.xlu0 %v20825_v34, %s10645_s20  ;;  %v20833_v59 = vcombine.low %v20831_v31, %v20832_v56  ;;  %v20836_v34 = vld [vmem:[#allocation214_spill] sm:$0xff] }
 0x4a8   :  { %v16016_v48 = vpop.permute.xlu1 %9065  ;;  %v16018_v43 = vpop.permute.xlu0 %9079 }
 0x4a9   :  { %20826 = vst [vmem:[#allocation137_spill] sm:$0xff] %v16016_v48  ;;  %20827 = vst [vmem:[#allocation138_spill] sm:$0xff] %v16018_v43  ;;  %v20838_v48 = vcombine.low %v20836_v34, %v20837_v53  ;;  %v20839_v43 = vld [vmem:[#allocation330_spill] sm:$0xff] }
 0x4aa   :  { %9309 = vrot.lane.b32.xlu1 %v20830_v19, %s10645_s20  ;;  %9323 = vrot.lane.b32.xlu0 %v20833_v59, %s10645_s20  ;;  %v20841_v6 = vcombine.low %v20839_v43, %v20840_v24  ;;  %v20844_v59 = vld [vmem:[#allocation246_spill] sm:$0xff] }
 0x4ac   :  { %v16028_v7 = vpop.permute.xlu1 %9069  ;;  %v16030_v11 = vpop.permute.xlu0 %9083 }
 0x4ad   :  { %20834 = vst [vmem:[#allocation61_spill] sm:$0xff] %v16028_v7  ;;  %20835 = vst [vmem:[#allocation63_spill] sm:$0xff] %v16030_v11  ;;  %v20846_v7 = vcombine.low %v20844_v59, %v20845_v18  ;;  %v20847_v11 = vld [vmem:[#allocation367_spill] sm:$0xff] }
 0x4ae   :  { %9313 = vrot.lane.b32.xlu1 %v20838_v48, %s10645_s20  ;;  %9327 = vrot.lane.b32.xlu0 %v20841_v6, %s10645_s20  ;;  %v20849_v36 = vcombine.low %v20847_v11, %v20848_v23  ;;  %v20852_v6 = vld [vmem:[#allocation278_spill] sm:$0xff] }
 0x4b0   :  { %v16040_v19 = vpop.permute.xlu1 %9073  ;;  %v16042_v21 = vpop.permute.xlu0 %9087 }
 0x4b1   :  { %20842 = vst [vmem:[#allocation168_spill] sm:$0xff] %v16040_v19  ;;  %20843 = vst [vmem:[#allocation169_spill] sm:$0xff] %v16042_v21  ;;  %v20854_v19 = vcombine.low %v20852_v6, %v20853_v40  ;;  %v20855_v21 = vld [vmem:[#allocation401_spill] sm:$0xff] }
 0x4b2   :  { %9317 = vrot.lane.b32.xlu1 %v20846_v7, %s10645_s20  ;;  %9331 = vrot.lane.b32.xlu0 %v20849_v36, %s10645_s20  ;;  %v20857_v41 = vcombine.low %v20855_v21, %v20856_v35  ;;  %v20860_v36 = vld [vmem:[#allocation314_spill] sm:$0xff] }
 0x4b4   :  { %v16052_v48 = vpop.permute.xlu1 %9077  ;;  %v16054_v58 = vpop.permute.xlu0 %9091 }
 0x4b5   :  { %20850 = vst [vmem:[#allocation90_spill] sm:$0xff] %v16052_v48  ;;  %20851 = vst [vmem:[#allocation91_spill] sm:$0xff] %v16054_v58  ;;  %v20862_v48 = vcombine.low %v20860_v36, %v20861_v32 }
 0x4b6   :  { %9321 = vrot.lane.b32.xlu1 %v20854_v19, %s10645_s20  ;;  %9335 = vrot.lane.b32.xlu0 %v20857_v41, %s10645_s20  ;;  %v20868_v41 = vld [vmem:[#allocation349_spill] sm:$0xff] }
 0x4b8   :  { %v16064_v7 = vpop.permute.xlu1 %9081  ;;  %v16066_v62 = vpop.permute.xlu0 %9159 }
 0x4b9   :  { %20858 = vst [vmem:[#allocation198_spill] sm:$0xff] %v16064_v7  ;;  %20859 = vst [vmem:[#allocation199_spill] sm:$0xff] %v16066_v62  ;;  %v20870_v7 = vcombine.low %v20868_v41, %v20869_v17  ;;  %v20880_v62 = vld [vmem:[#allocation489_spill] sm:$0xff] }
 0x4ba   :  { %9325 = vrot.lane.b32.xlu1 %v20862_v48, %s10645_s20  ;;  %9339 = vrot.lane.b32.xlu0 %v20865_v0, %s10645_s20  ;;  %v20876_v0 = vld [vmem:[#allocation383_spill] sm:$0xff] }
 0x4bc   :  { %v16076_v19 = vpop.permute.xlu1 %9085  ;;  %v16078_v60 = vpop.permute.xlu0 %9163 }
 0x4bd   :  { %20866 = vst [vmem:[#allocation121_spill] sm:$0xff] %v16076_v19  ;;  %20867 = vst [vmem:[#allocation122_spill] sm:$0xff] %v16078_v60  ;;  %v20878_v19 = vcombine.low %v20876_v0, %v20877_v29  ;;  %v20879_v60 = vld [vmem:[#allocation482_spill] sm:$0xff] }
 0x4be   :  { %9329 = vrot.lane.b32.xlu1 %v20870_v7, %s10645_s20  ;;  %9343 = vrot.lane.b32.xlu0 %v20873_v50, %s10645_s20  ;;  %v20881_v15 = vcombine.low %v20879_v60, %v20880_v62  ;;  %v20884_v50 = vld [vmem:[#allocation413_spill] sm:$0xff] }
 0x4c0   :  { %v16088_v48 = vpop.permute.xlu1 %9089  ;;  %v16090_v1 = vpop.permute.xlu0 %9167 }
 0x4c1   :  { %20874 = vst [vmem:[#allocation230_spill] sm:$0xff] %v16088_v48  ;;  %20875 = vst [vmem:[#allocation231_spill] sm:$0xff] %v16090_v1  ;;  %v20886_v48 = vcombine.low %v20884_v50, %v20885_v39  ;;  %v20887_v1 = vcombine.high %v20765_v12, %v20766_v42  ;;  %v20897_v12 = vld [vmem:[#allocation475_spill] sm:$0xff] }
 0x4c2   :  { %9333 = vrot.lane.b32.xlu1 %v20878_v19, %s10645_s20  ;;  %9347 = vrot.lane.b32.xlu0 %v20881_v15, %s10645_s20  ;;  %v20890_v15 = vld [vmem:[#allocation445_spill] sm:$0xff] }
 0x4c4   :  { %v16100_v7 = vpop.permute.xlu1 %9093  ;;  %v16102_v58 = vpop.permute.xlu0 %9171 }
 0x4c5   :  { %20882 = vst [vmem:[#allocation153_spill] sm:$0xff] %v16100_v7  ;;  %20883 = vst [vmem:[#allocation154_spill] sm:$0xff] %v16102_v58  ;;  %v20891_v7 = vld [vmem:[#allocation446_spill] sm:$0xff]  ;;  %v20893_v58 = vcombine.high %v20771_v37, %v20772_v47  ;;  %v20902_v37 = vld [vmem:[#allocation11_spill] sm:$0xff] }
 0x4c6   :  { %9337 = vrot.lane.b32.xlu1 %v20886_v48, %s10645_s20  ;;  %9415 = vrot.lane.b32.xlu0 %v20887_v1, %s10646_s21  ;;  %v20892_v62 = vcombine.low %v20890_v15, %v20891_v7  ;;  %v20896_v1 = vld [vmem:[#allocation474_spill] sm:$0xff]  ;;  %v20903_v47 = vld [vmem:[#allocation41_spill] sm:$0xff] }
 0x4c7   :  { %v20898_v42 = vcombine.low %v20896_v1, %v20897_v12 }
 0x4c8   :  { %v16112_v19 = vpop.permute.xlu1 %9161  ;;  %v16114_v29 = vpop.permute.xlu0 %9175 }
 0x4c9   :  { %20888 = vst [vmem:[#allocation261_spill] sm:$0xff] %v16112_v19  ;;  %20889 = vst [vmem:[#allocation263_spill] sm:$0xff] %v16114_v29  ;;  %v20899_v29 = vcombine.high %v20777_v49, %v20778_v28  ;;  %v20909_v49 = vcombine.high %v20791_v10, %v20792_v55  ;;  %v20917_v10 = vcombine.high %v20807_v2, %v20808_v46 }
 0x4ca   :  { %9341 = vrot.lane.b32.xlu1 %v20892_v62, %s10645_s20  ;;  %9419 = vrot.lane.b32.xlu0 %v20893_v58, %s10646_s21  ;;  %v20904_v58 = vcombine.low %v20902_v37, %v20903_v47  ;;  %v20925_v2 = vcombine.high %v20823_v4, %v20824_v9  ;;  %v20932_v9 = vcombine.high %v20836_v34, %v20837_v53 }
 0x4cb   :  { %v20933_v4 = vcombine.high %v20839_v43, %v20840_v24  ;;  %v20940_v24 = vcombine.high %v20852_v6, %v20853_v40  ;;  %v20941_v43 = vcombine.high %v20855_v21, %v20856_v35  ;;  %v20948_v35 = vcombine.high %v20868_v41, %v20869_v17 }
 0x4cc   :  { %v16124_v48 = vpop.permute.xlu1 %9165  ;;  %v16126_v39 = vpop.permute.xlu0 %9179  ;;  %v20949_v21 = vcombine.high %v20871_v61, %v20872_v52  ;;  %v20958_v52 = vld [vmem:[#allocation23_spill] sm:$0xff]  ;;  %v20959_v61 = vld [vmem:[#allocation22_spill] sm:$0xff] }
 0x4cd   :  { %20894 = vst [vmem:[#allocation183_spill] sm:$0xff] %v16124_v48  ;;  %20895 = vst [vmem:[#allocation184_spill] sm:$0xff] %v16126_v39  ;;  %v20905_v39 = vcombine.high %v20783_v33, %v20784_v20  ;;  %v20913_v33 = vcombine.high %v20799_v30, %v20800_v54  ;;  %v20921_v30 = vcombine.high %v20815_v3, %v20816_v44 }
 0x4ce   :  { %9345 = vrot.lane.b32.xlu1 %v20898_v42, %s10645_s20  ;;  %9423 = vrot.lane.b32.xlu0 %v20899_v29, %s10646_s21  ;;  %v20908_v29 = vcombine.high %v20788_v13, %v20789_v5  ;;  %v20916_v5 = vcombine.high %v20804_v45, %v20805_v57  ;;  %v20924_v57 = vcombine.high %v20820_v8, %v20821_v27 }
 0x4cf   :  { %v20928_v44 = vcombine.high %v20828_v16, %v20829_v26  ;;  %v20929_v3 = vcombine.high %v20831_v31, %v20832_v56  ;;  %v20936_v56 = vcombine.high %v20844_v59, %v20845_v18  ;;  %v20937_v31 = vcombine.high %v20847_v11, %v20848_v23 }
 0x4d0   :  { %v16136_v62 = vpop.permute.xlu1 %9169  ;;  %v16138_v19 = vpop.permute.xlu0 %9183  ;;  %v20944_v23 = vcombine.high %v20860_v36, %v20861_v32  ;;  %v20945_v11 = vcombine.high %v20863_v51, %v20864_v14  ;;  %v20952_v51 = vld [vmem:[#allocation384_spill] sm:$0xff]  ;;  %v20954_v36 = vld [vmem:[#allocation489_spill] sm:$0xff] }
 0x4d1   :  { %20900 = vst [vmem:[#allocation293_spill] sm:$0xff] %v16136_v62  ;;  %20901 = vst [vmem:[#allocation295_spill] sm:$0xff] %v16138_v19  ;;  %v20953_v14 = vcombine.high %v20876_v0, %v20952_v51  ;;  %v21036_v62 = vld [vmem:[#allocation437_spill] sm:$0xff] }
 0x4d2   :  { %9349 = vrot.lane.b32.xlu1 %v20904_v58, %s10645_s20  ;;  %9427 = vrot.lane.b32.xlu0 %v20905_v39, %s10646_s21  ;;  %v20912_v39 = vcombine.high %v20796_v63, %v20797_v25  ;;  %v20920_v25 = vcombine.high %v20812_v22, %v20813_v38 }
 0x4d4   :  { %v16148_v42 = vpop.permute.xlu1 %9173  ;;  %v16150_v48 = vpop.permute.xlu0 %9187 }
 0x4d5   :  { %20906 = vst [vmem:[#allocation214_spill] sm:$0xff] %v16148_v42  ;;  %20907 = vst [vmem:[#allocation215_spill] sm:$0xff] %v16150_v48  ;;  %v21030_v42 = vld [vmem:[#allocation220_spill] sm:$0xff] }
 0x4d6   :  { %9417 = vrot.lane.b32.xlu1 %v20908_v29, %s10646_s21  ;;  %9431 = vrot.lane.b32.xlu0 %v20909_v49, %s10646_s21  ;;  %v20955_v29 = vcombine.high %v20879_v60, %v20954_v36  ;;  %v1963_v49 = vcombine.low %v20959_v61, %v20958_v52  ;;  %v20964_v60 = vld [vmem:[#allocation51_spill] sm:$0xff]  ;;  %v20986_v36 = vld [vmem:[#allocation64_spill] sm:$0xff] }
 0x4d8   :  { %v16160_v28 = vpop.permute.xlu1 %9177  ;;  %v16162_v58 = vpop.permute.xlu0 %9191 }
 0x4d9   :  { %20910 = vst [vmem:[#allocation330_spill] sm:$0xff] %v16160_v28  ;;  %20911 = vst [vmem:[#allocation332_spill] sm:$0xff] %v16162_v58  ;;  %v21024_v28 = vld [vmem:[#allocation370_spill] sm:$0xff] }
 0x4da   :  { %9421 = vrot.lane.b32.xlu1 %v20912_v39, %s10646_s21  ;;  %9435 = vrot.lane.b32.xlu0 %v20913_v33, %s10646_s21  ;;  %v20960_v39 = vld [vmem:[#allocation414_spill] sm:$0xff] }
 0x4db   :  { %v20961_v33 = vcombine.high %v20884_v50, %v20960_v39  ;;  %v20988_v39 = vld [vmem:[#allocation170_spill] sm:$0xff] }
 0x4dc   :  { %v16172_v20 = vpop.permute.xlu1 %9181  ;;  %v16174_v13 = vpop.permute.xlu0 %9195 }
 0x4dd   :  { %20914 = vst [vmem:[#allocation246_spill] sm:$0xff] %v16172_v20  ;;  %20915 = vst [vmem:[#allocation247_spill] sm:$0xff] %v16174_v13  ;;  %v21018_v20 = vld [vmem:[#allocation158_spill] sm:$0xff] }
 0x4de   :  { %9425 = vrot.lane.b32.xlu1 %v20916_v5, %s10646_s21  ;;  %9439 = vrot.lane.b32.xlu0 %v20917_v10, %s10646_s21  ;;  %v20965_v10 = vld [vmem:[#allocation50_spill] sm:$0xff] }
 0x4e0   :  { %v16184_v55 = vpop.permute.xlu1 %9185  ;;  %v16186_v63 = vpop.permute.xlu0 %9199 }
 0x4e1   :  { %20918 = vst [vmem:[#allocation367_spill] sm:$0xff] %v16184_v55  ;;  %20919 = vst [vmem:[#allocation369_spill] sm:$0xff] %v16186_v63  ;;  %v21012_v55 = vld [vmem:[#allocation297_spill] sm:$0xff] }
 0x4e2   :  { %9429 = vrot.lane.b32.xlu1 %v20920_v25, %s10646_s21  ;;  %9443 = vrot.lane.b32.xlu0 %v20921_v30, %s10646_s21  ;;  %v2171_v25 = vcombine.low %v20965_v10, %v20964_v60  ;;  %v20966_v30 = vcombine.high %v20890_v15, %v20891_v7  ;;  %v20974_v15 = vld [vmem:[#allocation108_spill] sm:$0xff] }
 0x4e4   :  { %v16196_v54 = vpop.permute.xlu1 %9189  ;;  %v16198_v45 = vpop.permute.xlu0 %9203 }
 0x4e5   :  { %20922 = vst [vmem:[#allocation278_spill] sm:$0xff] %v16196_v54  ;;  %20923 = vst [vmem:[#allocation279_spill] sm:$0xff] %v16198_v45  ;;  %v21006_v45 = vld [vmem:[#allocation109_spill] sm:$0xff] }
 0x4e6   :  { %9433 = vrot.lane.b32.xlu1 %v20924_v57, %s10646_s21  ;;  %9447 = vrot.lane.b32.xlu0 %v20925_v2, %s10646_s21  ;;  %v20969_v2 = vld [vmem:[#allocation79_spill] sm:$0xff] }
 0x4e8   :  { %v16208_v38 = vpop.permute.xlu1 %9193  ;;  %v16210_v46 = vpop.permute.xlu0 %9207 }
 0x4e9   :  { %20926 = vst [vmem:[#allocation401_spill] sm:$0xff] %v16208_v38  ;;  %20927 = vst [vmem:[#allocation403_spill] sm:$0xff] %v16210_v46  ;;  %v21005_v38 = vld [vmem:[#allocation264_spill] sm:$0xff] }
 0x4ea   :  { %9437 = vrot.lane.b32.xlu1 %v20928_v44, %s10646_s21  ;;  %9451 = vrot.lane.b32.xlu0 %v20929_v3, %s10646_s21  ;;  %v20970_v44 = vld [vmem:[#allocation78_spill] sm:$0xff]  ;;  %v5291_v54 = vcombine.low %v21006_v45, %v21005_v38 }
 0x4eb   :  { %v2795_v3 = vcombine.low %v20970_v44, %v20969_v2 }
 0x4ec   :  { %v16220_v27 = vpop.permute.xlu1 %9197  ;;  %v16222_v22 = vpop.permute.xlu0 %9211 }
 0x4ed   :  { %20930 = vst [vmem:[#allocation314_spill] sm:$0xff] %v16220_v27  ;;  %20931 = vst [vmem:[#allocation315_spill] sm:$0xff] %v16222_v22 }
 0x4ee   :  { %9441 = vrot.lane.b32.xlu1 %v20932_v9, %s10646_s21  ;;  %9455 = vrot.lane.b32.xlu0 %v20933_v4, %s10646_s21  ;;  %v20971_v9 = vcombine.high %v20896_v1, %v20897_v12  ;;  %v20979_v12 = vld [vmem:[#allocation37_spill] sm:$0xff] }
 0x4f0   :  { %v16232_v26 = vpop.permute.xlu1 %9201  ;;  %v16234_v8 = vpop.permute.xlu0 %9215 }
 0x4f1   :  { %20934 = vst [vmem:[#allocation431_spill] sm:$0xff] %v16232_v26  ;;  %20935 = vst [vmem:[#allocation433_spill] sm:$0xff] %v16234_v8  ;;  %v21000_v8 = vld [vmem:[#allocation232_spill] sm:$0xff] }
 0x4f2   :  { %9445 = vrot.lane.b32.xlu1 %v20936_v56, %s10646_s21  ;;  %9459 = vrot.lane.b32.xlu0 %v20937_v31, %s10646_s21  ;;  %v20975_v56 = vld [vmem:[#allocation107_spill] sm:$0xff] }
 0x4f3   :  { %v3003_v31 = vcombine.low %v20975_v56, %v20974_v15 }
 0x4f4   :  { %v16244_v53 = vpop.permute.xlu1 %9205  ;;  %v16246_v16 = vpop.permute.xlu0 %9219 }
 0x4f5   :  { %20938 = vst [vmem:[#allocation349_spill] sm:$0xff] %v16244_v53  ;;  %20939 = vst [vmem:[#allocation350_spill] sm:$0xff] %v16246_v16  ;;  %v20999_v53 = vld [vmem:[#allocation233_spill] sm:$0xff] }
 0x4f6   :  { %9449 = vrot.lane.b32.xlu1 %v20940_v24, %s10646_s21  ;;  %9463 = vrot.lane.b32.xlu0 %v20941_v43, %s10646_s21  ;;  %v20976_v24 = vcombine.high %v20902_v37, %v20903_v47  ;;  %v20985_v47 = vld [vmem:[#allocation65_spill] sm:$0xff]  ;;  %v4667_v26 = vcombine.low %v21000_v8, %v20999_v53 }
 0x4f8   :  { %v16256_v18 = vpop.permute.xlu1 %9209  ;;  %v16258_v34 = vpop.permute.xlu0 %9287 }
 0x4f9   :  { %20942 = vst [vmem:[#allocation458_spill] sm:$0xff] %v16256_v18  ;;  %20943 = vst [vmem:[#allocation460_spill] sm:$0xff] %v16258_v34  ;;  %v21048_v34 = vld [vmem:[#allocation493_spill] sm:$0xff] }
 0x4fa   :  { %9453 = vrot.lane.b32.xlu1 %v20944_v23, %s10646_s21  ;;  %9467 = vrot.lane.b32.xlu0 %v20945_v11, %s10646_s21  ;;  %v20980_v23 = vld [vmem:[#allocation36_spill] sm:$0xff] }
 0x4fb   :  { %v2067_v11 = vcombine.low %v20980_v23, %v20979_v12 }
 0x4fc   :  { %v16268_v40 = vpop.permute.xlu1 %9213  ;;  %v16270_v59 = vpop.permute.xlu0 %9291 }
 0x4fd   :  { %20946 = vst [vmem:[#allocation383_spill] sm:$0xff] %v16268_v40  ;;  %20947 = vst [vmem:[#allocation482_spill] sm:$0xff] %v16270_v59 }
 0x4fe   :  { %9457 = vrot.lane.b32.xlu1 %v20948_v35, %s10646_s21  ;;  %9471 = vrot.lane.b32.xlu0 %v20949_v21, %s10646_s21  ;;  %v20981_v35 = vld [vmem:[#allocation140_spill] sm:$0xff]  ;;  %v20982_v21 = vld [vmem:[#allocation139_spill] sm:$0xff] }
 0x4ff   :  { %v3627_v51 = vcombine.low %v20982_v21, %v20981_v35 }
 0x500   :  { %v16280_v32 = vpop.permute.xlu1 %9217  ;;  %v16282_v6 = vpop.permute.xlu0 %9295 }
 0x501   :  { %20950 = vst [vmem:[#allocation413_spill] sm:$0xff] %v16280_v32  ;;  %20951 = vst [vmem:[#allocation445_spill] sm:$0xff] %v16282_v6 }
 0x502   :  { %9461 = vrot.lane.b32.xlu1 %v20953_v14, %s10646_s21  ;;  %9475 = vrot.lane.b32.xlu0 %v20955_v29, %s10646_s21  ;;  %v2275_v29 = vcombine.low %v20986_v36, %v20985_v47 }
 0x504   :  { %v16292_v17 = vpop.permute.xlu1 %9221  ;;  %v16294_v41 = vpop.permute.xlu0 %9299 }
 0x505   :  { %20956 = vst [vmem:[#allocation446_spill] sm:$0xff] %v16292_v17  ;;  %20957 = vst [vmem:[#allocation474_spill] sm:$0xff] %v16294_v41  ;;  %v21042_v41 = vld [vmem:[#allocation463_spill] sm:$0xff] }
 0x506   :  { %9465 = vrot.lane.b32.xlu1 %v20961_v33, %s10646_s21  ;;  %9543 = vrot.lane.b32.xlu0 %v1963_v49, %s10647_s22  ;;  %v20987_v49 = vld [vmem:[#allocation171_spill] sm:$0xff] }
 0x507   :  { %v3835_v33 = vcombine.low %v20988_v39, %v20987_v49 }
 0x508   :  { %v16303_v0 = vpop.permute.xlu1 %9289  ;;  %v16305_v5 = vpop.permute.xlu0 %9303 }
 0x509   :  { %20962 = vst [vmem:[#allocation475_spill] sm:$0xff] %v16303_v0  ;;  %20963 = vst [vmem:[#allocation11_spill] sm:$0xff] %v16305_v5 }
 0x50a   :  { %9469 = vrot.lane.b32.xlu1 %v20966_v30, %s10646_s21  ;;  %9547 = vrot.lane.b32.xlu0 %v2171_v25, %s10647_s22 }
 0x50c   :  { %v16314_v57 = vpop.permute.xlu1 %9293  ;;  %v16316_v50 = vpop.permute.xlu0 %9307 }
 0x50d   :  { %20967 = vst [vmem:[#allocation41_spill] sm:$0xff] %v16314_v57  ;;  %20968 = vst [vmem:[#allocation384_spill] sm:$0xff] %v16316_v50 }
 0x50e   :  { %9473 = vrot.lane.b32.xlu1 %v20971_v9, %s10646_s21  ;;  %9551 = vrot.lane.b32.xlu0 %v2795_v3, %s10647_s22  ;;  %v20991_v3 = vld [vmem:[#allocation93_spill] sm:$0xff]  ;;  %v20992_v9 = vld [vmem:[#allocation92_spill] sm:$0xff] }
 0x510   :  { %v16325_v4 = vpop.permute.xlu1 %9297  ;;  %v16327_v7 = vpop.permute.xlu0 %9311 }
 0x511   :  { %20972 = vst [vmem:[#allocation489_spill] sm:$0xff] %v16325_v4  ;;  %20973 = vst [vmem:[#allocation23_spill] sm:$0xff] %v16327_v7 }
 0x512   :  { %9477 = vrot.lane.b32.xlu1 %v20976_v24, %s10646_s21  ;;  %9555 = vrot.lane.b32.xlu0 %v3003_v31, %s10647_s22  ;;  %v2899_v31 = vcombine.low %v20992_v9, %v20991_v3  ;;  %v20993_v24 = vld [vmem:[#allocation201_spill] sm:$0xff] }
 0x514   :  { %v16336_v43 = vpop.permute.xlu1 %9301  ;;  %v16338_v1 = vpop.permute.xlu0 %9315 }
 0x515   :  { %20977 = vst [vmem:[#allocation22_spill] sm:$0xff] %v16336_v43  ;;  %20978 = vst [vmem:[#allocation414_spill] sm:$0xff] %v16338_v1 }
 0x516   :  { %9545 = vrot.lane.b32.xlu1 %v2067_v11, %s10647_s22  ;;  %9559 = vrot.lane.b32.xlu0 %v3627_v51, %s10647_s22  ;;  %v20994_v11 = vld [vmem:[#allocation200_spill] sm:$0xff] }
 0x517   :  { %v4459_v51 = vcombine.low %v20994_v11, %v20993_v24 }
 0x518   :  { %v16346_v14 = vpop.permute.xlu1 %9305  ;;  %v16348_v37 = vpop.permute.xlu0 %9319 }
 0x519   :  { %20983 = vst [vmem:[#allocation51_spill] sm:$0xff] %v16346_v14  ;;  %20984 = vst [vmem:[#allocation50_spill] sm:$0xff] %v16348_v37 }
 0x51a   :  { %9549 = vrot.lane.b32.xlu1 %v2275_v29, %s10647_s22  ;;  %9563 = vrot.lane.b32.xlu0 %v3835_v33, %s10647_s22  ;;  %v20997_v29 = vld [vmem:[#allocation124_spill] sm:$0xff]  ;;  %v20998_v33 = vld [vmem:[#allocation123_spill] sm:$0xff] }
 0x51b   :  { %v3107_v18 = vcombine.low %v20998_v33, %v20997_v29 }
 0x51c   :  { %v16356_v25 = vpop.permute.xlu1 %9309  ;;  %v16358_v30 = vpop.permute.xlu0 %9323 }
 0x51d   :  { %20989 = vst [vmem:[#allocation79_spill] sm:$0xff] %v16356_v25  ;;  %20990 = vst [vmem:[#allocation78_spill] sm:$0xff] %v16358_v30 }
 0x51e   :  { %9553 = vrot.lane.b32.xlu1 %v2899_v31, %s10647_s22  ;;  %9567 = vrot.lane.b32.xlu0 %v4459_v51, %s10647_s22  ;;  %v21003_v31 = vld [vmem:[#allocation156_spill] sm:$0xff]  ;;  %v21004_v51 = vld [vmem:[#allocation155_spill] sm:$0xff] }
 0x51f   :  { %v3731_v46 = vcombine.low %v21004_v51, %v21003_v31 }
 0x520   :  { %v16366_v32 = vpop.permute.xlu1 %9313  ;;  %v16368_v40 = vpop.permute.xlu0 %9327 }
 0x521   :  { %20995 = vst [vmem:[#allocation108_spill] sm:$0xff] %v16366_v32  ;;  %20996 = vst [vmem:[#allocation107_spill] sm:$0xff] %v16368_v40 }
 0x522   :  { %9557 = vrot.lane.b32.xlu1 %v3107_v18, %s10647_s22  ;;  %9571 = vrot.lane.b32.xlu0 %v4667_v26, %s10647_s22  ;;  %v21009_v18 = vld [vmem:[#allocation186_spill] sm:$0xff]  ;;  %v21010_v26 = vld [vmem:[#allocation185_spill] sm:$0xff] }
 0x523   :  { %v3939_v63 = vcombine.low %v21010_v26, %v21009_v18 }
 0x524   :  { %v16376_v22 = vpop.permute.xlu1 %9317  ;;  %v16378_v27 = vpop.permute.xlu0 %9331 }
 0x525   :  { %21001 = vst [vmem:[#allocation37_spill] sm:$0xff] %v16376_v22  ;;  %21002 = vst [vmem:[#allocation36_spill] sm:$0xff] %v16378_v27  ;;  %v21011_v22 = vld [vmem:[#allocation298_spill] sm:$0xff] }
 0x526   :  { %9561 = vrot.lane.b32.xlu1 %v3731_v46, %s10647_s22  ;;  %9575 = vrot.lane.b32.xlu0 %v5291_v54, %s10647_s22  ;;  %v5499_v27 = vcombine.low %v21012_v55, %v21011_v22  ;;  %v21015_v46 = vld [vmem:[#allocation217_spill] sm:$0xff]  ;;  %v21016_v54 = vld [vmem:[#allocation216_spill] sm:$0xff] }
 0x527   :  { %v4563_v13 = vcombine.low %v21016_v54, %v21015_v46 }
 0x528   :  { %v16386_v40 = vpop.permute.xlu1 %9321  ;;  %v16388_v32 = vpop.permute.xlu0 %9335 }
 0x529   :  { %21007 = vst [vmem:[#allocation140_spill] sm:$0xff] %v16386_v40  ;;  %21008 = vst [vmem:[#allocation139_spill] sm:$0xff] %v16388_v32  ;;  %v21017_v40 = vld [vmem:[#allocation334_spill] sm:$0xff] }
 0x52a   :  { %9565 = vrot.lane.b32.xlu1 %v3939_v63, %s10647_s22  ;;  %9579 = vrot.lane.b32.xlu0 %v5499_v27, %s10647_s22  ;;  %v6123_v32 = vcombine.low %v21018_v20, %v21017_v40  ;;  %v21021_v63 = vld [vmem:[#allocation250_spill] sm:$0xff]  ;;  %v21022_v27 = vld [vmem:[#allocation249_spill] sm:$0xff] }
 0x52b   :  { %v4771_v58 = vcombine.low %v21022_v27, %v21021_v63 }
 0x52c   :  { %v16396_v30 = vpop.permute.xlu1 %9325  ;;  %v16398_v25 = vpop.permute.xlu0 %9339 }
 0x52d   :  { %21013 = vst [vmem:[#allocation65_spill] sm:$0xff] %v16396_v30  ;;  %21014 = vst [vmem:[#allocation64_spill] sm:$0xff] %v16398_v25  ;;  %v21023_v30 = vld [vmem:[#allocation371_spill] sm:$0xff] }
 0x52e   :  { %9569 = vrot.lane.b32.xlu1 %v4563_v13, %s10647_s22  ;;  %9583 = vrot.lane.b32.xlu0 %v6123_v32, %s10647_s22  ;;  %v6331_v25 = vcombine.low %v21024_v28, %v21023_v30  ;;  %v21027_v13 = vld [vmem:[#allocation282_spill] sm:$0xff]  ;;  %v21028_v32 = vld [vmem:[#allocation280_spill] sm:$0xff] }
 0x52f   :  { %v5395_v48 = vcombine.low %v21028_v32, %v21027_v13 }
 0x530   :  { %v16406_v37 = vpop.permute.xlu1 %9329  ;;  %v16408_v14 = vpop.permute.xlu0 %9343 }
 0x531   :  { %21019 = vst [vmem:[#allocation171_spill] sm:$0xff] %v16406_v37  ;;  %21020 = vst [vmem:[#allocation170_spill] sm:$0xff] %v16408_v14  ;;  %v21029_v37 = vld [vmem:[#allocation404_spill] sm:$0xff] }
 0x532   :  { %9573 = vrot.lane.b32.xlu1 %v4771_v58, %s10647_s22  ;;  %9587 = vrot.lane.b32.xlu0 %v6331_v25, %s10647_s22  ;;  %v6955_v14 = vcombine.low %v21030_v42, %v21029_v37  ;;  %v21033_v58 = vld [vmem:[#allocation318_spill] sm:$0xff]  ;;  %v21034_v25 = vld [vmem:[#allocation316_spill] sm:$0xff] }
 0x533   :  { %v5603_v19 = vcombine.low %v21034_v25, %v21033_v58 }
 0x534   :  { %v16416_v1 = vpop.permute.xlu1 %9333  ;;  %v16418_v43 = vpop.permute.xlu0 %9347 }
 0x535   :  { %21025 = vst [vmem:[#allocation93_spill] sm:$0xff] %v16416_v1  ;;  %21026 = vst [vmem:[#allocation92_spill] sm:$0xff] %v16418_v43  ;;  %v21035_v1 = vld [vmem:[#allocation438_spill] sm:$0xff] }
 0x536   :  { %9577 = vrot.lane.b32.xlu1 %v5395_v48, %s10647_s22  ;;  %9591 = vrot.lane.b32.xlu0 %v6955_v14, %s10647_s22  ;;  %v7163_v50 = vcombine.low %v21036_v62, %v21035_v1  ;;  %v21039_v48 = vld [vmem:[#allocation353_spill] sm:$0xff]  ;;  %v21040_v14 = vld [vmem:[#allocation352_spill] sm:$0xff] }
 0x537   :  { %v6227_v0 = vcombine.low %v21040_v14, %v21039_v48 }
 0x538   :  { %v16426_v7 = vpop.permute.xlu1 %9337  ;;  %v16428_v4 = vpop.permute.xlu0 %9415 }
 0x539   :  { %21031 = vst [vmem:[#allocation201_spill] sm:$0xff] %v16426_v7  ;;  %21032 = vst [vmem:[#allocation200_spill] sm:$0xff] %v16428_v4  ;;  %v21041_v7 = vld [vmem:[#allocation466_spill] sm:$0xff] }
 0x53a   :  { %9581 = vrot.lane.b32.xlu1 %v5603_v19, %s10647_s22  ;;  %9595 = vrot.lane.b32.xlu0 %v7163_v50, %s10647_s22  ;;  %v7787_v17 = vcombine.low %v21042_v41, %v21041_v7  ;;  %v21045_v19 = vld [vmem:[#allocation387_spill] sm:$0xff]  ;;  %v21046_v50 = vld [vmem:[#allocation386_spill] sm:$0xff] }
 0x53b   :  { %v6435_v4 = vcombine.low %v21046_v50, %v21045_v19 }
 0x53c   :  { %v16436_v57 = vpop.permute.xlu1 %9341  ;;  %v16438_v5 = vpop.permute.xlu0 %9419 }
 0x53d   :  { %21037 = vst [vmem:[#allocation124_spill] sm:$0xff] %v16436_v57  ;;  %21038 = vst [vmem:[#allocation123_spill] sm:$0xff] %v16438_v5  ;;  %v21047_v57 = vld [vmem:[#allocation494_spill] sm:$0xff] }
 0x53e   :  { %9585 = vrot.lane.b32.xlu1 %v6227_v0, %s10647_s22  ;;  %9599 = vrot.lane.b32.xlu0 %v7787_v17, %s10647_s22  ;;  %v7995_v5 = vcombine.low %v21048_v34, %v21047_v57  ;;  %v21051_v0 = vld [vmem:[#allocation419_spill] sm:$0xff] }
 0x53f   :  { %v21052_v17 = vld [vmem:[#allocation415_spill] sm:$0xff] }
 0x540   :  { %v16446_v6 = vpop.permute.xlu1 %9345  ;;  %v16448_v59 = vpop.permute.xlu0 %9423  ;;  %v7059_v7 = vcombine.low %v21052_v17, %v21051_v0  ;;  %v21057_v57 = vld [vmem:[#allocation439_spill] sm:$0xff] }
 0x541   :  { %21043 = vst [vmem:[#allocation233_spill] sm:$0xff] %v16446_v6  ;;  %21044 = vst [vmem:[#allocation232_spill] sm:$0xff] %v16448_v59  ;;  %v21053_v6 = vcombine.high %v20959_v61, %v20958_v52  ;;  %v21061_v52 = vld [vmem:[#allocation467_spill] sm:$0xff] }
 0x542   :  { %9589 = vrot.lane.b32.xlu1 %v6435_v4, %s10647_s22  ;;  %9603 = vrot.lane.b32.xlu0 %v7995_v5, %s10647_s22  ;;  %v21056_v5 = vld [vmem:[#allocation435_spill] sm:$0xff] }
 0x544   :  { %v16456_v43 = vpop.permute.xlu1 %9349  ;;  %v16458_v16 = vpop.permute.xlu0 %9427 }
 0x545   :  { %21049 = vst [vmem:[#allocation156_spill] sm:$0xff] %v16456_v43  ;;  %21050 = vst [vmem:[#allocation155_spill] sm:$0xff] %v16458_v16  ;;  %v7267_v43 = vcombine.low %v21057_v57, %v21056_v5  ;;  %v21058_v16 = vcombine.high %v20965_v10, %v20964_v60  ;;  %v21064_v60 = vld [vmem:[#allocation258_spill] sm:$0xff] }
 0x546   :  { %9593 = vrot.lane.b32.xlu1 %v7059_v7, %s10647_s22  ;;  %9671 = vrot.lane.b32.xlu0 %v21053_v6, %s10648_s23  ;;  %v21062_v6 = vld [vmem:[#allocation449_spill] sm:$0xff] }
 0x547   :  { %v7891_v61 = vcombine.low %v21062_v6, %v21061_v52 }
 0x548   :  { %v16467_v59 = vpop.permute.xlu1 %9417  ;;  %v16469_v4 = vpop.permute.xlu0 %9431 }
 0x549   :  { %21054 = vst [vmem:[#allocation264_spill] sm:$0xff] %v16467_v59  ;;  %21055 = vst [vmem:[#allocation109_spill] sm:$0xff] %v16469_v4  ;;  %v21063_v4 = vcombine.high %v20970_v44, %v20969_v2  ;;  %v21069_v2 = vcombine.high %v20980_v23, %v20979_v12  ;;  %v21070_v44 = vcombine.high %v20982_v21, %v20981_v35 }
 0x54a   :  { %9597 = vrot.lane.b32.xlu1 %v7267_v43, %s10647_s22  ;;  %9675 = vrot.lane.b32.xlu0 %v21058_v16, %s10648_s23  ;;  %v21065_v16 = vld [vmem:[#allocation148_spill] sm:$0xff]  ;;  %v21077_v35 = vcombine.high %v20992_v9, %v20991_v3  ;;  %v21078_v21 = vcombine.high %v20994_v11, %v20993_v24  ;;  %v21085_v24 = vcombine.high %v21004_v51, %v21003_v31 }
 0x54b   :  { %v8099_v10 = vcombine.low %v21065_v16, %v21064_v60  ;;  %v21086_v11 = vcombine.high %v21006_v45, %v21005_v38  ;;  %v21093_v45 = vcombine.high %v21016_v54, %v21015_v46  ;;  %v21094_v38 = vcombine.high %v21018_v20, %v21017_v40 }
 0x54c   :  { %v16478_v7 = vpop.permute.xlu1 %9421  ;;  %v16480_v0 = vpop.permute.xlu0 %9435  ;;  %v21100_v20 = vcombine.high %v21028_v32, %v21027_v13  ;;  %v21101_v40 = vcombine.high %v21030_v42, %v21029_v37  ;;  %v21106_v42 = vcombine.high %v21040_v14, %v21039_v48  ;;  %v21107_v37 = vld [vmem:[#allocation466_spill] sm:$0xff] }
 0x54d   :  { %21059 = vst [vmem:[#allocation186_spill] sm:$0xff] %v16478_v7  ;;  %21060 = vst [vmem:[#allocation185_spill] sm:$0xff] %v16480_v0  ;;  %v21066_v0 = vcombine.high %v20975_v56, %v20974_v15  ;;  %v21073_v15 = vcombine.high %v20986_v36, %v20985_v47  ;;  %v21074_v56 = vcombine.high %v20988_v39, %v20987_v49 }
 0x54e   :  { %9601 = vrot.lane.b32.xlu1 %v7891_v61, %s10647_s22  ;;  %9679 = vrot.lane.b32.xlu0 %v21063_v4, %s10648_s23  ;;  %v21081_v49 = vcombine.high %v20998_v33, %v20997_v29  ;;  %v21082_v39 = vcombine.high %v21000_v8, %v20999_v53  ;;  %v21089_v8 = vcombine.high %v21010_v26, %v21009_v18 }
 0x54f   :  { %v21090_v53 = vcombine.high %v21012_v55, %v21011_v22  ;;  %v21097_v55 = vcombine.high %v21022_v27, %v21021_v63  ;;  %v21098_v22 = vcombine.high %v21024_v28, %v21023_v30  ;;  %v21103_v28 = vcombine.high %v21034_v25, %v21033_v58 }
 0x550   :  { %v16489_v43 = vpop.permute.xlu1 %9425  ;;  %v16491_v59 = vpop.permute.xlu0 %9439  ;;  %v21104_v30 = vcombine.high %v21036_v62, %v21035_v1  ;;  %v21110_v62 = vcombine.high %v21046_v50, %v21045_v19  ;;  %v21111_v1 = vld [vmem:[#allocation494_spill] sm:$0xff] }
 0x552   :  { %9605 = vrot.lane.b32.xlu1 %v8099_v10, %s10647_s22  ;;  %9683 = vrot.lane.b32.xlu0 %v21066_v0, %s10648_s23  ;;  %v21108_v0 = vcombine.high %v21042_v41, %v21107_v37  ;;  %v21113_v41 = vld [vmem:[#allocation419_spill] sm:$0xff] }
 0x554   :  { %v16500_v61 = vpop.permute.xlu1 %9429  ;;  %v16502_v7 = vpop.permute.xlu0 %9443 }
 0x555   :  { %21067 = vst [vmem:[#allocation298_spill] sm:$0xff] %v16500_v61  ;;  %21068 = vst [vmem:[#allocation297_spill] sm:$0xff] %v16502_v7  ;;  %v21239_v7 = vld [vmem:[#allocation325_spill] sm:$0xff]  ;;  %v21241_v61 = vld [vmem:[#allocation442_spill] sm:$0xff] }
 0x556   :  { %9673 = vrot.lane.b32.xlu1 %v21069_v2, %s10648_s23  ;;  %9687 = vrot.lane.b32.xlu0 %v21070_v44, %s10648_s23  ;;  %v21112_v2 = vcombine.high %v21048_v34, %v21111_v1  ;;  %v21114_v44 = vcombine.high %v21052_v17, %v21113_v41  ;;  %v21118_v34 = vcombine.high %v21057_v57, %v21056_v5  ;;  %v21120_v17 = vld [vmem:[#allocation267_spill] sm:$0xff]  ;;  %v21136_v1 = vld [vmem:[#allocation40_spill] sm:$0xff] }
 0x557   :  { %v21130_v5 = vld [vmem:[#allocation55_spill] sm:$0xff] }
 0x558   :  { %v16512_v4 = vpop.permute.xlu1 %9433  ;;  %v16514_v10 = vpop.permute.xlu0 %9447 }
 0x559   :  { %21071 = vst [vmem:[#allocation217_spill] sm:$0xff] %v16512_v4  ;;  %21072 = vst [vmem:[#allocation216_spill] sm:$0xff] %v16514_v10 }
 0x55a   :  { %9677 = vrot.lane.b32.xlu1 %v21073_v15, %s10648_s23  ;;  %9691 = vrot.lane.b32.xlu0 %v21074_v56, %s10648_s23  ;;  %v21115_v15 = vld [vmem:[#allocation187_spill] sm:$0xff] }
 0x55b   :  { %v21116_v56 = vld [vmem:[#allocation251_spill] sm:$0xff] }
 0x55c   :  { %v16524_v12 = vpop.permute.xlu1 %9437  ;;  %v16526_v23 = vpop.permute.xlu0 %9451  ;;  %v21117_v19 = vcombine.low %v21115_v15, %v21116_v56 }
 0x55d   :  { %21075 = vst [vmem:[#allocation334_spill] sm:$0xff] %v16524_v12  ;;  %21076 = vst [vmem:[#allocation158_spill] sm:$0xff] %v16526_v23 }
 0x55e   :  { %9681 = vrot.lane.b32.xlu1 %v21077_v35, %s10648_s23  ;;  %9695 = vrot.lane.b32.xlu0 %v21078_v21, %s10648_s23  ;;  %v21119_v21 = vld [vmem:[#allocation266_spill] sm:$0xff] }
 0x560   :  { %v16536_v47 = vpop.permute.xlu1 %9441  ;;  %v16538_v36 = vpop.permute.xlu0 %9455 }
 0x561   :  { %21079 = vst [vmem:[#allocation250_spill] sm:$0xff] %v16536_v47  ;;  %21080 = vst [vmem:[#allocation249_spill] sm:$0xff] %v16538_v36  ;;  %v21209_v36 = vld [vmem:[#allocation342_spill] sm:$0xff] }
 0x562   :  { %9685 = vrot.lane.b32.xlu1 %v21081_v49, %s10648_s23  ;;  %9699 = vrot.lane.b32.xlu0 %v21082_v39, %s10648_s23  ;;  %v21121_v49 = vcombine.low %v21119_v21, %v21120_v17  ;;  %v21122_v39 = vld [vmem:[#allocation160_spill] sm:$0xff] }
 0x564   :  { %v16548_v3 = vpop.permute.xlu1 %9445  ;;  %v16550_v9 = vpop.permute.xlu0 %9459 }
 0x565   :  { %21083 = vst [vmem:[#allocation371_spill] sm:$0xff] %v16548_v3  ;;  %21084 = vst [vmem:[#allocation370_spill] sm:$0xff] %v16550_v9  ;;  %v21207_v9 = vld [vmem:[#allocation377_spill] sm:$0xff] }
 0x566   :  { %9689 = vrot.lane.b32.xlu1 %v21085_v24, %s10648_s23  ;;  %9703 = vrot.lane.b32.xlu0 %v21086_v11, %s10648_s23  ;;  %v21123_v24 = vld [vmem:[#allocation24_spill] sm:$0xff]  ;;  %v21124_v11 = vld [vmem:[#allocation26_spill] sm:$0xff]  ;;  %v21208_v3 = vld [vmem:[#allocation341_spill] sm:$0xff] }
 0x567   :  { %v21210_v47 = vcombine.low %v21208_v3, %v21209_v36  ;;  %v21224_v3 = vld [vmem:[#allocation299_spill] sm:$0xff] }
 0x568   :  { %v16560_v29 = vpop.permute.xlu1 %9449  ;;  %v16562_v33 = vpop.permute.xlu0 %9463 }
 0x569   :  { %21087 = vst [vmem:[#allocation282_spill] sm:$0xff] %v16560_v29  ;;  %21088 = vst [vmem:[#allocation280_spill] sm:$0xff] %v16562_v33  ;;  %v21199_v33 = vld [vmem:[#allocation343_spill] sm:$0xff]  ;;  %v21203_v29 = vld [vmem:[#allocation208_spill] sm:$0xff] }
 0x56a   :  { %9693 = vrot.lane.b32.xlu1 %v21089_v8, %s10648_s23  ;;  %9707 = vrot.lane.b32.xlu0 %v21090_v53, %s10648_s23  ;;  %v21125_v8 = vcombine.low %v21123_v24, %v21124_v11  ;;  %v21142_v24 = vld [vmem:[#allocation335_spill] sm:$0xff]  ;;  %v21143_v11 = vld [vmem:[#allocation66_spill] sm:$0xff] }
 0x56c   :  { %v16572_v31 = vpop.permute.xlu1 %9453  ;;  %v16574_v51 = vpop.permute.xlu0 %9467  ;;  %v10025_v53 = vsel %vm10023_vm0, %v21125_v8, %v21122_v39  ;;  %v21144_v8 = vld [vmem:[#allocation68_spill] sm:$0xff] }
 0x56d   :  { %21091 = vst [vmem:[#allocation404_spill] sm:$0xff] %v16572_v31  ;;  %21092 = vst [vmem:[#allocation220_spill] sm:$0xff] %v16574_v51 }
 0x56e   :  { %9697 = vrot.lane.b32.xlu1 %v21093_v45, %s10648_s23  ;;  %9711 = vrot.lane.b32.xlu0 %v21094_v38, %s10648_s23  ;;  %v21126_v45 = vld [vmem:[#allocation25_spill] sm:$0xff]  ;;  %v21127_v38 = vld [vmem:[#allocation10_spill] sm:$0xff] }
 0x570   :  { %v16584_v18 = vpop.permute.xlu1 %9457  ;;  %v16586_v26 = vpop.permute.xlu0 %9471 }
 0x571   :  { %21095 = vst [vmem:[#allocation318_spill] sm:$0xff] %v16584_v18  ;;  %21096 = vst [vmem:[#allocation316_spill] sm:$0xff] %v16586_v26 }
 0x572   :  { %9701 = vrot.lane.b32.xlu1 %v21097_v55, %s10648_s23  ;;  %9715 = vrot.lane.b32.xlu0 %v21098_v22, %s10648_s23  ;;  %v21128_v55 = vld [vmem:[#allocation12_spill] sm:$0xff] }
 0x573   :  { %v21129_v22 = vcombine.low %v21127_v38, %v21128_v55  ;;  %v21146_v55 = vld [vmem:[#allocation222_spill] sm:$0xff] }
 0x574   :  { %v16596_v46 = vpop.permute.xlu1 %9461  ;;  %v16598_v54 = vpop.permute.xlu0 %9475 }
 0x575   :  { %21099 = vst [vmem:[#allocation438_spill] sm:$0xff] %v16596_v46 }
 0x576   :  { %9705 = vrot.lane.b32.xlu1 %v21100_v20, %s10648_s23  ;;  %9719 = vrot.lane.b32.xlu0 %v21101_v40, %s10648_s23  ;;  %v10024_v20 = vsel %vm10023_vm0, %v21129_v22, %v21126_v45  ;;  %v21145_v45 = vcombine.low %v21143_v11, %v21144_v8  ;;  %v21147_v22 = vld [vmem:[#allocation110_spill] sm:$0xff]  ;;  %v21159_v8 = vld [vmem:[#allocation283_spill] sm:$0xff] }
 0x578   :  { %v16608_v63 = vpop.permute.xlu1 %9465  ;;  %v16610_v27 = vpop.permute.xlu0 %9543  ;;  %v10028_v38 = vsel %vm10023_vm0, %v21145_v45, %v21142_v24  ;;  %v21158_v24 = vcombine.high %v21062_v6, %v21061_v52  ;;  %v21160_v45 = vld [vmem:[#allocation284_spill] sm:$0xff]  ;;  %v21171_v52 = vld [vmem:[#allocation162_spill] sm:$0xff]  ;;  %v21172_v6 = vld [vmem:[#allocation159_spill] sm:$0xff] }
 0x579   :  { %21102 = vst [vmem:[#allocation437_spill] sm:$0xff] %v16608_v63  ;;  %v21176_v63 = vld [vmem:[#allocation205_spill] sm:$0xff] }
 0x57a   :  { %9709 = vrot.lane.b32.xlu1 %v21103_v28, %s10648_s23  ;;  %9723 = vrot.lane.b32.xlu0 %v21104_v30, %s10648_s23  ;;  %v21131_v28 = vld [vmem:[#allocation52_spill] sm:$0xff]  ;;  %v21132_v30 = vld [vmem:[#allocation54_spill] sm:$0xff] }
 0x57c   :  { %v16620_v13 = vpop.permute.xlu1 %9469  ;;  %v16622_v32 = vpop.permute.xlu0 %9547 }
 0x57d   :  { %21105 = vst [vmem:[#allocation353_spill] sm:$0xff] %v16620_v13  ;;  %v21174_v13 = vld [vmem:[#allocation177_spill] sm:$0xff] }
 0x57e   :  { %9713 = vrot.lane.b32.xlu1 %v21106_v42, %s10648_s23  ;;  %9727 = vrot.lane.b32.xlu0 %v21108_v0, %s10648_s23  ;;  %v21133_v42 = vcombine.low %v21131_v28, %v21132_v30  ;;  %v21134_v0 = vld [vmem:[#allocation27_spill] sm:$0xff] }
 0x580   :  { %v16632_v58 = vpop.permute.xlu1 %9473  ;;  %v16634_v25 = vpop.permute.xlu0 %9551  ;;  %v10027_v37 = vsel %vm10023_vm0, %v21133_v42, %v21130_v5  ;;  %v21148_v5 = vld [vmem:[#allocation112_spill] sm:$0xff]  ;;  %v21150_v42 = vld [vmem:[#allocation53_spill] sm:$0xff] }
 0x581   :  { %21109 = vst [vmem:[#allocation352_spill] sm:$0xff] %v16632_v58  ;;  %v21149_v28 = vcombine.low %v21147_v22, %v21148_v5  ;;  %v21162_v22 = vld [vmem:[#allocation188_spill] sm:$0xff]  ;;  %v21163_v5 = vld [vmem:[#allocation131_spill] sm:$0xff] }
 0x582   :  { %9717 = vrot.lane.b32.xlu1 %v21110_v62, %s10648_s23  ;;  %9731 = vrot.lane.b32.xlu0 %v21112_v2, %s10648_s23  ;;  %v21135_v62 = vld [vmem:[#allocation38_spill] sm:$0xff] }
 0x583   :  { %v21137_v2 = vcombine.low %v21135_v62, %v21136_v1  ;;  %v10031_v30 = vsel %vm10023_vm0, %v21149_v28, %v21146_v55  ;;  %v21152_v62 = vld [vmem:[#allocation97_spill] sm:$0xff]  ;;  %v21161_v55 = vcombine.low %v21159_v8, %v21160_v45  ;;  %v21164_v28 = vld [vmem:[#allocation128_spill] sm:$0xff] }
 0x584   :  { %v16644_v48 = vpop.permute.xlu1 %9477  ;;  %v16646_v14 = vpop.permute.xlu0 %9555 }
 0x585   :  { %v10026_v41 = vsel %vm10023_vm0, %v21137_v2, %v21134_v0  ;;  %v21151_v0 = vld [vmem:[#allocation95_spill] sm:$0xff] }
 0x586   :  { %9721 = vrot.lane.b32.xlu1 %v21114_v44, %s10648_s23  ;;  %9799 = vrot.lane.b32.xlu0 %v21117_v19, %s10649_s24  ;;  %v21138_v44 = vld [vmem:[#allocation190_spill] sm:$0xff]  ;;  %v21139_v19 = vld [vmem:[#allocation80_spill] sm:$0xff]  ;;  %v21153_v1 = vcombine.low %v21151_v0, %v21152_v62  ;;  %v21166_v62 = vld [vmem:[#allocation351_spill] sm:$0xff] }
 0x588   :  { %v16656_v50 = vpop.permute.xlu1 %9545  ;;  %v16658_v35 = vpop.permute.xlu0 %9559  ;;  %v10030_v2 = vsel %vm10023_vm0, %v21153_v1, %v21150_v42  ;;  %v21165_v42 = vcombine.low %v21163_v5, %v21164_v28  ;;  %v21167_v1 = vld [vmem:[#allocation172_spill] sm:$0xff]  ;;  %v21178_v28 = vld [vmem:[#allocation115_spill] sm:$0xff] }
 0x58a   :  { %9725 = vrot.lane.b32.xlu1 %v21118_v34, %s10648_s23  ;;  %9803 = vrot.lane.b32.xlu0 %v21121_v49, %s10649_s24  ;;  %v21140_v34 = vld [vmem:[#allocation82_spill] sm:$0xff]  ;;  %v10032_v0 = vsel %vm10023_vm0, %v21165_v42, %v21162_v22  ;;  %v21179_v22 = vld [vmem:[#allocation192_spill] sm:$0xff]  ;;  %v21180_v42 = vld [vmem:[#allocation189_spill] sm:$0xff] }
 0x58b   :  { %v21141_v49 = vcombine.low %v21139_v19, %v21140_v34  ;;  %v21154_v19 = vld [vmem:[#allocation113_spill] sm:$0xff]  ;;  %v21156_v34 = vld [vmem:[#allocation144_spill] sm:$0xff]  ;;  %v21181_v26 = vcombine.low %v21179_v22, %v21180_v42 }
 0x58c   :  { %v16678_v40 = vpop.permute.xlu1 %9549  ;;  %v16680_v57 = vpop.permute.xlu0 %9563 }
 0x58d   :  { %v10029_v39 = vsel %vm10023_vm0, %v21141_v49, %v21138_v44  ;;  %v21155_v44 = vld [vmem:[#allocation142_spill] sm:$0xff] }
 0x58e   :  { %v21157_v49 = vcombine.low %v21155_v44, %v21156_v34  ;;  %9729 = vrot.lane.b32.xlu1 %v21158_v24, %s10648_s23  ;;  %9807 = vrot.lane.b32.xlu0 %v21161_v55, %s10649_s24  ;;  %v21173_v24 = vcombine.low %v21171_v52, %v21172_v6  ;;  %v21175_v55 = vld [vmem:[#allocation203_spill] sm:$0xff]  ;;  %v21186_v6 = vld [vmem:[#allocation256_spill] sm:$0xff] }
 0x58f   :  { %v21177_v46 = vcombine.low %v21175_v55, %v21176_v63  ;;  %v21190_v55 = vld [vmem:[#allocation373_spill] sm:$0xff] }
 0x590   :  { %v10033_v11 = vsel %vm10023_vm0, %v21157_v49, %v21154_v19  ;;  %v21168_v19 = vld [vmem:[#allocation174_spill] sm:$0xff]  ;;  %v21170_v49 = vld [vmem:[#allocation81_spill] sm:$0xff]  ;;  %v16765_v42 = vpop.permute.xlu1 %9553 }
 0x591   :  { %v21169_v44 = vcombine.low %v21167_v1, %v21168_v19  ;;  %v10034_v58 = vsel %vm10023_vm0, %v21173_v24, %v21170_v49  ;;  %v10037_v5 = vsel %vm10023_vm0, %v21177_v46, %v21174_v13  ;;  %v10036_v1 = vsel %vm10023_vm0, %v21181_v26, %v21178_v28  ;;  %v21182_v19 = vld [vmem:[#allocation240_spill] sm:$0xff]  ;;  %v21188_v24 = vld [vmem:[#allocation221_spill] sm:$0xff]  ;;  %v21191_v46 = vld [vmem:[#allocation271_spill] sm:$0xff]  ;;  %v16767_v26 = vpop.permute.xlu0 %9567 }
 0x592   :  { %v21187_v49 = vld [vmem:[#allocation224_spill] sm:$0xff]  ;;  %21194 = vst [vmem:[#allocation463_spill] sm:$0xff] %v16767_v26  ;;  %v21195_v28 = vld [vmem:[#allocation359_spill] sm:$0xff] }
 0x593   :  { %v10035_v34 = vsel %vm10023_vm0, %v21169_v44, %v21166_v62  ;;  %v21183_v62 = vld [vmem:[#allocation235_spill] sm:$0xff]  ;;  %v21184_v44 = vld [vmem:[#allocation237_spill] sm:$0xff]  ;;  %v21189_v51 = vcombine.low %v21187_v49, %v21188_v24  ;;  %v21192_v13 = vld [vmem:[#allocation272_spill] sm:$0xff] }
 0x594   :  { %v21185_v18 = vcombine.low %v21183_v62, %v21184_v44  ;;  %v21193_v31 = vcombine.low %v21191_v46, %v21192_v13  ;;  %v21196_v62 = vld [vmem:[#allocation259_spill] sm:$0xff]  ;;  %v21201_v24 = vld [vmem:[#allocation308_spill] sm:$0xff] }
 0x595   :  { %v10038_v63 = vsel %vm10023_vm0, %v21189_v51, %v21186_v6  ;;  %v21197_v44 = vld [vmem:[#allocation255_spill] sm:$0xff]  ;;  %v21204_v46 = vld [vmem:[#allocation292_spill] sm:$0xff] }
 0x596   :  { %v10039_v52 = vsel %vm10023_vm0, %v21185_v18, %v21182_v19  ;;  %v10041_v22 = vsel %vm10023_vm0, %v21193_v31, %v21190_v55  ;;  %v21198_v18 = vcombine.low %v21196_v62, %v21197_v44  ;;  %v21200_v49 = vld [vmem:[#allocation307_spill] sm:$0xff]  ;;  %v21205_v13 = vld [vmem:[#allocation288_spill] sm:$0xff]  ;;  %v10045_v62 = vsel %vm10023_vm0, %v21210_v47, %v21207_v9  ;;  %v21211_v44 = vld [vmem:[#allocation238_spill] sm:$0xff] }
 0x597   :  { %v21202_v51 = vcombine.low %v21200_v49, %v21201_v24  ;;  %v21206_v31 = vcombine.low %v21204_v46, %v21205_v13  ;;  %v21215_v24 = vld [vmem:[#allocation290_spill] sm:$0xff]  ;;  %v21219_v13 = vld [vmem:[#allocation345_spill] sm:$0xff]  ;;  %v21223_v47 = vcombine.high %v21065_v16, %v21064_v60  ;;  %v21237_v16 = vld [vmem:[#allocation428_spill] sm:$0xff] }
 0x598   :  { %v10040_v19 = vsel %vm10023_vm0, %v21198_v18, %v21195_v28  ;;  %v21212_v28 = vld [vmem:[#allocation328_spill] sm:$0xff]  ;;  %v21236_v60 = vld [vmem:[#allocation430_spill] sm:$0xff] }
 0x599   :  { %v10043_v6 = vsel %vm10023_vm0, %v21202_v51, %v21199_v33  ;;  %v10042_v55 = vsel %vm10023_vm0, %v21206_v31, %v21203_v29  ;;  %v21213_v18 = vld [vmem:[#allocation324_spill] sm:$0xff]  ;;  %v21216_v33 = vld [vmem:[#allocation375_spill] sm:$0xff]  ;;  %v21220_v29 = vld [vmem:[#allocation365_spill] sm:$0xff]  ;;  %9733 = vrot.lane.b32.xlu1 %v21223_v47, %s10648_s23  ;;  %v21238_v47 = vcombine.low %v21236_v60, %v21237_v16 }
 0x59a   :  { %v21214_v23 = vcombine.low %v21212_v28, %v21213_v18  ;;  %v21217_v51 = vld [vmem:[#allocation376_spill] sm:$0xff]  ;;  %v21221_v31 = vld [vmem:[#allocation361_spill] sm:$0xff]  ;;  %v21228_v28 = vld [vmem:[#allocation407_spill] sm:$0xff] }
 0x59b   :  { %v21218_v12 = vcombine.low %v21216_v33, %v21217_v51  ;;  %v21222_v10 = vcombine.low %v21220_v29, %v21221_v31  ;;  %v21229_v18 = vld [vmem:[#allocation408_spill] sm:$0xff]  ;;  %v21231_v33 = vld [vmem:[#allocation379_spill] sm:$0xff]  ;;  %v21235_v31 = vld [vmem:[#allocation385_spill] sm:$0xff] }
 0x59c   :  { %v10044_v49 = vsel %vm10023_vm0, %v21214_v23, %v21211_v44  ;;  %v21225_v23 = vld [vmem:[#allocation300_spill] sm:$0xff]  ;;  %v21227_v44 = vld [vmem:[#allocation427_spill] sm:$0xff]  ;;  %v10050_v4 = vsel %vm10023_vm0, %v21238_v47, %v21235_v31  ;;  %v21253_v47 = vld [vmem:[#allocation326_spill] sm:$0xff] }
 0x59d   :  { %v10047_v46 = vsel %vm10023_vm0, %v21218_v12, %v21215_v24  ;;  %v10046_v36 = vsel %vm10023_vm0, %v21222_v10, %v21219_v13  ;;  %v21226_v9 = vcombine.low %v21224_v3, %v21225_v23  ;;  %v21230_v12 = vcombine.low %v21228_v28, %v21229_v18  ;;  %v21232_v51 = vld [vmem:[#allocation399_spill] sm:$0xff]  ;;  %v21245_v18 = vld [vmem:[#allocation450_spill] sm:$0xff] }
 0x59e   :  { %v21233_v29 = vld [vmem:[#allocation395_spill] sm:$0xff] }
 0x59f   :  { %9811 = vrot.lane.b32.xlu0 %v21226_v9, %s10649_s24  ;;  %v10049_v24 = vsel %vm10023_vm0, %v21230_v12, %v21227_v44  ;;  %v21234_v10 = vcombine.low %v21232_v51, %v21233_v29  ;;  %v21240_v9 = vld [vmem:[#allocation440_spill] sm:$0xff]  ;;  %v21246_v12 = vld [vmem:[#allocation455_spill] sm:$0xff] }
 0x5a0   :  { %v21242_v23 = vcombine.low %v21240_v9, %v21241_v61  ;;  %v21244_v44 = vld [vmem:[#allocation416_spill] sm:$0xff]  ;;  %v21247_v3 = vcombine.low %v21245_v18, %v21246_v12  ;;  %v21249_v29 = vld [vmem:[#allocation483_spill] sm:$0xff]  ;;  %v10059_v61 = vsel %vm10056_vm1, %v10026_v41, %v21253_v47  ;;  %v21264_v47 = vld [vmem:[#allocation273_spill] sm:$0xff] }
 0x5a1   :  { %v10048_v13 = vsel %vm10023_vm0, %v21234_v10, %v21231_v33  ;;  %v21248_v33 = vld [vmem:[#allocation175_spill] sm:$0xff]  ;;  %v21250_v10 = vld [vmem:[#allocation486_spill] sm:$0xff]  ;;  %v21256_v9 = vld [vmem:[#allocation8_spill] sm:$0xff] }
 0x5a2   :  { %v16832_v28 = vsel %vm10023_vm0, %v21242_v23, %v21239_v7  ;;  %v10052_v51 = vsel %vm10023_vm0, %v21247_v3, %v21244_v44  ;;  %v21251_v26 = vcombine.low %v21249_v29, %v21250_v10  ;;  %v21252_v31 = vld [vmem:[#allocation423_spill] sm:$0xff]  ;;  %v16848_v7 = vpop.permute.xlu1 %9557  ;;  %v16850_v23 = vpop.permute.xlu0 %9571  ;;  %v10061_v18 = vsel %vm10056_vm1, %v10028_v38, %v21256_v9  ;;  %v21257_v3 = vld [vmem:[#allocation362_spill] sm:$0xff]  ;;  %v21258_v44 = vld [vmem:[#allocation317_spill] sm:$0xff] }
 0x5a3   :  { %21243 = vst [vmem:[#allocation387_spill] sm:$0xff] %v16832_v28  ;;  %v10057_v16 = vsel %vm10056_vm1, %v10024_v20, %v21252_v31  ;;  %21254 = vst [vmem:[#allocation386_spill] sm:$0xff] %v16848_v7  ;;  %v21259_v12 = vld [vmem:[#allocation67_spill] sm:$0xff]  ;;  %v21262_v20 = vld [vmem:[#allocation397_spill] sm:$0xff] }
 0x5a4   :  { %v10054_v60 = vsel %vm10023_vm0, %v21251_v26, %v21248_v33  ;;  %21255 = vst [vmem:[#allocation493_spill] sm:$0xff] %v16850_v23  ;;  %v21260_v28 = vcombine.low %v21258_v44, %v21259_v12  ;;  %v21261_v26 = vld [vmem:[#allocation363_spill] sm:$0xff]  ;;  %v10058_v10 = vsel %vm10056_vm1, %v10025_v53, %v21262_v20  ;;  %v10060_v23 = vsel %vm10056_vm1, %v10027_v37, %v21264_v47  ;;  %v21266_v9 = vld [vmem:[#allocation302_spill] sm:$0xff]  ;;  %v21272_v53 = vld [vmem:[#allocation16_spill] sm:$0xff] }
 0x5a5   :  { %v10063_v33 = vsel %vm10056_vm1, %v10030_v2, %v21261_v26  ;;  %v21263_v41 = vld [vmem:[#allocation275_spill] sm:$0xff]  ;;  %v21273_v26 = vld [vmem:[#allocation234_spill] sm:$0xff]  ;;  %v21274_v20 = vld [vmem:[#allocation44_spill] sm:$0xff] }
 0x5a6   :  { %v10055_v29 = vsel %vm10023_vm0, %v21260_v28, %v21257_v3  ;;  %v10065_v31 = vsel %vm10056_vm1, %v10032_v0, %v21263_v41  ;;  %v21265_v7 = vld [vmem:[#allocation311_spill] sm:$0xff]  ;;  %v21270_v3 = vld [vmem:[#allocation320_spill] sm:$0xff]  ;;  %v10062_v0 = vsel %vm10056_vm1, %v10029_v39, %v21272_v53  ;;  %v10069_v37 = vsel %vm10056_vm1, %v10036_v1, %v21273_v26  ;;  %v16893_v53 = vpop.permute.xlu1 %9561  ;;  %v16895_v1 = vpop.permute.xlu0 %9575 }
 0x5a7   :  { %v10067_v38 = vsel %vm10056_vm1, %v10034_v58, %v21265_v7  ;;  %v21267_v44 = vld [vmem:[#allocation303_spill] sm:$0xff]  ;;  %v10064_v58 = vsel %vm10056_vm1, %v10031_v30, %v21274_v20  ;;  %v21275_v7 = vld [vmem:[#allocation70_spill] sm:$0xff]  ;;  %v21276_v47 = vld [vmem:[#allocation72_spill] sm:$0xff]  ;;  %21280 = vst [vmem:[#allocation415_spill] sm:$0xff] %v16893_v53 }
 0x5a8   :  { %v21268_v28 = vcombine.low %v21266_v9, %v21267_v44  ;;  %v21269_v2 = vld [vmem:[#allocation319_spill] sm:$0xff]  ;;  %v10071_v41 = vsel %vm10056_vm1, %v10038_v63, %v21275_v7  ;;  %v21277_v44 = vld [vmem:[#allocation454_spill] sm:$0xff]  ;;  %21281 = vst [vmem:[#allocation435_spill] sm:$0xff] %v16895_v1  ;;  %v21282_v30 = vld [vmem:[#allocation101_spill] sm:$0xff] }
 0x5a9   :  { %v21271_v12 = vcombine.low %v21269_v2, %v21270_v3  ;;  %v10073_v9 = vsel %vm10056_vm1, %v10040_v19, %v21277_v44  ;;  %v21278_v3 = vld [vmem:[#allocation461_spill] sm:$0xff]  ;;  %v21279_v2 = vld [vmem:[#allocation99_spill] sm:$0xff]  ;;  %v10070_v26 = vsel %vm10056_vm1, %v10037_v5, %v21282_v30  ;;  %v21283_v63 = vld [vmem:[#allocation28_spill] sm:$0xff] }
 0x5aa   :  { %9801 = vrot.lane.b32.xlu1 %v21268_v28, %s10649_s24  ;;  %v10066_v28 = vsel %vm10056_vm1, %v10033_v11, %v21276_v47  ;;  %v10075_v39 = vsel %vm10056_vm1, %v10042_v55, %v21279_v2  ;;  %v10077_v20 = vsel %vm10056_vm1, %v10044_v49, %v21283_v63  ;;  %v21284_v11 = vld [vmem:[#allocation30_spill] sm:$0xff]  ;;  %v21287_v55 = vld [vmem:[#allocation56_spill] sm:$0xff]  ;;  %v21290_v30 = vld [vmem:[#allocation337_spill] sm:$0xff] }
 0x5ab   :  { %9815 = vrot.lane.b32.xlu0 %v21271_v12, %s10649_s24  ;;  %v10068_v12 = vsel %vm10056_vm1, %v10035_v34, %v21278_v3  ;;  %v10072_v7 = vsel %vm10056_vm1, %v10039_v52, %v21284_v11  ;;  %v21285_v19 = vld [vmem:[#allocation130_spill] sm:$0xff]  ;;  %v21286_v34 = vld [vmem:[#allocation132_spill] sm:$0xff]  ;;  %v10081_v2 = vsel %vm10056_vm1, %v10048_v13, %v21287_v55  ;;  %v21293_v52 = vld [vmem:[#allocation357_spill] sm:$0xff] }
 0x5ac   :  { %v10079_v44 = vsel %vm10056_vm1, %v10046_v36, %v21285_v19  ;;  %v10074_v3 = vsel %vm10056_vm1, %v10041_v22, %v21286_v34  ;;  %v21288_v47 = vld [vmem:[#allocation58_spill] sm:$0xff]  ;;  %v21289_v5 = vld [vmem:[#allocation336_spill] sm:$0xff]  ;;  %v21295_v36 = vld [vmem:[#allocation161_spill] sm:$0xff] }
 0x5ad   :  { %v10076_v1 = vsel %vm10056_vm1, %v10043_v6, %v21288_v47  ;;  %v21291_v53 = vcombine.low %v21289_v5, %v21290_v30  ;;  %v21292_v49 = vld [vmem:[#allocation356_spill] sm:$0xff]  ;;  %v10083_v11 = vsel %vm10056_vm1, %v10050_v4, %v21295_v36  ;;  %v21296_v22 = vld [vmem:[#allocation86_spill] sm:$0xff]  ;;  %v21297_v13 = vld [vmem:[#allocation191_spill] sm:$0xff] }
 0x5ae   :  { %v21294_v63 = vcombine.low %v21292_v49, %v21293_v52  ;;  %v10078_v19 = vsel %vm10056_vm1, %v10045_v62, %v21296_v22  ;;  %v10085_v34 = vsel %vm10056_vm1, %v10052_v51, %v21297_v13  ;;  %v21298_v6 = vld [vmem:[#allocation116_spill] sm:$0xff]  ;;  %v21299_v47 = vld [vmem:[#allocation223_spill] sm:$0xff]  ;;  %v21300_v30 = vld [vmem:[#allocation225_spill] sm:$0xff]  ;;  %v16937_v62 = vpop.permute.xlu1 %9565  ;;  %v16939_v22 = vpop.permute.xlu0 %9579 }
 0x5af   :  { %9805 = vrot.lane.b32.xlu1 %v21291_v53, %s10649_s24  ;;  %v10080_v55 = vsel %vm10056_vm1, %v10047_v46, %v21298_v6  ;;  %v10087_v53 = vsel %vm10056_vm1, %v10054_v60, %v21299_v47  ;;  %v16931_v5 = vsel %vm10056_vm1, %v10049_v24, %v21300_v30  ;;  %v21303_v4 = vld [vmem:[#allocation281_spill] sm:$0xff]  ;;  %21304 = vst [vmem:[#allocation467_spill] sm:$0xff] %v16937_v62  ;;  %21305 = vst [vmem:[#allocation449_spill] sm:$0xff] %v16939_v22  ;;  %v21306_v51 = vld [vmem:[#allocation176_spill] sm:$0xff] }
 0x5b0   :  { %9819 = vrot.lane.b32.xlu0 %v21294_v63, %s10649_s24  ;;  %21301 = vst [vmem:[#allocation439_spill] sm:$0xff] %v16931_v5  ;;  %v21302_v63 = vld [vmem:[#allocation146_spill] sm:$0xff]  ;;  %v10092_v36 = vsel %vm10089_vm2, %v10059_v61, %v21303_v4  ;;  %v10094_v46 = vsel %vm10089_vm2, %v10061_v18, %v21306_v51  ;;  %v21308_v6 = vld [vmem:[#allocation291_spill] sm:$0xff]  ;;  %v21311_v61 = vld [vmem:[#allocation209_spill] sm:$0xff] }
 0x5b1   :  { %v10090_v52 = vsel %vm10089_vm2, %v10057_v16, %v21302_v63  ;;  %v21307_v13 = vld [vmem:[#allocation178_spill] sm:$0xff]  ;;  %v10096_v24 = vsel %vm10089_vm2, %v10063_v33, %v21308_v6  ;;  %v21310_v16 = vld [vmem:[#allocation207_spill] sm:$0xff]  ;;  %v10093_v4 = vsel %vm10089_vm2, %v10060_v23, %v21311_v61 }
 0x5b2   :  { %v10088_v60 = vsel %vm10056_vm1, %v10055_v29, %v21307_v13  ;;  %v21309_v30 = vld [vmem:[#allocation294_spill] sm:$0xff]  ;;  %v10098_v63 = vsel %vm10089_vm2, %v10065_v31, %v21310_v16  ;;  %v21312_v5 = vld [vmem:[#allocation327_spill] sm:$0xff]  ;;  %v21321_v16 = vld [vmem:[#allocation480_spill] sm:$0xff] }
 0x5b3   :  { %v10091_v47 = vsel %vm10089_vm2, %v10058_v10, %v21309_v30  ;;  %v10100_v22 = vsel %vm10089_vm2, %v10067_v38, %v21312_v5  ;;  %v21313_v18 = vld [vmem:[#allocation354_spill] sm:$0xff]  ;;  %v21314_v51 = vld [vmem:[#allocation355_spill] sm:$0xff]  ;;  %v21319_v10 = vld [vmem:[#allocation329_spill] sm:$0xff]  ;;  %v10097_v38 = vsel %vm10089_vm2, %v10064_v58, %v21321_v16 }
 0x5b4   :  { %v21315_v29 = vcombine.low %v21313_v18, %v21314_v51  ;;  %v21316_v33 = vld [vmem:[#allocation390_spill] sm:$0xff]  ;;  %v21317_v13 = vld [vmem:[#allocation391_spill] sm:$0xff]  ;;  %v10095_v31 = vsel %vm10089_vm2, %v10062_v0, %v21319_v10  ;;  %v21320_v30 = vld [vmem:[#allocation485_spill] sm:$0xff]  ;;  %v16979_v10 = vpop.permute.xlu1 %9569 }
 0x5b5   :  { %v21318_v6 = vcombine.low %v21316_v33, %v21317_v13  ;;  %v10102_v23 = vsel %vm10089_vm2, %v10069_v37, %v21320_v30  ;;  %v21322_v5 = vld [vmem:[#allocation301_spill] sm:$0xff]  ;;  %v21323_v62 = vld [vmem:[#allocation491_spill] sm:$0xff]  ;;  %v21326_v33 = vld [vmem:[#allocation364_spill] sm:$0xff]  ;;  %21327 = vst [vmem:[#allocation258_spill] sm:$0xff] %v16979_v10  ;;  %v16981_v37 = vpop.permute.xlu0 %9583 }
 0x5b6   :  { %9809 = vrot.lane.b32.xlu1 %v21315_v29, %s10649_s24  ;;  %v10104_v61 = vsel %vm10089_vm2, %v10071_v41, %v21322_v5  ;;  %v10099_v29 = vsel %vm10089_vm2, %v10066_v28, %v21323_v62  ;;  %v21324_v51 = vld [vmem:[#allocation239_spill] sm:$0xff]  ;;  %v21325_v13 = vld [vmem:[#allocation241_spill] sm:$0xff]  ;;  %v10108_v0 = vsel %vm10089_vm2, %v10075_v39, %v21326_v33  ;;  %21328 = vst [vmem:[#allocation148_spill] sm:$0xff] %v16981_v37  ;;  %v21329_v58 = vld [vmem:[#allocation366_spill] sm:$0xff] }
 0x5b7   :  { %9823 = vrot.lane.b32.xlu0 %v21318_v6, %s10649_s24  ;;  %v10106_v18 = vsel %vm10089_vm2, %v10073_v9, %v21324_v51  ;;  %v10101_v6 = vsel %vm10089_vm2, %v10068_v12, %v21325_v13  ;;  %v10103_v30 = vsel %vm10089_vm2, %v10070_v26, %v21329_v58  ;;  %v21330_v41 = vld [vmem:[#allocation274_spill] sm:$0xff]  ;;  %v21331_v28 = vld [vmem:[#allocation276_spill] sm:$0xff]  ;;  %v21337_v58 = vld [vmem:[#allocation389_spill] sm:$0xff] }
 0x5b8   :  { %v10110_v16 = vsel %vm10089_vm2, %v10077_v20, %v21330_v41  ;;  %v10105_v62 = vsel %vm10089_vm2, %v10072_v7, %v21331_v28  ;;  %v21332_v9 = vld [vmem:[#allocation398_spill] sm:$0xff]  ;;  %v21333_v12 = vld [vmem:[#allocation400_spill] sm:$0xff]  ;;  %v21339_v20 = vld [vmem:[#allocation421_spill] sm:$0xff] }
 0x5b9   :  { %v10112_v51 = vsel %vm10089_vm2, %v10079_v44, %v21332_v9  ;;  %v10107_v13 = vsel %vm10089_vm2, %v10074_v3, %v21333_v12  ;;  %v21334_v39 = vld [vmem:[#allocation310_spill] sm:$0xff]  ;;  %v21335_v5 = vld [vmem:[#allocation312_spill] sm:$0xff] }
 0x5ba   :  { %v10114_v33 = vsel %vm10089_vm2, %v10081_v2, %v21334_v39  ;;  %v10109_v37 = vsel %vm10089_vm2, %v10076_v1, %v21335_v5  ;;  %v21336_v26 = vld [vmem:[#allocation388_spill] sm:$0xff]  ;;  %v21340_v7 = vld [vmem:[#allocation422_spill] sm:$0xff]  ;;  %v21345_v1 = vld [vmem:[#allocation457_spill] sm:$0xff] }
 0x5bb   :  { %v21338_v10 = vcombine.low %v21336_v26, %v21337_v58  ;;  %v21341_v41 = vcombine.low %v21339_v20, %v21340_v7  ;;  %v21342_v44 = vld [vmem:[#allocation432_spill] sm:$0xff]  ;;  %v21344_v2 = vld [vmem:[#allocation346_spill] sm:$0xff]  ;;  %v10113_v39 = vsel %vm10089_vm2, %v10080_v55, %v21345_v1  ;;  %v21347_v58 = vld [vmem:[#allocation487_spill] sm:$0xff] }
 0x5bc   :  { %v10116_v28 = vsel %vm10089_vm2, %v10083_v11, %v21342_v44  ;;  %v21343_v3 = vld [vmem:[#allocation344_spill] sm:$0xff]  ;;  %v10118_v12 = vsel %vm10089_vm2, %v10085_v34, %v21344_v2  ;;  %v21346_v5 = vld [vmem:[#allocation378_spill] sm:$0xff]  ;;  %v10123_v26 = vsel %vm10122_vm3, %v10090_v52, %v21347_v58  ;;  %v17021_v44 = vpop.permute.xlu1 %9573  ;;  %v21352_v34 = vld [vmem:[#allocation69_spill] sm:$0xff] }
 0x5bd   :  { %9813 = vrot.lane.b32.xlu1 %v21338_v10, %s10649_s24  ;;  %9827 = vrot.lane.b32.xlu0 %v21341_v41, %s10649_s24  ;;  %v10111_v9 = vsel %vm10089_vm2, %v10078_v19, %v21343_v3  ;;  %v10120_v10 = vsel %vm10089_vm2, %v10087_v53, %v21346_v5  ;;  %v21348_v7 = vld [vmem:[#allocation444_spill] sm:$0xff]  ;;  %v21349_v20 = vld [vmem:[#allocation470_spill] sm:$0xff]  ;;  %21350 = vst [vmem:[#allocation466_spill] sm:$0xff] %v17021_v44  ;;  %v17023_v19 = vpop.permute.xlu0 %9587  ;;  %v21353_v55 = vld [vmem:[#allocation13_spill] sm:$0xff] }
 0x5be   :  { %v10125_v41 = vsel %vm10122_vm3, %v10092_v36, %v21348_v7  ;;  %v10127_v11 = vsel %vm10122_vm3, %v10094_v46, %v21349_v20  ;;  %21351 = vst [vmem:[#allocation494_spill] sm:$0xff] %v17023_v19  ;;  %v10121_v3 = vsel %vm10089_vm2, %v10088_v60, %v21352_v34  ;;  %v10129_v2 = vsel %vm10122_vm3, %v10096_v24, %v21353_v55  ;;  %v21354_v53 = vld [vmem:[#allocation429_spill] sm:$0xff]  ;;  %v21355_v52 = vld [vmem:[#allocation456_spill] sm:$0xff]  ;;  %v21357_v46 = vld [vmem:[#allocation410_spill] sm:$0xff] }
 0x5bf   :  { %v10124_v1 = vsel %vm10122_vm3, %v10091_v47, %v21354_v53  ;;  %v10131_v58 = vsel %vm10122_vm3, %v10098_v63, %v21355_v52  ;;  %v21356_v36 = vld [vmem:[#allocation488_spill] sm:$0xff]  ;;  %v10133_v20 = vsel %vm10122_vm3, %v10100_v22, %v21357_v46  ;;  %v21358_v5 = vld [vmem:[#allocation409_spill] sm:$0xff]  ;;  %v21362_v47 = vld [vmem:[#allocation447_spill] sm:$0xff] }
 0x5c0   :  { %v10126_v7 = vsel %vm10122_vm3, %v10093_v4, %v21356_v36  ;;  %v10128_v19 = vsel %vm10122_vm3, %v10095_v31, %v21358_v5  ;;  %v21359_v60 = vld [vmem:[#allocation141_spill] sm:$0xff]  ;;  %v21363_v55 = vld [vmem:[#allocation448_spill] sm:$0xff]  ;;  %v21366_v52 = vld [vmem:[#allocation15_spill] sm:$0xff] }
 0x5c1   :  { %v21360_v34 = vld [vmem:[#allocation417_spill] sm:$0xff]  ;;  %v21364_v53 = vcombine.low %v21362_v47, %v21363_v55  ;;  %v10130_v22 = vsel %vm10122_vm3, %v10097_v38, %v21366_v52  ;;  %v21368_v46 = vld [vmem:[#allocation43_spill] sm:$0xff]  ;;  %v21371_v55 = vld [vmem:[#allocation102_spill] sm:$0xff]  ;;  %v17065_v38 = vpop.permute.xlu0 %9591 }
 0x5c2   :  { %v21361_v24 = vcombine.low %v21359_v60, %v21360_v34  ;;  %v21365_v63 = vld [vmem:[#allocation17_spill] sm:$0xff]  ;;  %v10132_v5 = vsel %vm10122_vm3, %v10099_v29, %v21368_v46  ;;  %v21370_v34 = vld [vmem:[#allocation71_spill] sm:$0xff]  ;;  %v21372_v47 = vld [vmem:[#allocation100_spill] sm:$0xff]  ;;  %21373 = vst [vmem:[#allocation419_spill] sm:$0xff] %v17065_v38 }
 0x5c3   :  { %9831 = vrot.lane.b32.xlu0 %v21364_v53, %s10649_s24  ;;  %v10135_v4 = vsel %vm10122_vm3, %v10102_v23, %v21365_v63  ;;  %v21367_v36 = vld [vmem:[#allocation45_spill] sm:$0xff]  ;;  %v10134_v60 = vsel %vm10122_vm3, %v10101_v6, %v21370_v34  ;;  %v10141_v53 = vsel %vm10122_vm3, %v10108_v0, %v21371_v55  ;;  %v10136_v23 = vsel %vm10122_vm3, %v10103_v30, %v21372_v47  ;;  %v17063_v63 = vpop.permute.xlu1 %9577  ;;  %v21378_v0 = vld [vmem:[#allocation59_spill] sm:$0xff] }
 0x5c4   :  { %9817 = vrot.lane.b32.xlu1 %v21361_v24, %s10649_s24  ;;  %v10137_v31 = vsel %vm10122_vm3, %v10104_v61, %v21367_v36  ;;  %v21369_v44 = vld [vmem:[#allocation73_spill] sm:$0xff]  ;;  %v21374_v61 = vld [vmem:[#allocation31_spill] sm:$0xff]  ;;  %v10147_v55 = vsel %vm10122_vm3, %v10114_v33, %v21378_v0  ;;  %v21387_v33 = vld [vmem:[#allocation164_spill] sm:$0xff] }
 0x5c5   :  { %v10139_v24 = vsel %vm10122_vm3, %v10106_v18, %v21369_v44  ;;  %v10143_v52 = vsel %vm10122_vm3, %v10110_v16, %v21374_v61  ;;  %v21375_v29 = vld [vmem:[#allocation29_spill] sm:$0xff]  ;;  %v21376_v18 = vld [vmem:[#allocation134_spill] sm:$0xff] }
 0x5c6   :  { %v10138_v36 = vsel %vm10122_vm3, %v10105_v62, %v21375_v29  ;;  %v10145_v44 = vsel %vm10122_vm3, %v10112_v51, %v21376_v18  ;;  %v21377_v6 = vld [vmem:[#allocation133_spill] sm:$0xff]  ;;  %v21381_v16 = vld [vmem:[#allocation418_spill] sm:$0xff]  ;;  %v21382_v62 = vld [vmem:[#allocation420_spill] sm:$0xff]  ;;  %v17095_v18 = vsel %vm10122_vm3, %v10111_v9, %v21387_v33 }
 0x5c7   :  { %v10140_v34 = vsel %vm10122_vm3, %v10107_v13, %v21377_v6  ;;  %v21379_v30 = vld [vmem:[#allocation57_spill] sm:$0xff]  ;;  %v21383_v61 = vcombine.low %v21381_v16, %v21382_v62  ;;  %v21385_v13 = vld [vmem:[#allocation479_spill] sm:$0xff]  ;;  %v21394_v33 = vld [vmem:[#allocation262_spill] sm:$0xff] }
 0x5c8   :  { %v17079_v47 = vsel %vm10122_vm3, %v10109_v37, %v21379_v30  ;;  %v21380_v46 = vld [vmem:[#allocation165_spill] sm:$0xff]  ;;  %v21388_v37 = vld [vmem:[#allocation87_spill] sm:$0xff] }
 0x5c9   :  { %v17083_v38 = vsel %vm10122_vm3, %v10116_v28, %v21380_v46  ;;  %9821 = vrot.lane.b32.xlu1 %v21383_v61, %s10649_s24  ;;  %v21384_v51 = vld [vmem:[#allocation477_spill] sm:$0xff]  ;;  %v17099_v6 = vsel %vm10122_vm3, %v10118_v12, %v21388_v37  ;;  %v21390_v30 = vld [vmem:[#allocation195_spill] sm:$0xff]  ;;  %v21391_v61 = vld [vmem:[#allocation118_spill] sm:$0xff]  ;;  %v17117_v12 = vsel %vm10122_vm3, %v10121_v3, %v21394_v33  ;;  %v17119_v37 = vpop.permute.xlu1 %9581 }
 0x5ca   :  { %v21386_v29 = vcombine.low %v21384_v51, %v21385_v13  ;;  %v21389_v28 = vld [vmem:[#allocation85_spill] sm:$0xff]  ;;  %v10153_v46 = vsel %vm10122_vm3, %v10120_v10, %v21390_v30  ;;  %v10156_v62 = vsel %vm10155_vm4, %v10123_v26, %v21391_v61  ;;  %v21392_v13 = vld [vmem:[#allocation150_spill] sm:$0xff]  ;;  %21395 = vst [vmem:[#allocation187_spill] sm:$0xff] %v17119_v37  ;;  %v21398_v26 = vld [vmem:[#allocation179_spill] sm:$0xff] }
 0x5cb   :  { %v17103_v0 = vsel %vm10122_vm3, %v10113_v39, %v21389_v28  ;;  %v21393_v51 = vld [vmem:[#allocation94_spill] sm:$0xff]  ;;  %v17121_v39 = vpop.permute.xlu0 %9595  ;;  %v21397_v28 = vld [vmem:[#allocation180_spill] sm:$0xff]  ;;  %v17129_v30 = vsel %vm10155_vm4, %v10124_v1, %v21398_v26 }
 0x5cc   :  { %9835 = vrot.lane.b32.xlu0 %v21386_v29, %s10649_s24  ;;  %v10158_v29 = vsel %vm10155_vm4, %v10125_v41, %v21392_v13  ;;  %v17113_v9 = vsel %vm10155_vm4, %v10127_v11, %v21393_v51  ;;  %21396 = vst [vmem:[#allocation251_spill] sm:$0xff] %v17121_v39  ;;  %v17125_v10 = vsel %vm10155_vm4, %v10129_v2, %v21397_v28  ;;  %v21399_v41 = vld [vmem:[#allocation125_spill] sm:$0xff]  ;;  %v21400_v51 = vld [vmem:[#allocation296_spill] sm:$0xff]  ;;  %v21401_v13 = vld [vmem:[#allocation211_spill] sm:$0xff] }
 0x5cd   :  { %v17133_v11 = vsel %vm10155_vm4, %v10131_v58, %v21399_v41  ;;  %v17137_v3 = vsel %vm10155_vm4, %v10126_v7, %v21400_v51  ;;  %v17141_v61 = vsel %vm10155_vm4, %v10133_v20, %v21401_v13  ;;  %v21402_v33 = vld [vmem:[#allocation210_spill] sm:$0xff]  ;;  %v21404_v26 = vld [vmem:[#allocation236_spill] sm:$0xff]  ;;  %v21405_v58 = vld [vmem:[#allocation253_spill] sm:$0xff] }
 0x5ce   :  { %v17145_v2 = vsel %vm10155_vm4, %v10128_v19, %v21402_v33  ;;  %v21403_v28 = vld [vmem:[#allocation382_spill] sm:$0xff]  ;;  %v21406_v41 = vcombine.low %v21404_v26, %v21405_v58  ;;  %v21407_v7 = vld [vmem:[#allocation96_spill] sm:$0xff]  ;;  %v21410_v20 = vld [vmem:[#allocation333_spill] sm:$0xff] }
 0x5cf   :  { %v10186_v1 = vsel %vm10155_vm4, %v10153_v46, %v21403_v28  ;;  %v21408_v51 = vld [vmem:[#allocation98_spill] sm:$0xff]  ;;  %v17159_v13 = vsel %vm10155_vm4, %v10135_v4, %v21410_v20  ;;  %v21411_v19 = vld [vmem:[#allocation331_spill] sm:$0xff]  ;;  %v21413_v37 = vld [vmem:[#allocation88_spill] sm:$0xff] }
 0x5d0   :  { %9825 = vrot.lane.b32.xlu1 %v21406_v41, %s10649_s24  ;;  %v21409_v39 = vcombine.low %v21407_v7, %v21408_v51  ;;  %v17163_v33 = vsel %vm10155_vm4, %v10130_v22, %v21411_v19  ;;  %v21412_v46 = vld [vmem:[#allocation243_spill] sm:$0xff]  ;;  %v10219_v41 = vsel %vm10188_vm5, %v10186_v1, %v21413_v37  ;;  %v21414_v58 = vld [vmem:[#allocation242_spill] sm:$0xff]  ;;  %v17181_v22 = vpop.permute.xlu1 %9585  ;;  %v17183_v19 = vpop.permute.xlu0 %9599 }
 0x5d1   :  { %v17167_v28 = vsel %vm10155_vm4, %v10137_v31, %v21412_v46  ;;  %v17173_v26 = vsel %vm10155_vm4, %v10132_v5, %v21414_v58  ;;  %v21416_v4 = vld [vmem:[#allocation338_spill] sm:$0xff]  ;;  %21417 = vst [vmem:[#allocation266_spill] sm:$0xff] %v17181_v22  ;;  %21418 = vst [vmem:[#allocation267_spill] sm:$0xff] %v17183_v19  ;;  %v21419_v31 = vld [vmem:[#allocation289_spill] sm:$0xff] }
 0x5d2   :  { %9839 = vrot.lane.b32.xlu0 %v21409_v39, %s10649_s24  ;;  %v21415_v39 = vld [vmem:[#allocation143_spill] sm:$0xff]  ;;  %v10252_v20 = vsel %vm10221_vm6, %v10219_v41, %v21416_v4  ;;  %v17187_v46 = vsel %vm10155_vm4, %v10134_v60, %v21419_v31  ;;  %v21422_v58 = vld [vmem:[#allocation277_spill] sm:$0xff]  ;;  %v21424_v19 = vld [vmem:[#allocation350_spill] sm:$0xff] }
 0x5d3   :  { %v17177_v51 = vsel %vm10155_vm4, %v10139_v24, %v21415_v39  ;;  %v21420_v37 = vld [vmem:[#allocation111_spill] sm:$0xff]  ;;  %v17197_v41 = vsel %vm10155_vm4, %v10136_v23, %v21422_v58  ;;  %v21423_v39 = vld [vmem:[#allocation204_spill] sm:$0xff]  ;;  %v21426_v31 = vld [vmem:[#allocation465_spill] sm:$0xff] }
 0x5d4   :  { %v17191_v5 = vsel %vm10155_vm4, %v10141_v53, %v21420_v37  ;;  %v21421_v1 = vld [vmem:[#allocation91_spill] sm:$0xff]  ;;  %v10189_v4 = vsel %vm10188_vm5, %v10156_v62, %v21423_v39  ;;  %v21425_v60 = vld [vmem:[#allocation464_spill] sm:$0xff]  ;;  %v21431_v7 = vld [vmem:[#allocation218_spill] sm:$0xff] }
 0x5d5   :  { %v10285_v24 = vsel %vm10254_vm7, %v10252_v20, %v21421_v1  ;;  %v21427_v53 = vcombine.low %v21425_v60, %v21426_v31  ;;  %v21428_v37 = vld [vmem:[#allocation339_spill] sm:$0xff]  ;;  %v21429_v20 = vld [vmem:[#allocation157_spill] sm:$0xff]  ;;  %v17213_v23 = vsel %vm10155_vm4, %v10143_v52, %v21431_v7  ;;  %v21432_v58 = vld [vmem:[#allocation196_spill] sm:$0xff]  ;;  %v17227_v52 = vpop.permute.xlu1 %9589  ;;  %v9604_v7 = vpop.permute.xlu0 %9603 }
 0x5d6   :  { %v10318_v22 = vsel %vm10287_vm8, %v10285_v24, %v21424_v19  ;;  %v21430_v1 = vcombine.low %v21428_v37, %v21429_v20  ;;  %v10222_v62 = vsel %vm10221_vm6, %v10189_v4, %v21432_v58  ;;  %v21433_v39 = vld [vmem:[#allocation92_spill] sm:$0xff]  ;;  %v21434_v24 = vld [vmem:[#allocation402_spill] sm:$0xff]  ;;  %21436 = vst [vmem:[#allocation160_spill] sm:$0xff] %v17227_v52  ;;  %v21437_v20 = vld [vmem:[#allocation9_spill] sm:$0xff] }
 0x5d7   :  { %9829 = vrot.lane.b32.xlu1 %v21427_v53, %s10649_s24  ;;  %v10351_v19 = vsel %vm10320_vm9, %v10318_v22, %v21433_v39  ;;  %v17221_v31 = vsel %vm10155_vm4, %v10138_v36, %v21434_v24  ;;  %v21435_v53 = vld [vmem:[#allocation374_spill] sm:$0xff]  ;;  %v17231_v4 = vsel %vm10155_vm4, %v10145_v44, %v21437_v20  ;;  %v21438_v22 = vld [vmem:[#allocation127_spill] sm:$0xff]  ;;  %v21440_v24 = vld [vmem:[#allocation313_spill] sm:$0xff] }
 0x5d8   :  { %9843 = vrot.lane.b32.xlu0 %v21430_v1, %s10649_s24  ;;  %v10255_v60 = vsel %vm10254_vm7, %v10222_v62, %v21435_v53  ;;  %v10384_v1 = vsel %vm10353_vm10, %v10351_v19, %v16598_v54  ;;  %v17235_v58 = vsel %vm10155_vm4, %v10140_v34, %v21438_v22  ;;  %v21439_v36 = vld [vmem:[#allocation199_spill] sm:$0xff]  ;;  %v17244_v54 = vsel %vm10155_vm4, %v10147_v55, %v21440_v24  ;;  %v21442_v52 = vld [vmem:[#allocation460_spill] sm:$0xff]  ;;  %v21443_v20 = vld [vmem:[#allocation285_spill] sm:$0xff] }
 0x5d9   :  { %v10288_v39 = vsel %vm10287_vm8, %v10255_v60, %v21439_v36  ;;  %v17240_v62 = vsel %vm10386_vm11, %v10384_v1, %v9604_v7  ;;  %v21441_v19 = vld [vmem:[#allocation495_spill] sm:$0xff]  ;;  %v21444_v34 = vld [vmem:[#allocation476_spill] sm:$0xff]  ;;  %v21446_v60 = vld [vmem:[#allocation257_spill] sm:$0xff] }
 0x5da   :  { %v10191_v53 = vsel %vm10188_vm5, %v10158_v29, %v21441_v19  ;;  %v10321_v44 = vsel %vm10320_vm9, %v10288_v39, %v21442_v52  ;;  %v21445_v22 = vcombine.low %v21443_v20, %v21444_v34  ;;  %v21447_v36 = vld [vmem:[#allocation147_spill] sm:$0xff]  ;;  %v21449_v7 = vld [vmem:[#allocation436_spill] sm:$0xff]  ;;  %v21450_v29 = vld [vmem:[#allocation434_spill] sm:$0xff] }
 0x5db   :  { %v21448_v1 = vcombine.low %v21446_v60, %v21447_v36  ;;  %v17261_v55 = vsel %vm10155_vm4, %v17079_v47, %v21449_v7  ;;  %v17266_v52 = vsel %vm10155_vm4, %v17083_v38, %v21450_v29  ;;  %v21451_v39 = vld [vmem:[#allocation119_spill] sm:$0xff]  ;;  %v21452_v19 = vld [vmem:[#allocation200_spill] sm:$0xff]  ;;  %v21455_v7 = vld [vmem:[#allocation478_spill] sm:$0xff] }
 0x5dc   :  { %9833 = vrot.lane.b32.xlu1 %v21445_v22, %s10649_s24  ;;  %v10224_v24 = vsel %vm10221_vm6, %v10191_v53, %v21451_v39  ;;  %v10354_v22 = vsel %vm10353_vm10, %v10321_v44, %v21452_v19  ;;  %v21453_v34 = vld [vmem:[#allocation348_spill] sm:$0xff]  ;;  %v21454_v36 = vld [vmem:[#allocation347_spill] sm:$0xff]  ;;  %v17286_v53 = vpop.permute.xlu1 %9593  ;;  %v9672_v39 = vpop.permute.xlu0 %9671  ;;  %v21457_v44 = vld [vmem:[#allocation462_spill] sm:$0xff] }
 0x5dd   :  { %9847 = vrot.lane.b32.xlu0 %v21448_v1, %s10649_s24  ;;  %v17275_v1 = vsel %vm10155_vm4, %v17095_v18, %v21453_v34  ;;  %v17280_v47 = vsel %vm10155_vm4, %v17099_v6, %v21454_v36  ;;  %v10257_v38 = vsel %vm10254_vm7, %v10224_v24, %v21455_v7  ;;  %v10387_v29 = vsel %vm10386_vm11, %v10354_v22, %v16610_v27  ;;  %v21458_v18 = vld [vmem:[#allocation42_spill] sm:$0xff]  ;;  %v21461_v7 = vld [vmem:[#allocation193_spill] sm:$0xff]  ;;  %v21464_v60 = vld [vmem:[#allocation496_spill] sm:$0xff] }
 0x5de   :  { %21456 = vst [vmem:[#allocation24_spill] sm:$0xff] %v17286_v53  ;;  %v17291_v19 = vsel %vm10155_vm4, %v17103_v0, %v21457_v44  ;;  %v10193_v34 = vsel %vm10188_vm5, %v17113_v9, %v21458_v18  ;;  %v21459_v6 = vld [vmem:[#allocation122_spill] sm:$0xff]  ;;  %v17299_v24 = vsel %vm10419_vm12, %v10387_v29, %v9672_v39  ;;  %v10187_v27 = vsel %vm10155_vm4, %v17117_v12, %v21461_v7  ;;  %v21465_v9 = vld [vmem:[#allocation497_spill] sm:$0xff] }
 0x5df   :  { %v10290_v36 = vsel %vm10287_vm8, %v10257_v38, %v21459_v6  ;;  %21460 = vst [vmem:[#allocation26_spill] sm:$0xff] %v17299_v24  ;;  %v21462_v22 = vld [vmem:[#allocation114_spill] sm:$0xff]  ;;  %v21466_v18 = vcombine.low %v21464_v60, %v21465_v9  ;;  %v21467_v38 = vld [vmem:[#allocation393_spill] sm:$0xff]  ;;  %v21470_v6 = vld [vmem:[#allocation459_spill] sm:$0xff] }
 0x5e0   :  { %v10195_v53 = vsel %vm10188_vm5, %v17125_v10, %v21462_v22  ;;  %v21463_v0 = vld [vmem:[#allocation482_spill] sm:$0xff]  ;;  %v21468_v29 = vld [vmem:[#allocation145_spill] sm:$0xff]  ;;  %v10190_v12 = vsel %vm10188_vm5, %v17129_v30, %v21470_v6  ;;  %v21472_v22 = vld [vmem:[#allocation228_spill] sm:$0xff]  ;;  %v17337_v6 = vpop.permute.xlu1 %9597 }
 0x5e1   :  { %v10323_v44 = vsel %vm10320_vm9, %v10290_v36, %v21463_v0  ;;  %9837 = vrot.lane.b32.xlu1 %v21466_v18, %s10649_s24  ;;  %v21469_v39 = vcombine.low %v21467_v38, %v21468_v29  ;;  %v21471_v7 = vld [vmem:[#allocation381_spill] sm:$0xff]  ;;  %v10226_v36 = vsel %vm10221_vm6, %v10193_v34, %v21472_v22  ;;  %v21473_v0 = vld [vmem:[#allocation123_spill] sm:$0xff]  ;;  %v21474_v18 = vld [vmem:[#allocation492_spill] sm:$0xff]  ;;  %v9676_v34 = vpop.permute.xlu0 %9675 }
 0x5e2   :  { %v10197_v10 = vsel %vm10188_vm5, %v17133_v11, %v21471_v7  ;;  %v10356_v24 = vsel %vm10353_vm10, %v10323_v44, %v21473_v0  ;;  %v10192_v9 = vsel %vm10188_vm5, %v17137_v3, %v21474_v18  ;;  %v21475_v29 = vld [vmem:[#allocation490_spill] sm:$0xff]  ;;  %v21476_v38 = vld [vmem:[#allocation441_spill] sm:$0xff]  ;;  %v21478_v22 = vld [vmem:[#allocation20_spill] sm:$0xff] }
 0x5e3   :  { %9851 = vrot.lane.b32.xlu0 %v21469_v39, %s10649_s24  ;;  %v10199_v39 = vsel %vm10188_vm5, %v17141_v61, %v21475_v29  ;;  %v10259_v30 = vsel %vm10254_vm7, %v10226_v36, %v21476_v38  ;;  %v10389_v11 = vsel %vm10386_vm11, %v10356_v24, %v16622_v32  ;;  %v21477_v7 = vld [vmem:[#allocation18_spill] sm:$0xff]  ;;  %v17347_v3 = vsel %vm10188_vm5, %v17159_v13, %v21478_v22  ;;  %v21479_v61 = vld [vmem:[#allocation231_spill] sm:$0xff]  ;;  %v21481_v32 = vld [vmem:[#allocation412_spill] sm:$0xff] }
 0x5e4   :  { %v17342_v44 = vsel %vm10188_vm5, %v17145_v2, %v21477_v7  ;;  %v10292_v29 = vsel %vm10287_vm8, %v10259_v30, %v21479_v61  ;;  %v17352_v38 = vsel %vm10419_vm12, %v10389_v11, %v9676_v34  ;;  %v17357_v24 = vsel %vm10188_vm5, %v17163_v33, %v21481_v32  ;;  %v21482_v36 = vld [vmem:[#allocation411_spill] sm:$0xff]  ;;  %v21483_v0 = vld [vmem:[#allocation445_spill] sm:$0xff]  ;;  %v21484_v18 = vld [vmem:[#allocation126_spill] sm:$0xff] }
 0x5e5   :  { %21480 = vst [vmem:[#allocation25_spill] sm:$0xff] %v17352_v38  ;;  %v17362_v2 = vsel %vm10188_vm5, %v17167_v28, %v21482_v36  ;;  %v10325_v13 = vsel %vm10320_vm9, %v10292_v29, %v21483_v0  ;;  %v21485_v7 = vld [vmem:[#allocation129_spill] sm:$0xff]  ;;  %v21488_v34 = vld [vmem:[#allocation14_spill] sm:$0xff]  ;;  %v21490_v33 = vld [vmem:[#allocation48_spill] sm:$0xff] }
 0x5e6   :  { %v21486_v30 = vcombine.low %v21484_v18, %v21485_v7  ;;  %v21487_v11 = vld [vmem:[#allocation309_spill] sm:$0xff]  ;;  %v17377_v61 = vsel %vm10188_vm5, %v17173_v26, %v21490_v33  ;;  %v21491_v28 = vld [vmem:[#allocation152_spill] sm:$0xff]  ;;  %v21492_v36 = vld [vmem:[#allocation151_spill] sm:$0xff]  ;;  %v17396_v33 = vpop.permute.xlu1 %9601 }
 0x5e7   :  { %v21489_v22 = vcombine.low %v21487_v11, %v21488_v34  ;;  %v10220_v32 = vsel %vm10188_vm5, %v10187_v27, %v21491_v28  ;;  %v10228_v29 = vsel %vm10221_vm6, %v10195_v53, %v21492_v36  ;;  %v21493_v0 = vld [vmem:[#allocation232_spill] sm:$0xff]  ;;  %21497 = vst [vmem:[#allocation10_spill] sm:$0xff] %v17396_v33  ;;  %v9680_v53 = vpop.permute.xlu0 %9679  ;;  %v21499_v36 = vld [vmem:[#allocation153_spill] sm:$0xff] }
 0x5e8   :  { %9841 = vrot.lane.b32.xlu1 %v21486_v30, %s10649_s24  ;;  %v10358_v38 = vsel %vm10353_vm10, %v10325_v13, %v21493_v0  ;;  %v21494_v30 = vld [vmem:[#allocation46_spill] sm:$0xff]  ;;  %v21496_v11 = vld [vmem:[#allocation468_spill] sm:$0xff]  ;;  %v21515_v33 = vld [vmem:[#allocation265_spill] sm:$0xff] }
 0x5e9   :  { %9855 = vrot.lane.b32.xlu0 %v21489_v22, %s10649_s24  ;;  %v17388_v7 = vsel %vm10188_vm5, %v17177_v51, %v21494_v30  ;;  %v21495_v22 = vld [vmem:[#allocation202_spill] sm:$0xff]  ;;  %v10261_v26 = vsel %vm10254_vm7, %v10228_v29, %v21496_v11  ;;  %v10391_v27 = vsel %vm10386_vm11, %v10358_v38, %v16634_v25  ;;  %v21498_v28 = vld [vmem:[#allocation76_spill] sm:$0xff] }
 0x5ea   :  { %v10253_v34 = vsel %vm10221_vm6, %v10220_v32, %v21495_v22  ;;  %v17401_v13 = vsel %vm10188_vm5, %v17187_v46, %v21498_v28  ;;  %v21500_v0 = vld [vmem:[#allocation154_spill] sm:$0xff]  ;;  %v17408_v30 = vsel %vm10419_vm12, %v10391_v27, %v9680_v53  ;;  %v21505_v28 = vld [vmem:[#allocation83_spill] sm:$0xff]  ;;  %v21509_v27 = vld [vmem:[#allocation84_spill] sm:$0xff] }
 0x5eb   :  { %v10286_v51 = vsel %vm10254_vm7, %v10253_v34, %v21499_v36  ;;  %v10294_v32 = vsel %vm10287_vm8, %v10261_v26, %v21500_v0  ;;  %21501 = vst [vmem:[#allocation12_spill] sm:$0xff] %v17408_v30  ;;  %v21502_v11 = vld [vmem:[#allocation74_spill] sm:$0xff]  ;;  %v21506_v34 = vld [vmem:[#allocation219_spill] sm:$0xff] }
 0x5ec   :  { %v17413_v25 = vsel %vm10188_vm5, %v17191_v5, %v21502_v11  ;;  %v21503_v38 = vld [vmem:[#allocation446_spill] sm:$0xff]  ;;  %v21507_v36 = vcombine.low %v21505_v28, %v21506_v34  ;;  %v21508_v26 = vld [vmem:[#allocation163_spill] sm:$0xff]  ;;  %v21512_v11 = vld [vmem:[#allocation252_spill] sm:$0xff] }
 0x5ed   :  { %v10319_v29 = vsel %vm10287_vm8, %v10286_v51, %v21503_v38  ;;  %v21504_v22 = vld [vmem:[#allocation474_spill] sm:$0xff]  ;;  %v21510_v53 = vcombine.low %v21508_v26, %v21509_v27  ;;  %v10230_v30 = vsel %vm10221_vm6, %v10197_v10, %v21512_v11  ;;  %v21513_v51 = vld [vmem:[#allocation156_spill] sm:$0xff]  ;;  %v21516_v34 = vld [vmem:[#allocation39_spill] sm:$0xff]  ;;  %v9684_v10 = vpop.permute.xlu0 %9683 }
 0x5ee   :  { %v10327_v46 = vsel %vm10320_vm9, %v10294_v32, %v21504_v22  ;;  %9845 = vrot.lane.b32.xlu1 %v21507_v36, %s10649_s24  ;;  %v21511_v0 = vld [vmem:[#allocation254_spill] sm:$0xff]  ;;  %v10352_v38 = vsel %vm10320_vm9, %v10319_v29, %v21513_v51  ;;  %v21514_v32 = vld [vmem:[#allocation155_spill] sm:$0xff]  ;;  %v10263_v28 = vsel %vm10254_vm7, %v10230_v30, %v21516_v34  ;;  %v21517_v11 = vld [vmem:[#allocation261_spill] sm:$0xff] }
 0x5ef   :  { %9859 = vrot.lane.b32.xlu0 %v21510_v53, %s10649_s24  ;;  %v10223_v5 = vsel %vm10221_vm6, %v10190_v12, %v21511_v0  ;;  %v10360_v22 = vsel %vm10353_vm10, %v10327_v46, %v21514_v32  ;;  %v10385_v53 = vsel %vm10353_vm10, %v10352_v38, %v16644_v48  ;;  %v9606_v0 = vpop.permute.xlu1 %9605  ;;  %v21518_v51 = vld [vmem:[#allocation263_spill] sm:$0xff]  ;;  %v21519_v30 = vld [vmem:[#allocation104_spill] sm:$0xff] }
 0x5f0   :  { %v10256_v36 = vsel %vm10254_vm7, %v10223_v5, %v21515_v33  ;;  %v10393_v12 = vsel %vm10386_vm11, %v10360_v22, %v16646_v14  ;;  %v10296_v46 = vsel %vm10287_vm8, %v10263_v28, %v21518_v51  ;;  %v17448_v32 = vsel %vm10386_vm11, %v10385_v53, %v9606_v0  ;;  %v21520_v14 = vld [vmem:[#allocation475_spill] sm:$0xff]  ;;  %v21522_v22 = vld [vmem:[#allocation396_spill] sm:$0xff]  ;;  %v21523_v28 = vld [vmem:[#allocation173_spill] sm:$0xff] }
 0x5f1   :  { %v10289_v29 = vsel %vm10287_vm8, %v10256_v36, %v21517_v11  ;;  %v17451_v33 = vsel %vm10419_vm12, %v10393_v12, %v9684_v10  ;;  %v17456_v48 = vsel %vm10188_vm5, %v17197_v41, %v21519_v30  ;;  %v21521_v5 = vld [vmem:[#allocation11_spill] sm:$0xff]  ;;  %v21524_v36 = vcombine.low %v21522_v22, %v21523_v28  ;;  %v21526_v12 = vld [vmem:[#allocation182_spill] sm:$0xff]  ;;  %v21527_v0 = vld [vmem:[#allocation181_spill] sm:$0xff] }
 0x5f2   :  { %v10322_v34 = vsel %vm10320_vm9, %v10289_v29, %v21520_v14  ;;  %v10329_v38 = vsel %vm10320_vm9, %v10296_v46, %v21521_v5  ;;  %v21525_v53 = vcombine.high %v21115_v15, %v21116_v56  ;;  %v10225_v41 = vsel %vm10221_vm6, %v10192_v9, %v21526_v12  ;;  %v21528_v11 = vld [vmem:[#allocation264_spill] sm:$0xff]  ;;  %v21529_v51 = vld [vmem:[#allocation109_spill] sm:$0xff] }
 0x5f3   :  { %9849 = vrot.lane.b32.xlu1 %v21524_v36, %s10649_s24  ;;  %v10232_v10 = vsel %vm10221_vm6, %v10199_v39, %v21527_v0  ;;  %v10355_v29 = vsel %vm10353_vm10, %v10322_v34, %v21528_v11  ;;  %v10362_v46 = vsel %vm10353_vm10, %v10329_v38, %v21529_v51  ;;  %v21530_v30 = vld [vmem:[#allocation305_spill] sm:$0xff]  ;;  %v9674_v9 = vpop.permute.xlu1 %9673  ;;  %v9688_v39 = vpop.permute.xlu0 %9687  ;;  %v21533_v12 = vld [vmem:[#allocation184_spill] sm:$0xff] }
 0x5f4   :  { %9927 = vrot.lane.b32.xlu0 %v21525_v53, %s10650_s25  ;;  %v10258_v14 = vsel %vm10254_vm7, %v10225_v41, %v21530_v30  ;;  %v21531_v5 = vld [vmem:[#allocation453_spill] sm:$0xff]  ;;  %v10388_v15 = vsel %vm10386_vm11, %v10355_v29, %v16656_v50  ;;  %v10395_v56 = vsel %vm10386_vm11, %v10362_v46, %v16658_v35  ;;  %v21532_v53 = vld [vmem:[#allocation183_spill] sm:$0xff]  ;;  %v21536_v29 = vld [vmem:[#allocation384_spill] sm:$0xff] }
 0x5f5   :  { %v10265_v36 = vsel %vm10254_vm7, %v10232_v10, %v21531_v5  ;;  %v10291_v34 = vsel %vm10287_vm8, %v10258_v14, %v21532_v53  ;;  %v17491_v0 = vsel %vm10419_vm12, %v10388_v15, %v9674_v9  ;;  %v17494_v41 = vsel %vm10419_vm12, %v10395_v56, %v9688_v39  ;;  %v21534_v10 = vld [vmem:[#allocation103_spill] sm:$0xff]  ;;  %v21535_v35 = vld [vmem:[#allocation41_spill] sm:$0xff]  ;;  %v21542_v15 = vld [vmem:[#allocation286_spill] sm:$0xff] }
 0x5f6   :  { %v10298_v38 = vsel %vm10287_vm8, %v10265_v36, %v21533_v12  ;;  %v17499_v50 = vsel %vm10188_vm5, %v17213_v23, %v21534_v10  ;;  %v10324_v11 = vsel %vm10320_vm9, %v10291_v34, %v21535_v35  ;;  %v21537_v46 = vld [vmem:[#allocation117_spill] sm:$0xff]  ;;  %v21538_v30 = vld [vmem:[#allocation227_spill] sm:$0xff]  ;;  %v21540_v5 = vcombine.high %v21119_v21, %v21120_v17  ;;  %v21543_v9 = vld [vmem:[#allocation186_spill] sm:$0xff] }
 0x5f7   :  { %v10331_v51 = vsel %vm10320_vm9, %v10298_v38, %v21536_v29  ;;  %v21539_v14 = vcombine.low %v21537_v46, %v21538_v30  ;;  %v21541_v36 = vld [vmem:[#allocation287_spill] sm:$0xff]  ;;  %v10234_v56 = vsel %vm10221_vm6, %v17347_v3, %v21542_v15  ;;  %v10357_v39 = vsel %vm10353_vm10, %v10324_v11, %v21543_v9  ;;  %v21544_v53 = vld [vmem:[#allocation185_spill] sm:$0xff]  ;;  %v21545_v12 = vld [vmem:[#allocation484_spill] sm:$0xff]  ;;  %v9678_v35 = vpop.permute.xlu1 %9677  ;;  %v9692_v3 = vpop.permute.xlu0 %9691 }
 0x5f8   :  { %9931 = vrot.lane.b32.xlu0 %v21540_v5, %s10650_s25  ;;  %v10227_v23 = vsel %vm10221_vm6, %v17342_v44, %v21541_v36  ;;  %v10364_v34 = vsel %vm10353_vm10, %v10331_v51, %v21544_v53  ;;  %v21546_v10 = vld [vmem:[#allocation406_spill] sm:$0xff]  ;;  %v10390_v17 = vsel %vm10386_vm11, %v10357_v39, %v16678_v40  ;;  %v21547_v29 = vld [vmem:[#allocation293_spill] sm:$0xff]  ;;  %v21552_v39 = vld [vmem:[#allocation368_spill] sm:$0xff] }
 0x5f9   :  { %9853 = vrot.lane.b32.xlu1 %v21539_v14, %s10649_s24  ;;  %v10260_v38 = vsel %vm10254_vm7, %v10227_v23, %v21545_v12  ;;  %v10267_v21 = vsel %vm10254_vm7, %v10234_v56, %v21546_v10  ;;  %v10397_v44 = vsel %vm10386_vm11, %v10364_v34, %v16680_v57  ;;  %v21548_v14 = vld [vmem:[#allocation295_spill] sm:$0xff]  ;;  %v17536_v5 = vsel %vm10419_vm12, %v10390_v17, %v9678_v35  ;;  %v21549_v23 = vld [vmem:[#allocation34_spill] sm:$0xff]  ;;  %v21550_v57 = vld [vmem:[#allocation489_spill] sm:$0xff] }
 0x5fa   :  { %v10293_v11 = vsel %vm10287_vm8, %v10260_v38, %v21547_v29  ;;  %v10300_v51 = vsel %vm10287_vm8, %v10267_v21, %v21548_v14  ;;  %v17539_v36 = vsel %vm10419_vm12, %v10397_v44, %v9692_v3  ;;  %v17544_v40 = vsel %vm10188_vm5, %v17221_v31, %v21549_v23  ;;  %v21551_v56 = vld [vmem:[#allocation23_spill] sm:$0xff]  ;;  %v21553_v53 = vld [vmem:[#allocation424_spill] sm:$0xff]  ;;  %v21556_v38 = vld [vmem:[#allocation213_spill] sm:$0xff] }
 0x5fb   :  { %v10326_v15 = vsel %vm10320_vm9, %v10293_v11, %v21550_v57  ;;  %v10333_v9 = vsel %vm10320_vm9, %v10300_v51, %v21551_v56  ;;  %v21554_v34 = vcombine.low %v21552_v39, %v21553_v53  ;;  %v21555_v12 = vcombine.high %v21159_v8, %v21160_v45  ;;  %v21557_v10 = vld [vmem:[#allocation212_spill] sm:$0xff]  ;;  %v21558_v35 = vld [vmem:[#allocation21_spill] sm:$0xff]  ;;  %v21559_v29 = vld [vmem:[#allocation19_spill] sm:$0xff]  ;;  %v9682_v14 = vpop.permute.xlu1 %9681 }
 0x5fc   :  { %v10229_v31 = vsel %vm10221_vm6, %v17357_v24, %v21556_v38  ;;  %v10236_v21 = vsel %vm10221_vm6, %v17362_v2, %v21557_v10  ;;  %v10359_v17 = vsel %vm10353_vm10, %v10326_v15, %v16489_v43  ;;  %v10366_v44 = vsel %vm10353_vm10, %v10333_v9, %v16491_v59  ;;  %v21560_v24 = vld [vmem:[#allocation463_spill] sm:$0xff]  ;;  %v9696_v2 = vpop.permute.xlu0 %9695  ;;  %v21561_v51 = vld [vmem:[#allocation214_spill] sm:$0xff]  ;;  %v21563_v56 = vld [vmem:[#allocation32_spill] sm:$0xff] }
 0x5fd   :  { %9857 = vrot.lane.b32.xlu1 %v21554_v34, %s10649_s24  ;;  %9935 = vrot.lane.b32.xlu0 %v21555_v12, %s10650_s25  ;;  %v10262_v3 = vsel %vm10254_vm7, %v10229_v31, %v21558_v35  ;;  %v10269_v8 = vsel %vm10254_vm7, %v10236_v21, %v21559_v29  ;;  %v10392_v45 = vsel %vm10386_vm11, %v10359_v17, %v16765_v42  ;;  %v21562_v23 = vld [vmem:[#allocation215_spill] sm:$0xff]  ;;  %v21564_v9 = vld [vmem:[#allocation22_spill] sm:$0xff]  ;;  %v21566_v31 = vld [vmem:[#allocation473_spill] sm:$0xff] }
 0x5fe   :  { %v10399_v11 = vsel %vm10386_vm11, %v10366_v44, %v21560_v24  ;;  %v10295_v43 = vsel %vm10287_vm8, %v10262_v3, %v21561_v51  ;;  %v10302_v59 = vsel %vm10287_vm8, %v10269_v8, %v21562_v23  ;;  %v17581_v57 = vsel %vm10419_vm12, %v10392_v45, %v9682_v14  ;;  %v21565_v12 = vld [vmem:[#allocation414_spill] sm:$0xff]  ;;  %v21567_v10 = vld [vmem:[#allocation472_spill] sm:$0xff]  ;;  %v21569_v17 = vld [vmem:[#allocation299_spill] sm:$0xff] }
 0x5ff   :  { %v17584_v15 = vsel %vm10419_vm12, %v10399_v11, %v9696_v2  ;;  %v17589_v42 = vsel %vm10188_vm5, %v17231_v4, %v21563_v56  ;;  %v10328_v34 = vsel %vm10320_vm9, %v10295_v43, %v21564_v9  ;;  %v10335_v38 = vsel %vm10320_vm9, %v10302_v59, %v21565_v12  ;;  %v21570_v44 = vld [vmem:[#allocation300_spill] sm:$0xff]  ;;  %v21572_v3 = vld [vmem:[#allocation323_spill] sm:$0xff]  ;;  %v21573_v29 = vld [vmem:[#allocation321_spill] sm:$0xff]  ;;  %v9686_v12 = vpop.permute.xlu1 %9685 }
 0x600   :  { %v21568_v21 = vcombine.low %v21566_v31, %v21567_v10  ;;  %v21571_v35 = vcombine.high %v21569_v17, %v21570_v44  ;;  %v10231_v4 = vsel %vm10221_vm6, %v17377_v61, %v21572_v3  ;;  %v10238_v8 = vsel %vm10221_vm6, %v17388_v7, %v21573_v29  ;;  %v21574_v45 = vld [vmem:[#allocation298_spill] sm:$0xff]  ;;  %v21575_v11 = vld [vmem:[#allocation297_spill] sm:$0xff]  ;;  %v21576_v2 = vld [vmem:[#allocation47_spill] sm:$0xff]  ;;  %v9700_v7 = vpop.permute.xlu0 %9699 }
 0x601   :  { %v10361_v24 = vsel %vm10353_vm10, %v10328_v34, %v21574_v45  ;;  %v10368_v14 = vsel %vm10353_vm10, %v10335_v38, %v21575_v11  ;;  %v10264_v51 = vsel %vm10254_vm7, %v10231_v4, %v21576_v2  ;;  %v21577_v43 = vld [vmem:[#allocation49_spill] sm:$0xff]  ;;  %v21578_v59 = vld [vmem:[#allocation386_spill] sm:$0xff]  ;;  %v21581_v17 = vld [vmem:[#allocation332_spill] sm:$0xff] }
 0x602   :  { %9861 = vrot.lane.b32.xlu1 %v21568_v21, %s10649_s24  ;;  %9939 = vrot.lane.b32.xlu0 %v21571_v35, %s10650_s25  ;;  %v10271_v23 = vsel %vm10254_vm7, %v10238_v8, %v21577_v43  ;;  %v10394_v56 = vsel %vm10386_vm11, %v10361_v24, %v21578_v59  ;;  %v21579_v61 = vld [vmem:[#allocation493_spill] sm:$0xff]  ;;  %v21580_v21 = vld [vmem:[#allocation330_spill] sm:$0xff]  ;;  %v21582_v3 = vld [vmem:[#allocation136_spill] sm:$0xff] }
 0x603   :  { %v10401_v9 = vsel %vm10386_vm11, %v10368_v14, %v21579_v61  ;;  %v10297_v34 = vsel %vm10287_vm8, %v10264_v51, %v21580_v21  ;;  %v10304_v38 = vsel %vm10287_vm8, %v10271_v23, %v21581_v17  ;;  %v17626_v44 = vsel %vm10419_vm12, %v10394_v56, %v9686_v12  ;;  %v21583_v29 = vld [vmem:[#allocation51_spill] sm:$0xff]  ;;  %v21584_v45 = vld [vmem:[#allocation50_spill] sm:$0xff]  ;;  %v21589_v43 = vld [vmem:[#allocation320_spill] sm:$0xff] }
 0x604   :  { %v17629_v35 = vsel %vm10419_vm12, %v10401_v9, %v9700_v7  ;;  %v17634_v4 = vsel %vm10188_vm5, %v17235_v58, %v21582_v3  ;;  %v10330_v8 = vsel %vm10320_vm9, %v10297_v34, %v21583_v29  ;;  %v10337_v24 = vsel %vm10320_vm9, %v10304_v38, %v21584_v45  ;;  %v21585_v11 = vld [vmem:[#allocation302_spill] sm:$0xff]  ;;  %v21586_v14 = vld [vmem:[#allocation303_spill] sm:$0xff]  ;;  %v21591_v59 = vld [vmem:[#allocation245_spill] sm:$0xff] }
 0x605   :  { %v21587_v2 = vcombine.high %v21585_v11, %v21586_v14  ;;  %v21588_v51 = vld [vmem:[#allocation319_spill] sm:$0xff]  ;;  %v10233_v58 = vsel %vm10221_vm6, %v17401_v13, %v21591_v59  ;;  %v21592_v56 = vld [vmem:[#allocation244_spill] sm:$0xff]  ;;  %v21593_v9 = vld [vmem:[#allocation217_spill] sm:$0xff]  ;;  %v9690_v14 = vpop.permute.xlu1 %9689 }
 0x606   :  { %v21590_v23 = vcombine.high %v21588_v51, %v21589_v43  ;;  %v10240_v61 = vsel %vm10221_vm6, %v17413_v25, %v21592_v56  ;;  %v10363_v12 = vsel %vm10353_vm10, %v10330_v8, %v21593_v9  ;;  %v21594_v7 = vld [vmem:[#allocation216_spill] sm:$0xff]  ;;  %v21595_v34 = vld [vmem:[#allocation75_spill] sm:$0xff]  ;;  %v21596_v38 = vld [vmem:[#allocation77_spill] sm:$0xff]  ;;  %v9704_v25 = vpop.permute.xlu0 %9703 }
 0x607   :  { %9929 = vrot.lane.b32.xlu1 %v21587_v2, %s10650_s25  ;;  %v10370_v21 = vsel %vm10353_vm10, %v10337_v24, %v21594_v7  ;;  %v10266_v17 = vsel %vm10254_vm7, %v10233_v58, %v21595_v34  ;;  %v10273_v3 = vsel %vm10254_vm7, %v10240_v61, %v21596_v38  ;;  %v21597_v29 = vld [vmem:[#allocation415_spill] sm:$0xff]  ;;  %v21599_v2 = vld [vmem:[#allocation246_spill] sm:$0xff]  ;;  %v21604_v7 = vld [vmem:[#allocation336_spill] sm:$0xff] }
 0x608   :  { %9943 = vrot.lane.b32.xlu0 %v21590_v23, %s10650_s25  ;;  %v10396_v45 = vsel %vm10386_vm11, %v10363_v12, %v21597_v29  ;;  %v21598_v13 = vld [vmem:[#allocation435_spill] sm:$0xff]  ;;  %v10299_v8 = vsel %vm10287_vm8, %v10266_v17, %v21599_v2  ;;  %v21603_v9 = vld [vmem:[#allocation78_spill] sm:$0xff]  ;;  %v21607_v17 = vld [vmem:[#allocation357_spill] sm:$0xff] }
 0x609   :  { %v10403_v11 = vsel %vm10386_vm11, %v10370_v21, %v21598_v13  ;;  %v21600_v51 = vld [vmem:[#allocation247_spill] sm:$0xff]  ;;  %v17671_v43 = vsel %vm10419_vm12, %v10396_v45, %v9690_v14  ;;  %v21605_v21 = vld [vmem:[#allocation337_spill] sm:$0xff]  ;;  %v21608_v38 = vcombine.high %v21292_v49, %v21607_v17  ;;  %v21610_v29 = vld [vmem:[#allocation358_spill] sm:$0xff] }
 0x60a   :  { %v10306_v24 = vsel %vm10287_vm8, %v10273_v3, %v21600_v51  ;;  %v17674_v23 = vsel %vm10419_vm12, %v10403_v11, %v9704_v25  ;;  %v21601_v59 = vld [vmem:[#allocation135_spill] sm:$0xff]  ;;  %v21606_v34 = vcombine.high %v21604_v7, %v21605_v21  ;;  %v21609_v3 = vld [vmem:[#allocation360_spill] sm:$0xff]  ;;  %v10242_v45 = vsel %vm10221_vm6, %v17499_v50, %v21610_v29  ;;  %v21611_v13 = vld [vmem:[#allocation334_spill] sm:$0xff]  ;;  %v9708_v50 = vpop.permute.xlu0 %9707 }
 0x60b   :  { %v10213_v58 = vsel %vm10188_vm5, %v17244_v54, %v21601_v59  ;;  %v21602_v56 = vld [vmem:[#allocation79_spill] sm:$0xff]  ;;  %v10339_v12 = vsel %vm10320_vm9, %v10306_v24, %v21603_v9  ;;  %v10235_v54 = vsel %vm10221_vm6, %v17456_v48, %v21609_v3  ;;  %v21612_v14 = vld [vmem:[#allocation158_spill] sm:$0xff]  ;;  %v21613_v2 = vld [vmem:[#allocation105_spill] sm:$0xff]  ;;  %v9694_v9 = vpop.permute.xlu1 %9693 }
 0x60c   :  { %v10332_v61 = vsel %vm10320_vm9, %v10299_v8, %v21602_v56  ;;  %9933 = vrot.lane.b32.xlu1 %v21606_v34, %s10650_s25  ;;  %9947 = vrot.lane.b32.xlu0 %v21608_v38, %s10650_s25  ;;  %v10372_v25 = vsel %vm10353_vm10, %v10339_v12, %v21612_v14  ;;  %v10268_v8 = vsel %vm10254_vm7, %v10235_v54, %v21613_v2  ;;  %v21614_v51 = vld [vmem:[#allocation106_spill] sm:$0xff]  ;;  %v21615_v24 = vld [vmem:[#allocation467_spill] sm:$0xff]  ;;  %v21616_v48 = vld [vmem:[#allocation449_spill] sm:$0xff] }
 0x60d   :  { %v10365_v11 = vsel %vm10353_vm10, %v10332_v61, %v21611_v13  ;;  %v10275_v49 = vsel %vm10254_vm7, %v10242_v45, %v21614_v51  ;;  %v10405_v56 = vsel %vm10386_vm11, %v10372_v25, %v21616_v48  ;;  %v21617_v7 = vld [vmem:[#allocation367_spill] sm:$0xff]  ;;  %v21618_v21 = vld [vmem:[#allocation369_spill] sm:$0xff]  ;;  %v21619_v38 = vld [vmem:[#allocation62_spill] sm:$0xff] }
 0x60e   :  { %v10398_v59 = vsel %vm10386_vm11, %v10365_v11, %v21615_v24  ;;  %v10301_v61 = vsel %vm10287_vm8, %v10268_v8, %v21617_v7  ;;  %v10308_v12 = vsel %vm10287_vm8, %v10275_v49, %v21618_v21  ;;  %v17717_v17 = vsel %vm10419_vm12, %v10405_v56, %v9708_v50  ;;  %v21620_v54 = vld [vmem:[#allocation108_spill] sm:$0xff]  ;;  %v21621_v45 = vld [vmem:[#allocation107_spill] sm:$0xff]  ;;  %v21622_v11 = vld [vmem:[#allocation354_spill] sm:$0xff] }
 0x60f   :  { %v17714_v34 = vsel %vm10419_vm12, %v10398_v59, %v9694_v9  ;;  %v10208_v3 = vsel %vm10188_vm5, %v17261_v55, %v21619_v38  ;;  %v10334_v29 = vsel %vm10320_vm9, %v10301_v61, %v21620_v54  ;;  %v10341_v13 = vsel %vm10320_vm9, %v10308_v12, %v21621_v45  ;;  %v21623_v14 = vld [vmem:[#allocation355_spill] sm:$0xff]  ;;  %v21625_v2 = vld [vmem:[#allocation390_spill] sm:$0xff]  ;;  %v21629_v24 = vld [vmem:[#allocation268_spill] sm:$0xff] }
 0x610   :  { %v21624_v25 = vcombine.high %v21622_v11, %v21623_v14  ;;  %v21626_v8 = vld [vmem:[#allocation391_spill] sm:$0xff]  ;;  %v21628_v49 = vld [vmem:[#allocation270_spill] sm:$0xff]  ;;  %v10244_v59 = vsel %vm10221_vm6, %v17589_v42, %v21629_v24  ;;  %v21631_v9 = vld [vmem:[#allocation249_spill] sm:$0xff]  ;;  %v9698_v11 = vpop.permute.xlu1 %9697  ;;  %v9712_v42 = vpop.permute.xlu0 %9711 }
 0x611   :  { %v21627_v51 = vcombine.high %v21625_v2, %v21626_v8  ;;  %v10237_v55 = vsel %vm10221_vm6, %v17544_v40, %v21628_v49  ;;  %v21630_v48 = vld [vmem:[#allocation250_spill] sm:$0xff]  ;;  %v10374_v50 = vsel %vm10353_vm10, %v10341_v13, %v21631_v9  ;;  %v21632_v7 = vld [vmem:[#allocation33_spill] sm:$0xff]  ;;  %v21633_v21 = vld [vmem:[#allocation35_spill] sm:$0xff] }
 0x612   :  { %9937 = vrot.lane.b32.xlu1 %v21624_v25, %s10650_s25  ;;  %v10367_v56 = vsel %vm10353_vm10, %v10334_v29, %v21630_v48  ;;  %v10270_v61 = vsel %vm10254_vm7, %v10237_v55, %v21632_v7  ;;  %v10277_v12 = vsel %vm10254_vm7, %v10244_v59, %v21633_v21  ;;  %v21634_v38 = vld [vmem:[#allocation258_spill] sm:$0xff]  ;;  %v21635_v40 = vld [vmem:[#allocation148_spill] sm:$0xff]  ;;  %v21637_v25 = vld [vmem:[#allocation279_spill] sm:$0xff] }
 0x613   :  { %9951 = vrot.lane.b32.xlu0 %v21627_v51, %s10650_s25  ;;  %v10400_v54 = vsel %vm10386_vm11, %v10367_v56, %v21634_v38  ;;  %v10407_v45 = vsel %vm10386_vm11, %v10374_v50, %v21635_v40  ;;  %v21636_v14 = vld [vmem:[#allocation278_spill] sm:$0xff]  ;;  %v10310_v13 = vsel %vm10287_vm8, %v10277_v12, %v21637_v25  ;;  %v21638_v51 = vld [vmem:[#allocation60_spill] sm:$0xff]  ;;  %v21639_v55 = vld [vmem:[#allocation37_spill] sm:$0xff] }
 0x614   :  { %v10303_v29 = vsel %vm10287_vm8, %v10270_v61, %v21636_v14  ;;  %v17757_v2 = vsel %vm10419_vm12, %v10400_v54, %v9698_v11  ;;  %v17760_v8 = vsel %vm10419_vm12, %v10407_v45, %v9712_v42  ;;  %v10215_v49 = vsel %vm10188_vm5, %v17266_v52, %v21638_v51  ;;  %v21640_v59 = vld [vmem:[#allocation36_spill] sm:$0xff]  ;;  %v21642_v9 = vld [vmem:[#allocation389_spill] sm:$0xff]  ;;  %v21645_v61 = vld [vmem:[#allocation422_spill] sm:$0xff] }
 0x615   :  { %v10336_v24 = vsel %vm10320_vm9, %v10303_v29, %v21639_v55  ;;  %v10343_v48 = vsel %vm10320_vm9, %v10310_v13, %v21640_v59  ;;  %v21641_v56 = vld [vmem:[#allocation388_spill] sm:$0xff]  ;;  %v21644_v7 = vld [vmem:[#allocation421_spill] sm:$0xff]  ;;  %v21647_v12 = vld [vmem:[#allocation394_spill] sm:$0xff] }
 0x616   :  { %v21643_v50 = vcombine.high %v21641_v56, %v21642_v9  ;;  %v21646_v21 = vcombine.high %v21644_v7, %v21645_v61  ;;  %v10239_v52 = vsel %vm10221_vm6, %v17634_v4, %v21647_v12  ;;  %v21648_v38 = vld [vmem:[#allocation392_spill] sm:$0xff]  ;;  %v21649_v40 = vld [vmem:[#allocation371_spill] sm:$0xff]  ;;  %v21650_v11 = vld [vmem:[#allocation370_spill] sm:$0xff]  ;;  %v9702_v56 = vpop.permute.xlu1 %9701 }
 0x617   :  { %v10246_v54 = vsel %vm10221_vm6, %v10213_v58, %v21648_v38  ;;  %v10369_v45 = vsel %vm10353_vm10, %v10336_v24, %v21649_v40  ;;  %v10376_v42 = vsel %vm10353_vm10, %v10343_v48, %v21650_v11  ;;  %v21651_v14 = vld [vmem:[#allocation137_spill] sm:$0xff]  ;;  %v21652_v25 = vld [vmem:[#allocation138_spill] sm:$0xff]  ;;  %v9716_v58 = vpop.permute.xlu0 %9715 }
 0x618   :  { %9941 = vrot.lane.b32.xlu1 %v21643_v50, %s10650_s25  ;;  %9955 = vrot.lane.b32.xlu0 %v21646_v21, %s10650_s25  ;;  %v10272_v29 = vsel %vm10254_vm7, %v10239_v52, %v21651_v14  ;;  %v10279_v13 = vsel %vm10254_vm7, %v10246_v54, %v21652_v25  ;;  %v21653_v51 = vld [vmem:[#allocation466_spill] sm:$0xff]  ;;  %v21655_v9 = vld [vmem:[#allocation401_spill] sm:$0xff]  ;;  %v21656_v50 = vld [vmem:[#allocation403_spill] sm:$0xff] }
 0x619   :  { %v10402_v55 = vsel %vm10386_vm11, %v10369_v45, %v21653_v51  ;;  %v21654_v59 = vld [vmem:[#allocation494_spill] sm:$0xff]  ;;  %v10305_v24 = vsel %vm10287_vm8, %v10272_v29, %v21655_v9  ;;  %v10312_v48 = vsel %vm10287_vm8, %v10279_v13, %v21656_v50  ;;  %v21657_v21 = vld [vmem:[#allocation167_spill] sm:$0xff]  ;;  %v21658_v52 = vld [vmem:[#allocation140_spill] sm:$0xff] }
 0x61a   :  { %v10409_v4 = vsel %vm10386_vm11, %v10376_v42, %v21654_v59  ;;  %v17799_v7 = vsel %vm10419_vm12, %v10402_v55, %v9702_v56  ;;  %v10210_v12 = vsel %vm10188_vm5, %v17275_v1, %v21657_v21  ;;  %v10338_v38 = vsel %vm10320_vm9, %v10305_v24, %v21658_v52  ;;  %v21659_v54 = vld [vmem:[#allocation139_spill] sm:$0xff]  ;;  %v21660_v45 = vld [vmem:[#allocation141_spill] sm:$0xff]  ;;  %v21664_v29 = vld [vmem:[#allocation448_spill] sm:$0xff] }
 0x61b   :  { %v17802_v61 = vsel %vm10419_vm12, %v10409_v4, %v9716_v58  ;;  %v10345_v40 = vsel %vm10320_vm9, %v10312_v48, %v21659_v54  ;;  %v21661_v11 = vld [vmem:[#allocation417_spill] sm:$0xff]  ;;  %v21663_v14 = vld [vmem:[#allocation447_spill] sm:$0xff]  ;;  %v21666_v13 = vld [vmem:[#allocation306_spill] sm:$0xff]  ;;  %v9706_v54 = vpop.permute.xlu1 %9705 }
 0x61c   :  { %v21662_v42 = vcombine.high %v21660_v45, %v21661_v11  ;;  %v21665_v25 = vcombine.high %v21663_v14, %v21664_v29  ;;  %v10241_v51 = vsel %vm10221_vm6, %v10208_v3, %v21666_v13  ;;  %v21667_v1 = vld [vmem:[#allocation304_spill] sm:$0xff]  ;;  %v21668_v59 = vld [vmem:[#allocation282_spill] sm:$0xff]  ;;  %v21670_v9 = vld [vmem:[#allocation61_spill] sm:$0xff] }
 0x61d   :  { %v10248_v55 = vsel %vm10221_vm6, %v10215_v49, %v21667_v1  ;;  %v10371_v4 = vsel %vm10353_vm10, %v10338_v38, %v21668_v59  ;;  %v21669_v56 = vld [vmem:[#allocation280_spill] sm:$0xff]  ;;  %v10274_v24 = vsel %vm10254_vm7, %v10241_v51, %v21670_v9  ;;  %v21671_v50 = vld [vmem:[#allocation63_spill] sm:$0xff]  ;;  %v9720_v49 = vpop.permute.xlu0 %9719  ;;  %v21673_v45 = vld [vmem:[#allocation314_spill] sm:$0xff] }
 0x61e   :  { %9945 = vrot.lane.b32.xlu1 %v21662_v42, %s10650_s25  ;;  %9959 = vrot.lane.b32.xlu0 %v21665_v25, %s10650_s25  ;;  %v10378_v58 = vsel %vm10353_vm10, %v10345_v40, %v21669_v56  ;;  %v10281_v48 = vsel %vm10254_vm7, %v10248_v55, %v21671_v50  ;;  %v10404_v21 = vsel %vm10386_vm11, %v10371_v4, %v17063_v63  ;;  %v21672_v52 = vld [vmem:[#allocation419_spill] sm:$0xff]  ;;  %v21675_v29 = vld [vmem:[#allocation166_spill] sm:$0xff]  ;;  %v21676_v25 = vld [vmem:[#allocation65_spill] sm:$0xff] }
 0x61f   :  { %v10411_v3 = vsel %vm10386_vm11, %v10378_v58, %v21672_v52  ;;  %v10307_v38 = vsel %vm10287_vm8, %v10274_v24, %v21673_v45  ;;  %v21674_v11 = vld [vmem:[#allocation315_spill] sm:$0xff]  ;;  %v17840_v42 = vsel %vm10419_vm12, %v10404_v21, %v9706_v54  ;;  %v10217_v63 = vsel %vm10188_vm5, %v17280_v47, %v21675_v29  ;;  %v21677_v51 = vld [vmem:[#allocation64_spill] sm:$0xff]  ;;  %v21680_v4 = vld [vmem:[#allocation477_spill] sm:$0xff]  ;;  %v9710_v29 = vpop.permute.xlu1 %9709 }
 0x620   :  { %v10314_v40 = vsel %vm10287_vm8, %v10281_v48, %v21674_v11  ;;  %v17843_v14 = vsel %vm10419_vm12, %v10411_v3, %v9720_v49  ;;  %v10340_v13 = vsel %vm10320_vm9, %v10307_v38, %v21676_v25  ;;  %v21678_v55 = vld [vmem:[#allocation420_spill] sm:$0xff]  ;;  %v21681_v56 = vld [vmem:[#allocation479_spill] sm:$0xff]  ;;  %v21683_v9 = vld [vmem:[#allocation426_spill] sm:$0xff] }
 0x621   :  { %v10347_v1 = vsel %vm10320_vm9, %v10314_v40, %v21677_v51  ;;  %v21679_v59 = vcombine.high %v21381_v16, %v21678_v55  ;;  %v21682_v58 = vcombine.high %v21680_v4, %v21681_v56  ;;  %v10243_v24 = vsel %vm10221_vm6, %v10210_v12, %v21683_v9  ;;  %v21684_v47 = vld [vmem:[#allocation425_spill] sm:$0xff]  ;;  %v21685_v48 = vld [vmem:[#allocation404_spill] sm:$0xff]  ;;  %v21689_v38 = vld [vmem:[#allocation187_spill] sm:$0xff] }
 0x622   :  { %v10250_v50 = vsel %vm10221_vm6, %v10217_v63, %v21684_v47  ;;  %v10373_v21 = vsel %vm10353_vm10, %v10340_v13, %v21685_v48  ;;  %v21686_v52 = vld [vmem:[#allocation220_spill] sm:$0xff]  ;;  %v21688_v49 = vld [vmem:[#allocation169_spill] sm:$0xff]  ;;  %v21690_v40 = vld [vmem:[#allocation251_spill] sm:$0xff]  ;;  %v9724_v63 = vpop.permute.xlu0 %9723 }
 0x623   :  { %9949 = vrot.lane.b32.xlu1 %v21679_v59, %s10650_s25  ;;  %9963 = vrot.lane.b32.xlu0 %v21682_v58, %s10650_s25  ;;  %v10380_v3 = vsel %vm10353_vm10, %v10347_v1, %v21686_v52  ;;  %v21687_v54 = vld [vmem:[#allocation168_spill] sm:$0xff]  ;;  %v10283_v45 = vsel %vm10254_vm7, %v10250_v50, %v21688_v49  ;;  %v10406_v11 = vsel %vm10386_vm11, %v10373_v21, %v21689_v38  ;;  %v21691_v25 = vld [vmem:[#allocation431_spill] sm:$0xff]  ;;  %v21692_v51 = vld [vmem:[#allocation433_spill] sm:$0xff] }
 0x624   :  { %v10276_v16 = vsel %vm10254_vm7, %v10243_v24, %v21687_v54  ;;  %v10413_v12 = vsel %vm10386_vm11, %v10380_v3, %v21690_v40  ;;  %v10316_v1 = vsel %vm10287_vm8, %v10283_v45, %v21692_v51  ;;  %v17881_v55 = vsel %vm10419_vm12, %v10406_v11, %v9710_v29  ;;  %v21693_v4 = vld [vmem:[#allocation89_spill] sm:$0xff]  ;;  %v21694_v58 = vld [vmem:[#allocation171_spill] sm:$0xff]  ;;  %v21695_v24 = vld [vmem:[#allocation170_spill] sm:$0xff] }
 0x625   :  { %v10309_v13 = vsel %vm10287_vm8, %v10276_v16, %v21691_v25  ;;  %v17884_v59 = vsel %vm10419_vm12, %v10413_v12, %v9724_v63  ;;  %v10212_v56 = vsel %vm10188_vm5, %v17291_v19, %v21693_v4  ;;  %v10349_v47 = vsel %vm10320_vm9, %v10316_v1, %v21695_v24  ;;  %v21696_v50 = vld [vmem:[#allocation236_spill] sm:$0xff]  ;;  %v21697_v48 = vld [vmem:[#allocation253_spill] sm:$0xff]  ;;  %v21700_v3 = vld [vmem:[#allocation98_spill] sm:$0xff] }
 0x626   :  { %v10342_v9 = vsel %vm10320_vm9, %v10309_v13, %v21694_v58  ;;  %v21698_v21 = vcombine.high %v21696_v50, %v21697_v48  ;;  %v21699_v52 = vld [vmem:[#allocation96_spill] sm:$0xff]  ;;  %v21703_v49 = vld [vmem:[#allocation439_spill] sm:$0xff]  ;;  %v21705_v11 = vld [vmem:[#allocation318_spill] sm:$0xff]  ;;  %v9714_v50 = vpop.permute.xlu1 %9713 }
 0x627   :  { %v21701_v54 = vcombine.high %v21699_v52, %v21700_v3  ;;  %v21702_v16 = vld [vmem:[#allocation380_spill] sm:$0xff]  ;;  %v10375_v40 = vsel %vm10353_vm10, %v10342_v9, %v21705_v11  ;;  %v21707_v63 = vld [vmem:[#allocation194_spill] sm:$0xff]  ;;  %v21710_v58 = vld [vmem:[#allocation267_spill] sm:$0xff] }
 0x628   :  { %9953 = vrot.lane.b32.xlu1 %v21698_v21, %s10650_s25  ;;  %v10115_v19 = vsel %vm10089_vm2, %v21703_v49, %v21702_v16  ;;  %v21704_v45 = vld [vmem:[#allocation340_spill] sm:$0xff]  ;;  %v21708_v13 = vld [vmem:[#allocation90_spill] sm:$0xff]  ;;  %v21712_v21 = vld [vmem:[#allocation349_spill] sm:$0xff] }
 0x629   :  { %9967 = vrot.lane.b32.xlu0 %v21701_v54, %s10650_s25  ;;  %v10245_v38 = vsel %vm10221_vm6, %v10212_v56, %v21704_v45  ;;  %v21706_v12 = vld [vmem:[#allocation316_spill] sm:$0xff]  ;;  %v10148_v25 = vsel %vm10122_vm3, %v10115_v19, %v21707_v63  ;;  %v21709_v1 = vld [vmem:[#allocation266_spill] sm:$0xff]  ;;  %v9728_v56 = vpop.permute.xlu0 %9727  ;;  %v21714_v16 = vld [vmem:[#allocation387_spill] sm:$0xff] }
 0x62a   :  { %v10382_v29 = vsel %vm10353_vm10, %v10349_v47, %v21706_v12  ;;  %v10278_v51 = vsel %vm10254_vm7, %v10245_v38, %v21708_v13  ;;  %v10408_v4 = vsel %vm10386_vm11, %v10375_v40, %v21709_v1  ;;  %v21711_v48 = vld [vmem:[#allocation248_spill] sm:$0xff]  ;;  %v21715_v19 = vld [vmem:[#allocation197_spill] sm:$0xff]  ;;  %v21722_v13 = vld [vmem:[#allocation443_spill] sm:$0xff] }
 0x62b   :  { %v10415_v24 = vsel %vm10386_vm11, %v10382_v29, %v21710_v58  ;;  %v10181_v9 = vsel %vm10155_vm4, %v10148_v25, %v21711_v48  ;;  %v10311_v47 = vsel %vm10287_vm8, %v10278_v51, %v21712_v21  ;;  %v17923_v52 = vsel %vm10419_vm12, %v10408_v4, %v9714_v50  ;;  %v21713_v54 = vld [vmem:[#allocation260_spill] sm:$0xff]  ;;  %v21716_v38 = vld [vmem:[#allocation93_spill] sm:$0xff]  ;;  %v21723_v1 = vld [vmem:[#allocation451_spill] sm:$0xff] }
 0x62c   :  { %v17926_v3 = vsel %vm10419_vm12, %v10415_v24, %v9728_v56  ;;  %v10084_v49 = vsel %vm10056_vm1, %v21714_v16, %v21713_v54  ;;  %v10214_v45 = vsel %vm10188_vm5, %v10181_v9, %v21715_v19  ;;  %v10344_v11 = vsel %vm10320_vm9, %v10311_v47, %v21716_v38  ;;  %v21717_v40 = vld [vmem:[#allocation464_spill] sm:$0xff]  ;;  %v21718_v12 = vld [vmem:[#allocation465_spill] sm:$0xff]  ;;  %v21724_v58 = vld [vmem:[#allocation438_spill] sm:$0xff]  ;;  %v9718_v38 = vpop.permute.xlu1 %9717 }
 0x62d   :  { %v21719_v29 = vcombine.high %v21717_v40, %v21718_v12  ;;  %v21720_v63 = vld [vmem:[#allocation157_spill] sm:$0xff]  ;;  %v10117_v51 = vsel %vm10089_vm2, %v10084_v49, %v21722_v13  ;;  %v10247_v4 = vsel %vm10221_vm6, %v10214_v45, %v21723_v1  ;;  %v10377_v24 = vsel %vm10353_vm10, %v10344_v11, %v21724_v58  ;;  %v21725_v50 = vld [vmem:[#allocation206_spill] sm:$0xff]  ;;  %v21731_v19 = vld [vmem:[#allocation160_spill] sm:$0xff]  ;;  %v9732_v45 = vpop.permute.xlu0 %9731 }
 0x62e   :  { %v21721_v25 = vcombine.high %v21428_v37, %v21720_v63  ;;  %v21726_v56 = vld [vmem:[#allocation269_spill] sm:$0xff]  ;;  %v21729_v47 = vld [vmem:[#allocation226_spill] sm:$0xff]  ;;  %v10410_v49 = vsel %vm10386_vm11, %v10377_v24, %v21731_v19  ;;  %v21735_v1 = vld [vmem:[#allocation120_spill] sm:$0xff] }
 0x62f   :  { %9957 = vrot.lane.b32.xlu1 %v21719_v29, %s10650_s25  ;;  %v21727_v48 = vld [vmem:[#allocation469_spill] sm:$0xff]  ;;  %v10150_v54 = vsel %vm10122_vm3, %v10117_v51, %v21729_v47  ;;  %v21730_v37 = vld [vmem:[#allocation198_spill] sm:$0xff]  ;;  %v17965_v63 = vsel %vm10419_vm12, %v10410_v49, %v9718_v38 }
 0x630   :  { %9971 = vrot.lane.b32.xlu0 %v21721_v25, %s10650_s25  ;;  %v21728_v9 = vcombine.low %v21726_v56, %v21727_v48  ;;  %v10280_v16 = vsel %vm10254_vm7, %v10247_v4, %v21730_v37  ;;  %v21732_v40 = vld [vmem:[#allocation322_spill] sm:$0xff]  ;;  %v17969_v25 = vsel %vm10419_vm12, %v17240_v62, %v9732_v45  ;;  %v21734_v13 = vld [vmem:[#allocation481_spill] sm:$0xff]  ;;  %v21742_v62 = vld [vmem:[#allocation471_spill] sm:$0xff] }
 0x631   :  { %v10183_v11 = vsel %vm10155_vm4, %v10150_v54, %v21732_v40  ;;  %v21733_v12 = vld [vmem:[#allocation458_spill] sm:$0xff]  ;;  %v21736_v58 = vld [vmem:[#allocation201_spill] sm:$0xff]  ;;  %v21747_v40 = vld [vmem:[#allocation24_spill] sm:$0xff] }
 0x632   :  { %v10053_v21 = vsel %vm10023_vm0, %v21728_v9, %v21725_v50  ;;  %v10313_v29 = vsel %vm10287_vm8, %v10280_v16, %v21733_v12  ;;  %v10216_v4 = vsel %vm10188_vm5, %v10183_v11, %v21735_v1  ;;  %v21737_v50 = vld [vmem:[#allocation476_spill] sm:$0xff]  ;;  %v21739_v48 = vld [vmem:[#allocation257_spill] sm:$0xff]  ;;  %v21740_v9 = vld [vmem:[#allocation147_spill] sm:$0xff]  ;;  %v9722_v12 = vpop.permute.xlu1 %9721 }
 0x633   :  { %v10086_v51 = vsel %vm10056_vm1, %v10053_v21, %v21734_v13  ;;  %v10346_v24 = vsel %vm10320_vm9, %v10313_v29, %v21736_v58  ;;  %v21738_v56 = vcombine.high %v21443_v20, %v21737_v50  ;;  %v21741_v47 = vcombine.high %v21739_v48, %v21740_v9  ;;  %v21743_v21 = vld [vmem:[#allocation372_spill] sm:$0xff]  ;;  %v21744_v16 = vld [vmem:[#allocation437_spill] sm:$0xff]  ;;  %v9800_v29 = vpop.permute.xlu0 %9799  ;;  %v21749_v1 = vld [vmem:[#allocation383_spill] sm:$0xff] }
 0x634   :  { %v10119_v54 = vsel %vm10089_vm2, %v10086_v51, %v21742_v62  ;;  %v10249_v37 = vsel %vm10221_vm6, %v10216_v4, %v21743_v21  ;;  %v10379_v19 = vsel %vm10353_vm10, %v10346_v24, %v21744_v16  ;;  %v21745_v49 = vld [vmem:[#allocation149_spill] sm:$0xff]  ;;  %v21748_v13 = vld [vmem:[#allocation452_spill] sm:$0xff] }
 0x635   :  { %9961 = vrot.lane.b32.xlu1 %v21738_v56, %s10650_s25  ;;  %9975 = vrot.lane.b32.xlu0 %v21741_v47, %s10650_s25  ;;  %v10152_v38 = vsel %vm10122_vm3, %v10119_v54, %v21745_v49  ;;  %v21746_v45 = vld [vmem:[#allocation121_spill] sm:$0xff]  ;;  %v10412_v11 = vsel %vm10386_vm11, %v10379_v19, %v21747_v40  ;;  %v21752_v56 = vld [vmem:[#allocation124_spill] sm:$0xff] }
 0x636   :  { %v10282_v20 = vsel %vm10254_vm7, %v10249_v37, %v21746_v45  ;;  %v10185_v51 = vsel %vm10155_vm4, %v10152_v38, %v21748_v13  ;;  %v18002_v58 = vsel %vm10419_vm12, %v10412_v11, %v9722_v12  ;;  %v21751_v24 = vld [vmem:[#allocation229_spill] sm:$0xff]  ;;  %v21760_v38 = vld [vmem:[#allocation230_spill] sm:$0xff]  ;;  %v9726_v40 = vpop.permute.xlu1 %9725 }
 0x637   :  { %v10315_v4 = vsel %vm10287_vm8, %v10282_v20, %v21749_v1  ;;  %21750 = vst [vmem:[#allocation55_spill] sm:$0xff] %v18002_v58  ;;  %v10218_v50 = vsel %vm10188_vm5, %v10185_v51, %v21751_v24  ;;  %v21753_v9 = vld [vmem:[#allocation497_spill] sm:$0xff]  ;;  %v21784_v58 = vld [vmem:[#allocation12_spill] sm:$0xff] }
 0x638   :  { %v10348_v48 = vsel %vm10320_vm9, %v10315_v4, %v21752_v56  ;;  %v21754_v47 = vcombine.high %v21464_v60, %v21753_v9  ;;  %v21755_v62 = vld [vmem:[#allocation393_spill] sm:$0xff]  ;;  %v9804_v60 = vpop.permute.xlu0 %9803  ;;  %v21767_v56 = vld [vmem:[#allocation14_spill] sm:$0xff] }
 0x639   :  { %v21756_v54 = vld [vmem:[#allocation145_spill] sm:$0xff] }
 0x63a   :  { %9965 = vrot.lane.b32.xlu1 %v21754_v47, %s10650_s25  ;;  %v21757_v21 = vcombine.high %v21755_v62, %v21756_v54  ;;  %v21758_v37 = vld [vmem:[#allocation405_spill] sm:$0xff]  ;;  %v21770_v47 = vld [vmem:[#allocation10_spill] sm:$0xff]  ;;  %v9730_v54 = vpop.permute.xlu1 %9729 }
 0x63b   :  { %v10251_v16 = vsel %vm10221_vm6, %v10218_v50, %v21758_v37  ;;  %v21759_v19 = vld [vmem:[#allocation353_spill] sm:$0xff] }
 0x63c   :  { %9979 = vrot.lane.b32.xlu0 %v21757_v21, %s10650_s25  ;;  %v10381_v49 = vsel %vm10353_vm10, %v10348_v48, %v21759_v19  ;;  %v10284_v45 = vsel %vm10254_vm7, %v10251_v16, %v21760_v38  ;;  %v21761_v11 = vld [vmem:[#allocation413_spill] sm:$0xff]  ;;  %v21769_v48 = vld [vmem:[#allocation352_spill] sm:$0xff]  ;;  %v9808_v21 = vpop.permute.xlu0 %9807  ;;  %v21772_v16 = vld [vmem:[#allocation83_spill] sm:$0xff] }
 0x63d   :  { %v10414_v20 = vsel %vm10386_vm11, %v10381_v49, %v17337_v6  ;;  %v10317_v12 = vsel %vm10287_vm8, %v10284_v45, %v21761_v11  ;;  %v21763_v51 = vld [vmem:[#allocation233_spill] sm:$0xff]  ;;  %v21775_v49 = vcombine.high %v21508_v26, %v21509_v27 }
 0x63e   :  { %v18027_v13 = vsel %vm10419_vm12, %v10414_v20, %v9726_v40  ;;  %v10350_v1 = vsel %vm10320_vm9, %v10317_v12, %v21763_v51  ;;  %v21764_v4 = vld [vmem:[#allocation129_spill] sm:$0xff]  ;;  %v9734_v38 = vpop.permute.xlu1 %9733  ;;  %v21777_v40 = vcombine.high %v21522_v22, %v21523_v28  ;;  %v21778_v51 = vcombine.high %v21537_v46, %v21538_v30 }
 0x63f   :  { %21762 = vst [vmem:[#allocation52_spill] sm:$0xff] %v18027_v13  ;;  %v21765_v24 = vcombine.high %v21484_v18, %v21764_v4  ;;  %v21766_v50 = vld [vmem:[#allocation309_spill] sm:$0xff]  ;;  %v10383_v9 = vsel %vm10353_vm10, %v10350_v1, %v21769_v48  ;;  %v21773_v18 = vld [vmem:[#allocation219_spill] sm:$0xff]  ;;  %v18056_v20 = vsel %vm10419_vm12, %v17448_v32, %v9734_v38  ;;  %v21779_v1 = vcombine.high %v21552_v39, %v21553_v53 }
 0x640   :  { %v21768_v6 = vcombine.high %v21766_v50, %v21767_v56  ;;  %v10416_v62 = vsel %vm10386_vm11, %v10383_v9, %v21770_v47  ;;  %v21774_v19 = vcombine.high %v21772_v16, %v21773_v18  ;;  %v9812_v45 = vpop.permute.xlu0 %9811  ;;  %21776 = vst [vmem:[#allocation27_spill] sm:$0xff] %v18056_v20  ;;  %v21780_v22 = vcombine.high %v21566_v31, %v21567_v10 }
 0x641   :  { %9969 = vrot.lane.b32.xlu1 %v21765_v24, %s10650_s25  ;;  %v18044_v37 = vsel %vm10419_vm12, %v10416_v62, %v9730_v54 }
 0x642   :  { %9983 = vrot.lane.b32.xlu0 %v21768_v6, %s10650_s25  ;;  %21771 = vst [vmem:[#allocation54_spill] sm:$0xff] %v18044_v37  ;;  %v9802_v11 = vpop.permute.xlu1 %9801 }
 0x644   :  { %v9816_v12 = vpop.permute.xlu0 %9815 }
 0x645   :  { %9973 = vrot.lane.b32.xlu1 %v21774_v19, %s10650_s25  ;;  %v21781_v19 = vld [vmem:[#allocation26_spill] sm:$0xff] }
 0x646   :  { %9987 = vrot.lane.b32.xlu0 %v21775_v49, %s10650_s25  ;;  %v9806_v26 = vpop.permute.xlu1 %9805  ;;  %v10453_v49 = vsel %vm10452_vm13, %v21781_v19, %v9800_v29  ;;  %v10457_v29 = vsel %vm10452_vm13, %v21784_v58, %v9808_v21  ;;  %v10454_v58 = vsel %vm10452_vm13, %v17491_v0, %v9802_v11 }
 0x648   :  { %v9820_v27 = vpop.permute.xlu0 %9819 }
 0x649   :  { %9977 = vrot.lane.b32.xlu1 %v21777_v40, %s10650_s25 }
 0x64a   :  { %v9810_v32 = vpop.permute.xlu1 %9809 }
 0x64c   :  { %v9824_v4 = vpop.permute.xlu0 %9823 }
 0x64d   :  { %9981 = vrot.lane.b32.xlu1 %v21778_v51, %s10650_s25 }
 0x64e   :  { %v18074_v28 = vpop.permute.xlu1 %9813 }
 0x650   :  { %v18076_v24 = vpop.permute.xlu0 %9827 }
 0x651   :  { %9985 = vrot.lane.b32.xlu1 %v21779_v1, %s10650_s25  ;;  %v21783_v1 = vld [vmem:[#allocation25_spill] sm:$0xff] }
 0x652   :  { %v18078_v46 = vpop.permute.xlu1 %9817 }
 0x654   :  { %v18080_v30 = vpop.permute.xlu0 %9831 }
 0x655   :  { %9989 = vrot.lane.b32.xlu1 %v21780_v22, %s10650_s25  ;;  %v10455_v22 = vsel %vm10452_vm13, %v21783_v1, %v9804_v60  ;;  %v10459_v60 = vsel %vm10452_vm13, %v17451_v33, %v9812_v45  ;;  %v10456_v33 = vsel %vm10452_vm13, %v17536_v5, %v9806_v26  ;;  %v10463_v45 = vsel %vm10452_vm13, %v17539_v36, %v9820_v27 }
 0x656   :  { %v18082_v50 = vpop.permute.xlu1 %9821 }
 0x658   :  { %v18084_v56 = vpop.permute.xlu0 %9835 }
 0x65a   :  { %v18086_v39 = vpop.permute.xlu1 %9825 }
 0x65c   :  { %v18088_v53 = vpop.permute.xlu0 %9839 }
 0x65e   :  { %v18090_v6 = vpop.permute.xlu1 %9829 }
 0x660   :  { %v18092_v31 = vpop.permute.xlu0 %9843 }
 0x662   :  { %v18094_v10 = vpop.permute.xlu1 %9833 }
 0x664   :  { %v18096_v48 = vpop.permute.xlu0 %9847 }
 0x666   :  { %v18098_v9 = vpop.permute.xlu1 %9837 }
 0x668   :  { %v18100_v47 = vpop.permute.xlu0 %9851 }
 0x66a   :  { %v18102_v62 = vpop.permute.xlu1 %9841 }
 0x66c   :  { %v18104_v54 = vpop.permute.xlu0 %9855 }
 0x66e   :  { %v18106_v16 = vpop.permute.xlu1 %9845 }
 0x670   :  { %v18108_v18 = vpop.permute.xlu0 %9859 }
 0x672   :  { %v18112_v38 = vpop.permute.xlu1 %9849 }
 0x673   :  { %21782 = vst [vmem:[#allocation38_spill] sm:$0xff] %v18112_v38 }
 0x674   :  { %v9928_v40 = vpop.permute.xlu0 %9927 }
 0x675   :  { %v10486_v51 = vsel %vm10485_vm14, %v10453_v49, %v9928_v40 }
 0x676   :  { %10519 = vst.msk [vmem:[#allocation5] sm:$0xff] %vm10518_vm15, %v10486_v51  ;;  %v18118_v20 = vpop.permute.xlu1 %9853 }
 0x678   :  { %v9932_v37 = vpop.permute.xlu0 %9931 }
 0x679   :  { %v10488_v13 = vsel %vm10485_vm14, %v10455_v22, %v9932_v37 }
 0x67a   :  { %10521 = vst.msk [vmem:[#allocation5 + $0x10] sm:$0xff] %vm10518_vm15, %v10488_v13  ;;  %v18124_v19 = vpop.permute.xlu1 %9857  ;;  %v10461_v13 = vsel %vm10452_vm13, %v17494_v41, %v9816_v12 }
 0x67c   :  { %v9936_v38 = vpop.permute.xlu0 %9935 }
 0x67d   :  { %v10490_v49 = vsel %vm10485_vm14, %v10457_v29, %v9936_v38  ;;  %v10458_v29 = vsel %vm10452_vm13, %v17581_v57, %v9810_v32  ;;  %v10467_v57 = vsel %vm10452_vm13, %v17629_v35, %v18076_v24 }
 0x67e   :  { %10523 = vst.msk [vmem:[#allocation5 + $0x20] sm:$0xff] %vm10518_vm15, %v10490_v49  ;;  %v18130_v40 = vpop.permute.xlu1 %9861  ;;  %v10465_v49 = vsel %vm10452_vm13, %v17584_v15, %v9824_v4 }
 0x680   :  { %v9940_v51 = vpop.permute.xlu0 %9939 }
 0x681   :  { %v10492_v37 = vsel %vm10485_vm14, %v10459_v60, %v9940_v51  ;;  %v10460_v60 = vsel %vm10452_vm13, %v17626_v44, %v18074_v28  ;;  %v10469_v44 = vsel %vm10452_vm13, %v17674_v23, %v18080_v30 }
 0x682   :  { %10525 = vst.msk [vmem:[#allocation5 + $0x30] sm:$0xff] %vm10518_vm15, %v10492_v37  ;;  %v9930_v21 = vpop.permute.xlu1 %9929  ;;  %v10462_v37 = vsel %vm10452_vm13, %v17671_v43, %v18078_v46  ;;  %v10471_v43 = vsel %vm10452_vm13, %v17717_v17, %v18084_v56 }
 0x683   :  { %v10487_v1 = vsel %vm10485_vm14, %v10454_v58, %v9930_v21 }
 0x684   :  { %v9944_v38 = vpop.permute.xlu0 %9943  ;;  %10520 = vst.msk [vmem:[#allocation5 + $0x8] sm:$0xff] %vm10518_vm15, %v10487_v1 }
 0x685   :  { %v10494_v22 = vsel %vm10485_vm14, %v10461_v13, %v9944_v38  ;;  %v10464_v13 = vsel %vm10452_vm13, %v17714_v34, %v18082_v50  ;;  %v10466_v38 = vsel %vm10452_vm13, %v17757_v2, %v18086_v39  ;;  %v10473_v34 = vsel %vm10452_vm13, %v17760_v8, %v18088_v53 }
 0x686   :  { %10527 = vst.msk [vmem:[#allocation5 + $0x40] sm:$0xff] %vm10518_vm15, %v10494_v22  ;;  %v9934_v0 = vpop.permute.xlu1 %9933  ;;  %v10468_v22 = vsel %vm10452_vm13, %v17799_v7, %v18090_v6  ;;  %v10475_v2 = vsel %vm10452_vm13, %v17802_v61, %v18092_v31  ;;  %v10477_v7 = vsel %vm10452_vm13, %v17843_v14, %v18096_v48 }
 0x687   :  { %v10489_v41 = vsel %vm10485_vm14, %v10456_v33, %v9934_v0 }
 0x688   :  { %v9948_v11 = vpop.permute.xlu0 %9947  ;;  %10522 = vst.msk [vmem:[#allocation5 + $0x18] sm:$0xff] %vm10518_vm15, %v10489_v41 }
 0x689   :  { %v10496_v12 = vsel %vm10485_vm14, %v10463_v45, %v9948_v11  ;;  %v10470_v45 = vsel %vm10452_vm13, %v17840_v42, %v18094_v10  ;;  %v10472_v11 = vsel %vm10452_vm13, %v17881_v55, %v18098_v9  ;;  %v10479_v42 = vsel %vm10452_vm13, %v17884_v59, %v18100_v47 }
 0x68a   :  { %10529 = vst.msk [vmem:[#allocation5 + $0x50] sm:$0xff] %vm10518_vm15, %v10496_v12  ;;  %v9938_v5 = vpop.permute.xlu1 %9937  ;;  %v10474_v12 = vsel %vm10452_vm13, %v17923_v52, %v18102_v62  ;;  %v10481_v55 = vsel %vm10452_vm13, %v17926_v3, %v18104_v54  ;;  %v10483_v52 = vsel %vm10452_vm13, %v17969_v25, %v18108_v18  ;;  %v21787_v25 = vld [vmem:[#allocation52_spill] sm:$0xff] }
 0x68b   :  { %v10491_v36 = vsel %vm10485_vm14, %v10458_v29, %v9938_v5 }
 0x68c   :  { %v9952_v26 = vpop.permute.xlu0 %9951  ;;  %10524 = vst.msk [vmem:[#allocation5 + $0x28] sm:$0xff] %vm10518_vm15, %v10491_v36  ;;  %v21786_v36 = vld [vmem:[#allocation55_spill] sm:$0xff] }
 0x68d   :  { %v10498_v27 = vsel %vm10485_vm14, %v10465_v49, %v9952_v26  ;;  %v10476_v49 = vsel %vm10452_vm13, %v17965_v63, %v18106_v16  ;;  %v21785_v26 = vld [vmem:[#allocation38_spill] sm:$0xff]  ;;  %v10480_v16 = vsel %vm10452_vm13, %v21787_v25, %v18118_v20 }
 0x68e   :  { %10531 = vst.msk [vmem:[#allocation5 + $0x60] sm:$0xff] %vm10518_vm15, %v10498_v27  ;;  %v9942_v32 = vpop.permute.xlu1 %9941  ;;  %v10478_v27 = vsel %vm10452_vm13, %v21786_v36, %v21785_v26 }
 0x68f   :  { %v10493_v4 = vsel %vm10485_vm14, %v10460_v60, %v9942_v32  ;;  %v21788_v32 = vld [vmem:[#allocation54_spill] sm:$0xff] }
 0x690   :  { %v9956_v15 = vpop.permute.xlu0 %9955  ;;  %10526 = vst.msk [vmem:[#allocation5 + $0x38] sm:$0xff] %vm10518_vm15, %v10493_v4 }
 0x691   :  { %v10500_v51 = vsel %vm10485_vm14, %v10467_v57, %v9956_v15  ;;  %v10482_v15 = vsel %vm10452_vm13, %v21788_v32, %v18124_v19 }
 0x692   :  { %10533 = vst.msk [vmem:[#allocation5 + $0x70] sm:$0xff] %vm10518_vm15, %v10500_v51  ;;  %v9946_v28 = vpop.permute.xlu1 %9945 }
 0x693   :  { %v10495_v24 = vsel %vm10485_vm14, %v10462_v37, %v9946_v28  ;;  %v21789_v37 = vld [vmem:[#allocation27_spill] sm:$0xff] }
 0x694   :  { %v9960_v35 = vpop.permute.xlu0 %9959  ;;  %10528 = vst.msk [vmem:[#allocation5 + $0x48] sm:$0xff] %vm10518_vm15, %v10495_v24  ;;  %v10484_v20 = vsel %vm10452_vm13, %v21789_v37, %v18130_v40 }
 0x695   :  { %v10502_v58 = vsel %vm10485_vm14, %v10469_v44, %v9960_v35 }
 0x696   :  { %10535 = vst.msk [vmem:[#allocation5 + $0x80] sm:$0xff] %vm10518_vm15, %v10502_v58  ;;  %v9950_v46 = vpop.permute.xlu1 %9949 }
 0x697   :  { %v10497_v30 = vsel %vm10485_vm14, %v10464_v13, %v9950_v46 }
 0x698   :  { %v9964_v23 = vpop.permute.xlu0 %9963  ;;  %10530 = vst.msk [vmem:[#allocation5 + $0x58] sm:$0xff] %vm10518_vm15, %v10497_v30 }
 0x699   :  { %v10504_v21 = vsel %vm10485_vm14, %v10471_v43, %v9964_v23 }
 0x69a   :  { %10537 = vst.msk [vmem:[#allocation5 + $0x90] sm:$0xff] %vm10518_vm15, %v10504_v21  ;;  %v9954_v50 = vpop.permute.xlu1 %9953 }
 0x69b   :  { %v10499_v56 = vsel %vm10485_vm14, %v10466_v38, %v9954_v50 }
 0x69c   :  { %v9968_v17 = vpop.permute.xlu0 %9967  ;;  %10532 = vst.msk [vmem:[#allocation5 + $0x68] sm:$0xff] %vm10518_vm15, %v10499_v56 }
 0x69d   :  { %v10506_v1 = vsel %vm10485_vm14, %v10473_v34, %v9968_v17 }
 0x69e   :  { %10539 = vst.msk [vmem:[#allocation5 + $0xa0] sm:$0xff] %vm10518_vm15, %v10506_v1 }
 0x6a1   :  { %v9958_v39 = vpop.permute.xlu1 %9957 }
 0x6a2   :  { %v9972_v8 = vpop.permute.xlu0 %9971  ;;  %v10501_v53 = vsel %vm10485_vm14, %v10468_v22, %v9958_v39 }
 0x6a3   :  { %v10508_v33 = vsel %vm10485_vm14, %v10475_v2, %v9972_v8  ;;  %10534 = vst.msk [vmem:[#allocation5 + $0x78] sm:$0xff] %vm10518_vm15, %v10501_v53 }
 0x6a4   :  { %10541 = vst.msk [vmem:[#allocation5 + $0xb0] sm:$0xff] %vm10518_vm15, %v10508_v33 }
 0x6a7   :  { %v9962_v6 = vpop.permute.xlu1 %9961  ;;  %v9976_v61 = vpop.permute.xlu0 %9975 }
 0x6a8   :  { %v10503_v31 = vsel %vm10485_vm14, %v10470_v45, %v9962_v6  ;;  %v10510_v0 = vsel %vm10485_vm14, %v10477_v7, %v9976_v61 }
 0x6a9   :  { %10536 = vst.msk [vmem:[#allocation5 + $0x88] sm:$0xff] %vm10518_vm15, %v10503_v31  ;;  %10543 = vst.msk [vmem:[#allocation5 + $0xc0] sm:$0xff] %vm10518_vm15, %v10510_v0 }
 0x6ac   :  { %v9966_v10 = vpop.permute.xlu1 %9965 }
 0x6ad   :  { %v10505_v48 = vsel %vm10485_vm14, %v10472_v11, %v9966_v10 }
 0x6ae   :  { %v9980_v14 = vpop.permute.xlu0 %9979  ;;  %10538 = vst.msk [vmem:[#allocation5 + $0x98] sm:$0xff] %vm10518_vm15, %v10505_v48 }
 0x6af   :  { %v10512_v41 = vsel %vm10485_vm14, %v10479_v42, %v9980_v14 }
 0x6b0   :  { %10545 = vst.msk [vmem:[#allocation5 + $0xd0] sm:$0xff] %vm10518_vm15, %v10512_v41 }
 0x6b3   :  { %v9970_v9 = vpop.permute.xlu1 %9969 }
 0x6b4   :  { %v9984_v59 = vpop.permute.xlu0 %9983  ;;  %v10507_v47 = vsel %vm10485_vm14, %v10474_v12, %v9970_v9 }
 0x6b5   :  { %v10514_v29 = vsel %vm10485_vm14, %v10481_v55, %v9984_v59  ;;  %10540 = vst.msk [vmem:[#allocation5 + $0xa8] sm:$0xff] %vm10518_vm15, %v10507_v47 }
 0x6b6   :  { %10547 = vst.msk [vmem:[#allocation5 + $0xe0] sm:$0xff] %vm10518_vm15, %v10514_v29 }
 0x6b7   :  { %v9974_v62 = vpop.permute.xlu1 %9973 }
 0x6b8   :  { %v9988_v3 = vpop.permute.xlu0 %9987  ;;  %v10509_v54 = vsel %vm10485_vm14, %v10476_v49, %v9974_v62 }
 0x6b9   :  { %v10516_v5 = vsel %vm10485_vm14, %v10483_v52, %v9988_v3  ;;  %10542 = vst.msk [vmem:[#allocation5 + $0xb8] sm:$0xff] %vm10518_vm15, %v10509_v54 }
 0x6ba   :  { %10549 = vst.msk [vmem:[#allocation5 + $0xf0] sm:$0xff] %vm10518_vm15, %v10516_v5 }
 0x6bb   :  { %v9978_v60 = vpop.permute.xlu1 %9977 }
 0x6bc   :  { %v10511_v63 = vsel %vm10485_vm14, %v10478_v27, %v9978_v60 }
 0x6bd   :  { %10544 = vst.msk [vmem:[#allocation5 + $0xc8] sm:$0xff] %vm10518_vm15, %v10511_v63 }
 0x6bf   :  { %v9982_v18 = vpop.permute.xlu1 %9981 }
 0x6c0   :  { %v10513_v57 = vsel %vm10485_vm14, %v10480_v16, %v9982_v18 }
 0x6c1   :  { %10546 = vst.msk [vmem:[#allocation5 + $0xd8] sm:$0xff] %vm10518_vm15, %v10513_v57 }
 0x6c3   :  { %v9986_v4 = vpop.permute.xlu1 %9985 }
 0x6c4   :  { %v10515_v51 = vsel %vm10485_vm14, %v10482_v15, %v9986_v4 }
 0x6c5   :  { %10548 = vst.msk [vmem:[#allocation5 + $0xe8] sm:$0xff] %vm10518_vm15, %v10515_v51 }
 0x6c7   :  { %v9990_v44 = vpop.permute.xlu1 %9989 }
 0x6c8   :  { %v10517_v28 = vsel %vm10485_vm14, %v10484_v20, %v9990_v44 }
 0x6c9   :  { %10550 = vst.msk [vmem:[#allocation5 + $0xf8] sm:$0xff] %vm10518_vm15, %v10517_v28 }
 0x6ca   :  { %10619 = shalt.err (!%p10616_p9)
}
 0x6cb   :  { %10562 = dma.vmem_to_hbm [thread:$0]  %s10557_s27, 4096, %s18275_s1, [#allocation4], %s10633_s9, %s10633_s9, %s10634_s10  }
 0x6cc   :  { %10630 = dma.done.wait [#allocation4], 4096  }
 0x6cd   :  { %10631 = vsyncadd [#allocation4], 4294963200 }
 0x6ce   :  { %10566 = vsyncpa [#allocation3], 1 }
 0x6cf   :  { %10567 = vsyncpa [#allocation4], 1 }

// kernel: tpu_custom_call.1
= control target key start
LH: loop header
LB: loop body
LE: loop exit
PB: predicated region body
PF: predicated region fallthrough
CT: control target
= control target key end

     0   :  { %7 = vsyncpa [#allocation3], 0  ;;  %s716_s0 = inlined_call_operand.hbm [shape: f32[8,256], index: 0, kind: input, shape index: {}]   ;;  %s717_s1 = inlined_call_operand.hbm [shape: f32[256,1024], index: 1, kind: input, shape index: {}]   ;;  %s718_s2 = inlined_call_operand.hbm [shape: f32[8,1024], index: 2, kind: output, shape index: {}]  }
   0x1   :  { %8 = vsyncpa [#allocation6], 0 }
   0x2   :  { %9 = vsyncpa [#allocation4], 0  ;;  %s675_s9 = smov [#allocation2]   ;;  %s676_s11 = smov [#allocation5]  }
   0x3   :  { %s16_s10 = sshll.u32 %s675_s9, 4  ;;  %s25_s12 = sshll.u32 %s676_s11, 4  ;;  %s17_s10 = int_to_ptr.vmem [resolvable:$true] %s16_s10  ;;  %s26_s12 = int_to_ptr.vmem [resolvable:$true] %s25_s12 }
   0x4   :  { %s617_s13 = scalar_lea.vmem %s17_s10, 256  ;;  %p622_p1 = scmp.lt.s32.totalorder %s17_s10, %s17_s10 }
   0x5   :  { %p618_p0 = scmp.ne.s32.totalorder %s17_s10, %s617_s13  ;;  %p623_p2 = scmp.lt.s32.totalorder %s617_s13, %s617_s13 }
   0x7   :  { %p624_p3 = por %p623_p2, %p622_p1 }
   0x9   :  { %p625_p4 = pnand %p624_p3, %p618_p0 }
   0xb   :  { %628 = shalt.err (!%p625_p4)
}
   0xc   :  { %19 = dma.hbm_to_vmem [thread:$0]  %s716_s0, 256, %s17_s10, [#allocation3]  }
   0xd   :  { %s637_s16 = scalar_lea.vmem %s26_s12, 32768  ;;  %p642_p6 = scmp.lt.s32.totalorder %s26_s12, %s26_s12 }
   0xe   :  { %p638_p5 = scmp.ne.s32.totalorder %s26_s12, %s637_s16  ;;  %p643_p7 = scmp.lt.s32.totalorder %s637_s16, %s637_s16 }
  0x10   :  { %p644_p8 = por %p643_p7, %p642_p6 }
  0x12   :  { %p645_p9 = pnand %p644_p8, %p638_p5 }
  0x14   :  { %648 = shalt.err (!%p645_p9)
}
  0x15   :  { %s677_s17 = smov 1024   ;;  %s678_s18 = smov 64  }
  0x16   :  { %31 = dma.hbm_to_vmem [thread:$0]  %s717_s1, 32768, %s26_s12, [#allocation6], %s677_s17, %s677_s17, %s678_s18  }
  0x17   :  { %669 = dma.done.wait [#allocation3], 256  }
  0x18   :  { %670 = vsyncadd [#allocation3], 4294967040 }
  0x19   :  { %671 = dma.done.wait [#allocation6], 32768  }
  0x1a   :  { %672 = vsyncadd [#allocation6], 4294934528  ;;  %v161_v0 = vld [vmem:[#allocation5 + $0x3c8] sm:$0xff]  ;;  %v163_v1 = vld [vmem:[#allocation5 + $0x3d8] sm:$0xff]  ;;  %s679_s0 = smov [#allocation7]  }
  0x1b   :  { %v160_v2 = vld [vmem:[#allocation5 + $0x3c0] sm:$0xff]  ;;  %296 = vmatprep.subr.mxu0 %v161_v0  ;;  %367 = vmatprep.subr.mxu1 %v163_v1  ;;  %v162_v3 = vld [vmem:[#allocation5 + $0x3d0] sm:$0xff]  ;;  %v153_v4 = vld [vmem:[#allocation5 + $0x388] sm:$0xff]  ;;  %s594_s1 = sshll.u32 %s679_s0, 4  ;;  %s595_s1 = int_to_ptr.vmem [resolvable:$true] %s594_s1 }
  0x1c   :  { %v155_v5 = vld [vmem:[#allocation5 + $0x398] sm:$0xff]  ;;  %297 = vmatpush1.msra.mxu0 %v160_v2  ;;  %368 = vmatpush1.msra.mxu1 %v162_v3  ;;  %v152_v6 = vld [vmem:[#allocation5 + $0x380] sm:$0xff]  ;;  %v154_v7 = vld [vmem:[#allocation5 + $0x390] sm:$0xff]  ;;  %s649_s21 = scalar_lea.vmem %s595_s1, 1024  ;;  %p654_p11 = scmp.lt.s32.totalorder %s595_s1, %s595_s1 }
  0x1d   :  { %v145_v8 = vld [vmem:[#allocation5 + $0x348] sm:$0xff]  ;;  %298 = vmatprep.subr.mxu0 %v153_v4  ;;  %369 = vmatprep.subr.mxu1 %v155_v5  ;;  %v147_v9 = vld [vmem:[#allocation5 + $0x358] sm:$0xff]  ;;  %v144_v10 = vld [vmem:[#allocation5 + $0x340] sm:$0xff]  ;;  %p650_p10 = scmp.ne.s32.totalorder %s595_s1, %s649_s21  ;;  %p655_p12 = scmp.lt.s32.totalorder %s649_s21, %s649_s21 }
  0x1e   :  { %v146_v11 = vld [vmem:[#allocation5 + $0x350] sm:$0xff]  ;;  %299 = vmatpush1.msra.mxu0 %v152_v6  ;;  %370 = vmatpush1.msra.mxu1 %v154_v7  ;;  %v137_v12 = vld [vmem:[#allocation5 + $0x308] sm:$0xff]  ;;  %v139_v13 = vld [vmem:[#allocation5 + $0x318] sm:$0xff] }
  0x1f   :  { %300 = vmatprep.subr.mxu0 %v145_v8  ;;  %371 = vmatprep.subr.mxu1 %v147_v9  ;;  %v136_v14 = vld [vmem:[#allocation5 + $0x300] sm:$0xff]  ;;  %v138_v15 = vld [vmem:[#allocation5 + $0x310] sm:$0xff]  ;;  %v129_v16 = vld [vmem:[#allocation5 + $0x2c8] sm:$0xff]  ;;  %p656_p13 = por %p655_p12, %p654_p11 }
  0x20   :  { %301 = vmatpush1.msra.mxu0 %v144_v10  ;;  %372 = vmatpush1.msra.mxu1 %v146_v11  ;;  %v131_v17 = vld [vmem:[#allocation5 + $0x2d8] sm:$0xff]  ;;  %v128_v18 = vld [vmem:[#allocation5 + $0x2c0] sm:$0xff]  ;;  %v130_v19 = vld [vmem:[#allocation5 + $0x2d0] sm:$0xff] }
  0x21   :  { %302 = vmatprep.subr.mxu0 %v137_v12  ;;  %373 = vmatprep.subr.mxu1 %v139_v13  ;;  %v121_v20 = vld [vmem:[#allocation5 + $0x288] sm:$0xff]  ;;  %v123_v21 = vld [vmem:[#allocation5 + $0x298] sm:$0xff]  ;;  %v120_v22 = vld [vmem:[#allocation5 + $0x280] sm:$0xff]  ;;  %p657_p0 = pnand %p656_p13, %p650_p10 }
  0x22   :  { %303 = vmatpush1.msra.mxu0 %v136_v14  ;;  %374 = vmatpush1.msra.mxu1 %v138_v15  ;;  %v122_v23 = vld [vmem:[#allocation5 + $0x290] sm:$0xff]  ;;  %v113_v24 = vld [vmem:[#allocation5 + $0x248] sm:$0xff]  ;;  %v115_v25 = vld [vmem:[#allocation5 + $0x258] sm:$0xff] }
  0x23   :  { %304 = vmatprep.subr.mxu0 %v129_v16  ;;  %375 = vmatprep.subr.mxu1 %v131_v17  ;;  %v112_v26 = vld [vmem:[#allocation5 + $0x240] sm:$0xff]  ;;  %v114_v27 = vld [vmem:[#allocation5 + $0x250] sm:$0xff]  ;;  %v105_v28 = vld [vmem:[#allocation5 + $0x208] sm:$0xff] }
  0x24   :  { %305 = vmatpush1.msra.mxu0 %v128_v18  ;;  %376 = vmatpush1.msra.mxu1 %v130_v19  ;;  %v107_v29 = vld [vmem:[#allocation5 + $0x218] sm:$0xff]  ;;  %v104_v30 = vld [vmem:[#allocation5 + $0x200] sm:$0xff]  ;;  %v106_v31 = vld [vmem:[#allocation5 + $0x210] sm:$0xff] }
  0x25   :  { %306 = vmatprep.subr.mxu0 %v121_v20  ;;  %377 = vmatprep.subr.mxu1 %v123_v21  ;;  %v97_v32 = vld [vmem:[#allocation5 + $0x1c8] sm:$0xff]  ;;  %v99_v33 = vld [vmem:[#allocation5 + $0x1d8] sm:$0xff]  ;;  %v96_v34 = vld [vmem:[#allocation5 + $0x1c0] sm:$0xff] }
  0x26   :  { %307 = vmatpush1.msra.mxu0 %v120_v22  ;;  %378 = vmatpush1.msra.mxu1 %v122_v23  ;;  %v98_v35 = vld [vmem:[#allocation5 + $0x1d0] sm:$0xff]  ;;  %v89_v36 = vld [vmem:[#allocation5 + $0x188] sm:$0xff]  ;;  %v91_v37 = vld [vmem:[#allocation5 + $0x198] sm:$0xff] }
  0x27   :  { %308 = vmatprep.subr.mxu0 %v113_v24  ;;  %379 = vmatprep.subr.mxu1 %v115_v25  ;;  %v88_v38 = vld [vmem:[#allocation5 + $0x180] sm:$0xff]  ;;  %v90_v39 = vld [vmem:[#allocation5 + $0x190] sm:$0xff]  ;;  %v81_v40 = vld [vmem:[#allocation5 + $0x148] sm:$0xff] }
  0x28   :  { %309 = vmatpush1.msra.mxu0 %v112_v26  ;;  %380 = vmatpush1.msra.mxu1 %v114_v27  ;;  %v83_v41 = vld [vmem:[#allocation5 + $0x158] sm:$0xff]  ;;  %v80_v42 = vld [vmem:[#allocation5 + $0x140] sm:$0xff]  ;;  %v82_v43 = vld [vmem:[#allocation5 + $0x150] sm:$0xff] }
  0x29   :  { %310 = vmatprep.subr.mxu0 %v105_v28  ;;  %381 = vmatprep.subr.mxu1 %v107_v29  ;;  %v73_v44 = vld [vmem:[#allocation5 + $0x108] sm:$0xff]  ;;  %v75_v45 = vld [vmem:[#allocation5 + $0x118] sm:$0xff]  ;;  %v72_v46 = vld [vmem:[#allocation5 + $0x100] sm:$0xff] }
  0x2a   :  { %311 = vmatpush1.msra.mxu0 %v104_v30  ;;  %382 = vmatpush1.msra.mxu1 %v106_v31  ;;  %v74_v47 = vld [vmem:[#allocation5 + $0x110] sm:$0xff]  ;;  %v65_v48 = vld [vmem:[#allocation5 + $0xc8] sm:$0xff]  ;;  %v67_v49 = vld [vmem:[#allocation5 + $0xd8] sm:$0xff] }
  0x2b   :  { %312 = vmatprep.subr.mxu0 %v97_v32  ;;  %383 = vmatprep.subr.mxu1 %v99_v33  ;;  %v64_v50 = vld [vmem:[#allocation5 + $0xc0] sm:$0xff]  ;;  %v66_v51 = vld [vmem:[#allocation5 + $0xd0] sm:$0xff]  ;;  %v57_v52 = vld [vmem:[#allocation5 + $0x88] sm:$0xff] }
  0x2c   :  { %313 = vmatpush1.msra.mxu0 %v96_v34  ;;  %384 = vmatpush1.msra.mxu1 %v98_v35  ;;  %v59_v53 = vld [vmem:[#allocation5 + $0x98] sm:$0xff]  ;;  %v56_v54 = vld [vmem:[#allocation5 + $0x80] sm:$0xff]  ;;  %v58_v55 = vld [vmem:[#allocation5 + $0x90] sm:$0xff] }
  0x2d   :  { %314 = vmatprep.subr.mxu0 %v89_v36  ;;  %385 = vmatprep.subr.mxu1 %v91_v37  ;;  %v49_v56 = vld [vmem:[#allocation5 + $0x48] sm:$0xff]  ;;  %v51_v57 = vld [vmem:[#allocation5 + $0x58] sm:$0xff]  ;;  %v48_v58 = vld [vmem:[#allocation5 + $0x40] sm:$0xff] }
  0x2e   :  { %315 = vmatpush1.msra.mxu0 %v88_v38  ;;  %386 = vmatpush1.msra.mxu1 %v90_v39  ;;  %v50_v59 = vld [vmem:[#allocation5 + $0x50] sm:$0xff]  ;;  %v41_v60 = vld [vmem:[#allocation5 + $0x8] sm:$0xff]  ;;  %v43_v61 = vld [vmem:[#allocation5 + $0x18] sm:$0xff] }
  0x2f   :  { %316 = vmatprep.subr.mxu0 %v81_v40  ;;  %387 = vmatprep.subr.mxu1 %v83_v41  ;;  %v40_v62 = vld [vmem:[#allocation5] sm:$0xff]  ;;  %v42_v63 = vld [vmem:[#allocation5 + $0x10] sm:$0xff]  ;;  %v289_v0 = vld [vmem:[#allocation5 + $0x7c8] sm:$0xff] }
  0x30   :  { %317 = vmatpush1.msra.mxu0 %v80_v42  ;;  %388 = vmatpush1.msra.mxu1 %v82_v43  ;;  %v291_v1 = vld [vmem:[#allocation5 + $0x7d8] sm:$0xff]  ;;  %v288_v2 = vld [vmem:[#allocation5 + $0x7c0] sm:$0xff]  ;;  %v290_v3 = vld [vmem:[#allocation5 + $0x7d0] sm:$0xff] }
  0x31   :  { %318 = vmatprep.subr.mxu0 %v73_v44  ;;  %389 = vmatprep.subr.mxu1 %v75_v45  ;;  %v281_v4 = vld [vmem:[#allocation5 + $0x788] sm:$0xff]  ;;  %v283_v5 = vld [vmem:[#allocation5 + $0x798] sm:$0xff]  ;;  %v280_v6 = vld [vmem:[#allocation5 + $0x780] sm:$0xff] }
  0x32   :  { %319 = vmatpush1.msra.mxu0 %v72_v46  ;;  %390 = vmatpush1.msra.mxu1 %v74_v47  ;;  %v282_v7 = vld [vmem:[#allocation5 + $0x790] sm:$0xff]  ;;  %v273_v8 = vld [vmem:[#allocation5 + $0x748] sm:$0xff]  ;;  %v275_v9 = vld [vmem:[#allocation5 + $0x758] sm:$0xff] }
  0x33   :  { %320 = vmatprep.subr.mxu0 %v65_v48  ;;  %391 = vmatprep.subr.mxu1 %v67_v49  ;;  %v272_v10 = vld [vmem:[#allocation5 + $0x740] sm:$0xff]  ;;  %v274_v11 = vld [vmem:[#allocation5 + $0x750] sm:$0xff]  ;;  %v265_v12 = vld [vmem:[#allocation5 + $0x708] sm:$0xff] }
  0x34   :  { %321 = vmatpush1.msra.mxu0 %v64_v50  ;;  %392 = vmatpush1.msra.mxu1 %v66_v51  ;;  %v267_v13 = vld [vmem:[#allocation5 + $0x718] sm:$0xff]  ;;  %v264_v14 = vld [vmem:[#allocation5 + $0x700] sm:$0xff]  ;;  %v266_v15 = vld [vmem:[#allocation5 + $0x710] sm:$0xff] }
  0x35   :  { %322 = vmatprep.subr.mxu0 %v57_v52  ;;  %393 = vmatprep.subr.mxu1 %v59_v53  ;;  %v257_v16 = vld [vmem:[#allocation5 + $0x6c8] sm:$0xff]  ;;  %v259_v17 = vld [vmem:[#allocation5 + $0x6d8] sm:$0xff]  ;;  %v256_v18 = vld [vmem:[#allocation5 + $0x6c0] sm:$0xff] }
  0x36   :  { %323 = vmatpush1.msra.mxu0 %v56_v54  ;;  %394 = vmatpush1.msra.mxu1 %v58_v55  ;;  %v258_v19 = vld [vmem:[#allocation5 + $0x6d0] sm:$0xff]  ;;  %v249_v20 = vld [vmem:[#allocation5 + $0x688] sm:$0xff]  ;;  %v251_v21 = vld [vmem:[#allocation5 + $0x698] sm:$0xff] }
  0x37   :  { %324 = vmatprep.subr.mxu0 %v49_v56  ;;  %395 = vmatprep.subr.mxu1 %v51_v57  ;;  %v248_v22 = vld [vmem:[#allocation5 + $0x680] sm:$0xff]  ;;  %v250_v23 = vld [vmem:[#allocation5 + $0x690] sm:$0xff]  ;;  %v241_v24 = vld [vmem:[#allocation5 + $0x648] sm:$0xff] }
  0x38   :  { %325 = vmatpush1.msra.mxu0 %v48_v58  ;;  %396 = vmatpush1.msra.mxu1 %v50_v59  ;;  %v243_v25 = vld [vmem:[#allocation5 + $0x658] sm:$0xff]  ;;  %v240_v26 = vld [vmem:[#allocation5 + $0x640] sm:$0xff]  ;;  %v242_v27 = vld [vmem:[#allocation5 + $0x650] sm:$0xff] }
  0x39   :  { %326 = vmatprep.subr.mxu0 %v41_v60  ;;  %397 = vmatprep.subr.mxu1 %v43_v61  ;;  %v233_v28 = vld [vmem:[#allocation5 + $0x608] sm:$0xff]  ;;  %v235_v29 = vld [vmem:[#allocation5 + $0x618] sm:$0xff]  ;;  %v232_v30 = vld [vmem:[#allocation5 + $0x600] sm:$0xff] }
  0x3a   :  { %327 = vmatpush1.msra.mxu0 %v40_v62  ;;  %398 = vmatpush1.msra.mxu1 %v42_v63  ;;  %v234_v31 = vld [vmem:[#allocation5 + $0x610] sm:$0xff]  ;;  %v225_v32 = vld [vmem:[#allocation5 + $0x5c8] sm:$0xff]  ;;  %v227_v33 = vld [vmem:[#allocation5 + $0x5d8] sm:$0xff] }
  0x3b   :  { %328 = vmatprep.subr.mxu0 %v289_v0  ;;  %399 = vmatprep.subr.mxu1 %v291_v1  ;;  %v224_v34 = vld [vmem:[#allocation5 + $0x5c0] sm:$0xff]  ;;  %v226_v35 = vld [vmem:[#allocation5 + $0x5d0] sm:$0xff]  ;;  %v217_v36 = vld [vmem:[#allocation5 + $0x588] sm:$0xff] }
  0x3c   :  { %329 = vmatpush2.msra.mxu0 %v288_v2  ;;  %400 = vmatpush2.msra.mxu1 %v290_v3  ;;  %v219_v37 = vld [vmem:[#allocation5 + $0x598] sm:$0xff]  ;;  %v216_v38 = vld [vmem:[#allocation5 + $0x580] sm:$0xff]  ;;  %v218_v39 = vld [vmem:[#allocation5 + $0x590] sm:$0xff] }
  0x3d   :  { %330 = vmatprep.subr.mxu0 %v281_v4  ;;  %401 = vmatprep.subr.mxu1 %v283_v5  ;;  %v209_v40 = vld [vmem:[#allocation5 + $0x548] sm:$0xff]  ;;  %v211_v41 = vld [vmem:[#allocation5 + $0x558] sm:$0xff]  ;;  %v208_v42 = vld [vmem:[#allocation5 + $0x540] sm:$0xff] }
  0x3e   :  { %331 = vmatpush2.msra.mxu0 %v280_v6  ;;  %402 = vmatpush2.msra.mxu1 %v282_v7  ;;  %v210_v43 = vld [vmem:[#allocation5 + $0x550] sm:$0xff]  ;;  %v201_v44 = vld [vmem:[#allocation5 + $0x508] sm:$0xff]  ;;  %v203_v45 = vld [vmem:[#allocation5 + $0x518] sm:$0xff] }
  0x3f   :  { %332 = vmatprep.subr.mxu0 %v273_v8  ;;  %403 = vmatprep.subr.mxu1 %v275_v9  ;;  %v200_v46 = vld [vmem:[#allocation5 + $0x500] sm:$0xff]  ;;  %v202_v47 = vld [vmem:[#allocation5 + $0x510] sm:$0xff]  ;;  %v193_v48 = vld [vmem:[#allocation5 + $0x4c8] sm:$0xff] }
  0x40   :  { %333 = vmatpush2.msra.mxu0 %v272_v10  ;;  %404 = vmatpush2.msra.mxu1 %v274_v11  ;;  %v195_v49 = vld [vmem:[#allocation5 + $0x4d8] sm:$0xff]  ;;  %v192_v50 = vld [vmem:[#allocation5 + $0x4c0] sm:$0xff]  ;;  %v194_v51 = vld [vmem:[#allocation5 + $0x4d0] sm:$0xff] }
  0x41   :  { %334 = vmatprep.subr.mxu0 %v265_v12  ;;  %405 = vmatprep.subr.mxu1 %v267_v13  ;;  %v185_v52 = vld [vmem:[#allocation5 + $0x488] sm:$0xff]  ;;  %v187_v53 = vld [vmem:[#allocation5 + $0x498] sm:$0xff]  ;;  %v184_v54 = vld [vmem:[#allocation5 + $0x480] sm:$0xff] }
  0x42   :  { %335 = vmatpush2.msra.mxu0 %v264_v14  ;;  %406 = vmatpush2.msra.mxu1 %v266_v15  ;;  %v186_v55 = vld [vmem:[#allocation5 + $0x490] sm:$0xff]  ;;  %v177_v56 = vld [vmem:[#allocation5 + $0x448] sm:$0xff]  ;;  %v179_v57 = vld [vmem:[#allocation5 + $0x458] sm:$0xff] }
  0x43   :  { %336 = vmatprep.subr.mxu0 %v257_v16  ;;  %407 = vmatprep.subr.mxu1 %v259_v17  ;;  %v176_v58 = vld [vmem:[#allocation5 + $0x440] sm:$0xff]  ;;  %v178_v59 = vld [vmem:[#allocation5 + $0x450] sm:$0xff]  ;;  %v169_v60 = vld [vmem:[#allocation5 + $0x408] sm:$0xff] }
  0x44   :  { %337 = vmatpush2.msra.mxu0 %v256_v18  ;;  %408 = vmatpush2.msra.mxu1 %v258_v19  ;;  %v171_v61 = vld [vmem:[#allocation5 + $0x418] sm:$0xff]  ;;  %v168_v62 = vld [vmem:[#allocation5 + $0x400] sm:$0xff]  ;;  %v170_v0 = vld [vmem:[#allocation5 + $0x410] sm:$0xff] }
  0x45   :  { %338 = vmatprep.subr.mxu0 %v249_v20  ;;  %409 = vmatprep.subr.mxu1 %v251_v21  ;;  %v701_v63 = vld [vmem:[#allocation2 + $0x8] sm:$0xff]  ;;  %v703_v1 = vld [vmem:[#allocation2] sm:$0xff]  ;;  %v165_v2 = vld [vmem:[#allocation5 + $0x3e8] sm:$0xff] }
  0x46   :  { %339 = vmatpush2.msra.mxu0 %v248_v22  ;;  %410 = vmatpush2.msra.mxu1 %v250_v23  ;;  %v167_v3 = vld [vmem:[#allocation5 + $0x3f8] sm:$0xff]  ;;  %v164_v4 = vld [vmem:[#allocation5 + $0x3e0] sm:$0xff]  ;;  %v166_v5 = vld [vmem:[#allocation5 + $0x3f0] sm:$0xff] }
  0x47   :  { %340 = vmatprep.subr.mxu0 %v241_v24  ;;  %411 = vmatprep.subr.mxu1 %v243_v25  ;;  %v157_v6 = vld [vmem:[#allocation5 + $0x3a8] sm:$0xff]  ;;  %v159_v7 = vld [vmem:[#allocation5 + $0x3b8] sm:$0xff]  ;;  %v156_v8 = vld [vmem:[#allocation5 + $0x3a0] sm:$0xff] }
  0x48   :  { %341 = vmatpush2.msra.mxu0 %v240_v26  ;;  %412 = vmatpush2.msra.mxu1 %v242_v27  ;;  %v158_v9 = vld [vmem:[#allocation5 + $0x3b0] sm:$0xff]  ;;  %v149_v10 = vld [vmem:[#allocation5 + $0x368] sm:$0xff]  ;;  %v151_v11 = vld [vmem:[#allocation5 + $0x378] sm:$0xff] }
  0x49   :  { %342 = vmatprep.subr.mxu0 %v233_v28  ;;  %413 = vmatprep.subr.mxu1 %v235_v29  ;;  %v148_v12 = vld [vmem:[#allocation5 + $0x360] sm:$0xff]  ;;  %v150_v13 = vld [vmem:[#allocation5 + $0x370] sm:$0xff]  ;;  %v141_v14 = vld [vmem:[#allocation5 + $0x328] sm:$0xff] }
  0x4a   :  { %343 = vmatpush2.msra.mxu0 %v232_v30  ;;  %414 = vmatpush2.msra.mxu1 %v234_v31  ;;  %v143_v15 = vld [vmem:[#allocation5 + $0x338] sm:$0xff]  ;;  %v140_v16 = vld [vmem:[#allocation5 + $0x320] sm:$0xff]  ;;  %v142_v17 = vld [vmem:[#allocation5 + $0x330] sm:$0xff] }
  0x4b   :  { %344 = vmatprep.subr.mxu0 %v225_v32  ;;  %415 = vmatprep.subr.mxu1 %v227_v33  ;;  %v133_v18 = vld [vmem:[#allocation5 + $0x2e8] sm:$0xff]  ;;  %v135_v19 = vld [vmem:[#allocation5 + $0x2f8] sm:$0xff]  ;;  %v132_v20 = vld [vmem:[#allocation5 + $0x2e0] sm:$0xff] }
  0x4c   :  { %345 = vmatpush2.msra.mxu0 %v224_v34  ;;  %416 = vmatpush2.msra.mxu1 %v226_v35  ;;  %v134_v21 = vld [vmem:[#allocation5 + $0x2f0] sm:$0xff]  ;;  %v125_v22 = vld [vmem:[#allocation5 + $0x2a8] sm:$0xff]  ;;  %v127_v23 = vld [vmem:[#allocation5 + $0x2b8] sm:$0xff] }
  0x4d   :  { %346 = vmatprep.subr.mxu0 %v217_v36  ;;  %417 = vmatprep.subr.mxu1 %v219_v37  ;;  %v124_v24 = vld [vmem:[#allocation5 + $0x2a0] sm:$0xff]  ;;  %v126_v25 = vld [vmem:[#allocation5 + $0x2b0] sm:$0xff]  ;;  %v117_v26 = vld [vmem:[#allocation5 + $0x268] sm:$0xff] }
  0x4e   :  { %347 = vmatpush2.msra.mxu0 %v216_v38  ;;  %418 = vmatpush2.msra.mxu1 %v218_v39  ;;  %v119_v27 = vld [vmem:[#allocation5 + $0x278] sm:$0xff]  ;;  %v116_v28 = vld [vmem:[#allocation5 + $0x260] sm:$0xff]  ;;  %v118_v29 = vld [vmem:[#allocation5 + $0x270] sm:$0xff] }
  0x4f   :  { %348 = vmatprep.subr.mxu0 %v209_v40  ;;  %419 = vmatprep.subr.mxu1 %v211_v41  ;;  %v109_v30 = vld [vmem:[#allocation5 + $0x228] sm:$0xff]  ;;  %v111_v31 = vld [vmem:[#allocation5 + $0x238] sm:$0xff]  ;;  %v108_v32 = vld [vmem:[#allocation5 + $0x220] sm:$0xff] }
  0x50   :  { %349 = vmatpush2.msra.mxu0 %v208_v42  ;;  %420 = vmatpush2.msra.mxu1 %v210_v43  ;;  %v110_v33 = vld [vmem:[#allocation5 + $0x230] sm:$0xff]  ;;  %v101_v34 = vld [vmem:[#allocation5 + $0x1e8] sm:$0xff]  ;;  %v103_v35 = vld [vmem:[#allocation5 + $0x1f8] sm:$0xff] }
  0x51   :  { %350 = vmatprep.subr.mxu0 %v201_v44  ;;  %421 = vmatprep.subr.mxu1 %v203_v45  ;;  %v100_v36 = vld [vmem:[#allocation5 + $0x1e0] sm:$0xff]  ;;  %v102_v37 = vld [vmem:[#allocation5 + $0x1f0] sm:$0xff]  ;;  %v93_v38 = vld [vmem:[#allocation5 + $0x1a8] sm:$0xff] }
  0x52   :  { %351 = vmatpush2.msra.mxu0 %v200_v46  ;;  %422 = vmatpush2.msra.mxu1 %v202_v47  ;;  %v95_v39 = vld [vmem:[#allocation5 + $0x1b8] sm:$0xff]  ;;  %v92_v40 = vld [vmem:[#allocation5 + $0x1a0] sm:$0xff]  ;;  %v94_v41 = vld [vmem:[#allocation5 + $0x1b0] sm:$0xff] }
  0x53   :  { %352 = vmatprep.subr.mxu0 %v193_v48  ;;  %423 = vmatprep.subr.mxu1 %v195_v49  ;;  %v85_v42 = vld [vmem:[#allocation5 + $0x168] sm:$0xff]  ;;  %v87_v43 = vld [vmem:[#allocation5 + $0x178] sm:$0xff]  ;;  %v84_v44 = vld [vmem:[#allocation5 + $0x160] sm:$0xff] }
  0x54   :  { %353 = vmatpush2.msra.mxu0 %v192_v50  ;;  %424 = vmatpush2.msra.mxu1 %v194_v51  ;;  %v86_v45 = vld [vmem:[#allocation5 + $0x170] sm:$0xff]  ;;  %v77_v46 = vld [vmem:[#allocation5 + $0x128] sm:$0xff]  ;;  %v79_v47 = vld [vmem:[#allocation5 + $0x138] sm:$0xff] }
  0x55   :  { %354 = vmatprep.subr.mxu0 %v185_v52  ;;  %425 = vmatprep.subr.mxu1 %v187_v53  ;;  %v76_v48 = vld [vmem:[#allocation5 + $0x120] sm:$0xff]  ;;  %v78_v49 = vld [vmem:[#allocation5 + $0x130] sm:$0xff]  ;;  %v69_v50 = vld [vmem:[#allocation5 + $0xe8] sm:$0xff] }
  0x56   :  { %355 = vmatpush2.msra.mxu0 %v184_v54  ;;  %426 = vmatpush2.msra.mxu1 %v186_v55  ;;  %v71_v51 = vld [vmem:[#allocation5 + $0xf8] sm:$0xff]  ;;  %v68_v52 = vld [vmem:[#allocation5 + $0xe0] sm:$0xff]  ;;  %v70_v53 = vld [vmem:[#allocation5 + $0xf0] sm:$0xff] }
  0x57   :  { %356 = vmatprep.subr.mxu0 %v177_v56  ;;  %427 = vmatprep.subr.mxu1 %v179_v57  ;;  %v61_v54 = vld [vmem:[#allocation5 + $0xa8] sm:$0xff]  ;;  %v63_v55 = vld [vmem:[#allocation5 + $0xb8] sm:$0xff]  ;;  %v60_v56 = vld [vmem:[#allocation5 + $0xa0] sm:$0xff] }
  0x58   :  { %357 = vmatpush2.msra.mxu0 %v176_v58  ;;  %428 = vmatpush2.msra.mxu1 %v178_v59  ;;  %v62_v57 = vld [vmem:[#allocation5 + $0xb0] sm:$0xff]  ;;  %v53_v58 = vld [vmem:[#allocation5 + $0x68] sm:$0xff]  ;;  %v55_v59 = vld [vmem:[#allocation5 + $0x78] sm:$0xff] }
  0x59   :  { %358 = vmatprep.subr.mxu0 %v169_v60  ;;  %429 = vmatprep.subr.mxu1 %v171_v61  ;;  %v52_v60 = vld [vmem:[#allocation5 + $0x60] sm:$0xff]  ;;  %v54_v61 = vld [vmem:[#allocation5 + $0x70] sm:$0xff] }
  0x5a   :  { %359 = vmatpush2.msra.mxu0 %v168_v62  ;;  %360 = vmatprep.mubr.f32.mxu0 %v701_v63  ;;  %v45_v62 = vld [vmem:[#allocation5 + $0x28] sm:$0xff] }
  0x5b   :  { %430 = vmatpush2.msra.mxu1 %v170_v0  ;;  %431 = vmatprep.mubr.f32.mxu1 %v701_v63  ;;  %v47_v0 = vld [vmem:[#allocation5 + $0x38] sm:$0xff] }
  0x5c   :  { %361 = vmatmul.mubr.f32.vlgmr.msra.gmra.mxu0 %v703_v1  ;;  %432 = vmatmul.mubr.f32.vlgmr.msra.gmra.mxu1 %v703_v1 }
  0x5d   :  { %438 = vmatprep.subr.mxu0 %v165_v2  ;;  %509 = vmatprep.subr.mxu1 %v167_v3  ;;  %v44_v2 = vld [vmem:[#allocation5 + $0x20] sm:$0xff]  ;;  %v46_v3 = vld [vmem:[#allocation5 + $0x30] sm:$0xff] }
  0x5e   :  { %439 = vmatpush1.msra.mxu0 %v164_v4  ;;  %510 = vmatpush1.msra.mxu1 %v166_v5  ;;  %v293_v4 = vld [vmem:[#allocation5 + $0x7e8] sm:$0xff]  ;;  %v295_v5 = vld [vmem:[#allocation5 + $0x7f8] sm:$0xff] }
  0x5f   :  { %440 = vmatprep.subr.mxu0 %v157_v6  ;;  %511 = vmatprep.subr.mxu1 %v159_v7  ;;  %v292_v6 = vld [vmem:[#allocation5 + $0x7e0] sm:$0xff]  ;;  %v294_v7 = vld [vmem:[#allocation5 + $0x7f0] sm:$0xff] }
  0x60   :  { %441 = vmatpush1.msra.mxu0 %v156_v8  ;;  %512 = vmatpush1.msra.mxu1 %v158_v9  ;;  %v285_v8 = vld [vmem:[#allocation5 + $0x7a8] sm:$0xff]  ;;  %v287_v9 = vld [vmem:[#allocation5 + $0x7b8] sm:$0xff] }
  0x61   :  { %442 = vmatprep.subr.mxu0 %v149_v10  ;;  %513 = vmatprep.subr.mxu1 %v151_v11  ;;  %v284_v10 = vld [vmem:[#allocation5 + $0x7a0] sm:$0xff]  ;;  %v286_v11 = vld [vmem:[#allocation5 + $0x7b0] sm:$0xff] }
  0x62   :  { %443 = vmatpush1.msra.mxu0 %v148_v12  ;;  %514 = vmatpush1.msra.mxu1 %v150_v13  ;;  %v277_v12 = vld [vmem:[#allocation5 + $0x768] sm:$0xff]  ;;  %v279_v13 = vld [vmem:[#allocation5 + $0x778] sm:$0xff] }
  0x63   :  { %444 = vmatprep.subr.mxu0 %v141_v14  ;;  %515 = vmatprep.subr.mxu1 %v143_v15  ;;  %v276_v14 = vld [vmem:[#allocation5 + $0x760] sm:$0xff]  ;;  %v278_v15 = vld [vmem:[#allocation5 + $0x770] sm:$0xff] }
  0x64   :  { %445 = vmatpush1.msra.mxu0 %v140_v16  ;;  %516 = vmatpush1.msra.mxu1 %v142_v17  ;;  %v269_v16 = vld [vmem:[#allocation5 + $0x728] sm:$0xff]  ;;  %v271_v17 = vld [vmem:[#allocation5 + $0x738] sm:$0xff] }
  0x65   :  { %446 = vmatprep.subr.mxu0 %v133_v18  ;;  %517 = vmatprep.subr.mxu1 %v135_v19  ;;  %v268_v18 = vld [vmem:[#allocation5 + $0x720] sm:$0xff]  ;;  %v270_v19 = vld [vmem:[#allocation5 + $0x730] sm:$0xff] }
  0x66   :  { %447 = vmatpush1.msra.mxu0 %v132_v20  ;;  %518 = vmatpush1.msra.mxu1 %v134_v21  ;;  %v261_v20 = vld [vmem:[#allocation5 + $0x6e8] sm:$0xff]  ;;  %v263_v21 = vld [vmem:[#allocation5 + $0x6f8] sm:$0xff] }
  0x67   :  { %448 = vmatprep.subr.mxu0 %v125_v22  ;;  %519 = vmatprep.subr.mxu1 %v127_v23  ;;  %v260_v22 = vld [vmem:[#allocation5 + $0x6e0] sm:$0xff]  ;;  %v262_v23 = vld [vmem:[#allocation5 + $0x6f0] sm:$0xff] }
  0x68   :  { %449 = vmatpush1.msra.mxu0 %v124_v24  ;;  %520 = vmatpush1.msra.mxu1 %v126_v25  ;;  %v253_v24 = vld [vmem:[#allocation5 + $0x6a8] sm:$0xff]  ;;  %v255_v25 = vld [vmem:[#allocation5 + $0x6b8] sm:$0xff] }
  0x69   :  { %450 = vmatprep.subr.mxu0 %v117_v26  ;;  %521 = vmatprep.subr.mxu1 %v119_v27  ;;  %v252_v26 = vld [vmem:[#allocation5 + $0x6a0] sm:$0xff]  ;;  %v254_v27 = vld [vmem:[#allocation5 + $0x6b0] sm:$0xff] }
  0x6a   :  { %451 = vmatpush1.msra.mxu0 %v116_v28  ;;  %522 = vmatpush1.msra.mxu1 %v118_v29  ;;  %v245_v28 = vld [vmem:[#allocation5 + $0x668] sm:$0xff]  ;;  %v247_v29 = vld [vmem:[#allocation5 + $0x678] sm:$0xff] }
  0x6b   :  { %452 = vmatprep.subr.mxu0 %v109_v30  ;;  %523 = vmatprep.subr.mxu1 %v111_v31  ;;  %v244_v30 = vld [vmem:[#allocation5 + $0x660] sm:$0xff]  ;;  %v246_v31 = vld [vmem:[#allocation5 + $0x670] sm:$0xff] }
  0x6c   :  { %453 = vmatpush1.msra.mxu0 %v108_v32  ;;  %524 = vmatpush1.msra.mxu1 %v110_v33  ;;  %v237_v32 = vld [vmem:[#allocation5 + $0x628] sm:$0xff]  ;;  %v239_v33 = vld [vmem:[#allocation5 + $0x638] sm:$0xff] }
  0x6d   :  { %454 = vmatprep.subr.mxu0 %v101_v34  ;;  %525 = vmatprep.subr.mxu1 %v103_v35  ;;  %v236_v34 = vld [vmem:[#allocation5 + $0x620] sm:$0xff]  ;;  %v238_v35 = vld [vmem:[#allocation5 + $0x630] sm:$0xff] }
  0x6e   :  { %455 = vmatpush1.msra.mxu0 %v100_v36  ;;  %526 = vmatpush1.msra.mxu1 %v102_v37  ;;  %v229_v36 = vld [vmem:[#allocation5 + $0x5e8] sm:$0xff]  ;;  %v231_v37 = vld [vmem:[#allocation5 + $0x5f8] sm:$0xff] }
  0x6f   :  { %456 = vmatprep.subr.mxu0 %v93_v38  ;;  %527 = vmatprep.subr.mxu1 %v95_v39  ;;  %v228_v38 = vld [vmem:[#allocation5 + $0x5e0] sm:$0xff]  ;;  %v230_v39 = vld [vmem:[#allocation5 + $0x5f0] sm:$0xff] }
  0x70   :  { %457 = vmatpush1.msra.mxu0 %v92_v40  ;;  %528 = vmatpush1.msra.mxu1 %v94_v41  ;;  %v221_v40 = vld [vmem:[#allocation5 + $0x5a8] sm:$0xff]  ;;  %v223_v41 = vld [vmem:[#allocation5 + $0x5b8] sm:$0xff] }
  0x71   :  { %458 = vmatprep.subr.mxu0 %v85_v42  ;;  %529 = vmatprep.subr.mxu1 %v87_v43  ;;  %v220_v42 = vld [vmem:[#allocation5 + $0x5a0] sm:$0xff]  ;;  %v222_v43 = vld [vmem:[#allocation5 + $0x5b0] sm:$0xff] }
  0x72   :  { %459 = vmatpush1.msra.mxu0 %v84_v44  ;;  %530 = vmatpush1.msra.mxu1 %v86_v45  ;;  %v213_v44 = vld [vmem:[#allocation5 + $0x568] sm:$0xff]  ;;  %v215_v45 = vld [vmem:[#allocation5 + $0x578] sm:$0xff] }
  0x73   :  { %460 = vmatprep.subr.mxu0 %v77_v46  ;;  %531 = vmatprep.subr.mxu1 %v79_v47  ;;  %v212_v46 = vld [vmem:[#allocation5 + $0x560] sm:$0xff]  ;;  %v214_v47 = vld [vmem:[#allocation5 + $0x570] sm:$0xff] }
  0x74   :  { %461 = vmatpush1.msra.mxu0 %v76_v48  ;;  %532 = vmatpush1.msra.mxu1 %v78_v49  ;;  %v205_v48 = vld [vmem:[#allocation5 + $0x528] sm:$0xff]  ;;  %v207_v49 = vld [vmem:[#allocation5 + $0x538] sm:$0xff] }
  0x75   :  { %462 = vmatprep.subr.mxu0 %v69_v50  ;;  %533 = vmatprep.subr.mxu1 %v71_v51  ;;  %v204_v50 = vld [vmem:[#allocation5 + $0x520] sm:$0xff]  ;;  %v206_v51 = vld [vmem:[#allocation5 + $0x530] sm:$0xff] }
  0x76   :  { %463 = vmatpush1.msra.mxu0 %v68_v52  ;;  %534 = vmatpush1.msra.mxu1 %v70_v53  ;;  %v197_v52 = vld [vmem:[#allocation5 + $0x4e8] sm:$0xff]  ;;  %v199_v53 = vld [vmem:[#allocation5 + $0x4f8] sm:$0xff] }
  0x77   :  { %464 = vmatprep.subr.mxu0 %v61_v54  ;;  %535 = vmatprep.subr.mxu1 %v63_v55  ;;  %v196_v54 = vld [vmem:[#allocation5 + $0x4e0] sm:$0xff]  ;;  %v198_v55 = vld [vmem:[#allocation5 + $0x4f0] sm:$0xff] }
  0x78   :  { %465 = vmatpush1.msra.mxu0 %v60_v56  ;;  %536 = vmatpush1.msra.mxu1 %v62_v57  ;;  %v189_v56 = vld [vmem:[#allocation5 + $0x4a8] sm:$0xff]  ;;  %v191_v57 = vld [vmem:[#allocation5 + $0x4b8] sm:$0xff] }
  0x79   :  { %466 = vmatprep.subr.mxu0 %v53_v58  ;;  %537 = vmatprep.subr.mxu1 %v55_v59  ;;  %v188_v58 = vld [vmem:[#allocation5 + $0x4a0] sm:$0xff]  ;;  %v190_v59 = vld [vmem:[#allocation5 + $0x4b0] sm:$0xff] }
  0x7a   :  { %467 = vmatpush1.msra.mxu0 %v52_v60  ;;  %538 = vmatpush1.msra.mxu1 %v54_v61  ;;  %v181_v60 = vld [vmem:[#allocation5 + $0x468] sm:$0xff]  ;;  %v183_v61 = vld [vmem:[#allocation5 + $0x478] sm:$0xff] }
  0x7b   :  { %468 = vmatprep.subr.mxu0 %v45_v62  ;;  %539 = vmatprep.subr.mxu1 %v47_v0  ;;  %v180_v62 = vld [vmem:[#allocation5 + $0x460] sm:$0xff]  ;;  %v182_v0 = vld [vmem:[#allocation5 + $0x470] sm:$0xff] }
  0x7c   :  { %469 = vmatpush1.msra.mxu0 %v44_v2  ;;  %540 = vmatpush1.msra.mxu1 %v46_v3  ;;  %v173_v2 = vld [vmem:[#allocation5 + $0x428] sm:$0xff]  ;;  %v175_v3 = vld [vmem:[#allocation5 + $0x438] sm:$0xff] }
  0x7d   :  { %470 = vmatprep.subr.mxu0 %v293_v4  ;;  %541 = vmatprep.subr.mxu1 %v295_v5  ;;  %v172_v4 = vld [vmem:[#allocation5 + $0x420] sm:$0xff]  ;;  %v174_v5 = vld [vmem:[#allocation5 + $0x430] sm:$0xff] }
  0x7e   :  { %471 = vmatpush2.msra.mxu0 %v292_v6  ;;  %542 = vmatpush2.msra.mxu1 %v294_v7 }
  0x7f   :  { %472 = vmatprep.subr.mxu0 %v285_v8  ;;  %543 = vmatprep.subr.mxu1 %v287_v9 }
  0x80   :  { %473 = vmatpush2.msra.mxu0 %v284_v10  ;;  %544 = vmatpush2.msra.mxu1 %v286_v11 }
  0x81   :  { %474 = vmatprep.subr.mxu0 %v277_v12  ;;  %545 = vmatprep.subr.mxu1 %v279_v13 }
  0x82   :  { %475 = vmatpush2.msra.mxu0 %v276_v14  ;;  %546 = vmatpush2.msra.mxu1 %v278_v15 }
  0x83   :  { %476 = vmatprep.subr.mxu0 %v269_v16  ;;  %547 = vmatprep.subr.mxu1 %v271_v17 }
  0x84   :  { %477 = vmatpush2.msra.mxu0 %v268_v18  ;;  %548 = vmatpush2.msra.mxu1 %v270_v19 }
  0x85   :  { %478 = vmatprep.subr.mxu0 %v261_v20  ;;  %549 = vmatprep.subr.mxu1 %v263_v21 }
  0x86   :  { %479 = vmatpush2.msra.mxu0 %v260_v22  ;;  %550 = vmatpush2.msra.mxu1 %v262_v23 }
  0x87   :  { %480 = vmatprep.subr.mxu0 %v253_v24  ;;  %551 = vmatprep.subr.mxu1 %v255_v25 }
  0x88   :  { %481 = vmatpush2.msra.mxu0 %v252_v26  ;;  %552 = vmatpush2.msra.mxu1 %v254_v27 }
  0x89   :  { %482 = vmatprep.subr.mxu0 %v245_v28  ;;  %553 = vmatprep.subr.mxu1 %v247_v29 }
  0x8a   :  { %483 = vmatpush2.msra.mxu0 %v244_v30  ;;  %554 = vmatpush2.msra.mxu1 %v246_v31 }
  0x8b   :  { %484 = vmatprep.subr.mxu0 %v237_v32  ;;  %555 = vmatprep.subr.mxu1 %v239_v33 }
  0x8c   :  { %485 = vmatpush2.msra.mxu0 %v236_v34  ;;  %556 = vmatpush2.msra.mxu1 %v238_v35 }
  0x8d   :  { %486 = vmatprep.subr.mxu0 %v229_v36  ;;  %557 = vmatprep.subr.mxu1 %v231_v37 }
  0x8e   :  { %487 = vmatpush2.msra.mxu0 %v228_v38  ;;  %558 = vmatpush2.msra.mxu1 %v230_v39 }
  0x8f   :  { %488 = vmatprep.subr.mxu0 %v221_v40  ;;  %559 = vmatprep.subr.mxu1 %v223_v41 }
  0x90   :  { %489 = vmatpush2.msra.mxu0 %v220_v42  ;;  %560 = vmatpush2.msra.mxu1 %v222_v43 }
  0x91   :  { %490 = vmatprep.subr.mxu0 %v213_v44  ;;  %561 = vmatprep.subr.mxu1 %v215_v45 }
  0x92   :  { %491 = vmatpush2.msra.mxu0 %v212_v46  ;;  %562 = vmatpush2.msra.mxu1 %v214_v47 }
  0x93   :  { %492 = vmatprep.subr.mxu0 %v205_v48  ;;  %563 = vmatprep.subr.mxu1 %v207_v49 }
  0x94   :  { %493 = vmatpush2.msra.mxu0 %v204_v50  ;;  %564 = vmatpush2.msra.mxu1 %v206_v51 }
  0x95   :  { %494 = vmatprep.subr.mxu0 %v197_v52  ;;  %565 = vmatprep.subr.mxu1 %v199_v53 }
  0x96   :  { %495 = vmatpush2.msra.mxu0 %v196_v54  ;;  %566 = vmatpush2.msra.mxu1 %v198_v55 }
  0x97   :  { %496 = vmatprep.subr.mxu0 %v189_v56  ;;  %567 = vmatprep.subr.mxu1 %v191_v57 }
  0x98   :  { %497 = vmatpush2.msra.mxu0 %v188_v58  ;;  %568 = vmatpush2.msra.mxu1 %v190_v59 }
  0x99   :  { %498 = vmatprep.subr.mxu0 %v181_v60  ;;  %569 = vmatprep.subr.mxu1 %v183_v61 }
  0x9a   :  { %499 = vmatpush2.msra.mxu0 %v180_v62  ;;  %570 = vmatpush2.msra.mxu1 %v182_v0 }
  0x9b   :  { %500 = vmatprep.subr.mxu0 %v173_v2  ;;  %571 = vmatprep.subr.mxu1 %v175_v3 }
  0x9c   :  { %501 = vmatpush2.msra.mxu0 %v172_v4  ;;  %502 = vmatprep.mubr.f32.mxu0 %v701_v63 }
  0x9d   :  { %572 = vmatpush2.msra.mxu1 %v174_v5  ;;  %573 = vmatprep.mubr.f32.mxu1 %v701_v63 }
  0x9e   :  { %503 = vmatmul.mubr.f32.vlgmr.msra.gmra.mxu0 %v703_v1  ;;  %574 = vmatmul.mubr.f32.vlgmr.msra.gmra.mxu1 %v703_v1 }
 0x11c   :  { %v362_v6 = vpop.f32.mrf.mxu0  ;;  %v433_v7 = vpop.f32.mrf.mxu1 }
 0x11d   :  { %580 = vst [vmem:[#allocation7] sm:$0xff] %v362_v6  ;;  %582 = vst [vmem:[#allocation7 + $0x10] sm:$0xff] %v433_v7 }
 0x11e   :  { %v364_v8 = vpop.f32.mrf.mxu0  ;;  %v435_v9 = vpop.f32.mrf.mxu1 }
 0x11f   :  { %581 = vst [vmem:[#allocation7 + $0x8] sm:$0xff] %v364_v8  ;;  %583 = vst [vmem:[#allocation7 + $0x18] sm:$0xff] %v435_v9 }
 0x15e   :  { %v504_v10 = vpop.f32.mrf.mxu0  ;;  %v575_v11 = vpop.f32.mrf.mxu1 }
 0x15f   :  { %584 = vst [vmem:[#allocation7 + $0x20] sm:$0xff] %v504_v10  ;;  %586 = vst [vmem:[#allocation7 + $0x30] sm:$0xff] %v575_v11 }
 0x160   :  { %v506_v63 = vpop.f32.mrf.mxu0  ;;  %v577_v12 = vpop.f32.mrf.mxu1 }
 0x161   :  { %585 = vst [vmem:[#allocation7 + $0x28] sm:$0xff] %v506_v63  ;;  %587 = vst [vmem:[#allocation7 + $0x38] sm:$0xff] %v577_v12 }
 0x162   :  { %660 = shalt.err (!%p657_p0)
}
 0x163   :  { %597 = dma.vmem_to_hbm [thread:$0]  %s595_s1, 1024, %s718_s2, [#allocation4]  }
 0x164   :  { %673 = dma.done.wait [#allocation4], 1024  }
 0x165   :  { %674 = vsyncadd [#allocation4], 4294966272 }
 0x166   :  { %601 = vsyncpa [#allocation3], 1 }
 0x167   :  { %602 = vsyncpa [#allocation6], 1 }
 0x168   :  { %603 = vsyncpa [#allocation4], 1 }

</bundles_post_ra>
